<compile_context>
chip_gen: v7x
topology: tpu7x:2x2x1
jax: 0.10.0
libtpu: 0.0.40
codegen_flags: <defaults>
</compile_context>

<pallas_src>
import functools

import numpy as np

import jax
import jax.numpy as jnp
from jax import lax
from jax.experimental import pallas as pl
from jax.experimental.pallas import tpu as pltpu

ACT_DTYPE = jnp.bfloat16      # MXU operand dtype (set float32 for exact math)
LANES = 128                   # lane-padded channel width

# ------------------------------- geometry ---------------------------------- #
_K = 5                        # conv kernel size
_P1 = 14                      # pooled H/W after stage 1 (28/2)
_QROWS = _P1 * _P1            # 196 valid rows per pool quadrant (stage 1)
_QPAD = 208                   # quadrant rows padded to a multiple of 16
_S1ROWS = 4 * _QPAD           # 832 im2col rows per sample for conv1
_H1 = 14                      # stage-2 input spatial size
_HOW2 = (_H1 - _K + 1) * _H1  # 140 slack conv2 output rows (10 x row-pitch 14)
_HOW2PAD = 144                # padded to a multiple of 16
_S2ROWS = 32                  # stage-2 pooled rows (25 valid = 5x5), padded
_P2 = 5                       # pooled H/W after stage 2
_NCLS = 84


# ------------------------------ fused kernel ------------------------------- #

def _lenet_kernel(x1_ref, w1_ref, b1_ref, w2_ref, b2_ref, p2_ref,
                  w3_ref, b3_ref, wl_ref, bl_ref, o_ref, h1_ref, *, bt):
    """Whole LeNet forward for one batch tile of `bt` samples.

    x1_ref: (bt, 832, 128) bf16  conv1 im2col, quadrant-grouped, 75->128 lanes
    w1_ref: (128, 128)     bf16  conv1 weight (75 taps*cin -> 6 out, padded)
    w2/w3 : (25, 128, 128) bf16  per-tap weights (cin -> cout, padded)
    p2_ref: (32, 144)      bf16  stage-2 pool/selection matrix (0 / 0.25)
    b*    : (1, 128)       f32   biases
    wl_ref: (128, 128)     bf16  Linear(120->84) weight (transposed, padded)
    o_ref : (bt, 1, 128)   f32   per-sample logits (84 valid lanes)
    h1_ref: (208, 128)     bf16  VMEM scratch for the pooled stage-1 image
    """
    w1 = w1_ref[...]
    b1 = b1_ref[...]
    b2 = b2_ref[...]
    p2 = p2_ref[...]
    b3 = b3_ref[...]
    wl = wl_ref[...]
    bl = bl_ref[...]

    def per_sample(s, carry):
        # ---- stage 1: conv1 as one K=128 matmul + bias + tanh + quadrant pool
        x1s = x1_ref[s]                                           # (832, 128)
        y1 = jnp.dot(x1s, w1, preferred_element_type=jnp.float32)
        a1 = jnp.tanh(y1 + b1)                                    # f32
        h1 = 0.25 * (a1[0:_QPAD] + a1[_QPAD:2 * _QPAD]
                     + a1[2 * _QPAD:3 * _QPAD] + a1[3 * _QPAD:4 * _QPAD])
        h1_ref[...] = h1.astype(ACT_DTYPE)                        # (208, 128)

        # ---- stage 2: conv2 via 25 shifted slices, register accumulation
        acc2 = jnp.dot(h1_ref[pl.ds(0, _HOW2PAD), :], w2_ref[0],
                       preferred_element_type=jnp.float32)        # (144, 128)
        for t in range(1, _K * _K):
            i, j = divmod(t, _K)
            xs = h1_ref[pl.ds(i * _H1 + j, _HOW2PAD), :]
            acc2 = acc2 + jnp.dot(xs, w2_ref[t],
                                  preferred_element_type=jnp.float32)
        act2 = jnp.tanh(acc2 + b2)                                # (144, 128)
        # 2x2 avg pool + slack-column drop as one tiny matmul (lane-dense out).
        h2 = jnp.dot(p2, act2.astype(ACT_DTYPE),
                     preferred_element_type=jnp.float32)          # (32, 128)
        h2b = h2.astype(ACT_DTYPE)

        # ---- stage 3: conv3 (1x1 output) + tanh + Linear(120 -> 84)
        acc3 = jnp.dot(h2b[0:1, :], w3_ref[0],
                       preferred_element_type=jnp.float32)        # (1, 128)
        for t in range(1, _K * _K):
            acc3 = acc3 + jnp.dot(h2b[t:t + 1, :], w3_ref[t],
                                  preferred_element_type=jnp.float32)
        feat = jnp.tanh(acc3 + b3)                                # (1, 128)
        y = jnp.dot(feat.astype(ACT_DTYPE), wl,
                    preferred_element_type=jnp.float32) + bl      # (1, 128)
        o_ref[s] = y
        return carry

    lax.fori_loop(0, bt, per_sample, 0)


# ----------------------------- parameter prep ------------------------------ #

def init_params(key):
    """PyTorch-style uniform(-1/sqrt(fan_in), 1/sqrt(fan_in)) init, torch layout."""
    ks = jax.random.split(key, 8)

    def uni(k, shape, fan_in):
        bound = 1.0 / jnp.sqrt(jnp.float32(fan_in))
        return jax.random.uniform(k, shape, jnp.float32, -bound, bound)

    return {
        "w1": uni(ks[0], (6, 3, 5, 5), 3 * 25),     "b1": uni(ks[1], (6,), 3 * 25),
        "w2": uni(ks[2], (16, 6, 5, 5), 6 * 25),    "b2": uni(ks[3], (16,), 6 * 25),
        "w3": uni(ks[4], (120, 16, 5, 5), 16 * 25), "b3": uni(ks[5], (120,), 16 * 25),
        "wl": uni(ks[6], (84, 120), 120),           "bl": uni(ks[7], (84,), 120),
    }


def _pool_matrix2():
    """(32, 144) 0/0.25 matrix: pooled row a*5+c averages the 2x2 window of the
    slack-layout conv2 output (row pitch 14); pad rows/cols are zero."""
    pm = np.zeros((_S2ROWS, _HOW2PAD), np.float32)
    for a in range(_P2):
        for c in range(_P2):
            row = a * _P2 + c
            for dh in range(2):
                for dw in range(2):
                    pm[row, (2 * a + dh) * _H1 + (2 * c + dw)] = 0.25
    return pm


def prepare_params(raw, dtype=ACT_DTYPE):
    """Torch-layout params -> kernel layout (lane-padded to 128, bf16 operands)."""
    def conv1_w(w):                      # (6,3,5,5) -> (75->128, 6->128)
        o, c, k, _ = w.shape
        wt = jnp.transpose(w, (2, 3, 1, 0)).reshape(k * k * c, o)
        return jnp.pad(wt, ((0, LANES - k * k * c), (0, LANES - o))).astype(dtype)

    def conv_w_taps(w):                  # (O,C,5,5) -> (25, C->128, O->128)
        o, c, k, _ = w.shape
        wt = jnp.transpose(w, (2, 3, 1, 0)).reshape(k * k, c, o)
        return jnp.pad(wt, ((0, 0), (0, LANES - c), (0, LANES - o))).astype(dtype)

    def bias(b):
        return jnp.pad(b.reshape(1, -1),
                       ((0, 0), (0, LANES - b.shape[0]))).astype(jnp.float32)

    wl = jnp.pad(raw["wl"].T, ((0, LANES - 120), (0, LANES - 84))).astype(dtype)
    return {
        "w1": conv1_w(raw["w1"]),     "b1": bias(raw["b1"]),
        "w2": conv_w_taps(raw["w2"]), "b2": bias(raw["b2"]),
        "p2": jnp.asarray(_pool_matrix2(), dtype),
        "w3": conv_w_taps(raw["w3"]), "b3": bias(raw["b3"]),
        "wl": wl,                     "bl": bias(raw["bl"]),
    }


def _conv1_im2col(x, dtype=ACT_DTYPE):
    """x: (B,3,32,32) f32 -> (B, 832, 128) quadrant-grouped conv1 im2col, bf16."""
    b = x.shape[0]
    xt = jnp.transpose(x, (0, 2, 3, 1))                        # (B,32,32,3)
    cols = []
    for kh in range(_K):
        for kw in range(_K):
            cols.append(xt[:, kh:kh + 2 * _P1, kw:kw + 2 * _P1, :])   # (B,28,28,3)
    pat = jnp.stack(cols, axis=3)                              # (B,28,28,25,3)
    pat = pat.reshape(b, 2 * _P1, 2 * _P1, _K * _K * 3)        # f = kh*15+kw*3+cin
    pat = pat.reshape(b, _P1, 2, _P1, 2, _K * _K * 3)          # oh=(a,dh), ow=(c,dw)
    pat = jnp.transpose(pat, (0, 2, 4, 1, 3, 5))               # (B,dh,dw,a,c,75)
    pat = pat.reshape(b, 4, _QROWS, _K * _K * 3)
    pat = jnp.pad(pat, ((0, 0), (0, 0), (0, _QPAD - _QROWS),
                        (0, LANES - _K * _K * 3)))
    return pat.reshape(b, _S1ROWS, LANES).astype(dtype)


def _batch_tile(b):
    """Largest convenient batch tile that still leaves >=2 grid steps (v7x)."""
    if b >= 16:
        return 8
    for bt in (4, 2, 1):
        if b % bt == 0 and b // bt >= 2:
            return bt
    return 1


# ------------------------------- forward pass ------------------------------ #

@jax.jit
def lenet_forward(x, params):
    """x: (B, 3, 32, 32) f32 NCHW -> (B, 84) f32 (matches torch LeNet.forward)."""
    b = x.shape[0]
    bt = _batch_tile(b)
    b_pad = ((b + bt - 1) // bt) * bt
    if b_pad != b:
        x = jnp.pad(x, ((0, b_pad - b), (0, 0), (0, 0), (0, 0)))
    x1 = _conv1_im2col(x)                                      # (b_pad, 832, 128)
    n_tiles = b_pad // bt

    kernel = functools.partial(_lenet_kernel, bt=bt)
    grid_spec = pltpu.PrefetchScalarGridSpec(
        num_scalar_prefetch=0,
        grid=(n_tiles,),
        in_specs=[
            pl.BlockSpec((bt, _S1ROWS, LANES), lambda i: (i, 0, 0)),   # im2col
            pl.BlockSpec((LANES, LANES), lambda i: (0, 0)),            # w1
            pl.BlockSpec((1, LANES), lambda i: (0, 0)),                # b1
            pl.BlockSpec((_K * _K, LANES, LANES), lambda i: (0, 0, 0)),  # w2
            pl.BlockSpec((1, LANES), lambda i: (0, 0)),                # b2
            pl.BlockSpec((_S2ROWS, _HOW2PAD), lambda i: (0, 0)),       # p2
            pl.BlockSpec((_K * _K, LANES, LANES), lambda i: (0, 0, 0)),  # w3
            pl.BlockSpec((1, LANES), lambda i: (0, 0)),                # b3
            pl.BlockSpec((LANES, LANES), lambda i: (0, 0)),            # wl
            pl.BlockSpec((1, LANES), lambda i: (0, 0)),                # bl
        ],
        out_specs=pl.BlockSpec((bt, 1, LANES), lambda i: (i, 0, 0)),
        scratch_shapes=[pltpu.VMEM((_QPAD, LANES), ACT_DTYPE)],
    )
    out = pl.pallas_call(
        kernel,
        grid_spec=grid_spec,
        out_shape=jax.ShapeDtypeStruct((b_pad, 1, LANES), jnp.float32),
        compiler_params=pltpu.CompilerParams(
            dimension_semantics=("parallel",),
            vmem_limit_bytes=32 * 1024 * 1024,
        ),
    )(x1, params["w1"], params["b1"], params["w2"], params["b2"], params["p2"],
      params["w3"], params["b3"], params["wl"], params["bl"])
    return out.reshape(b_pad, LANES)[:b, :_NCLS]


# ---------------------------- pure-JAX reference --------------------------- #

def lenet_reference(x, raw):
    def conv(h, w, b):
        y = lax.conv_general_dilated(h, w, (1, 1), "VALID",
                                     dimension_numbers=("NCHW", "OIHW", "NCHW"))
        return y + b[None, :, None, None]

    def pool(h):
        n, c, hh, ww = h.shape
        return h.reshape(n, c, hh // 2, 2, ww // 2, 2).mean(axis=(3, 5))

    h = pool(jnp.tanh(conv(x, raw["w1"], raw["b1"])))
    h = pool(jnp.tanh(conv(h, raw["w2"], raw["b2"])))
    h = jnp.tanh(conv(h, raw["w3"], raw["b3"])).reshape(x.shape[0], -1)
    return h @ raw["wl"].T + raw["bl"]


if __name__ == "__main__":
    key = jax.random.PRNGKey(0)
    kx, kp = jax.random.split(key)

    # LeNet's architecture (three 5x5 valid convs + two 2x2 pools -> 120 feats)
    # requires 32x32 spatial input; keep batch small.
    x = jax.random.normal(kx, (2, 3, 32, 32), dtype=jnp.float32)
    raw = init_params(kp)
    params = prepare_params(raw)

    out = jax.block_until_ready(lenet_forward(x, params))
    assert out.shape == (2, _NCLS), out.shape

    ref = jax.block_until_ready(lenet_reference(x, raw))
    err = float(jnp.max(jnp.abs(out - ref)))
    assert err < 0.08, f"max abs err vs f32 reference: {err}"
    print("KERNEL_OK")
</pallas_src>

<mosaic_0001>
module attributes {stable_mosaic.version = 11 : i64} {
  func.func @_lenet_kernel(%arg0: i32, %arg1: memref<1x832x128xbf16, #tpu.memory_space<vmem>>, %arg2: memref<128x128xbf16, #tpu.memory_space<vmem>>, %arg3: memref<1x128xf32, #tpu.memory_space<vmem>>, %arg4: memref<25x128x128xbf16, #tpu.memory_space<vmem>>, %arg5: memref<1x128xf32, #tpu.memory_space<vmem>>, %arg6: memref<32x144xbf16, #tpu.memory_space<vmem>>, %arg7: memref<25x128x128xbf16, #tpu.memory_space<vmem>>, %arg8: memref<1x128xf32, #tpu.memory_space<vmem>>, %arg9: memref<128x128xbf16, #tpu.memory_space<vmem>>, %arg10: memref<1x128xf32, #tpu.memory_space<vmem>>, %arg11: memref<1x1x128xf32, #tpu.memory_space<vmem>>, %arg12: memref<208x128xbf16, #tpu.memory_space<vmem>>) attributes {dimension_semantics = [#tpu.dimension_semantics<parallel>], iteration_bounds = array<i64: 2>, scalar_prefetch = 0 : i64, scratch_operands = 1 : i64, tpu.core_type = #tpu.core_type<tc>, window_params = [{transform_indices = @transform_0, window_bounds = array<i64: 1, 832, 128>}, {pipeline_mode = #tpu.pipeline_mode<synchronous>, transform_indices = @transform_1, window_bounds = array<i64: 128, 128>}, {pipeline_mode = #tpu.pipeline_mode<synchronous>, transform_indices = @transform_2, window_bounds = array<i64: 1, 128>}, {pipeline_mode = #tpu.pipeline_mode<synchronous>, transform_indices = @transform_3, window_bounds = array<i64: 25, 128, 128>}, {pipeline_mode = #tpu.pipeline_mode<synchronous>, transform_indices = @transform_4, window_bounds = array<i64: 1, 128>}, {pipeline_mode = #tpu.pipeline_mode<synchronous>, transform_indices = @transform_5, window_bounds = array<i64: 32, 144>}, {pipeline_mode = #tpu.pipeline_mode<synchronous>, transform_indices = @transform_6, window_bounds = array<i64: 25, 128, 128>}, {pipeline_mode = #tpu.pipeline_mode<synchronous>, transform_indices = @transform_7, window_bounds = array<i64: 1, 128>}, {pipeline_mode = #tpu.pipeline_mode<synchronous>, transform_indices = @transform_8, window_bounds = array<i64: 128, 128>}, {pipeline_mode = #tpu.pipeline_mode<synchronous>, transform_indices = @transform_9, window_bounds = array<i64: 1, 128>}, {transform_indices = @transform_10, window_bounds = array<i64: 1, 1, 128>}]} {
    %c0 = arith.constant 0 : index
    %c0_0 = arith.constant 0 : index
    %0 = vector.load %arg2[%c0, %c0_0] : memref<128x128xbf16, #tpu.memory_space<vmem>>, vector<128x128xbf16>
    %c0_1 = arith.constant 0 : index
    %c0_2 = arith.constant 0 : index
    %1 = vector.load %arg3[%c0_1, %c0_2] : memref<1x128xf32, #tpu.memory_space<vmem>>, vector<1x128xf32>
    %c0_3 = arith.constant 0 : index
    %c0_4 = arith.constant 0 : index
    %2 = vector.load %arg5[%c0_3, %c0_4] : memref<1x128xf32, #tpu.memory_space<vmem>>, vector<1x128xf32>
    %c0_5 = arith.constant 0 : index
    %c0_6 = arith.constant 0 : index
    %3 = vector.load %arg6[%c0_5, %c0_6] : memref<32x144xbf16, #tpu.memory_space<vmem>>, vector<32x144xbf16>
    %c0_7 = arith.constant 0 : index
    %c0_8 = arith.constant 0 : index
    %4 = vector.load %arg8[%c0_7, %c0_8] : memref<1x128xf32, #tpu.memory_space<vmem>>, vector<1x128xf32>
    %c0_9 = arith.constant 0 : index
    %c0_10 = arith.constant 0 : index
    %5 = vector.load %arg9[%c0_9, %c0_10] : memref<128x128xbf16, #tpu.memory_space<vmem>>, vector<128x128xbf16>
    %c0_11 = arith.constant 0 : index
    %c0_12 = arith.constant 0 : index
    %6 = vector.load %arg10[%c0_11, %c0_12] : memref<1x128xf32, #tpu.memory_space<vmem>>, vector<1x128xf32>
    %c0_i32 = arith.constant 0 : i32
    %7 = arith.index_cast %c0_i32 : i32 to index
    %c0_13 = arith.constant 0 : index
    %c0_14 = arith.constant 0 : index
    %8 = vector.load %arg1[%7, %c0_13, %c0_14] : memref<1x832x128xbf16, #tpu.memory_space<vmem>>, vector<1x832x128xbf16>
    %9 = vector.shape_cast %8 : vector<1x832x128xbf16> to vector<832x128xbf16>
    %cst = arith.constant dense<0.000000e+00> : vector<832x128xf32>
    %10 = tpu.matmul %9, %0, %cst {dimension_numbers = #tpu.dot_dimension_numbers<[1], [0], [0], [1], [0, 0, 1, 1], [], []>} : vector<832x128xbf16>, vector<128x128xbf16>, vector<832x128xf32> -> vector<832x128xf32>
    %11 = vector.broadcast %1 : vector<1x128xf32> to vector<832x128xf32>
    %12 = arith.addf %10, %11 : vector<832x128xf32>
    %13 = math.tanh %12 : vector<832x128xf32>
    %14 = vector.extract_strided_slice %13 {offsets = [0, 0], sizes = [208, 128], strides = [1, 1]} : vector<832x128xf32> to vector<208x128xf32>
    %15 = vector.extract_strided_slice %13 {offsets = [208, 0], sizes = [208, 128], strides = [1, 1]} : vector<832x128xf32> to vector<208x128xf32>
    %16 = arith.addf %14, %15 : vector<208x128xf32>
    %17 = vector.extract_strided_slice %13 {offsets = [416, 0], sizes = [208, 128], strides = [1, 1]} : vector<832x128xf32> to vector<208x128xf32>
    %18 = arith.addf %16, %17 : vector<208x128xf32>
    %19 = vector.extract_strided_slice %13 {offsets = [624, 0], sizes = [208, 128], strides = [1, 1]} : vector<832x128xf32> to vector<208x128xf32>
    %20 = arith.addf %18, %19 : vector<208x128xf32>
    %cst_15 = arith.constant 2.500000e-01 : f32
    %21 = vector.broadcast %cst_15 : f32 to vector<208x128xf32>
    %22 = arith.mulf %21, %20 : vector<208x128xf32>
    %23 = arith.truncf %22 : vector<208x128xf32> to vector<208x128xbf16>
    %c0_16 = arith.constant 0 : index
    %c0_17 = arith.constant 0 : index
    %24 = vector.load %arg12[%c0_16, %c0_17] : memref<208x128xbf16, #tpu.memory_space<vmem>>, vector<208x128xbf16>
    tpu.vector_store %arg12[%c0_16, %c0_17], %23 {strides = array<i32>} : memref<208x128xbf16, #tpu.memory_space<vmem>>, vector<208x128xbf16>,
    %c0_18 = arith.constant 0 : index
    %c0_19 = arith.constant 0 : index
    %25 = vector.load %arg12[%c0_18, %c0_19] : memref<208x128xbf16, #tpu.memory_space<vmem>>, vector<144x128xbf16>
    %c0_20 = arith.constant 0 : index
    %c0_21 = arith.constant 0 : index
    %c0_22 = arith.constant 0 : index
    %26 = vector.load %arg4[%c0_20, %c0_21, %c0_22] : memref<25x128x128xbf16, #tpu.memory_space<vmem>>, vector<1x128x128xbf16>
    %27 = vector.shape_cast %26 : vector<1x128x128xbf16> to vector<128x128xbf16>
    %cst_23 = arith.constant dense<0.000000e+00> : vector<144x128xf32>
    %28 = tpu.matmul %25, %27, %cst_23 {dimension_numbers = #tpu.dot_dimension_numbers<[1], [0], [0], [1], [0, 0, 1, 1], [], []>} : vector<144x128xbf16>, vector<128x128xbf16>, vector<144x128xf32> -> vector<144x128xf32>
    %c1 = arith.constant 1 : index
    %c0_24 = arith.constant 0 : index
    %29 = vector.load %arg12[%c1, %c0_24] : memref<208x128xbf16, #tpu.memory_space<vmem>>, vector<144x128xbf16>
    %c1_25 = arith.constant 1 : index
    %c0_26 = arith.constant 0 : index
    %c0_27 = arith.constant 0 : index
    %30 = vector.load %arg4[%c1_25, %c0_26, %c0_27] : memref<25x128x128xbf16, #tpu.memory_space<vmem>>, vector<1x128x128xbf16>
    %31 = vector.shape_cast %30 : vector<1x128x128xbf16> to vector<128x128xbf16>
    %cst_28 = arith.constant dense<0.000000e+00> : vector<144x128xf32>
    %32 = tpu.matmul %29, %31, %cst_28 {dimension_numbers = #tpu.dot_dimension_numbers<[1], [0], [0], [1], [0, 0, 1, 1], [], []>} : vector<144x128xbf16>, vector<128x128xbf16>, vector<144x128xf32> -> vector<144x128xf32>
    %33 = arith.addf %28, %32 : vector<144x128xf32>
    %c2 = arith.constant 2 : index
    %c0_29 = arith.constant 0 : index
    %34 = vector.load %arg12[%c2, %c0_29] : memref<208x128xbf16, #tpu.memory_space<vmem>>, vector<144x128xbf16>
    %c2_30 = arith.constant 2 : index
    %c0_31 = arith.constant 0 : index
    %c0_32 = arith.constant 0 : index
    %35 = vector.load %arg4[%c2_30, %c0_31, %c0_32] : memref<25x128x128xbf16, #tpu.memory_space<vmem>>, vector<1x128x128xbf16>
    %36 = vector.shape_cast %35 : vector<1x128x128xbf16> to vector<128x128xbf16>
    %cst_33 = arith.constant dense<0.000000e+00> : vector<144x128xf32>
    %37 = tpu.matmul %34, %36, %cst_33 {dimension_numbers = #tpu.dot_dimension_numbers<[1], [0], [0], [1], [0, 0, 1, 1], [], []>} : vector<144x128xbf16>, vector<128x128xbf16>, vector<144x128xf32> -> vector<144x128xf32>
    %38 = arith.addf %33, %37 : vector<144x128xf32>
    %c3 = arith.constant 3 : index
    %c0_34 = arith.constant 0 : index
    %39 = vector.load %arg12[%c3, %c0_34] : memref<208x128xbf16, #tpu.memory_space<vmem>>, vector<144x128xbf16>
    %c3_35 = arith.constant 3 : index
    %c0_36 = arith.constant 0 : index
    %c0_37 = arith.constant 0 : index
    %40 = vector.load %arg4[%c3_35, %c0_36, %c0_37] : memref<25x128x128xbf16, #tpu.memory_space<vmem>>, vector<1x128x128xbf16>
    %41 = vector.shape_cast %40 : vector<1x128x128xbf16> to vector<128x128xbf16>
    %cst_38 = arith.constant dense<0.000000e+00> : vector<144x128xf32>
    %42 = tpu.matmul %39, %41, %cst_38 {dimension_numbers = #tpu.dot_dimension_numbers<[1], [0], [0], [1], [0, 0, 1, 1], [], []>} : vector<144x128xbf16>, vector<128x128xbf16>, vector<144x128xf32> -> vector<144x128xf32>
    %43 = arith.addf %38, %42 : vector<144x128xf32>
    %c4 = arith.constant 4 : index
    %c0_39 = arith.constant 0 : index
    %44 = vector.load %arg12[%c4, %c0_39] : memref<208x128xbf16, #tpu.memory_space<vmem>>, vector<144x128xbf16>
    %c4_40 = arith.constant 4 : index
    %c0_41 = arith.constant 0 : index
    %c0_42 = arith.constant 0 : index
    %45 = vector.load %arg4[%c4_40, %c0_41, %c0_42] : memref<25x128x128xbf16, #tpu.memory_space<vmem>>, vector<1x128x128xbf16>
    %46 = vector.shape_cast %45 : vector<1x128x128xbf16> to vector<128x128xbf16>
    %cst_43 = arith.constant dense<0.000000e+00> : vector<144x128xf32>
    %47 = tpu.matmul %44, %46, %cst_43 {dimension_numbers = #tpu.dot_dimension_numbers<[1], [0], [0], [1], [0, 0, 1, 1], [], []>} : vector<144x128xbf16>, vector<128x128xbf16>, vector<144x128xf32> -> vector<144x128xf32>
    %48 = arith.addf %43, %47 : vector<144x128xf32>
    %c14 = arith.constant 14 : index
    %c0_44 = arith.constant 0 : index
    %49 = vector.load %arg12[%c14, %c0_44] : memref<208x128xbf16, #tpu.memory_space<vmem>>, vector<144x128xbf16>
    %c5 = arith.constant 5 : index
    %c0_45 = arith.constant 0 : index
    %c0_46 = arith.constant 0 : index
    %50 = vector.load %arg4[%c5, %c0_45, %c0_46] : memref<25x128x128xbf16, #tpu.memory_space<vmem>>, vector<1x128x128xbf16>
    %51 = vector.shape_cast %50 : vector<1x128x128xbf16> to vector<128x128xbf16>
    %cst_47 = arith.constant dense<0.000000e+00> : vector<144x128xf32>
    %52 = tpu.matmul %49, %51, %cst_47 {dimension_numbers = #tpu.dot_dimension_numbers<[1], [0], [0], [1], [0, 0, 1, 1], [], []>} : vector<144x128xbf16>, vector<128x128xbf16>, vector<144x128xf32> -> vector<144x128xf32>
    %53 = arith.addf %48, %52 : vector<144x128xf32>
    %c15 = arith.constant 15 : index
    %c0_48 = arith.constant 0 : index
    %54 = vector.load %arg12[%c15, %c0_48] : memref<208x128xbf16, #tpu.memory_space<vmem>>, vector<144x128xbf16>
    %c6 = arith.constant 6 : index
    %c0_49 = arith.constant 0 : index
    %c0_50 = arith.constant 0 : index
    %55 = vector.load %arg4[%c6, %c0_49, %c0_50] : memref<25x128x128xbf16, #tpu.memory_space<vmem>>, vector<1x128x128xbf16>
    %56 = vector.shape_cast %55 : vector<1x128x128xbf16> to vector<128x128xbf16>
    %cst_51 = arith.constant dense<0.000000e+00> : vector<144x128xf32>
    %57 = tpu.matmul %54, %56, %cst_51 {dimension_numbers = #tpu.dot_dimension_numbers<[1], [0], [0], [1], [0, 0, 1, 1], [], []>} : vector<144x128xbf16>, vector<128x128xbf16>, vector<144x128xf32> -> vector<144x128xf32>
    %58 = arith.addf %53, %57 : vector<144x128xf32>
    %c16 = arith.constant 16 : index
    %c0_52 = arith.constant 0 : index
    %59 = vector.load %arg12[%c16, %c0_52] : memref<208x128xbf16, #tpu.memory_space<vmem>>, vector<144x128xbf16>
    %c7 = arith.constant 7 : index
    %c0_53 = arith.constant 0 : index
    %c0_54 = arith.constant 0 : index
    %60 = vector.load %arg4[%c7, %c0_53, %c0_54] : memref<25x128x128xbf16, #tpu.memory_space<vmem>>, vector<1x128x128xbf16>
    %61 = vector.shape_cast %60 : vector<1x128x128xbf16> to vector<128x128xbf16>
    %cst_55 = arith.constant dense<0.000000e+00> : vector<144x128xf32>
    %62 = tpu.matmul %59, %61, %cst_55 {dimension_numbers = #tpu.dot_dimension_numbers<[1], [0], [0], [1], [0, 0, 1, 1], [], []>} : vector<144x128xbf16>, vector<128x128xbf16>, vector<144x128xf32> -> vector<144x128xf32>
    %63 = arith.addf %58, %62 : vector<144x128xf32>
    %c17 = arith.constant 17 : index
    %c0_56 = arith.constant 0 : index
    %64 = vector.load %arg12[%c17, %c0_56] : memref<208x128xbf16, #tpu.memory_space<vmem>>, vector<144x128xbf16>
    %c8 = arith.constant 8 : index
    %c0_57 = arith.constant 0 : index
    %c0_58 = arith.constant 0 : index
    %65 = vector.load %arg4[%c8, %c0_57, %c0_58] : memref<25x128x128xbf16, #tpu.memory_space<vmem>>, vector<1x128x128xbf16>
    %66 = vector.shape_cast %65 : vector<1x128x128xbf16> to vector<128x128xbf16>
    %cst_59 = arith.constant dense<0.000000e+00> : vector<144x128xf32>
    %67 = tpu.matmul %64, %66, %cst_59 {dimension_numbers = #tpu.dot_dimension_numbers<[1], [0], [0], [1], [0, 0, 1, 1], [], []>} : vector<144x128xbf16>, vector<128x128xbf16>, vector<144x128xf32> -> vector<144x128xf32>
    %68 = arith.addf %63, %67 : vector<144x128xf32>
    %c18 = arith.constant 18 : index
    %c0_60 = arith.constant 0 : index
    %69 = vector.load %arg12[%c18, %c0_60] : memref<208x128xbf16, #tpu.memory_space<vmem>>, vector<144x128xbf16>
    %c9 = arith.constant 9 : index
    %c0_61 = arith.constant 0 : index
    %c0_62 = arith.constant 0 : index
    %70 = vector.load %arg4[%c9, %c0_61, %c0_62] : memref<25x128x128xbf16, #tpu.memory_space<vmem>>, vector<1x128x128xbf16>
    %71 = vector.shape_cast %70 : vector<1x128x128xbf16> to vector<128x128xbf16>
    %cst_63 = arith.constant dense<0.000000e+00> : vector<144x128xf32>
    %72 = tpu.matmul %69, %71, %cst_63 {dimension_numbers = #tpu.dot_dimension_numbers<[1], [0], [0], [1], [0, 0, 1, 1], [], []>} : vector<144x128xbf16>, vector<128x128xbf16>, vector<144x128xf32> -> vector<144x128xf32>
    %73 = arith.addf %68, %72 : vector<144x128xf32>
    %c28 = arith.constant 28 : index
    %c0_64 = arith.constant 0 : index
    %74 = vector.load %arg12[%c28, %c0_64] : memref<208x128xbf16, #tpu.memory_space<vmem>>, vector<144x128xbf16>
    %c10 = arith.constant 10 : index
    %c0_65 = arith.constant 0 : index
    %c0_66 = arith.constant 0 : index
    %75 = vector.load %arg4[%c10, %c0_65, %c0_66] : memref<25x128x128xbf16, #tpu.memory_space<vmem>>, vector<1x128x128xbf16>
    %76 = vector.shape_cast %75 : vector<1x128x128xbf16> to vector<128x128xbf16>
    %cst_67 = arith.constant dense<0.000000e+00> : vector<144x128xf32>
    %77 = tpu.matmul %74, %76, %cst_67 {dimension_numbers = #tpu.dot_dimension_numbers<[1], [0], [0], [1], [0, 0, 1, 1], [], []>} : vector<144x128xbf16>, vector<128x128xbf16>, vector<144x128xf32> -> vector<144x128xf32>
    %78 = arith.addf %73, %77 : vector<144x128xf32>
    %c29 = arith.constant 29 : index
    %c0_68 = arith.constant 0 : index
    %79 = vector.load %arg12[%c29, %c0_68] : memref<208x128xbf16, #tpu.memory_space<vmem>>, vector<144x128xbf16>
    %c11 = arith.constant 11 : index
    %c0_69 = arith.constant 0 : index
    %c0_70 = arith.constant 0 : index
    %80 = vector.load %arg4[%c11, %c0_69, %c0_70] : memref<25x128x128xbf16, #tpu.memory_space<vmem>>, vector<1x128x128xbf16>
    %81 = vector.shape_cast %80 : vector<1x128x128xbf16> to vector<128x128xbf16>
    %cst_71 = arith.constant dense<0.000000e+00> : vector<144x128xf32>
    %82 = tpu.matmul %79, %81, %cst_71 {dimension_numbers = #tpu.dot_dimension_numbers<[1], [0], [0], [1], [0, 0, 1, 1], [], []>} : vector<144x128xbf16>, vector<128x128xbf16>, vector<144x128xf32> -> vector<144x128xf32>
    %83 = arith.addf %78, %82 : vector<144x128xf32>
    %c30 = arith.constant 30 : index
    %c0_72 = arith.constant 0 : index
    %84 = vector.load %arg12[%c30, %c0_72] : memref<208x128xbf16, #tpu.memory_space<vmem>>, vector<144x128xbf16>
    %c12 = arith.constant 12 : index
    %c0_73 = arith.constant 0 : index
    %c0_74 = arith.constant 0 : index
    %85 = vector.load %arg4[%c12, %c0_73, %c0_74] : memref<25x128x128xbf16, #tpu.memory_space<vmem>>, vector<1x128x128xbf16>
    %86 = vector.shape_cast %85 : vector<1x128x128xbf16> to vector<128x128xbf16>
    %cst_75 = arith.constant dense<0.000000e+00> : vector<144x128xf32>
    %87 = tpu.matmul %84, %86, %cst_75 {dimension_numbers = #tpu.dot_dimension_numbers<[1], [0], [0], [1], [0, 0, 1, 1], [], []>} : vector<144x128xbf16>, vector<128x128xbf16>, vector<144x128xf32> -> vector<144x128xf32>
    %88 = arith.addf %83, %87 : vector<144x128xf32>
    %c31 = arith.constant 31 : index
    %c0_76 = arith.constant 0 : index
    %89 = vector.load %arg12[%c31, %c0_76] : memref<208x128xbf16, #tpu.memory_space<vmem>>, vector<144x128xbf16>
    %c13 = arith.constant 13 : index
    %c0_77 = arith.constant 0 : index
    %c0_78 = arith.constant 0 : index
    %90 = vector.load %arg4[%c13, %c0_77, %c0_78] : memref<25x128x128xbf16, #tpu.memory_space<vmem>>, vector<1x128x128xbf16>
    %91 = vector.shape_cast %90 : vector<1x128x128xbf16> to vector<128x128xbf16>
    %cst_79 = arith.constant dense<0.000000e+00> : vector<144x128xf32>
    %92 = tpu.matmul %89, %91, %cst_79 {dimension_numbers = #tpu.dot_dimension_numbers<[1], [0], [0], [1], [0, 0, 1, 1], [], []>} : vector<144x128xbf16>, vector<128x128xbf16>, vector<144x128xf32> -> vector<144x128xf32>
    %93 = arith.addf %88, %92 : vector<144x128xf32>
    %c32 = arith.constant 32 : index
    %c0_80 = arith.constant 0 : index
    %94 = vector.load %arg12[%c32, %c0_80] : memref<208x128xbf16, #tpu.memory_space<vmem>>, vector<144x128xbf16>
    %c14_81 = arith.constant 14 : index
    %c0_82 = arith.constant 0 : index
    %c0_83 = arith.constant 0 : index
    %95 = vector.load %arg4[%c14_81, %c0_82, %c0_83] : memref<25x128x128xbf16, #tpu.memory_space<vmem>>, vector<1x128x128xbf16>
    %96 = vector.shape_cast %95 : vector<1x128x128xbf16> to vector<128x128xbf16>
    %cst_84 = arith.constant dense<0.000000e+00> : vector<144x128xf32>
    %97 = tpu.matmul %94, %96, %cst_84 {dimension_numbers = #tpu.dot_dimension_numbers<[1], [0], [0], [1], [0, 0, 1, 1], [], []>} : vector<144x128xbf16>, vector<128x128xbf16>, vector<144x128xf32> -> vector<144x128xf32>
    %98 = arith.addf %93, %97 : vector<144x128xf32>
    %c42 = arith.constant 42 : index
    %c0_85 = arith.constant 0 : index
    %99 = vector.load %arg12[%c42, %c0_85] : memref<208x128xbf16, #tpu.memory_space<vmem>>, vector<144x128xbf16>
    %c15_86 = arith.constant 15 : index
    %c0_87 = arith.constant 0 : index
    %c0_88 = arith.constant 0 : index
    %100 = vector.load %arg4[%c15_86, %c0_87, %c0_88] : memref<25x128x128xbf16, #tpu.memory_space<vmem>>, vector<1x128x128xbf16>
    %101 = vector.shape_cast %100 : vector<1x128x128xbf16> to vector<128x128xbf16>
    %cst_89 = arith.constant dense<0.000000e+00> : vector<144x128xf32>
    %102 = tpu.matmul %99, %101, %cst_89 {dimension_numbers = #tpu.dot_dimension_numbers<[1], [0], [0], [1], [0, 0, 1, 1], [], []>} : vector<144x128xbf16>, vector<128x128xbf16>, vector<144x128xf32> -> vector<144x128xf32>
    %103 = arith.addf %98, %102 : vector<144x128xf32>
    %c43 = arith.constant 43 : index
    %c0_90 = arith.constant 0 : index
    %104 = vector.load %arg12[%c43, %c0_90] : memref<208x128xbf16, #tpu.memory_space<vmem>>, vector<144x128xbf16>
    %c16_91 = arith.constant 16 : index
    %c0_92 = arith.constant 0 : index
    %c0_93 = arith.constant 0 : index
    %105 = vector.load %arg4[%c16_91, %c0_92, %c0_93] : memref<25x128x128xbf16, #tpu.memory_space<vmem>>, vector<1x128x128xbf16>
    %106 = vector.shape_cast %105 : vector<1x128x128xbf16> to vector<128x128xbf16>
    %cst_94 = arith.constant dense<0.000000e+00> : vector<144x128xf32>
    %107 = tpu.matmul %104, %106, %cst_94 {dimension_numbers = #tpu.dot_dimension_numbers<[1], [0], [0], [1], [0, 0, 1, 1], [], []>} : vector<144x128xbf16>, vector<128x128xbf16>, vector<144x128xf32> -> vector<144x128xf32>
    %108 = arith.addf %103, %107 : vector<144x128xf32>
    %c44 = arith.constant 44 : index
    %c0_95 = arith.constant 0 : index
    %109 = vector.load %arg12[%c44, %c0_95] : memref<208x128xbf16, #tpu.memory_space<vmem>>, vector<144x128xbf16>
    %c17_96 = arith.constant 17 : index
    %c0_97 = arith.constant 0 : index
    %c0_98 = arith.constant 0 : index
    %110 = vector.load %arg4[%c17_96, %c0_97, %c0_98] : memref<25x128x128xbf16, #tpu.memory_space<vmem>>, vector<1x128x128xbf16>
    %111 = vector.shape_cast %110 : vector<1x128x128xbf16> to vector<128x128xbf16>
    %cst_99 = arith.constant dense<0.000000e+00> : vector<144x128xf32>
    %112 = tpu.matmul %109, %111, %cst_99 {dimension_numbers = #tpu.dot_dimension_numbers<[1], [0], [0], [1], [0, 0, 1, 1], [], []>} : vector<144x128xbf16>, vector<128x128xbf16>, vector<144x128xf32> -> vector<144x128xf32>
    %113 = arith.addf %108, %112 : vector<144x128xf32>
    %c45 = arith.constant 45 : index
    %c0_100 = arith.constant 0 : index
    %114 = vector.load %arg12[%c45, %c0_100] : memref<208x128xbf16, #tpu.memory_space<vmem>>, vector<144x128xbf16>
    %c18_101 = arith.constant 18 : index
    %c0_102 = arith.constant 0 : index
    %c0_103 = arith.constant 0 : index
    %115 = vector.load %arg4[%c18_101, %c0_102, %c0_103] : memref<25x128x128xbf16, #tpu.memory_space<vmem>>, vector<1x128x128xbf16>
    %116 = vector.shape_cast %115 : vector<1x128x128xbf16> to vector<128x128xbf16>
    %cst_104 = arith.constant dense<0.000000e+00> : vector<144x128xf32>
    %117 = tpu.matmul %114, %116, %cst_104 {dimension_numbers = #tpu.dot_dimension_numbers<[1], [0], [0], [1], [0, 0, 1, 1], [], []>} : vector<144x128xbf16>, vector<128x128xbf16>, vector<144x128xf32> -> vector<144x128xf32>
    %118 = arith.addf %113, %117 : vector<144x128xf32>
    %c46 = arith.constant 46 : index
    %c0_105 = arith.constant 0 : index
    %119 = vector.load %arg12[%c46, %c0_105] : memref<208x128xbf16, #tpu.memory_space<vmem>>, vector<144x128xbf16>
    %c19 = arith.constant 19 : index
    %c0_106 = arith.constant 0 : index
    %c0_107 = arith.constant 0 : index
    %120 = vector.load %arg4[%c19, %c0_106, %c0_107] : memref<25x128x128xbf16, #tpu.memory_space<vmem>>, vector<1x128x128xbf16>
    %121 = vector.shape_cast %120 : vector<1x128x128xbf16> to vector<128x128xbf16>
    %cst_108 = arith.constant dense<0.000000e+00> : vector<144x128xf32>
    %122 = tpu.matmul %119, %121, %cst_108 {dimension_numbers = #tpu.dot_dimension_numbers<[1], [0], [0], [1], [0, 0, 1, 1], [], []>} : vector<144x128xbf16>, vector<128x128xbf16>, vector<144x128xf32> -> vector<144x128xf32>
    %123 = arith.addf %118, %122 : vector<144x128xf32>
    %c56 = arith.constant 56 : index
    %c0_109 = arith.constant 0 : index
    %124 = vector.load %arg12[%c56, %c0_109] : memref<208x128xbf16, #tpu.memory_space<vmem>>, vector<144x128xbf16>
    %c20 = arith.constant 20 : index
    %c0_110 = arith.constant 0 : index
    %c0_111 = arith.constant 0 : index
    %125 = vector.load %arg4[%c20, %c0_110, %c0_111] : memref<25x128x128xbf16, #tpu.memory_space<vmem>>, vector<1x128x128xbf16>
    %126 = vector.shape_cast %125 : vector<1x128x128xbf16> to vector<128x128xbf16>
    %cst_112 = arith.constant dense<0.000000e+00> : vector<144x128xf32>
    %127 = tpu.matmul %124, %126, %cst_112 {dimension_numbers = #tpu.dot_dimension_numbers<[1], [0], [0], [1], [0, 0, 1, 1], [], []>} : vector<144x128xbf16>, vector<128x128xbf16>, vector<144x128xf32> -> vector<144x128xf32>
    %128 = arith.addf %123, %127 : vector<144x128xf32>
    %c57 = arith.constant 57 : index
    %c0_113 = arith.constant 0 : index
    %129 = vector.load %arg12[%c57, %c0_113] : memref<208x128xbf16, #tpu.memory_space<vmem>>, vector<144x128xbf16>
    %c21 = arith.constant 21 : index
    %c0_114 = arith.constant 0 : index
    %c0_115 = arith.constant 0 : index
    %130 = vector.load %arg4[%c21, %c0_114, %c0_115] : memref<25x128x128xbf16, #tpu.memory_space<vmem>>, vector<1x128x128xbf16>
    %131 = vector.shape_cast %130 : vector<1x128x128xbf16> to vector<128x128xbf16>
    %cst_116 = arith.constant dense<0.000000e+00> : vector<144x128xf32>
    %132 = tpu.matmul %129, %131, %cst_116 {dimension_numbers = #tpu.dot_dimension_numbers<[1], [0], [0], [1], [0, 0, 1, 1], [], []>} : vector<144x128xbf16>, vector<128x128xbf16>, vector<144x128xf32> -> vector<144x128xf32>
    %133 = arith.addf %128, %132 : vector<144x128xf32>
    %c58 = arith.constant 58 : index
    %c0_117 = arith.constant 0 : index
    %134 = vector.load %arg12[%c58, %c0_117] : memref<208x128xbf16, #tpu.memory_space<vmem>>, vector<144x128xbf16>
    %c22 = arith.constant 22 : index
    %c0_118 = arith.constant 0 : index
    %c0_119 = arith.constant 0 : index
    %135 = vector.load %arg4[%c22, %c0_118, %c0_119] : memref<25x128x128xbf16, #tpu.memory_space<vmem>>, vector<1x128x128xbf16>
    %136 = vector.shape_cast %135 : vector<1x128x128xbf16> to vector<128x128xbf16>
    %cst_120 = arith.constant dense<0.000000e+00> : vector<144x128xf32>
    %137 = tpu.matmul %134, %136, %cst_120 {dimension_numbers = #tpu.dot_dimension_numbers<[1], [0], [0], [1], [0, 0, 1, 1], [], []>} : vector<144x128xbf16>, vector<128x128xbf16>, vector<144x128xf32> -> vector<144x128xf32>
    %138 = arith.addf %133, %137 : vector<144x128xf32>
    %c59 = arith.constant 59 : index
    %c0_121 = arith.constant 0 : index
    %139 = vector.load %arg12[%c59, %c0_121] : memref<208x128xbf16, #tpu.memory_space<vmem>>, vector<144x128xbf16>
    %c23 = arith.constant 23 : index
    %c0_122 = arith.constant 0 : index
    %c0_123 = arith.constant 0 : index
    %140 = vector.load %arg4[%c23, %c0_122, %c0_123] : memref<25x128x128xbf16, #tpu.memory_space<vmem>>, vector<1x128x128xbf16>
    %141 = vector.shape_cast %140 : vector<1x128x128xbf16> to vector<128x128xbf16>
    %cst_124 = arith.constant dense<0.000000e+00> : vector<144x128xf32>
    %142 = tpu.matmul %139, %141, %cst_124 {dimension_numbers = #tpu.dot_dimension_numbers<[1], [0], [0], [1], [0, 0, 1, 1], [], []>} : vector<144x128xbf16>, vector<128x128xbf16>, vector<144x128xf32> -> vector<144x128xf32>
    %143 = arith.addf %138, %142 : vector<144x128xf32>
    %c60 = arith.constant 60 : index
    %c0_125 = arith.constant 0 : index
    %144 = vector.load %arg12[%c60, %c0_125] : memref<208x128xbf16, #tpu.memory_space<vmem>>, vector<144x128xbf16>
    %c24 = arith.constant 24 : index
    %c0_126 = arith.constant 0 : index
    %c0_127 = arith.constant 0 : index
    %145 = vector.load %arg4[%c24, %c0_126, %c0_127] : memref<25x128x128xbf16, #tpu.memory_space<vmem>>, vector<1x128x128xbf16>
    %146 = vector.shape_cast %145 : vector<1x128x128xbf16> to vector<128x128xbf16>
    %cst_128 = arith.constant dense<0.000000e+00> : vector<144x128xf32>
    %147 = tpu.matmul %144, %146, %cst_128 {dimension_numbers = #tpu.dot_dimension_numbers<[1], [0], [0], [1], [0, 0, 1, 1], [], []>} : vector<144x128xbf16>, vector<128x128xbf16>, vector<144x128xf32> -> vector<144x128xf32>
    %148 = arith.addf %143, %147 : vector<144x128xf32>
    %149 = vector.broadcast %2 : vector<1x128xf32> to vector<144x128xf32>
    %150 = arith.addf %148, %149 : vector<144x128xf32>
    %151 = math.tanh %150 : vector<144x128xf32>
    %152 = arith.truncf %151 : vector<144x128xf32> to vector<144x128xbf16>
    %cst_129 = arith.constant dense<0.000000e+00> : vector<32x128xf32>
    %153 = tpu.matmul %3, %152, %cst_129 {dimension_numbers = #tpu.dot_dimension_numbers<[1], [0], [0], [1], [0, 0, 1, 1], [], []>} : vector<32x144xbf16>, vector<144x128xbf16>, vector<32x128xf32> -> vector<32x128xf32>
    %154 = arith.truncf %153 : vector<32x128xf32> to vector<32x128xbf16>
    %155 = vector.extract_strided_slice %154 {offsets = [0, 0], sizes = [1, 128], strides = [1, 1]} : vector<32x128xbf16> to vector<1x128xbf16>
    %c0_130 = arith.constant 0 : index
    %c0_131 = arith.constant 0 : index
    %c0_132 = arith.constant 0 : index
    %156 = vector.load %arg7[%c0_130, %c0_131, %c0_132] : memref<25x128x128xbf16, #tpu.memory_space<vmem>>, vector<1x128x128xbf16>
    %157 = vector.shape_cast %156 : vector<1x128x128xbf16> to vector<128x128xbf16>
    %cst_133 = arith.constant dense<0.000000e+00> : vector<1x128xf32>
    %158 = tpu.matmul %155, %157, %cst_133 {dimension_numbers = #tpu.dot_dimension_numbers<[1], [0], [0], [1], [0, 0, 1, 1], [], []>} : vector<1x128xbf16>, vector<128x128xbf16>, vector<1x128xf32> -> vector<1x128xf32>
    %159 = vector.extract_strided_slice %154 {offsets = [1, 0], sizes = [1, 128], strides = [1, 1]} : vector<32x128xbf16> to vector<1x128xbf16>
    %c1_134 = arith.constant 1 : index
    %c0_135 = arith.constant 0 : index
    %c0_136 = arith.constant 0 : index
    %160 = vector.load %arg7[%c1_134, %c0_135, %c0_136] : memref<25x128x128xbf16, #tpu.memory_space<vmem>>, vector<1x128x128xbf16>
    %161 = vector.shape_cast %160 : vector<1x128x128xbf16> to vector<128x128xbf16>
    %cst_137 = arith.constant dense<0.000000e+00> : vector<1x128xf32>
    %162 = tpu.matmul %159, %161, %cst_137 {dimension_numbers = #tpu.dot_dimension_numbers<[1], [0], [0], [1], [0, 0, 1, 1], [], []>} : vector<1x128xbf16>, vector<128x128xbf16>, vector<1x128xf32> -> vector<1x128xf32>
    %163 = arith.addf %158, %162 : vector<1x128xf32>
    %164 = vector.extract_strided_slice %154 {offsets = [2, 0], sizes = [1, 128], strides = [1, 1]} : vector<32x128xbf16> to vector<1x128xbf16>
    %c2_138 = arith.constant 2 : index
    %c0_139 = arith.constant 0 : index
    %c0_140 = arith.constant 0 : index
    %165 = vector.load %arg7[%c2_138, %c0_139, %c0_140] : memref<25x128x128xbf16, #tpu.memory_space<vmem>>, vector<1x128x128xbf16>
    %166 = vector.shape_cast %165 : vector<1x128x128xbf16> to vector<128x128xbf16>
    %cst_141 = arith.constant dense<0.000000e+00> : vector<1x128xf32>
    %167 = tpu.matmul %164, %166, %cst_141 {dimension_numbers = #tpu.dot_dimension_numbers<[1], [0], [0], [1], [0, 0, 1, 1], [], []>} : vector<1x128xbf16>, vector<128x128xbf16>, vector<1x128xf32> -> vector<1x128xf32>
    %168 = arith.addf %163, %167 : vector<1x128xf32>
    %169 = vector.extract_strided_slice %154 {offsets = [3, 0], sizes = [1, 128], strides = [1, 1]} : vector<32x128xbf16> to vector<1x128xbf16>
    %c3_142 = arith.constant 3 : index
    %c0_143 = arith.constant 0 : index
    %c0_144 = arith.constant 0 : index
    %170 = vector.load %arg7[%c3_142, %c0_143, %c0_144] : memref<25x128x128xbf16, #tpu.memory_space<vmem>>, vector<1x128x128xbf16>
    %171 = vector.shape_cast %170 : vector<1x128x128xbf16> to vector<128x128xbf16>
    %cst_145 = arith.constant dense<0.000000e+00> : vector<1x128xf32>
    %172 = tpu.matmul %169, %171, %cst_145 {dimension_numbers = #tpu.dot_dimension_numbers<[1], [0], [0], [1], [0, 0, 1, 1], [], []>} : vector<1x128xbf16>, vector<128x128xbf16>, vector<1x128xf32> -> vector<1x128xf32>
    %173 = arith.addf %168, %172 : vector<1x128xf32>
    %174 = vector.extract_strided_slice %154 {offsets = [4, 0], sizes = [1, 128], strides = [1, 1]} : vector<32x128xbf16> to vector<1x128xbf16>
    %c4_146 = arith.constant 4 : index
    %c0_147 = arith.constant 0 : index
    %c0_148 = arith.constant 0 : index
    %175 = vector.load %arg7[%c4_146, %c0_147, %c0_148] : memref<25x128x128xbf16, #tpu.memory_space<vmem>>, vector<1x128x128xbf16>
    %176 = vector.shape_cast %175 : vector<1x128x128xbf16> to vector<128x128xbf16>
    %cst_149 = arith.constant dense<0.000000e+00> : vector<1x128xf32>
    %177 = tpu.matmul %174, %176, %cst_149 {dimension_numbers = #tpu.dot_dimension_numbers<[1], [0], [0], [1], [0, 0, 1, 1], [], []>} : vector<1x128xbf16>, vector<128x128xbf16>, vector<1x128xf32> -> vector<1x128xf32>
    %178 = arith.addf %173, %177 : vector<1x128xf32>
    %179 = vector.extract_strided_slice %154 {offsets = [5, 0], sizes = [1, 128], strides = [1, 1]} : vector<32x128xbf16> to vector<1x128xbf16>
    %c5_150 = arith.constant 5 : index
    %c0_151 = arith.constant 0 : index
    %c0_152 = arith.constant 0 : index
    %180 = vector.load %arg7[%c5_150, %c0_151, %c0_152] : memref<25x128x128xbf16, #tpu.memory_space<vmem>>, vector<1x128x128xbf16>
    %181 = vector.shape_cast %180 : vector<1x128x128xbf16> to vector<128x128xbf16>
    %cst_153 = arith.constant dense<0.000000e+00> : vector<1x128xf32>
    %182 = tpu.matmul %179, %181, %cst_153 {dimension_numbers = #tpu.dot_dimension_numbers<[1], [0], [0], [1], [0, 0, 1, 1], [], []>} : vector<1x128xbf16>, vector<128x128xbf16>, vector<1x128xf32> -> vector<1x128xf32>
    %183 = arith.addf %178, %182 : vector<1x128xf32>
    %184 = vector.extract_strided_slice %154 {offsets = [6, 0], sizes = [1, 128], strides = [1, 1]} : vector<32x128xbf16> to vector<1x128xbf16>
    %c6_154 = arith.constant 6 : index
    %c0_155 = arith.constant 0 : index
    %c0_156 = arith.constant 0 : index
    %185 = vector.load %arg7[%c6_154, %c0_155, %c0_156] : memref<25x128x128xbf16, #tpu.memory_space<vmem>>, vector<1x128x128xbf16>
    %186 = vector.shape_cast %185 : vector<1x128x128xbf16> to vector<128x128xbf16>
    %cst_157 = arith.constant dense<0.000000e+00> : vector<1x128xf32>
    %187 = tpu.matmul %184, %186, %cst_157 {dimension_numbers = #tpu.dot_dimension_numbers<[1], [0], [0], [1], [0, 0, 1, 1], [], []>} : vector<1x128xbf16>, vector<128x128xbf16>, vector<1x128xf32> -> vector<1x128xf32>
    %188 = arith.addf %183, %187 : vector<1x128xf32>
    %189 = vector.extract_strided_slice %154 {offsets = [7, 0], sizes = [1, 128], strides = [1, 1]} : vector<32x128xbf16> to vector<1x128xbf16>
    %c7_158 = arith.constant 7 : index
    %c0_159 = arith.constant 0 : index
    %c0_160 = arith.constant 0 : index
    %190 = vector.load %arg7[%c7_158, %c0_159, %c0_160] : memref<25x128x128xbf16, #tpu.memory_space<vmem>>, vector<1x128x128xbf16>
    %191 = vector.shape_cast %190 : vector<1x128x128xbf16> to vector<128x128xbf16>
    %cst_161 = arith.constant dense<0.000000e+00> : vector<1x128xf32>
    %192 = tpu.matmul %189, %191, %cst_161 {dimension_numbers = #tpu.dot_dimension_numbers<[1], [0], [0], [1], [0, 0, 1, 1], [], []>} : vector<1x128xbf16>, vector<128x128xbf16>, vector<1x128xf32> -> vector<1x128xf32>
    %193 = arith.addf %188, %192 : vector<1x128xf32>
    %194 = vector.extract_strided_slice %154 {offsets = [8, 0], sizes = [1, 128], strides = [1, 1]} : vector<32x128xbf16> to vector<1x128xbf16>
    %c8_162 = arith.constant 8 : index
    %c0_163 = arith.constant 0 : index
    %c0_164 = arith.constant 0 : index
    %195 = vector.load %arg7[%c8_162, %c0_163, %c0_164] : memref<25x128x128xbf16, #tpu.memory_space<vmem>>, vector<1x128x128xbf16>
    %196 = vector.shape_cast %195 : vector<1x128x128xbf16> to vector<128x128xbf16>
    %cst_165 = arith.constant dense<0.000000e+00> : vector<1x128xf32>
    %197 = tpu.matmul %194, %196, %cst_165 {dimension_numbers = #tpu.dot_dimension_numbers<[1], [0], [0], [1], [0, 0, 1, 1], [], []>} : vector<1x128xbf16>, vector<128x128xbf16>, vector<1x128xf32> -> vector<1x128xf32>
    %198 = arith.addf %193, %197 : vector<1x128xf32>
    %199 = vector.extract_strided_slice %154 {offsets = [9, 0], sizes = [1, 128], strides = [1, 1]} : vector<32x128xbf16> to vector<1x128xbf16>
    %c9_166 = arith.constant 9 : index
    %c0_167 = arith.constant 0 : index
    %c0_168 = arith.constant 0 : index
    %200 = vector.load %arg7[%c9_166, %c0_167, %c0_168] : memref<25x128x128xbf16, #tpu.memory_space<vmem>>, vector<1x128x128xbf16>
    %201 = vector.shape_cast %200 : vector<1x128x128xbf16> to vector<128x128xbf16>
    %cst_169 = arith.constant dense<0.000000e+00> : vector<1x128xf32>
    %202 = tpu.matmul %199, %201, %cst_169 {dimension_numbers = #tpu.dot_dimension_numbers<[1], [0], [0], [1], [0, 0, 1, 1], [], []>} : vector<1x128xbf16>, vector<128x128xbf16>, vector<1x128xf32> -> vector<1x128xf32>
    %203 = arith.addf %198, %202 : vector<1x128xf32>
    %204 = vector.extract_strided_slice %154 {offsets = [10, 0], sizes = [1, 128], strides = [1, 1]} : vector<32x128xbf16> to vector<1x128xbf16>
    %c10_170 = arith.constant 10 : index
    %c0_171 = arith.constant 0 : index
    %c0_172 = arith.constant 0 : index
    %205 = vector.load %arg7[%c10_170, %c0_171, %c0_172] : memref<25x128x128xbf16, #tpu.memory_space<vmem>>, vector<1x128x128xbf16>
    %206 = vector.shape_cast %205 : vector<1x128x128xbf16> to vector<128x128xbf16>
    %cst_173 = arith.constant dense<0.000000e+00> : vector<1x128xf32>
    %207 = tpu.matmul %204, %206, %cst_173 {dimension_numbers = #tpu.dot_dimension_numbers<[1], [0], [0], [1], [0, 0, 1, 1], [], []>} : vector<1x128xbf16>, vector<128x128xbf16>, vector<1x128xf32> -> vector<1x128xf32>
    %208 = arith.addf %203, %207 : vector<1x128xf32>
    %209 = vector.extract_strided_slice %154 {offsets = [11, 0], sizes = [1, 128], strides = [1, 1]} : vector<32x128xbf16> to vector<1x128xbf16>
    %c11_174 = arith.constant 11 : index
    %c0_175 = arith.constant 0 : index
    %c0_176 = arith.constant 0 : index
    %210 = vector.load %arg7[%c11_174, %c0_175, %c0_176] : memref<25x128x128xbf16, #tpu.memory_space<vmem>>, vector<1x128x128xbf16>
    %211 = vector.shape_cast %210 : vector<1x128x128xbf16> to vector<128x128xbf16>
    %cst_177 = arith.constant dense<0.000000e+00> : vector<1x128xf32>
    %212 = tpu.matmul %209, %211, %cst_177 {dimension_numbers = #tpu.dot_dimension_numbers<[1], [0], [0], [1], [0, 0, 1, 1], [], []>} : vector<1x128xbf16>, vector<128x128xbf16>, vector<1x128xf32> -> vector<1x128xf32>
    %213 = arith.addf %208, %212 : vector<1x128xf32>
    %214 = vector.extract_strided_slice %154 {offsets = [12, 0], sizes = [1, 128], strides = [1, 1]} : vector<32x128xbf16> to vector<1x128xbf16>
    %c12_178 = arith.constant 12 : index
    %c0_179 = arith.constant 0 : index
    %c0_180 = arith.constant 0 : index
    %215 = vector.load %arg7[%c12_178, %c0_179, %c0_180] : memref<25x128x128xbf16, #tpu.memory_space<vmem>>, vector<1x128x128xbf16>
    %216 = vector.shape_cast %215 : vector<1x128x128xbf16> to vector<128x128xbf16>
    %cst_181 = arith.constant dense<0.000000e+00> : vector<1x128xf32>
    %217 = tpu.matmul %214, %216, %cst_181 {dimension_numbers = #tpu.dot_dimension_numbers<[1], [0], [0], [1], [0, 0, 1, 1], [], []>} : vector<1x128xbf16>, vector<128x128xbf16>, vector<1x128xf32> -> vector<1x128xf32>
    %218 = arith.addf %213, %217 : vector<1x128xf32>
    %219 = vector.extract_strided_slice %154 {offsets = [13, 0], sizes = [1, 128], strides = [1, 1]} : vector<32x128xbf16> to vector<1x128xbf16>
    %c13_182 = arith.constant 13 : index
    %c0_183 = arith.constant 0 : index
    %c0_184 = arith.constant 0 : index
    %220 = vector.load %arg7[%c13_182, %c0_183, %c0_184] : memref<25x128x128xbf16, #tpu.memory_space<vmem>>, vector<1x128x128xbf16>
    %221 = vector.shape_cast %220 : vector<1x128x128xbf16> to vector<128x128xbf16>
    %cst_185 = arith.constant dense<0.000000e+00> : vector<1x128xf32>
    %222 = tpu.matmul %219, %221, %cst_185 {dimension_numbers = #tpu.dot_dimension_numbers<[1], [0], [0], [1], [0, 0, 1, 1], [], []>} : vector<1x128xbf16>, vector<128x128xbf16>, vector<1x128xf32> -> vector<1x128xf32>
    %223 = arith.addf %218, %222 : vector<1x128xf32>
    %224 = vector.extract_strided_slice %154 {offsets = [14, 0], sizes = [1, 128], strides = [1, 1]} : vector<32x128xbf16> to vector<1x128xbf16>
    %c14_186 = arith.constant 14 : index
    %c0_187 = arith.constant 0 : index
    %c0_188 = arith.constant 0 : index
    %225 = vector.load %arg7[%c14_186, %c0_187, %c0_188] : memref<25x128x128xbf16, #tpu.memory_space<vmem>>, vector<1x128x128xbf16>
    %226 = vector.shape_cast %225 : vector<1x128x128xbf16> to vector<128x128xbf16>
    %cst_189 = arith.constant dense<0.000000e+00> : vector<1x128xf32>
    %227 = tpu.matmul %224, %226, %cst_189 {dimension_numbers = #tpu.dot_dimension_numbers<[1], [0], [0], [1], [0, 0, 1, 1], [], []>} : vector<1x128xbf16>, vector<128x128xbf16>, vector<1x128xf32> -> vector<1x128xf32>
    %228 = arith.addf %223, %227 : vector<1x128xf32>
    %229 = vector.extract_strided_slice %154 {offsets = [15, 0], sizes = [1, 128], strides = [1, 1]} : vector<32x128xbf16> to vector<1x128xbf16>
    %c15_190 = arith.constant 15 : index
    %c0_191 = arith.constant 0 : index
    %c0_192 = arith.constant 0 : index
    %230 = vector.load %arg7[%c15_190, %c0_191, %c0_192] : memref<25x128x128xbf16, #tpu.memory_space<vmem>>, vector<1x128x128xbf16>
    %231 = vector.shape_cast %230 : vector<1x128x128xbf16> to vector<128x128xbf16>
    %cst_193 = arith.constant dense<0.000000e+00> : vector<1x128xf32>
    %232 = tpu.matmul %229, %231, %cst_193 {dimension_numbers = #tpu.dot_dimension_numbers<[1], [0], [0], [1], [0, 0, 1, 1], [], []>} : vector<1x128xbf16>, vector<128x128xbf16>, vector<1x128xf32> -> vector<1x128xf32>
    %233 = arith.addf %228, %232 : vector<1x128xf32>
    %234 = vector.extract_strided_slice %154 {offsets = [16, 0], sizes = [1, 128], strides = [1, 1]} : vector<32x128xbf16> to vector<1x128xbf16>
    %c16_194 = arith.constant 16 : index
    %c0_195 = arith.constant 0 : index
    %c0_196 = arith.constant 0 : index
    %235 = vector.load %arg7[%c16_194, %c0_195, %c0_196] : memref<25x128x128xbf16, #tpu.memory_space<vmem>>, vector<1x128x128xbf16>
    %236 = vector.shape_cast %235 : vector<1x128x128xbf16> to vector<128x128xbf16>
    %cst_197 = arith.constant dense<0.000000e+00> : vector<1x128xf32>
    %237 = tpu.matmul %234, %236, %cst_197 {dimension_numbers = #tpu.dot_dimension_numbers<[1], [0], [0], [1], [0, 0, 1, 1], [], []>} : vector<1x128xbf16>, vector<128x128xbf16>, vector<1x128xf32> -> vector<1x128xf32>
    %238 = arith.addf %233, %237 : vector<1x128xf32>
    %239 = vector.extract_strided_slice %154 {offsets = [17, 0], sizes = [1, 128], strides = [1, 1]} : vector<32x128xbf16> to vector<1x128xbf16>
    %c17_198 = arith.constant 17 : index
    %c0_199 = arith.constant 0 : index
    %c0_200 = arith.constant 0 : index
    %240 = vector.load %arg7[%c17_198, %c0_199, %c0_200] : memref<25x128x128xbf16, #tpu.memory_space<vmem>>, vector<1x128x128xbf16>
    %241 = vector.shape_cast %240 : vector<1x128x128xbf16> to vector<128x128xbf16>
    %cst_201 = arith.constant dense<0.000000e+00> : vector<1x128xf32>
    %242 = tpu.matmul %239, %241, %cst_201 {dimension_numbers = #tpu.dot_dimension_numbers<[1], [0], [0], [1], [0, 0, 1, 1], [], []>} : vector<1x128xbf16>, vector<128x128xbf16>, vector<1x128xf32> -> vector<1x128xf32>
    %243 = arith.addf %238, %242 : vector<1x128xf32>
    %244 = vector.extract_strided_slice %154 {offsets = [18, 0], sizes = [1, 128], strides = [1, 1]} : vector<32x128xbf16> to vector<1x128xbf16>
    %c18_202 = arith.constant 18 : index
    %c0_203 = arith.constant 0 : index
    %c0_204 = arith.constant 0 : index
    %245 = vector.load %arg7[%c18_202, %c0_203, %c0_204] : memref<25x128x128xbf16, #tpu.memory_space<vmem>>, vector<1x128x128xbf16>
    %246 = vector.shape_cast %245 : vector<1x128x128xbf16> to vector<128x128xbf16>
    %cst_205 = arith.constant dense<0.000000e+00> : vector<1x128xf32>
    %247 = tpu.matmul %244, %246, %cst_205 {dimension_numbers = #tpu.dot_dimension_numbers<[1], [0], [0], [1], [0, 0, 1, 1], [], []>} : vector<1x128xbf16>, vector<128x128xbf16>, vector<1x128xf32> -> vector<1x128xf32>
    %248 = arith.addf %243, %247 : vector<1x128xf32>
    %249 = vector.extract_strided_slice %154 {offsets = [19, 0], sizes = [1, 128], strides = [1, 1]} : vector<32x128xbf16> to vector<1x128xbf16>
    %c19_206 = arith.constant 19 : index
    %c0_207 = arith.constant 0 : index
    %c0_208 = arith.constant 0 : index
    %250 = vector.load %arg7[%c19_206, %c0_207, %c0_208] : memref<25x128x128xbf16, #tpu.memory_space<vmem>>, vector<1x128x128xbf16>
    %251 = vector.shape_cast %250 : vector<1x128x128xbf16> to vector<128x128xbf16>
    %cst_209 = arith.constant dense<0.000000e+00> : vector<1x128xf32>
    %252 = tpu.matmul %249, %251, %cst_209 {dimension_numbers = #tpu.dot_dimension_numbers<[1], [0], [0], [1], [0, 0, 1, 1], [], []>} : vector<1x128xbf16>, vector<128x128xbf16>, vector<1x128xf32> -> vector<1x128xf32>
    %253 = arith.addf %248, %252 : vector<1x128xf32>
    %254 = vector.extract_strided_slice %154 {offsets = [20, 0], sizes = [1, 128], strides = [1, 1]} : vector<32x128xbf16> to vector<1x128xbf16>
    %c20_210 = arith.constant 20 : index
    %c0_211 = arith.constant 0 : index
    %c0_212 = arith.constant 0 : index
    %255 = vector.load %arg7[%c20_210, %c0_211, %c0_212] : memref<25x128x128xbf16, #tpu.memory_space<vmem>>, vector<1x128x128xbf16>
    %256 = vector.shape_cast %255 : vector<1x128x128xbf16> to vector<128x128xbf16>
    %cst_213 = arith.constant dense<0.000000e+00> : vector<1x128xf32>
    %257 = tpu.matmul %254, %256, %cst_213 {dimension_numbers = #tpu.dot_dimension_numbers<[1], [0], [0], [1], [0, 0, 1, 1], [], []>} : vector<1x128xbf16>, vector<128x128xbf16>, vector<1x128xf32> -> vector<1x128xf32>
    %258 = arith.addf %253, %257 : vector<1x128xf32>
    %259 = vector.extract_strided_slice %154 {offsets = [21, 0], sizes = [1, 128], strides = [1, 1]} : vector<32x128xbf16> to vector<1x128xbf16>
    %c21_214 = arith.constant 21 : index
    %c0_215 = arith.constant 0 : index
    %c0_216 = arith.constant 0 : index
    %260 = vector.load %arg7[%c21_214, %c0_215, %c0_216] : memref<25x128x128xbf16, #tpu.memory_space<vmem>>, vector<1x128x128xbf16>
    %261 = vector.shape_cast %260 : vector<1x128x128xbf16> to vector<128x128xbf16>
    %cst_217 = arith.constant dense<0.000000e+00> : vector<1x128xf32>
    %262 = tpu.matmul %259, %261, %cst_217 {dimension_numbers = #tpu.dot_dimension_numbers<[1], [0], [0], [1], [0, 0, 1, 1], [], []>} : vector<1x128xbf16>, vector<128x128xbf16>, vector<1x128xf32> -> vector<1x128xf32>
    %263 = arith.addf %258, %262 : vector<1x128xf32>
    %264 = vector.extract_strided_slice %154 {offsets = [22, 0], sizes = [1, 128], strides = [1, 1]} : vector<32x128xbf16> to vector<1x128xbf16>
    %c22_218 = arith.constant 22 : index
    %c0_219 = arith.constant 0 : index
    %c0_220 = arith.constant 0 : index
    %265 = vector.load %arg7[%c22_218, %c0_219, %c0_220] : memref<25x128x128xbf16, #tpu.memory_space<vmem>>, vector<1x128x128xbf16>
    %266 = vector.shape_cast %265 : vector<1x128x128xbf16> to vector<128x128xbf16>
    %cst_221 = arith.constant dense<0.000000e+00> : vector<1x128xf32>
    %267 = tpu.matmul %264, %266, %cst_221 {dimension_numbers = #tpu.dot_dimension_numbers<[1], [0], [0], [1], [0, 0, 1, 1], [], []>} : vector<1x128xbf16>, vector<128x128xbf16>, vector<1x128xf32> -> vector<1x128xf32>
    %268 = arith.addf %263, %267 : vector<1x128xf32>
    %269 = vector.extract_strided_slice %154 {offsets = [23, 0], sizes = [1, 128], strides = [1, 1]} : vector<32x128xbf16> to vector<1x128xbf16>
    %c23_222 = arith.constant 23 : index
    %c0_223 = arith.constant 0 : index
    %c0_224 = arith.constant 0 : index
    %270 = vector.load %arg7[%c23_222, %c0_223, %c0_224] : memref<25x128x128xbf16, #tpu.memory_space<vmem>>, vector<1x128x128xbf16>
    %271 = vector.shape_cast %270 : vector<1x128x128xbf16> to vector<128x128xbf16>
    %cst_225 = arith.constant dense<0.000000e+00> : vector<1x128xf32>
    %272 = tpu.matmul %269, %271, %cst_225 {dimension_numbers = #tpu.dot_dimension_numbers<[1], [0], [0], [1], [0, 0, 1, 1], [], []>} : vector<1x128xbf16>, vector<128x128xbf16>, vector<1x128xf32> -> vector<1x128xf32>
    %273 = arith.addf %268, %272 : vector<1x128xf32>
    %274 = vector.extract_strided_slice %154 {offsets = [24, 0], sizes = [1, 128], strides = [1, 1]} : vector<32x128xbf16> to vector<1x128xbf16>
    %c24_226 = arith.constant 24 : index
    %c0_227 = arith.constant 0 : index
    %c0_228 = arith.constant 0 : index
    %275 = vector.load %arg7[%c24_226, %c0_227, %c0_228] : memref<25x128x128xbf16, #tpu.memory_space<vmem>>, vector<1x128x128xbf16>
    %276 = vector.shape_cast %275 : vector<1x128x128xbf16> to vector<128x128xbf16>
    %cst_229 = arith.constant dense<0.000000e+00> : vector<1x128xf32>
    %277 = tpu.matmul %274, %276, %cst_229 {dimension_numbers = #tpu.dot_dimension_numbers<[1], [0], [0], [1], [0, 0, 1, 1], [], []>} : vector<1x128xbf16>, vector<128x128xbf16>, vector<1x128xf32> -> vector<1x128xf32>
    %278 = arith.addf %273, %277 : vector<1x128xf32>
    %279 = arith.addf %278, %4 : vector<1x128xf32>
    %280 = math.tanh %279 : vector<1x128xf32>
    %281 = arith.truncf %280 : vector<1x128xf32> to vector<1x128xbf16>
    %cst_230 = arith.constant dense<0.000000e+00> : vector<1x128xf32>
    %282 = tpu.matmul %281, %5, %cst_230 {dimension_numbers = #tpu.dot_dimension_numbers<[1], [0], [0], [1], [0, 0, 1, 1], [], []>} : vector<1x128xbf16>, vector<128x128xbf16>, vector<1x128xf32> -> vector<1x128xf32>
    %283 = arith.addf %282, %6 : vector<1x128xf32>
    %284 = arith.index_cast %c0_i32 : i32 to index
    %c0_231 = arith.constant 0 : index
    %c0_232 = arith.constant 0 : index
    %285 = vector.load %arg11[%284, %c0_231, %c0_232] : memref<1x1x128xf32, #tpu.memory_space<vmem>>, vector<1x1x128xf32>
    %286 = vector.shape_cast %285 : vector<1x1x128xf32> to vector<1x128xf32>
    %287 = vector.shape_cast %283 : vector<1x128xf32> to vector<1x1x128xf32>
    tpu.vector_store %arg11[%284, %c0_231, %c0_232], %287 {strides = array<i32>} : memref<1x1x128xf32, #tpu.memory_space<vmem>>, vector<1x1x128xf32>,
    %c1_i32 = arith.constant 1 : i32
    return
  }
  func.func @transform_0(%arg0: i32) -> (i32, i32, i32) {
    %c0_i32 = arith.constant 0 : i32
    %c0_i32_0 = arith.constant 0 : i32
    %c0_i32_1 = arith.constant 0 : i32
    return %arg0, %c0_i32, %c0_i32_0 : i32, i32, i32
  }
  func.func @transform_1(%arg0: i32) -> (i32, i32) {
    %c0_i32 = arith.constant 0 : i32
    %c0_i32_0 = arith.constant 0 : i32
    %c0_i32_1 = arith.constant 0 : i32
    return %c0_i32, %c0_i32_0 : i32, i32
  }
  func.func @transform_2(%arg0: i32) -> (i32, i32) {
    %c0_i32 = arith.constant 0 : i32
    %c0_i32_0 = arith.constant 0 : i32
    %c0_i32_1 = arith.constant 0 : i32
    return %c0_i32, %c0_i32_0 : i32, i32
  }
  func.func @transform_3(%arg0: i32) -> (i32, i32, i32) {
    %c0_i32 = arith.constant 0 : i32
    %c0_i32_0 = arith.constant 0 : i32
    %c0_i32_1 = arith.constant 0 : i32
    %c0_i32_2 = arith.constant 0 : i32
    return %c0_i32, %c0_i32_0, %c0_i32_1 : i32, i32, i32
  }
  func.func @transform_4(%arg0: i32) -> (i32, i32) {
    %c0_i32 = arith.constant 0 : i32
    %c0_i32_0 = arith.constant 0 : i32
    %c0_i32_1 = arith.constant 0 : i32
    return %c0_i32, %c0_i32_0 : i32, i32
  }
  func.func @transform_5(%arg0: i32) -> (i32, i32) {
    %c0_i32 = arith.constant 0 : i32
    %c0_i32_0 = arith.constant 0 : i32
    %c0_i32_1 = arith.constant 0 : i32
    return %c0_i32, %c0_i32_0 : i32, i32
  }
  func.func @transform_6(%arg0: i32) -> (i32, i32, i32) {
    %c0_i32 = arith.constant 0 : i32
    %c0_i32_0 = arith.constant 0 : i32
    %c0_i32_1 = arith.constant 0 : i32
    %c0_i32_2 = arith.constant 0 : i32
    return %c0_i32, %c0_i32_0, %c0_i32_1 : i32, i32, i32
  }
  func.func @transform_7(%arg0: i32) -> (i32, i32) {
    %c0_i32 = arith.constant 0 : i32
    %c0_i32_0 = arith.constant 0 : i32
    %c0_i32_1 = arith.constant 0 : i32
    return %c0_i32, %c0_i32_0 : i32, i32
  }
  func.func @transform_8(%arg0: i32) -> (i32, i32) {
    %c0_i32 = arith.constant 0 : i32
    %c0_i32_0 = arith.constant 0 : i32
    %c0_i32_1 = arith.constant 0 : i32
    return %c0_i32, %c0_i32_0 : i32, i32
  }
  func.func @transform_9(%arg0: i32) -> (i32, i32) {
    %c0_i32 = arith.constant 0 : i32
    %c0_i32_0 = arith.constant 0 : i32
    %c0_i32_1 = arith.constant 0 : i32
    return %c0_i32, %c0_i32_0 : i32, i32
  }
  func.func @transform_10(%arg0: i32) -> (i32, i32, i32) {
    %c0_i32 = arith.constant 0 : i32
    %c0_i32_0 = arith.constant 0 : i32
    %c0_i32_1 = arith.constant 0 : i32
    return %arg0, %c0_i32, %c0_i32_0 : i32, i32, i32
  }
}

</mosaic_0001>

<bundles_post_ra>
// kernel: lenet_forward.1
= control target key start
LH: loop header
LB: loop body
LE: loop exit
PB: predicated region body
PF: predicated region fallthrough
CT: control target
= control target key end

     0   :  { %15 = vsyncpa [#allocation4], 0  ;;  %s20355_s0 = inlined_call_operand.vmem [shape: bf16[2,832,128], index: 0, kind: input, shape index: {}]   ;;  %s20356_s1 = inlined_call_operand.vmem [shape: bf16[128,128], index: 1, kind: input, shape index: {}]   ;;  %s20357_s2 = inlined_call_operand.vmem [shape: f32[1,128], index: 2, kind: input, shape index: {}]   ;;  %s20358_s3 = inlined_call_operand.vmem [shape: bf16[25,128,128], index: 3, kind: input, shape index: {}]   ;;  %s20359_s4 = inlined_call_operand.vmem [shape: f32[1,128], index: 4, kind: input, shape index: {}]   ;;  %s20360_s5 = inlined_call_operand.vmem [shape: bf16[32,144], index: 5, kind: input, shape index: {}]   ;;  %s20361_s6 = inlined_call_operand.vmem [shape: bf16[25,128,128], index: 6, kind: input, shape index: {}]   ;;  %s20362_s7 = inlined_call_operand.vmem [shape: f32[1,128], index: 7, kind: input, shape index: {}]   ;;  %s20363_s8 = inlined_call_operand.vmem [shape: bf16[128,128], index: 8, kind: input, shape index: {}]   ;;  %s20364_s9 = inlined_call_operand.vmem [shape: f32[1,128], index: 9, kind: input, shape index: {}]   ;;  %s20365_s10 = inlined_call_operand.hbm [shape: f32[2,1,128], index: 10, kind: output, shape index: {}]  }
   0x1   :  { %17 = vsyncpa [#allocation4 + $0x1], 0  ;;  %s15193_s13 = smov 0   ;;  %s15195_s14 = smov 0  }
   0x2   :  { %s15197_s15 = smov 0   ;;  %s15199_s16 = smov 0  }
   0x3 LB: > { %s15214_s17 = sadd.s32 4294967295, %s15132_s16   ;;  %s10352_s18 = sadd.s32 4294967294, %s15132_s16   ;;  %s15132_s16 = sphi %s15199_s16, %s20779_s16   ;;  %s15128_s15 = sphi %s15197_s15, %s20778_s15   ;;  %s15124_s14 = sphi %s15195_s14, %s20777_s14   ;;  %s15120_s13 = sphi %s15193_s13, %s20776_s13  }
   0x4   : > { %s15218_s19 = sadd.s32 1, %s15132_s16   ;;  %s245_s20 = sadd.s32 1, %s15128_s15 }
   0x5   : > { %s242_s21 = ssub.s32 %s15132_s16, %s15218_s19  ;;  %p255_p0 = scmp.ne.s32.totalorder %s15128_s15, %s15124_s14 }
   0x6   : > { %p243_p1 = scmp.eq.s32.totalorder %s242_s21, 0  ;;  %p256_p2 = scmp.eq.s32.totalorder %s15214_s17, 1 }
   0x7   : > { %p261_p3 = scmp.ne.s32.totalorder %s15124_s14, %s15120_s13  ;;  %p262_p4 = scmp.eq.s32.totalorder %s10352_s18, 1 }
   0x8   : > { %s15229_s22 = scalar_select %p243_p1, %s15128_s15, %s245_s20  }
   0x9   : > { %p15231_p5 = por %p256_p2, %p255_p0  ;;  %p15235_p6 = por %p262_p4, %p261_p3 }
   0xa   : > { %p10355_p7 = scmp.ge.s32.totalorder %s15132_s16, 1  ;;  %p315_p8 = scmp.lt.s32.totalorder %s15132_s16, 3 }
   0xc   : > { %p316_p9 = pnand %p10355_p7, %p315_p8 }
   0xe   : > { %319 = sbr.rel (%p316_p9) target bundleno = 2751 (0xabf), region = 60 }
  0x15   : > { %v14306_v0 = vld [vmem:[%s20356_s1] sm:$0xff]   ;;  %p352_p10 = scmp.lt.s32.totalorder %s15214_s17, 1  ;;  %v14307_v1 = vld [vmem:[%s20356_s1 + $0x8] sm:$0xff]   ;;  %v14308_v2 = vld [vmem:[%s20356_s1 + $0x10] sm:$0xff]   ;;  %vm15135_vm0 = vmmov 0   ;;  %vm2014_vm3 = vcmask 1046528  }
  0x16   : > { %12323 = vmatprep.subr.bf16.mxu0 %v14306_v0  ;;  %v14309_v3 = vld [vmem:[%s20356_s1 + $0x18] sm:$0xff]   ;;  %v14310_v5 = vld [vmem:[%s20356_s1 + $0x20] sm:$0xff]   ;;  %v14311_v6 = vld [vmem:[%s20356_s1 + $0x28] sm:$0xff]   ;;  %vm1594_vm1 = vsmask.f32 7424  ;;  %vm2482_vm4 = vcmask 1045504  }
  0x17   : > { %s353_s29 = scalar_select %p352_p10, %s15214_s17, 1  ;;  %12324 = vmatpush3.bf16.msra.mxu0 %v14306_v0  ;;  %v14312_v7 = vld [vmem:[%s20356_s1 + $0x30] sm:$0xff]   ;;  %v14313_v8 = vld [vmem:[%s20356_s1 + $0x38] sm:$0xff]   ;;  %vm2232_vm2 = vsmask.f32 6400  ;;  %vm2703_vm6 = vcmask 1040384  }
  0x18   : > { %12325 = vmatprep.subr.bf16.mxu0 %v14307_v1  ;;  %vm2921_vm5 = vsmask.f32 256  ;;  %vm3857_vm7 = vcmask 1041408   ;;  %vm5201_vm8 = vsmask.f32 2304  ;;  %vm4983_vm10 = vcmask 1042432  }
  0x19   : > { %s14263_s12 = smul.u32 416, %s353_s29  ;;  %vm4075_vm9 = vsmask.f32 1280  ;;  %vm6193_vm11 = vcmask 1043456   ;;  %vm6411_vm12 = vsmask.f32 3328 }
  0x1a   : > { %vm7435_vm13 = vcmask 130048   ;;  %s350_s11 = sand.u32 1, %s15124_s14   ;;  %s11601_s20 = sshll.u32 %s15214_s17, 4 }
  0x1b   : > { %s15255_s21 = scalar_lea.vmem %s20355_s0, %s14263_s12  ;;  %12326 = vmatpush3.bf16.msra.mxu0 %v14307_v1  ;;  %s20313_s28 = scalar_lea.hbm %s20365_s10, %s11601_s20 }
  0x1c   : > { %12327 = vmatprep.subr.bf16.mxu0 %v14308_v2  ;;  %v14314_v4 = vld [vmem:[%s15255_s21] sm:$0xff]   ;;  %v14315_v9 = vld [vmem:[%s15255_s21 + $0x8] sm:$0xff]   ;;  %v14316_v10 = vld [vmem:[%s15255_s21 + $0x10] sm:$0xff]   ;;  %s10285_s29 = scalar_lea.sflag [#allocation4], %s350_s11  ;;  %s15137_s30 = smov [#allocation3]  }
  0x1d   : > { %12339 = vmatprep.mubr.bf16.mxu0 %v14314_v4  ;;  %v14317_v11 = vld [vmem:[%s15255_s21 + $0x18] sm:$0xff]   ;;  %v14318_v12 = vld [vmem:[%s15255_s21 + $0x20] sm:$0xff]   ;;  %v14319_v13 = vld [vmem:[%s15255_s21 + $0x28] sm:$0xff]   ;;  %s15074_s12 = sshll.u32 %s15137_s30, 4  ;;  %s15075_s12 = int_to_ptr.vmem [resolvable:$false] %s15074_s12 }
  0x1e   : > { %v14320_v14 = vld [vmem:[%s15255_s21 + $0x30] sm:$0xff]   ;;  %v14321_v15 = vld [vmem:[%s15255_s21 + $0x38] sm:$0xff]   ;;  %v14322_v16 = vld [vmem:[%s15255_s21 + $0x40] sm:$0xff]   ;;  %s15076_s18 = scalar_lea.vmem %s15075_s12, 32 }
  0x1f   : > { %12328 = vmatpush3.bf16.msra.mxu0 %v14308_v2  ;;  %v14323_v17 = vld [vmem:[%s15255_s21 + $0x48] sm:$0xff]   ;;  %v14324_v18 = vld [vmem:[%s15255_s21 + $0x50] sm:$0xff]   ;;  %v14325_v19 = vld [vmem:[%s15255_s21 + $0x58] sm:$0xff]  }
  0x20   : > { %12329 = vmatprep.subr.bf16.mxu0 %v14309_v3  ;;  %v14326_v20 = vld [vmem:[%s15255_s21 + $0x60] sm:$0xff]   ;;  %v14327_v21 = vld [vmem:[%s15255_s21 + $0x68] sm:$0xff]   ;;  %v14328_v22 = vld [vmem:[%s15255_s21 + $0x70] sm:$0xff]  }
  0x21   : > { %v14329_v23 = vld [vmem:[%s15255_s21 + $0x78] sm:$0xff]   ;;  %v14330_v24 = vld [vmem:[%s15255_s21 + $0x80] sm:$0xff]   ;;  %v14331_v25 = vld [vmem:[%s15255_s21 + $0x88] sm:$0xff]  }
  0x22   : > { %v14332_v26 = vld [vmem:[%s15255_s21 + $0x90] sm:$0xff]   ;;  %v14333_v27 = vld [vmem:[%s15255_s21 + $0x98] sm:$0xff]   ;;  %v14334_v28 = vld [vmem:[%s15255_s21 + $0xa0] sm:$0xff]  }
  0x23   : > { %12330 = vmatpush3.bf16.msra.mxu0 %v14309_v3  ;;  %v14335_v29 = vld [vmem:[%s15255_s21 + $0xa8] sm:$0xff]   ;;  %v14336_v30 = vld [vmem:[%s15255_s21 + $0xb0] sm:$0xff]   ;;  %v14337_v31 = vld [vmem:[%s15255_s21 + $0xb8] sm:$0xff]  }
  0x24   : > { %12331 = vmatprep.subr.bf16.mxu0 %v14310_v5  ;;  %v14338_v32 = vld [vmem:[%s15255_s21 + $0xc0] sm:$0xff]   ;;  %v14339_v33 = vld [vmem:[%s15255_s21 + $0xc8] sm:$0xff]   ;;  %v14340_v34 = vld [vmem:[%s15255_s21 + $0xd0] sm:$0xff]  }
  0x25   : > { %v14341_v35 = vld [vmem:[%s15255_s21 + $0xd8] sm:$0xff]   ;;  %v14342_v36 = vld [vmem:[%s15255_s21 + $0xe0] sm:$0xff]   ;;  %v14343_v37 = vld [vmem:[%s15255_s21 + $0xe8] sm:$0xff]  }
  0x26   : > { %v14344_v38 = vld [vmem:[%s15255_s21 + $0xf0] sm:$0xff]   ;;  %v14345_v39 = vld [vmem:[%s15255_s21 + $0xf8] sm:$0xff]   ;;  %v14346_v40 = vld [vmem:[%s15255_s21 + $0x100] sm:$0xff]  }
  0x27   : > { %12332 = vmatpush3.bf16.msra.mxu0 %v14310_v5  ;;  %v14347_v41 = vld [vmem:[%s15255_s21 + $0x108] sm:$0xff]   ;;  %v14348_v42 = vld [vmem:[%s15255_s21 + $0x110] sm:$0xff]   ;;  %v14349_v43 = vld [vmem:[%s15255_s21 + $0x118] sm:$0xff]  }
  0x28   : > { %12333 = vmatprep.subr.bf16.mxu0 %v14311_v6  ;;  %v14350_v44 = vld [vmem:[%s15255_s21 + $0x120] sm:$0xff]   ;;  %v14351_v45 = vld [vmem:[%s15255_s21 + $0x128] sm:$0xff]   ;;  %v14352_v46 = vld [vmem:[%s15255_s21 + $0x130] sm:$0xff]  }
  0x29   : > { %v14353_v47 = vld [vmem:[%s15255_s21 + $0x138] sm:$0xff]   ;;  %v14354_v48 = vld [vmem:[%s15255_s21 + $0x140] sm:$0xff]   ;;  %v14355_v49 = vld [vmem:[%s15255_s21 + $0x148] sm:$0xff]  }
  0x2a   : > { %v14356_v50 = vld [vmem:[%s15255_s21 + $0x150] sm:$0xff]   ;;  %v14357_v51 = vld [vmem:[%s15255_s21 + $0x158] sm:$0xff]   ;;  %v14358_v52 = vld [vmem:[%s15255_s21 + $0x160] sm:$0xff]  }
  0x2b   : > { %12334 = vmatpush3.bf16.msra.mxu0 %v14311_v6  ;;  %v14359_v53 = vld [vmem:[%s15255_s21 + $0x168] sm:$0xff]   ;;  %v14360_v54 = vld [vmem:[%s15255_s21 + $0x170] sm:$0xff]   ;;  %v14361_v55 = vld [vmem:[%s15255_s21 + $0x178] sm:$0xff]  }
  0x2c   : > { %12335 = vmatprep.subr.bf16.mxu0 %v14312_v7  ;;  %v14362_v56 = vld [vmem:[%s15255_s21 + $0x180] sm:$0xff]   ;;  %v14363_v57 = vld [vmem:[%s15255_s21 + $0x188] sm:$0xff]   ;;  %v14364_v58 = vld [vmem:[%s15255_s21 + $0x190] sm:$0xff]  }
  0x2d   : > { %v14365_v59 = vld [vmem:[%s15255_s21 + $0x198] sm:$0xff]   ;;  %s351_s21 = scalar_lea.vmem [#allocation3], %s350_s11 }
  0x2e   : > { %s10297_s25 = sshll.u32 %s351_s21, 4  ;;  %s20315_s25 = int_to_ptr.vmem [resolvable:$true] %s10297_s25 }
  0x2f   : > { %12336 = vmatpush3.bf16.msra.mxu0 %v14312_v7  ;;  %s15070_s17 = scalar_lea.vmem %s20315_s25, 16  ;;  %p15077_p0 = scmp.lt.s32.totalorder %s20315_s25, %s15075_s12 }
  0x30   : > { %12337 = vmatprep.subr.bf16.mxu0 %v14313_v8  ;;  %p15071_p11 = scmp.ne.s32.totalorder %s20315_s25, %s15070_s17  ;;  %p15078_p1 = scmp.lt.s32.totalorder %s15076_s18, %s15070_s17 }
  0x32   : > { %p15072_p12 = pnand %p15071_p11, %p15231_p5  ;;  %p15079_p2 = por %p15078_p1, %p15077_p0 }
  0x33   : > { %12338 = vmatpush3.bf16.msra.mxu0 %v14313_v8 }
  0x34   : > { %p15073_p13 = pneg %p15072_p12 }
  0x36   : > { %12340 = vmatmul.mubr.bf16.vlgmr.msra.gmra.mrb[0].mxu0 %v14315_v9  ;;  %p15080_p3 = pnand %p15079_p2, %p15073_p13 }
  0x37   : > { %12343 = vmatprep.mubr.bf16.mxu0 %v14316_v10 }
  0x3e   : > { %12344 = vmatmul.mubr.bf16.gmra.mrb[4].mxu0 %v14317_v11 }
  0x3f   : > { %12347 = vmatprep.mubr.bf16.mxu0 %v14318_v12  ;;  %v14366_v12 = vld [vmem:[%s20358_s3 + $0x40] sm:$0xff]  }
  0x46   : > { %12348 = vmatmul.mubr.bf16.gmra.mrb[8].mxu0 %v14319_v13  ;;  %v20372_v13 = vmov 0.0  }
  0x47   : > { %12351 = vmatprep.mubr.bf16.mxu0 %v14320_v14  ;;  %12443 = vmatprep.subr.bf16.mxu1 %v20372_v13  ;;  %v14367_v14 = vld [vmem:[%s20358_s3 + $0xc0] sm:$0xff]  }
  0x48   : > { %12599 = vmatprep.subr.bf16.mxu0 %v20372_v13  ;;  %12444 = vmatpush3.bf16.msra.mxu1 %v14366_v12 }
  0x49   : > { %12445 = vmatprep.subr.bf16.mxu1 %v20372_v13  ;;  %12600 = vmatpush3.bf16.msra.mxu0 %v14367_v14 }
  0x4a   : > { %12601 = vmatprep.subr.bf16.mxu0 %v20372_v13  ;;  %12459 = vmatprep.mubr.msk.bf16.mxu1 %vm15135_vm0, %v20372_v13 }
  0x4e   : > { %12352 = vmatmul.mubr.bf16.gmra.mrb[12].mxu0 %v14321_v15  ;;  %v14368_v15 = vld [vmem:[%s20358_s3 + $0x48] sm:$0xff]  }
  0x4f   : > { %12355 = vmatprep.mubr.bf16.mxu0 %v14322_v16  ;;  %12446 = vmatpush3.bf16.msra.mxu1 %v14368_v15 }
  0x50   : > { %12447 = vmatprep.subr.bf16.mxu1 %v20372_v13 }
  0x56   : > { %12356 = vmatmul.mubr.bf16.gmra.mrb[16].mxu0 %v14323_v17 }
  0x57   : > { %12359 = vmatprep.mubr.bf16.mxu0 %v14324_v18  ;;  %v14369_v18 = vld [vmem:[%s20358_s3 + $0xc8] sm:$0xff]  }
  0x58   : > { %12602 = vmatpush3.bf16.msra.mxu0 %v14369_v18 }
  0x59   : > { %12603 = vmatprep.subr.bf16.mxu0 %v20372_v13 }
  0x5e   : > { %12360 = vmatmul.mubr.bf16.gmra.mrb[20].mxu0 %v14325_v19 }
  0x5f   : > { %12363 = vmatprep.mubr.bf16.mxu0 %v14326_v20 }
  0x66   : > { %12364 = vmatmul.mubr.bf16.gmra.mrb[24].mxu0 %v14327_v21  ;;  %v14370_v21 = vld [vmem:[%s20358_s3 + $0x50] sm:$0xff]  }
  0x67   : > { %12367 = vmatprep.mubr.bf16.mxu0 %v14328_v22  ;;  %12448 = vmatpush3.bf16.msra.mxu1 %v14370_v21  ;;  %v14371_v22 = vld [vmem:[%s20358_s3 + $0xd0] sm:$0xff]  }
  0x68   : > { %12449 = vmatprep.subr.bf16.mxu1 %v20372_v13  ;;  %12604 = vmatpush3.bf16.msra.mxu0 %v14371_v22 }
  0x69   : > { %12605 = vmatprep.subr.bf16.mxu0 %v20372_v13 }
  0x6e   : > { %12368 = vmatmul.mubr.bf16.gmra.mrb[28].mxu0 %v14329_v23  ;;  %v14372_v23 = vld [vmem:[%s20358_s3 + $0x58] sm:$0xff]  }
  0x6f   : > { %12371 = vmatprep.mubr.bf16.mxu0 %v14330_v24  ;;  %12450 = vmatpush3.bf16.msra.mxu1 %v14372_v23 }
  0x70   : > { %12451 = vmatprep.subr.bf16.mxu1 %v20372_v13 }
  0x76   : > { %12372 = vmatmul.mubr.bf16.gmra.mrb[32].mxu0 %v14331_v25  ;;  %v15394_v25 = vld [vmem:[%s20357_s2] ss:$0 sm:$0xff] }
  0x77   : > { %12375 = vmatprep.mubr.bf16.mxu0 %v14332_v26 }
  0x7e   : > { %12376 = vmatmul.mubr.bf16.gmra.mrb[36].mxu0 %v14333_v27  ;;  %v14373_v27 = vld [vmem:[%s20358_s3 + $0xd8] sm:$0xff]  }
  0x7f   : > { %12379 = vmatprep.mubr.bf16.mxu0 %v14334_v28  ;;  %12606 = vmatpush3.bf16.msra.mxu0 %v14373_v27 }
  0x80   : > { %12607 = vmatprep.subr.bf16.mxu0 %v20372_v13 }
  0x86   : > { %12380 = vmatmul.mubr.bf16.gmra.mrb[40].mxu0 %v14335_v29 }
  0x87   : > { %12383 = vmatprep.mubr.bf16.mxu0 %v14336_v30  ;;  %v14374_v30 = vld [vmem:[%s20358_s3 + $0x60] sm:$0xff]  }
  0x88   : > { %12452 = vmatpush3.bf16.msra.mxu1 %v14374_v30 }
  0x89   : > { %12453 = vmatprep.subr.bf16.mxu1 %v20372_v13 }
  0x8e   : > { %12384 = vmatmul.mubr.bf16.gmra.mrb[44].mxu0 %v14337_v31  ;;  %v14375_v31 = vld [vmem:[%s20358_s3 + $0xe0] sm:$0xff]  }
  0x8f   : > { %12387 = vmatprep.mubr.bf16.mxu0 %v14338_v32  ;;  %12608 = vmatpush3.bf16.msra.mxu0 %v14375_v31 }
  0x90   : > { %12609 = vmatprep.subr.bf16.mxu0 %v20372_v13 }
  0x96   : > { %12388 = vmatmul.mubr.bf16.gmra.mrb[48].mxu0 %v14339_v33  ;;  %v14376_v33 = vld [vmem:[%s20358_s3 + $0x68] sm:$0xff]  }
  0x97   : > { %12391 = vmatprep.mubr.bf16.mxu0 %v14340_v34  ;;  %12454 = vmatpush3.bf16.msra.mxu1 %v14376_v33 }
  0x98   : > { %12455 = vmatprep.subr.bf16.mxu1 %v20372_v13 }
  0x9e   : > { %12392 = vmatmul.mubr.bf16.gmra.mrb[52].mxu0 %v14341_v35 }
  0x9f   : > { %12395 = vmatprep.mubr.bf16.mxu0 %v14342_v36 }
  0xa6   : > { %12396 = vmatmul.mubr.bf16.gmra.mrb[56].mxu0 %v14343_v37 }
  0xa7   : > { %12399 = vmatprep.mubr.bf16.mxu0 %v14344_v38  ;;  %v14377_v38 = vld [vmem:[%s20358_s3 + $0xe8] sm:$0xff]  }
  0xa8   : > { %12610 = vmatpush3.bf16.msra.mxu0 %v14377_v38 }
  0xa9   : > { %12611 = vmatprep.subr.bf16.mxu0 %v20372_v13 }
  0xae   : > { %12400 = vmatmul.mubr.bf16.gmra.mrb[60].mxu0 %v14345_v39 }
  0xaf   : > { %12403 = vmatprep.mubr.bf16.mxu0 %v14346_v40 }
  0xb6   : > { %12404 = vmatmul.mubr.bf16.gmra.mrb[64].mxu0 %v14347_v41 }
  0xb7   : > { %12407 = vmatprep.mubr.bf16.mxu0 %v14348_v42 }
  0xbe   : > { %12408 = vmatmul.mubr.bf16.gmra.mrb[68].mxu0 %v14349_v43  ;;  %v14378_v43 = vld [vmem:[%s20358_s3 + $0x70] sm:$0xff]  }
  0xbf   : > { %12411 = vmatprep.mubr.bf16.mxu0 %v14350_v44  ;;  %12456 = vmatpush3.bf16.msra.mxu1 %v14378_v43 }
  0xc0   : > { %12457 = vmatprep.subr.bf16.mxu1 %v20372_v13 }
  0xc6   : > { %12412 = vmatmul.mubr.bf16.gmra.mrb[72].mxu0 %v14351_v45 }
  0xc7   : > { %12415 = vmatprep.mubr.bf16.mxu0 %v14352_v46  ;;  %v14379_v46 = vld [vmem:[%s20358_s3 + $0xf0] sm:$0xff]  }
  0xc8   : > { %12612 = vmatpush3.bf16.msra.mxu0 %v14379_v46 }
  0xc9   : > { %12613 = vmatprep.subr.bf16.mxu0 %v20372_v13 }
  0xce   : > { %12416 = vmatmul.mubr.bf16.gmra.mrb[76].mxu0 %v14353_v47 }
  0xcf   : > { %12419 = vmatprep.mubr.bf16.mxu0 %v14354_v48  ;;  %v14380_v48 = vld [vmem:[%s20358_s3 + $0x78] sm:$0xff]  }
  0xd0   : > { %12458 = vmatpush3.bf16.msra.mxu1 %v14380_v48 }
  0xd1   : > { %12495 = vmatprep.subr.bf16.mxu1 %v20372_v13 }
  0xd6   : > { %12420 = vmatmul.mubr.bf16.gmra.mrb[80].mxu0 %v14355_v49 }
  0xd7   : > { %12423 = vmatprep.mubr.bf16.mxu0 %v14356_v50 }
  0xde   : > { %12424 = vmatmul.mubr.bf16.gmra.mrb[84].mxu0 %v14357_v51 }
  0xdf   : > { %12427 = vmatprep.mubr.bf16.mxu0 %v14358_v52  ;;  %v14381_v52 = vld [vmem:[%s20358_s3 + $0xf8] sm:$0xff]  }
  0xe0   : > { %12614 = vmatpush3.bf16.msra.mxu0 %v14381_v52 }
  0xe1   : > { %12703 = vmatprep.subr.bf16.mxu0 %v20372_v13 }
  0xe6   : > { %12428 = vmatmul.mubr.bf16.gmra.mrb[88].mxu0 %v14359_v53 }
  0xe7   : > { %12431 = vmatprep.mubr.bf16.mxu0 %v14360_v54 }
  0xee   : > { %12432 = vmatmul.mubr.bf16.gmra.mrb[92].mxu0 %v14361_v55 }
  0xef   : > { %12435 = vmatprep.mubr.bf16.mxu0 %v14362_v56 }
  0xf6   : > { %12436 = vmatmul.mubr.bf16.gmra.mrb[96].mxu0 %v14363_v57 }
  0xf7   : > { %12439 = vmatprep.mubr.bf16.mxu0 %v14364_v58 }
  0xfe   : > { %12440 = vmatmul.mubr.bf16.gmra.mrb[100].mxu0 %v14365_v59 }
  0xff   : > { %12615 = vmatprep.mubr.msk.bf16.mxu0 %vm15135_vm0, %v20372_v13 }
 0x109   : > { %v15324_v60 = vpop.f32.mrb[0].mxu0 }
 0x10a   : > { %v902_v61 = vpop.f32.mrb[1].mxu0  ;;  %v911_v40 = vadd.f32 %v15324_v60, %v15394_v25 }
 0x10b   : > { %v15326_v62 = vpop.f32.mrb[2].mxu0  ;;  %v903_v32 = vadd.f32 %v15394_v25, %v902_v61 }
 0x10c   : > { %v905_v63 = vpop.f32.mrb[3].mxu0  ;;  %v914_v44 = vadd.f32 %v15326_v62, %v15394_v25 }
 0x10d   : > { %v906_v34 = vadd.f32 %v15394_v25, %v905_v63  ;;  %14780 = vtanh.f32 %v903_v32 }
 0x111   : > { %v15328_v0 = vpop.f32.mrb[4].mxu0 }
 0x112   : > { %v15330_v1 = vpop.f32.mrb[5].mxu0  ;;  %v927_v55 = vadd.f32 %v15328_v0, %v15394_v25 }
 0x113   : > { %v15332_v2 = vpop.f32.mrb[6].mxu0  ;;  %v919_v45 = vadd.f32 %v15394_v25, %v15330_v1 }
 0x114   : > { %v15334_v3 = vpop.f32.mrb[7].mxu0  ;;  %v930_v59 = vadd.f32 %v15332_v2, %v15394_v25 }
 0x115   : > { %v922_v47 = vadd.f32 %v15394_v25, %v15334_v3 }
 0x117   : > { %v14781_v58 = vpop.eup %14780 }
 0x119   : > { %v15336_v4 = vpop.f32.mrb[8].mxu0 }
 0x11a   : > { %v15338_v5 = vpop.f32.mrb[9].mxu0  ;;  %v943_v23 = vadd.f32 %v15336_v4, %v15394_v25 }
 0x11b   : > { %v15340_v6 = vpop.f32.mrb[10].mxu0  ;;  %v935_v62 = vadd.f32 %v15394_v25, %v15338_v5 }
 0x11c   : > { %v15342_v7 = vpop.f32.mrb[11].mxu0  ;;  %v946_v32 = vadd.f32 %v15340_v6, %v15394_v25 }
 0x11d   : > { %v938_v0 = vadd.f32 %v15394_v25, %v15342_v7 }
 0x121   : > { %v15344_v8 = vpop.f32.mrb[12].mxu0 }
 0x122   : > { %v15346_v9 = vpop.f32.mrb[13].mxu0 }
 0x123   : > { %v15348_v10 = vpop.f32.mrb[14].mxu0 }
 0x124   : > { %v15350_v11 = vpop.f32.mrb[15].mxu0 }
 0x125   : > { %v954_v4 = vadd.f32 %v15394_v25, %v15350_v11 }
 0x129   : > { %v15364_v16 = vpop.f32.mrb[16].mxu0 }
 0x12a   : > { %v15367_v17 = vpop.f32.mrb[17].mxu0 }
 0x12b   : > { %v15372_v19 = vpop.f32.mrb[18].mxu0 }
 0x12c   : > { %v15375_v20 = vpop.f32.mrb[19].mxu0 }
 0x131   : > { %v15388_v24 = vpop.f32.mrb[20].mxu0 }
 0x132   : > { %v15396_v26 = vpop.f32.mrb[21].mxu0 }
 0x133   : > { %v15401_v28 = vpop.f32.mrb[22].mxu0 }
 0x134   : > { %v15404_v29 = vpop.f32.mrb[23].mxu0 }
 0x139   : > { %v12365_v35 = vpop.f32.mrb[24].mxu0 }
 0x13a   : > { %v1007_v36 = vadd.f32 %v12365_v35, %v15394_v25  ;;  %v15421_v37 = vpop.f32.mrb[25].mxu0  ;;  %v951_v35 = vadd.f32 %v15394_v25, %v15346_v9 }
 0x13b   : > { %v12366_v39 = vpop.f32.mrb[26].mxu0 }
 0x13c   : > { %14782 = vtanh.f32 %v1007_v36  ;;  %v1010_v41 = vadd.f32 %v12366_v39, %v15394_v25  ;;  %v15430_v42 = vpop.f32.mrb[27].mxu0 }
 0x13d   : > { %14784 = vtanh.f32 %v906_v34 }
 0x13e   : > { %14786 = vtanh.f32 %v1010_v41 }
 0x13f   : > { %14788 = vtanh.f32 %v911_v40 }
 0x140   : > { %14790 = vtanh.f32 %v914_v44 }
 0x141   : > { %v12369_v49 = vpop.f32.mrb[28].mxu0  ;;  %14792 = vtanh.f32 %v919_v45 }
 0x142   : > { %v1023_v50 = vadd.f32 %v12369_v49, %v15394_v25  ;;  %v1014_v51 = vpop.f32.mrb[29].mxu0  ;;  %14794 = vtanh.f32 %v922_v47 }
 0x143   : > { %v1015_v53 = vadd.f32 %v15394_v25, %v1014_v51  ;;  %v12370_v54 = vpop.f32.mrb[30].mxu0 }
 0x144   : > { %14796 = vtanh.f32 %v1023_v50  ;;  %v1026_v56 = vadd.f32 %v12370_v54, %v15394_v25  ;;  %v1017_v57 = vpop.f32.mrb[31].mxu0  ;;  %v959_v50 = vadd.f32 %v15344_v8, %v15394_v25  ;;  %v962_v54 = vadd.f32 %v15348_v10, %v15394_v25 }
 0x145   : > { %14798 = vtanh.f32 %v1015_v53  ;;  %v1018_v60 = vadd.f32 %v15394_v25, %v1017_v57  ;;  %v967_v57 = vadd.f32 %v15394_v25, %v15367_v17  ;;  %v970_v8 = vadd.f32 %v15394_v25, %v15375_v20 }
 0x146   : > { %v14783_v61 = vpop.eup %14782  ;;  %14800 = vtanh.f32 %v1026_v56 }
 0x147   : > { %v14785_v63 = vpop.eup %14784  ;;  %v15471_v1 = vadd.f32 %v14783_v61, %v14781_v58  ;;  %14802 = vtanh.f32 %v1018_v60 }
 0x148   : > { %v14787_v2 = vpop.eup %14786  ;;  %14804 = vtanh.f32 %v927_v55 }
 0x149   : > { %14806 = vtanh.f32 %v930_v59  ;;  %v15473_v3 = vadd.f32 %v14787_v2, %v14785_v63  ;;  %v12373_v12 = vpop.f32.mrb[32].mxu0  ;;  %v14789_v14 = vpop.eup %14788 }
 0x14a   : > { %14808 = vtanh.f32 %v935_v62  ;;  %v1039_v15 = vadd.f32 %v12373_v12, %v15394_v25  ;;  %v1030_v18 = vpop.f32.mrb[33].mxu0  ;;  %v14791_v5 = vpop.eup %14790 }
 0x14b   : > { %14810 = vtanh.f32 %v938_v0  ;;  %v1031_v21 = vadd.f32 %v15394_v25, %v1030_v18  ;;  %v12374_v22 = vpop.f32.mrb[34].mxu0  ;;  %v14793_v7 = vpop.eup %14792 }
 0x14c   : > { %14812 = vtanh.f32 %v1039_v15  ;;  %v1042_v27 = vadd.f32 %v12374_v22, %v15394_v25  ;;  %v1033_v30 = vpop.f32.mrb[35].mxu0  ;;  %v14795_v31 = vpop.eup %14794 }
 0x14d   : > { %14814 = vtanh.f32 %v1031_v21  ;;  %v1034_v33 = vadd.f32 %v15394_v25, %v1033_v30 }
 0x14e   : > { %v14797_v34 = vpop.eup %14796  ;;  %14816 = vtanh.f32 %v1042_v27 }
 0x14f   : > { %v14799_v36 = vpop.eup %14798  ;;  %v15487_v38 = vadd.f32 %v14797_v34, %v14793_v7  ;;  %14818 = vtanh.f32 %v1034_v33 }
 0x150   : > { %v14801_v39 = vpop.eup %14800  ;;  %14820 = vtanh.f32 %v943_v23  ;;  %v15489_v40 = vadd.f32 %v14799_v36, %v14789_v14  ;;  %v978_v23 = vadd.f32 %v15372_v19, %v15394_v25 }
 0x151   : > { %v14803_v6 = vpop.eup %14802  ;;  %14822 = vtanh.f32 %v946_v32  ;;  %v15491_v41 = vadd.f32 %v14801_v39, %v14795_v31  ;;  %v12377_v43 = vpop.f32.mrb[36].mxu0  ;;  %v983_v31 = vadd.f32 %v15394_v25, %v15396_v26 }
 0x152   : > { %v14805_v44 = vpop.eup %14804  ;;  %14824 = vtanh.f32 %v951_v35  ;;  %v15493_v9 = vadd.f32 %v14803_v6, %v14791_v5  ;;  %v1055_v45 = vadd.f32 %v12377_v43, %v15394_v25  ;;  %v1046_v46 = vpop.f32.mrb[37].mxu0  ;;  %v975_v5 = vadd.f32 %v15364_v16, %v15394_v25 }
 0x153   : > { %v14807_v11 = vpop.eup %14806  ;;  %14826 = vtanh.f32 %v954_v4  ;;  %v1047_v47 = vadd.f32 %v15394_v25, %v1046_v46  ;;  %v12378_v48 = vpop.f32.mrb[38].mxu0  ;;  %v986_v16 = vadd.f32 %v15394_v25, %v15404_v29 }
 0x154   : > { %v14809_v49 = vpop.eup %14808  ;;  %14828 = vtanh.f32 %v1055_v45  ;;  %v1058_v51 = vadd.f32 %v12378_v48, %v15394_v25  ;;  %v1049_v52 = vpop.f32.mrb[39].mxu0 }
 0x155   : > { %v14811_v53 = vpop.eup %14810  ;;  %14830 = vtanh.f32 %v1047_v47  ;;  %v1050_v55 = vadd.f32 %v15394_v25, %v1049_v52 }
 0x156   : > { %v14813_v56 = vpop.eup %14812  ;;  %14832 = vtanh.f32 %v1058_v51 }
 0x157   : > { %v14815_v58 = vpop.eup %14814  ;;  %v15507_v59 = vadd.f32 %v14813_v56, %v14809_v49  ;;  %14834 = vtanh.f32 %v1050_v55 }
 0x158   : > { %v14817_v60 = vpop.eup %14816  ;;  %14836 = vtanh.f32 %v959_v50  ;;  %v15509_v61 = vadd.f32 %v14815_v58, %v14805_v44  ;;  %v994_v50 = vadd.f32 %v15401_v28, %v15394_v25 }
 0x159   : > { %v14819_v10 = vpop.eup %14818  ;;  %14838 = vtanh.f32 %v962_v54  ;;  %v15511_v62 = vadd.f32 %v14817_v60, %v14811_v53  ;;  %v12381_v63 = vpop.f32.mrb[40].mxu0  ;;  %v999_v53 = vadd.f32 %v15394_v25, %v15421_v37 }
 0x15a   : > { %v14821_v0 = vpop.eup %14820  ;;  %14840 = vtanh.f32 %v967_v57  ;;  %v15513_v17 = vadd.f32 %v14819_v10, %v14807_v11  ;;  %v1071_v2 = vadd.f32 %v12381_v63, %v15394_v25  ;;  %v1062_v12 = vpop.f32.mrb[41].mxu0  ;;  %v991_v11 = vadd.f32 %v15388_v24, %v15394_v25 }
 0x15b   : > { %v14823_v20 = vpop.eup %14822  ;;  %14842 = vtanh.f32 %v970_v8  ;;  %v1063_v14 = vadd.f32 %v15394_v25, %v1062_v12  ;;  %v12382_v15 = vpop.f32.mrb[42].mxu0  ;;  %v1002_v24 = vadd.f32 %v15394_v25, %v15430_v42 }
 0x15c   : > { %v14825_v18 = vpop.eup %14824  ;;  %14844 = vtanh.f32 %v1071_v2  ;;  %v1074_v21 = vadd.f32 %v12382_v15, %v15394_v25  ;;  %v1065_v22 = vpop.f32.mrb[43].mxu0 }
 0x15d   : > { %v14827_v7 = vpop.eup %14826  ;;  %14846 = vtanh.f32 %v1063_v14  ;;  %v1066_v27 = vadd.f32 %v15394_v25, %v1065_v22 }
 0x15e   : > { %v14829_v30 = vpop.eup %14828  ;;  %14848 = vtanh.f32 %v1074_v21 }
 0x15f   : > { %v14831_v32 = vpop.eup %14830  ;;  %v15527_v33 = vadd.f32 %v14829_v30, %v14825_v18  ;;  %14850 = vtanh.f32 %v1066_v27 }
 0x160   : > { %v14833_v34 = vpop.eup %14832  ;;  %14852 = vtanh.f32 %v975_v5  ;;  %v15529_v35 = vadd.f32 %v14831_v32, %v14821_v0 }
 0x161   : > { %v14835_v19 = vpop.eup %14834  ;;  %14854 = vtanh.f32 %v978_v23  ;;  %v15531_v36 = vadd.f32 %v14833_v34, %v14827_v7  ;;  %v12385_v4 = vpop.f32.mrb[44].mxu0 }
 0x162   : > { %v14837_v39 = vpop.eup %14836  ;;  %14856 = vtanh.f32 %v983_v31  ;;  %v15533_v26 = vadd.f32 %v14835_v19, %v14823_v20  ;;  %v1087_v6 = vadd.f32 %v12385_v4, %v15394_v25  ;;  %v1078_v43 = vpop.f32.mrb[45].mxu0 }
 0x163   : > { %v14839_v29 = vpop.eup %14838  ;;  %14858 = vtanh.f32 %v986_v16  ;;  %v1079_v44 = vadd.f32 %v15394_v25, %v1078_v43  ;;  %v12386_v45 = vpop.f32.mrb[46].mxu0 }
 0x164   : > { %v14841_v46 = vpop.eup %14840  ;;  %14860 = vtanh.f32 %v1087_v6  ;;  %v1090_v47 = vadd.f32 %v12386_v45, %v15394_v25  ;;  %v1081_v48 = vpop.f32.mrb[47].mxu0 }
 0x165   : > { %v14843_v49 = vpop.eup %14842  ;;  %14862 = vtanh.f32 %v1079_v44  ;;  %v1082_v51 = vadd.f32 %v15394_v25, %v1081_v48 }
 0x166   : > { %v14845_v52 = vpop.eup %14844  ;;  %14864 = vtanh.f32 %v1090_v47 }
 0x167   : > { %v14847_v54 = vpop.eup %14846  ;;  %v15547_v55 = vadd.f32 %v14845_v52, %v14841_v46  ;;  %14866 = vtanh.f32 %v1082_v51 }
 0x168   : > { %v14849_v56 = vpop.eup %14848  ;;  %14868 = vtanh.f32 %v991_v11  ;;  %v15549_v57 = vadd.f32 %v14847_v54, %v14837_v39 }
 0x169   : > { %v14851_v28 = vpop.eup %14850  ;;  %14870 = vtanh.f32 %v994_v50  ;;  %v15551_v58 = vadd.f32 %v14849_v56, %v14843_v49  ;;  %v12389_v8 = vpop.f32.mrb[48].mxu0 }
 0x16a   : > { %v14853_v60 = vpop.eup %14852  ;;  %14872 = vtanh.f32 %v999_v53  ;;  %v15553_v37 = vadd.f32 %v14851_v28, %v14839_v29  ;;  %v1103_v10 = vadd.f32 %v12389_v8, %v15394_v25  ;;  %v1094_v63 = vpop.f32.mrb[49].mxu0 }
 0x16b   : > { %v14855_v42 = vpop.eup %14854  ;;  %14874 = vtanh.f32 %v1002_v24  ;;  %v1095_v0 = vadd.f32 %v15394_v25, %v1094_v63  ;;  %v12390_v2 = vpop.f32.mrb[50].mxu0 }
 0x16c   : > { %v14857_v12 = vpop.eup %14856  ;;  %14876 = vtanh.f32 %v1103_v10  ;;  %v1106_v20 = vadd.f32 %v12390_v2, %v15394_v25  ;;  %v1097_v14 = vpop.f32.mrb[51].mxu0 }
 0x16d   : > { %v14859_v15 = vpop.eup %14858  ;;  %14878 = vtanh.f32 %v1095_v0  ;;  %v1098_v18 = vadd.f32 %v15394_v25, %v1097_v14 }
 0x16e   : > { %v14861_v5 = vpop.eup %14860  ;;  %14880 = vtanh.f32 %v1106_v20 }
 0x16f   : > { %v14863_v21 = vpop.eup %14862  ;;  %v15559_v22 = vadd.f32 %v14861_v5, %v14857_v12  ;;  %14882 = vtanh.f32 %v1098_v18 }
 0x170   : > { %v14865_v7 = vpop.eup %14864  ;;  %v15561_v23 = vadd.f32 %v14863_v21, %v14853_v60 }
 0x171   : > { %v14867_v27 = vpop.eup %14866  ;;  %v15563_v30 = vadd.f32 %v14865_v7, %v14859_v15  ;;  %v12393_v31 = vpop.f32.mrb[52].mxu0 }
 0x172   : > { %v14869_v32 = vpop.eup %14868  ;;  %v15565_v16 = vadd.f32 %v14867_v27, %v14855_v42  ;;  %v1119_v34 = vadd.f32 %v12393_v31, %v15394_v25  ;;  %v1110_v19 = vpop.f32.mrb[53].mxu0 }
 0x173   : > { %v14871_v4 = vpop.eup %14870  ;;  %v1111_v39 = vadd.f32 %v15394_v25, %v1110_v19  ;;  %v12394_v6 = vpop.f32.mrb[54].mxu0 }
 0x174   : > { %v14873_v43 = vpop.eup %14872  ;;  %14884 = vtanh.f32 %v1119_v34  ;;  %v1122_v29 = vadd.f32 %v12394_v6, %v15394_v25  ;;  %v1113_v44 = vpop.f32.mrb[55].mxu0 }
 0x175   : > { %v14875_v45 = vpop.eup %14874  ;;  %14886 = vtanh.f32 %v1111_v39  ;;  %v1114_v46 = vadd.f32 %v15394_v25, %v1113_v44 }
 0x176   : > { %v14877_v11 = vpop.eup %14876  ;;  %14888 = vtanh.f32 %v1122_v29 }
 0x177   : > { %v14879_v47 = vpop.eup %14878  ;;  %v15571_v48 = vadd.f32 %v14877_v11, %v14873_v43  ;;  %14890 = vtanh.f32 %v1114_v46 }
 0x178   : > { %v14881_v49 = vpop.eup %14880  ;;  %v15573_v50 = vadd.f32 %v14879_v47, %v14869_v32 }
 0x179   : > { %v14883_v51 = vpop.eup %14882  ;;  %v15575_v52 = vadd.f32 %v14881_v49, %v14875_v45  ;;  %v12397_v53 = vpop.f32.mrb[56].mxu0 }
 0x17a   : > { %v15577_v54 = vadd.f32 %v14883_v51, %v14871_v4  ;;  %v1135_v24 = vadd.f32 %v12397_v53, %v15394_v25  ;;  %v1126_v56 = vpop.f32.mrb[57].mxu0 }
 0x17b   : > { %v1127_v28 = vadd.f32 %v15394_v25, %v1126_v56  ;;  %v12398_v8 = vpop.f32.mrb[58].mxu0 }
 0x17c   : > { %14892 = vtanh.f32 %v1135_v24  ;;  %v1138_v60 = vadd.f32 %v12398_v8, %v15394_v25  ;;  %v1129_v10 = vpop.f32.mrb[59].mxu0 }
 0x17d   : > { %14894 = vtanh.f32 %v1127_v28  ;;  %v1130_v63 = vadd.f32 %v15394_v25, %v1129_v10 }
 0x17e   : > { %v14885_v42 = vpop.eup %14884  ;;  %14896 = vtanh.f32 %v1138_v60 }
 0x17f   : > { %v14887_v0 = vpop.eup %14886  ;;  %v15584_v2 = vadd.f32 %v14885_v42, %v15489_v40  ;;  %14898 = vtanh.f32 %v1130_v63 }
 0x180   : > { %v14889_v12 = vpop.eup %14888  ;;  %v15587_v20 = vadd.f32 %v14887_v0, %v15471_v1 }
 0x181   : > { %v14891_v14 = vpop.eup %14890  ;;  %v15590_v15 = vadd.f32 %v14889_v12, %v15493_v9  ;;  %v12401_v18 = vpop.f32.mrb[60].mxu0 }
 0x182   : > { %v15593_v5 = vadd.f32 %v14891_v14, %v15473_v3  ;;  %v1151_v21 = vadd.f32 %v12401_v18, %v15394_v25  ;;  %v1142_v7 = vpop.f32.mrb[61].mxu0 }
 0x183   : > { %v1143_v27 = vadd.f32 %v15394_v25, %v1142_v7  ;;  %v12402_v40 = vpop.f32.mrb[62].mxu0 }
 0x184   : > { %14900 = vtanh.f32 %v1151_v21  ;;  %v1154_v31 = vadd.f32 %v12402_v40, %v15394_v25  ;;  %v1145_v32 = vpop.f32.mrb[63].mxu0 }
 0x185   : > { %14902 = vtanh.f32 %v1143_v27  ;;  %v1146_v1 = vadd.f32 %v15394_v25, %v1145_v32 }
 0x186   : > { %v14893_v34 = vpop.eup %14892  ;;  %14904 = vtanh.f32 %v1154_v31 }
 0x187   : > { %v14895_v9 = vpop.eup %14894  ;;  %v15600_v19 = vadd.f32 %v14893_v34, %v15509_v61  ;;  %14906 = vtanh.f32 %v1146_v1 }
 0x188   : > { %v14897_v3 = vpop.eup %14896  ;;  %v15603_v4 = vadd.f32 %v14895_v9, %v15487_v38 }
 0x189   : > { %v14899_v39 = vpop.eup %14898  ;;  %v15606_v6 = vadd.f32 %v14897_v3, %v15513_v17  ;;  %v12405_v43 = vpop.f32.mrb[64].mxu0 }
 0x18a   : > { %v15609_v29 = vadd.f32 %v14899_v39, %v15491_v41  ;;  %v1167_v44 = vadd.f32 %v12405_v43, %v15394_v25  ;;  %v1158_v45 = vpop.f32.mrb[65].mxu0 }
 0x18b   : > { %v1159_v46 = vadd.f32 %v15394_v25, %v1158_v45  ;;  %v12406_v61 = vpop.f32.mrb[66].mxu0 }
 0x18c   : > { %14908 = vtanh.f32 %v1167_v44  ;;  %v1170_v11 = vadd.f32 %v12406_v61, %v15394_v25  ;;  %v1161_v47 = vpop.f32.mrb[67].mxu0 }
 0x18d   : > { %14910 = vtanh.f32 %v1159_v46  ;;  %v1162_v38 = vadd.f32 %v15394_v25, %v1161_v47 }
 0x18e   : > { %v14901_v49 = vpop.eup %14900  ;;  %14912 = vtanh.f32 %v1170_v11 }
 0x18f   : > { %v14903_v17 = vpop.eup %14902  ;;  %v15616_v51 = vadd.f32 %v14901_v49, %v15529_v35  ;;  %14914 = vtanh.f32 %v1162_v38 }
 0x190   : > { %v14905_v41 = vpop.eup %14904  ;;  %v15619_v53 = vadd.f32 %v14903_v17, %v15507_v59 }
 0x191   : > { %v14907_v24 = vpop.eup %14906  ;;  %v15622_v56 = vadd.f32 %v14905_v41, %v15533_v26  ;;  %v12409_v28 = vpop.f32.mrb[68].mxu0 }
 0x192   : > { %v15625_v8 = vadd.f32 %v14907_v24, %v15511_v62  ;;  %v1183_v60 = vadd.f32 %v12409_v28, %v15394_v25  ;;  %v1174_v10 = vpop.f32.mrb[69].mxu0 }
 0x193   : > { %v1175_v63 = vadd.f32 %v15394_v25, %v1174_v10  ;;  %v12410_v35 = vpop.f32.mrb[70].mxu0 }
 0x194   : > { %14916 = vtanh.f32 %v1183_v60  ;;  %v1186_v42 = vadd.f32 %v12410_v35, %v15394_v25  ;;  %v1177_v0 = vpop.f32.mrb[71].mxu0 }
 0x195   : > { %14918 = vtanh.f32 %v1175_v63  ;;  %v1178_v59 = vadd.f32 %v15394_v25, %v1177_v0 }
 0x196   : > { %v14909_v12 = vpop.eup %14908  ;;  %14920 = vtanh.f32 %v1186_v42 }
 0x197   : > { %v14911_v26 = vpop.eup %14910  ;;  %v15632_v14 = vadd.f32 %v14909_v12, %v15549_v57  ;;  %14922 = vtanh.f32 %v1178_v59 }
 0x198   : > { %v14913_v62 = vpop.eup %14912  ;;  %v15635_v18 = vadd.f32 %v14911_v26, %v15527_v33  ;;  %v15648_v33 = vld [vmem:[%s20357_s2] ss:$0 sm:$0xff] }
 0x199   : > { %v14915_v21 = vpop.eup %14914  ;;  %v15638_v7 = vadd.f32 %v14913_v62, %v15553_v37  ;;  %v12413_v27 = vpop.f32.mrb[72].mxu0 }
 0x19a   : > { %v15641_v40 = vadd.f32 %v14915_v21, %v15531_v36  ;;  %v1199_v31 = vadd.f32 %v12413_v27, %v15394_v25  ;;  %v1190_v32 = vpop.f32.mrb[73].mxu0 }
 0x19b   : > { %v1191_v1 = vadd.f32 %v15394_v25, %v1190_v32  ;;  %v12414_v57 = vpop.f32.mrb[74].mxu0 }
 0x19c   : > { %14924 = vtanh.f32 %v1199_v31  ;;  %v1202_v34 = vadd.f32 %v15648_v33, %v12414_v57  ;;  %v1193_v37 = vpop.f32.mrb[75].mxu0 }
 0x19d   : > { %14926 = vtanh.f32 %v1191_v1  ;;  %v1194_v9 = vadd.f32 %v15648_v33, %v1193_v37 }
 0x19e   : > { %v14917_v36 = vpop.eup %14916  ;;  %14928 = vtanh.f32 %v1202_v34 }
 0x19f   : > { %v14919_v3 = vpop.eup %14918  ;;  %v15653_v39 = vadd.f32 %v14917_v36, %v15561_v23  ;;  %14930 = vtanh.f32 %v1194_v9 }
 0x1a0   : > { %v14921_v25 = vpop.eup %14920  ;;  %v15656_v43 = vadd.f32 %v14919_v3, %v15547_v55 }
 0x1a1   : > { %v14923_v44 = vpop.eup %14922  ;;  %v15659_v45 = vadd.f32 %v14921_v25, %v15565_v16  ;;  %v12417_v46 = vpop.f32.mrb[76].mxu0 }
 0x1a2   : > { %v15662_v61 = vadd.f32 %v14923_v44, %v15551_v58  ;;  %v1215_v11 = vadd.f32 %v15648_v33, %v12417_v46  ;;  %v1206_v47 = vpop.f32.mrb[77].mxu0 }
 0x1a3   : > { %v1207_v38 = vadd.f32 %v15648_v33, %v1206_v47  ;;  %v12418_v23 = vpop.f32.mrb[78].mxu0 }
 0x1a4   : > { %14932 = vtanh.f32 %v1215_v11  ;;  %v1218_v49 = vadd.f32 %v15648_v33, %v12418_v23  ;;  %v1209_v17 = vpop.f32.mrb[79].mxu0 }
 0x1a5   : > { %14934 = vtanh.f32 %v1207_v38  ;;  %v1210_v55 = vadd.f32 %v15648_v33, %v1209_v17 }
 0x1a6   : > { %v14925_v41 = vpop.eup %14924  ;;  %14936 = vtanh.f32 %v1218_v49 }
 0x1a7   : > { %v14927_v16 = vpop.eup %14926  ;;  %v15669_v24 = vadd.f32 %v14925_v41, %v15573_v50  ;;  %14938 = vtanh.f32 %v1210_v55 }
 0x1a8   : > { %v14929_v58 = vpop.eup %14928  ;;  %v15672_v28 = vadd.f32 %v14927_v16, %v15559_v22 }
 0x1a9   : > { %v14931_v60 = vpop.eup %14930  ;;  %v15675_v10 = vadd.f32 %v14929_v58, %v15577_v54  ;;  %v12421_v63 = vpop.f32.mrb[80].mxu0 }
 0x1aa   : > { %v15678_v35 = vadd.f32 %v14931_v60, %v15563_v30  ;;  %v1231_v42 = vadd.f32 %v15648_v33, %v12421_v63  ;;  %v1222_v0 = vpop.f32.mrb[81].mxu0 }
 0x1ab   : > { %v1223_v59 = vadd.f32 %v15648_v33, %v1222_v0  ;;  %v12422_v50 = vpop.f32.mrb[82].mxu0 }
 0x1ac   : > { %14940 = vtanh.f32 %v1231_v42  ;;  %v1234_v12 = vadd.f32 %v15648_v33, %v12422_v50  ;;  %v1225_v26 = vpop.f32.mrb[83].mxu0 }
 0x1ad   : > { %14942 = vtanh.f32 %v1223_v59  ;;  %v1226_v22 = vadd.f32 %v15648_v33, %v1225_v26 }
 0x1ae   : > { %v14933_v62 = vpop.eup %14932  ;;  %14944 = vtanh.f32 %v1234_v12 }
 0x1af   : > { %v14935_v54 = vpop.eup %14934  ;;  %v1473_v21 = vadd.f32 %v14933_v62, %v15587_v20  ;;  %14946 = vtanh.f32 %v1226_v22 }
 0x1b0   : > { %v14937_v30 = vpop.eup %14936  ;;  %v15686_v27 = vadd.f32 %v14935_v54, %v15571_v48 }
 0x1b1   : > { %v14939_v31 = vpop.eup %14938  ;;  %v1474_v32 = vadd.f32 %v14937_v30, %v15593_v5  ;;  %v12425_v1 = vpop.f32.mrb[84].mxu0  ;;  %v1499_v9 = vmul.f32 0.25, %v1473_v21 }
 0x1b2   : > { %v15690_v57 = vadd.f32 %v14939_v31, %v15575_v52  ;;  %v1247_v34 = vadd.f32 %v15648_v33, %v12425_v1  ;;  %v1238_v37 = vpop.f32.mrb[85].mxu0 }
 0x1b3   : > { %v1500_v36 = vmul.f32 0.25, %v1474_v32  ;;  %v1239_v3 = vadd.f32 %v15648_v33, %v1238_v37  ;;  %v12426_v20 = vpop.f32.mrb[86].mxu0 }
 0x1b4   : > { %14948 = vtanh.f32 %v1247_v34  ;;  %v1250_v25 = vadd.f32 %v15648_v33, %v12426_v20  ;;  %v1241_v48 = vpop.f32.mrb[87].mxu0 }
 0x1b5   : > { %v15695_v44 = vpack.c.bf16 %v1500_v36, %v1499_v9  ;;  %14950 = vtanh.f32 %v1239_v3  ;;  %v1242_v5 = vadd.f32 %v15648_v33, %v1241_v48 }
 0x1b6   : > { %v14941_v46 = vpop.eup %14940  ;;  %14952 = vtanh.f32 %v1250_v25 }
 0x1b7   : > { %v14943_v52 = vpop.eup %14942  ;;  %1538 = vst [vmem:[#allocation2] sm:$0xff] %v15695_v44  ;;  %v1477_v11 = vadd.f32 %v14941_v46, %v15603_v4  ;;  %14954 = vtanh.f32 %v1242_v5  ;;  %v1598_v47 = vshll.u32 %v15695_v44, 16  ;;  %v1596_v59 = vshrl.u32 %v15695_v44, 16 }
 0x1b8   : > { %v14945_v38 = vpop.eup %14944  ;;  %v1475_v23 = vadd.f32 %v14943_v52, %v15584_v2 }
 0x1b9   : > { %v14947_v49 = vpop.eup %14946  ;;  %v1478_v17 = vadd.f32 %v14945_v38, %v15609_v29  ;;  %v12429_v55 = vpop.f32.mrb[88].mxu0  ;;  %v1600_v60 = vrot.slane %v1598_v47, 1  ;;  %v1503_v63 = vmul.f32 0.25, %v1477_v11 }
 0x1ba   : > { %v1476_v41 = vadd.f32 %v14947_v49, %v15590_v15  ;;  %v1263_v16 = vadd.f32 %v15648_v33, %v12429_v55  ;;  %v1254_v58 = vpop.f32.mrb[89].mxu0  ;;  %v1501_v50 = vmul.f32 0.25, %v1475_v23  ;;  %v14382_v23 = vld [vmem:[%s20358_s3] sm:$0xff]  }
 0x1bb   : > { %v1504_v42 = vmul.f32 0.25, %v1478_v17  ;;  %v1255_v4 = vadd.f32 %v15648_v33, %v1254_v58  ;;  %v12430_v0 = vpop.f32.mrb[90].mxu0  ;;  %v1601_v54 = vor.u32 %v1600_v60, %v1596_v59 }
 0x1bc   : > { %v1502_v12 = vmul.f32 0.25, %v1476_v41  ;;  %14956 = vtanh.f32 %v1263_v16  ;;  %v1266_v2 = vadd.f32 %v15648_v33, %v12430_v0  ;;  %v1257_v29 = vpop.f32.mrb[91].mxu0 }
 0x1bd   : > { %v15708_v26 = vpack.c.bf16 %v1504_v42, %v1503_v63  ;;  %14958 = vtanh.f32 %v1255_v4  ;;  %v1258_v15 = vadd.f32 %v15648_v33, %v1257_v29 }
 0x1be   : > { %v14949_v22 = vpop.eup %14948  ;;  %v15711_v62 = vpack.c.bf16 %v1502_v12, %v1501_v50  ;;  %14960 = vtanh.f32 %v1266_v2  ;;  %v1986_v21 = vld [vmem:[#allocation2] sm:$0xfe]  ;;  %v14383_v12 = vld [vmem:[%s20358_s3 + $0x8] sm:$0xff]  }
 0x1bf   : > { %v14951_v30 = vpop.eup %14950  ;;  %1540 = vst [vmem:[#allocation2 + $0x10] sm:$0xff] %v15708_v26  ;;  %v1481_v31 = vadd.f32 %v14949_v22, %v15619_v53  ;;  %14962 = vtanh.f32 %v1258_v15  ;;  %v2234_v32 = vshrl.u32 %v1986_v21, 16  ;;  %v2237_v1 = vshll.u32 %v1986_v21, 16 }
 0x1c0   : > { %v14953_v34 = vpop.eup %14952  ;;  %1539 = vst [vmem:[#allocation2 + $0x8] sm:$0xff] %v15711_v62  ;;  %v1479_v37 = vadd.f32 %v14951_v30, %v15600_v19  ;;  %v15718_v9 = vshll.u32 %v15711_v62, 16  ;;  %v15721_v36 = vshrl.u32 %v15711_v62, 16  ;;  %v15724_v3 = vshll.u32 %v15708_v26, 16 }
 0x1c1   : > { %v14955_v20 = vpop.eup %14954  ;;  %v1507_v25 = vmul.f32 0.25, %v1481_v31  ;;  %v1482_v53 = vadd.f32 %v14953_v34, %v15625_v8  ;;  %v12433_v48 = vpop.f32.mrb[92].mxu0  ;;  %v2236_v5 = vrot.slane %v2234_v32, 1  ;;  %v2239_v46 = vrot.slane %v2237_v1, 2 }
 0x1c2   : > { %v1505_v52 = vmul.f32 0.25, %v1479_v37  ;;  %v1480_v11 = vadd.f32 %v14955_v20, %v15606_v6  ;;  %v1279_v19 = vadd.f32 %v15648_v33, %v12433_v48  ;;  %v1270_v47 = vpop.f32.mrb[93].mxu0  ;;  %v1605_v38 = vrot.slane %v15718_v9, 1 }
 0x1c3   : > { %v1508_v49 = vmul.f32 0.25, %v1482_v53  ;;  %v1271_v17 = vadd.f32 %v15648_v33, %v1270_v47  ;;  %v12434_v55 = vpop.f32.mrb[94].mxu0  ;;  %v2240_v8 = vor.u32 %v2239_v46, %v2236_v5  ;;  %v2241_v41 = vrot.slane %v15721_v36, 1 }
 0x1c4   : > { %v1506_v16 = vmul.f32 0.25, %v1480_v11  ;;  %14964 = vtanh.f32 %v1279_v19  ;;  %v1282_v6 = vadd.f32 %v15648_v33, %v12434_v55  ;;  %v1273_v58 = vpop.f32.mrb[95].mxu0  ;;  %v1606_v60 = vsel %vm1594_vm1, %v1601_v54, %v1605_v38 }
 0x1c5   : > { %v15737_v63 = vpack.c.bf16 %v1508_v49, %v1507_v25  ;;  %14966 = vtanh.f32 %v1271_v17  ;;  %v1274_v42 = vadd.f32 %v15648_v33, %v1273_v58  ;;  %12460 = vmatmul.mubr.bf16.vlgmr.msra.gmra.mrb[0].mxu1 %v1606_v60  ;;  %v2242_v4 = vrot.slane %v15718_v9, 2  ;;  %v14388_v17 = vld [vmem:[%s20358_s3 + $0x148] sm:$0xff]   ;;  %v14385_v60 = vld [vmem:[%s20358_s3 + $0x18] sm:$0xff]  }
 0x1c6   : > { %v14957_v0 = vpop.eup %14956  ;;  %v15741_v59 = vpack.c.bf16 %v1506_v16, %v1505_v52  ;;  %14968 = vtanh.f32 %v1282_v6  ;;  %12496 = vmatpush3.bf16.msra.mxu1 %v14382_v23  ;;  %12463 = vmatprep.mubr.msk.bf16.mxu1 %vm15135_vm0, %v20372_v13  ;;  %v1609_v50 = vor.u32 %v15721_v36, %v1605_v38  ;;  %v15754_v22 = vshrl.u32 %v15708_v26, 16 }
 0x1c7   : > { %v14959_v2 = vpop.eup %14958  ;;  %1542 = vst [vmem:[#allocation2 + $0x20] sm:$0xff] %v15737_v63  ;;  %v1485_v29 = vadd.f32 %v14957_v0, %v15635_v18  ;;  %14970 = vtanh.f32 %v1274_v42  ;;  %v15751_v15 = vor.u32 %v2242_v4, %v2241_v41  ;;  %12497 = vmatprep.subr.bf16.mxu1 %v20372_v13  ;;  %v1613_v30 = vrot.slane %v15724_v3, 1  ;;  %v14387_v18 = vld [vmem:[%s20358_s3 + $0x140] sm:$0xff]  }
 0x1c8   : > { %v14961_v54 = vpop.eup %14960  ;;  %1541 = vst [vmem:[#allocation2 + $0x18] sm:$0xff] %v15741_v59  ;;  %v1483_v21 = vadd.f32 %v14959_v2, %v15616_v51  ;;  %v2246_v31 = vrot.slane %v15724_v3, 2  ;;  %v2245_v20 = vrot.slane %v15754_v22, 1  ;;  %v15772_v5 = vshll.u32 %v15741_v59, 16  ;;  %v14390_v2 = vld [vmem:[%s20358_s3 + $0x150] sm:$0xff]  }
 0x1c9   : > { %v14963_v32 = vpop.eup %14962  ;;  %v1486_v1 = vadd.f32 %v14961_v54, %v15641_v40  ;;  %v12437_v34 = vpop.f32.mrb[96].mxu0  ;;  %v2244_v37 = vsel %vm2232_vm2, %v2240_v8, %v15751_v15  ;;  %v1614_v48 = vsel %vm1594_vm1, %v1609_v50, %v1613_v30  ;;  %v14384_v40 = vld [vmem:[%s20358_s3 + $0x10] sm:$0xff]   ;;  %v1511_v46 = vmul.f32 0.25, %v1485_v29 }
 0x1ca   : > { %v1484_v25 = vadd.f32 %v14963_v32, %v15622_v56  ;;  %v1295_v51 = vadd.f32 %v15648_v33, %v12437_v34  ;;  %v1286_v53 = vpop.f32.mrb[97].mxu0  ;;  %12616 = vmatmul.mubr.bf16.vlgmr.msra.gmra.mrb[104].mxu0 %v2244_v37  ;;  %12498 = vmatpush3.bf16.msra.mxu1 %v14383_v12  ;;  %v1509_v52 = vmul.f32 0.25, %v1483_v21  ;;  %v15782_v49 = vor.u32 %v2246_v31, %v2245_v20 }
 0x1cb   : > { %v1512_v11 = vmul.f32 0.25, %v1486_v1  ;;  %v1287_v19 = vadd.f32 %v15648_v33, %v1286_v53  ;;  %v12438_v56 = vpop.f32.mrb[98].mxu0  ;;  %12619 = vmatprep.mubr.msk.bf16.mxu0 %vm15135_vm0, %v20372_v13  ;;  %12499 = vmatprep.subr.bf16.mxu1 %v20372_v13  ;;  %v15791_v41 = vshrl.u32 %v15741_v59, 16  ;;  %v1621_v58 = vrot.slane %v15772_v5, 1 }
 0x1cc   : > { %v1510_v47 = vmul.f32 0.25, %v1484_v25  ;;  %14972 = vtanh.f32 %v1295_v51  ;;  %v1298_v38 = vadd.f32 %v15648_v33, %v12438_v56  ;;  %v1289_v23 = vpop.f32.mrb[99].mxu0  ;;  %12704 = vmatpush3.bf16.msra.mxu0 %v14387_v18  ;;  %v1617_v12 = vor.u32 %v15754_v22, %v1613_v30 }
 0x1cd   : > { %v15787_v55 = vpack.c.bf16 %v1512_v11, %v1511_v46  ;;  %14974 = vtanh.f32 %v1287_v19  ;;  %v1290_v8 = vadd.f32 %v15648_v33, %v1289_v23  ;;  %12464 = vmatmul.mubr.bf16.gmra.mrb[4].mxu1 %v1614_v48  ;;  %12705 = vmatprep.subr.bf16.mxu0 %v20372_v13  ;;  %v2249_v31 = vrot.slane %v15791_v41, 1  ;;  %v14391_v46 = vld [vmem:[%s20358_s3 + $0x158] sm:$0xff]  }
 0x1ce   : > { %v14965_v16 = vpop.eup %14964  ;;  %v15794_v6 = vpack.c.bf16 %v1510_v47, %v1509_v52  ;;  %14976 = vtanh.f32 %v1298_v38  ;;  %12467 = vmatprep.mubr.msk.bf16.mxu1 %vm15135_vm0, %v20372_v13  ;;  %12500 = vmatpush3.bf16.msra.mxu1 %v14384_v40  ;;  %v2250_v18 = vrot.slane %v15772_v5, 2  ;;  %v15824_v1 = vshll.u32 %v15737_v63, 16  ;;  %v14389_v38 = vld [vmem:[%s20358_s3 + $0x28] sm:$0xff]  }
 0x1cf   : > { %v14967_v42 = vpop.eup %14966  ;;  %1544 = vst [vmem:[#allocation2 + $0x30] sm:$0xff] %v15787_v55  ;;  %v1489_v4 = vadd.f32 %v14965_v16, %v15656_v43  ;;  %14978 = vtanh.f32 %v1290_v8  ;;  %12501 = vmatprep.subr.bf16.mxu1 %v20372_v13  ;;  %v2248_v43 = vsel %vm2232_vm2, %v15751_v15, %v15782_v49  ;;  %v14386_v15 = vld [vmem:[%s20358_s3 + $0x20] sm:$0xff]   ;;  %v15833_v25 = vshrl.u32 %v15737_v63, 16 }
 0x1d0   : > { %v14969_v0 = vpop.eup %14968  ;;  %1543 = vst [vmem:[#allocation2 + $0x28] sm:$0xff] %v15794_v6  ;;  %v1487_v50 = vadd.f32 %v14967_v42, %v15632_v14  ;;  %12706 = vmatpush3.bf16.msra.mxu0 %v14388_v17  ;;  %v15843_v19 = vor.u32 %v2250_v18, %v2249_v31  ;;  %v1625_v16 = vor.u32 %v15791_v41, %v1621_v58  ;;  %v15887_v18 = vshrl.u32 %v15794_v6, 16 }
 0x1d1   : > { %v14971_v29 = vpop.eup %14970  ;;  %v1490_v54 = vadd.f32 %v14969_v0, %v15662_v61  ;;  %v12441_v21 = vpop.f32.mrb[100].mxu0  ;;  %12707 = vmatprep.subr.bf16.mxu0 %v20372_v13  ;;  %v1622_v61 = vsel %vm1594_vm1, %v1617_v12, %v1621_v58  ;;  %v1515_v34 = vmul.f32 0.25, %v1489_v4  ;;  %v2253_v0 = vrot.slane %v15833_v25, 1 }
 0x1d2   : > { %v1488_v14 = vadd.f32 %v14971_v29, %v15638_v7  ;;  %v1311_v30 = vadd.f32 %v15648_v33, %v12441_v21  ;;  %v1302_v32 = vpop.f32.mrb[101].mxu0  ;;  %12620 = vmatmul.mubr.bf16.gmra.mrb[108].mxu0 %v2248_v43  ;;  %12502 = vmatpush3.bf16.msra.mxu1 %v14385_v60  ;;  %v1513_v51 = vmul.f32 0.25, %v1487_v50  ;;  %v14393_v60 = vld [vmem:[%s20358_s3 + $0x160] sm:$0xff]   ;;  %v2252_v4 = vsel %vm2232_vm2, %v15782_v49, %v15843_v19  ;;  %v14394_v21 = vld [vmem:[%s20358_s3 + $0x168] sm:$0xff]  }
 0x1d3   : > { %v1516_v37 = vmul.f32 0.25, %v1490_v54  ;;  %v1303_v7 = vadd.f32 %v15648_v33, %v1302_v32  ;;  %v12442_v20 = vpop.f32.mrb[102].mxu0  ;;  %12623 = vmatprep.mubr.msk.bf16.mxu0 %vm15135_vm0, %v20372_v13  ;;  %12503 = vmatprep.subr.bf16.mxu1 %v20372_v13  ;;  %v1629_v50 = vrot.slane %v15824_v1, 1  ;;  %v14396_v32 = vld [vmem:[%s20358_s3 + $0x38] sm:$0xff]  }
 0x1d4   : > { %v1514_v53 = vmul.f32 0.25, %v1488_v14  ;;  %14980 = vtanh.f32 %v1311_v30  ;;  %v1314_v48 = vadd.f32 %v15648_v33, %v12442_v20  ;;  %v1305_v40 = vpop.f32.mrb[103].mxu0  ;;  %12708 = vmatpush3.bf16.msra.mxu0 %v14390_v2  ;;  %v14395_v20 = vld [vmem:[%s20358_s3 + $0x170] sm:$0xff]  }
 0x1d5   : > { %v15840_v52 = vpack.c.bf16 %v1516_v37, %v1515_v34  ;;  %14982 = vtanh.f32 %v1303_v7  ;;  %v1306_v11 = vadd.f32 %v15648_v33, %v1305_v40  ;;  %12468 = vmatmul.mubr.bf16.gmra.mrb[8].mxu1 %v1622_v61  ;;  %12709 = vmatprep.subr.bf16.mxu0 %v20372_v13  ;;  %v1630_v54 = vsel %vm1594_vm1, %v1625_v16, %v1629_v50 }
 0x1d6   : > { %v14973_v56 = vpop.eup %14972  ;;  %v15846_v47 = vpack.c.bf16 %v1514_v53, %v1513_v51  ;;  %14984 = vtanh.f32 %v1314_v48  ;;  %12471 = vmatprep.mubr.msk.bf16.mxu1 %vm15135_vm0, %v20372_v13  ;;  %12504 = vmatpush3.bf16.msra.mxu1 %v14386_v15  ;;  %v2257_v48 = vrot.slane %v15887_v18, 1 }
 0x1d7   : > { %v14975_v23 = vpop.eup %14974  ;;  %1546 = vst [vmem:[#allocation2 + $0x40] sm:$0xff] %v15840_v52  ;;  %v1493_v33 = vadd.f32 %v14973_v56, %v15672_v28  ;;  %14986 = vtanh.f32 %v1306_v11  ;;  %12505 = vmatprep.subr.bf16.mxu1 %v20372_v13 }
 0x1d8   : > { %v14977_v17 = vpop.eup %14976  ;;  %1545 = vst [vmem:[#allocation2 + $0x38] sm:$0xff] %v15846_v47  ;;  %v1491_v8 = vadd.f32 %v14975_v23, %v15653_v39  ;;  %12710 = vmatpush3.bf16.msra.mxu0 %v14391_v46  ;;  %v2254_v39 = vrot.slane %v15824_v1, 2  ;;  %v1633_v46 = vor.u32 %v15833_v25, %v1629_v50 }
 0x1d9   : > { %v14979_v42 = vpop.eup %14978  ;;  %v1494_v28 = vadd.f32 %v14977_v17, %v15678_v35  ;;  %12711 = vmatprep.subr.bf16.mxu0 %v20372_v13  ;;  %v14392_v35 = vld [vmem:[%s20358_s3 + $0x30] sm:$0xff]   ;;  %v1519_v12 = vmul.f32 0.25, %v1493_v33  ;;  %v15921_v17 = vshll.u32 %v15787_v55, 16 }
 0x1da   : > { %v1492_v58 = vadd.f32 %v14979_v42, %v15659_v45  ;;  %12624 = vmatmul.mubr.bf16.gmra.mrb[112].mxu0 %v2252_v4  ;;  %12506 = vmatpush3.bf16.msra.mxu1 %v14389_v38  ;;  %v1517_v49 = vmul.f32 0.25, %v1491_v8  ;;  %v15881_v45 = vshll.u32 %v15794_v6, 16  ;;  %v2255_v31 = vor.u32 %v2254_v39, %v2253_v0 }
 0x1db   : > { %v1520_v2 = vmul.f32 0.25, %v1494_v28  ;;  %12627 = vmatprep.mubr.msk.bf16.mxu0 %vm15135_vm0, %v20372_v13  ;;  %12507 = vmatprep.subr.bf16.mxu1 %v20372_v13  ;;  %v15924_v8 = vshrl.u32 %v15787_v55, 16  ;;  %v2262_v4 = vrot.slane %v15921_v17, 2  ;;  %v1645_v0 = vrot.slane %v15921_v17, 1 }
 0x1dc   : > { %v1518_v29 = vmul.f32 0.25, %v1492_v58  ;;  %12712 = vmatpush3.bf16.msra.mxu0 %v14393_v60  ;;  %v1637_v7 = vrot.slane %v15881_v45, 1  ;;  %v2258_v40 = vrot.slane %v15881_v45, 2  ;;  %v15939_v58 = vshll.u32 %v15846_v47, 16 }
 0x1dd   : > { %v1535_v43 = vpack.c.bf16 %v1520_v2, %v1519_v12  ;;  %12472 = vmatmul.mubr.bf16.gmra.mrb[12].mxu1 %v1630_v54  ;;  %12713 = vmatprep.subr.bf16.mxu0 %v20372_v13  ;;  %v2261_v28 = vrot.slane %v15924_v8, 1  ;;  %v15942_v12 = vshrl.u32 %v15846_v47, 16  ;;  %v20368_v2 = vrot.slane %v15840_v52, 1 }
 0x1de   : > { %v14981_v14 = vpop.eup %14980  ;;  %v15890_v30 = vpack.c.bf16 %v1518_v29, %v1517_v49  ;;  %12475 = vmatprep.mubr.msk.bf16.mxu1 %vm15135_vm0, %v20372_v13  ;;  %12508 = vmatpush3.bf16.msra.mxu1 %v14392_v35  ;;  %v1638_v38 = vsel %vm1594_vm1, %v1633_v46, %v1637_v7  ;;  %v2259_v33 = vor.u32 %v2258_v40, %v2257_v48  ;;  %v1653_v29 = vrot.slane %v15939_v58, 1 }
 0x1df   : > { %v14983_v61 = vpop.eup %14982  ;;  %1548 = vst [vmem:[#allocation2 + $0x50] sm:$0xff] %v1535_v43  ;;  %v1497_v15 = vadd.f32 %v14981_v14, %v15686_v27  ;;  %12509 = vmatprep.subr.bf16.mxu1 %v20372_v13  ;;  %v2256_v27 = vsel %vm2232_vm2, %v15843_v19, %v2255_v31  ;;  %v1641_v60 = vor.u32 %v15887_v18, %v1637_v7  ;;  %v2266_v43 = vrot.slane %v15939_v58, 2 }
 0x1e0   : > { %v14985_v34 = vpop.eup %14984  ;;  %1547 = vst [vmem:[#allocation2 + $0x48] sm:$0xff] %v15890_v30  ;;  %v1495_v37 = vadd.f32 %v14983_v61, %v15669_v24  ;;  %12714 = vmatpush3.bf16.msra.mxu0 %v14394_v21  ;;  %v2260_v42 = vsel %vm2232_vm2, %v2255_v31, %v2259_v33  ;;  %v2263_v35 = vor.u32 %v2262_v4, %v2261_v28  ;;  %v2265_v21 = vrot.slane %v15942_v12, 1 }
 0x1e1   : > { %v14987_v51 = vpop.eup %14986  ;;  %v1498_v53 = vadd.f32 %v14985_v34, %v15690_v57  ;;  %12715 = vmatprep.subr.bf16.mxu0 %v20372_v13  ;;  %v1523_v11 = vmul.f32 0.25, %v1497_v15  ;;  %v1646_v39 = vsel %vm1594_vm1, %v1641_v60, %v1645_v0  ;;  %v1649_v14 = vor.u32 %v15924_v8, %v1645_v0 }
 0x1e2   : > { %v1496_v24 = vadd.f32 %v14987_v51, %v15675_v10  ;;  %12628 = vmatmul.mubr.bf16.gmra.mrb[116].mxu0 %v2256_v27  ;;  %12510 = vmatpush3.bf16.msra.mxu1 %v14396_v32  ;;  %v1521_v57 = vmul.f32 0.25, %v1495_v37  ;;  %v14397_v10 = vld [vmem:[%s20358_s3 + $0x178] sm:$0xff]   ;;  %v2264_v54 = vsel %vm2232_vm2, %v2259_v33, %v2263_v35  ;;  %v2267_v61 = vor.u32 %v2266_v43, %v2265_v21  ;;  %v3327_v51 = vld [vmem:[#allocation2 + $0x10] sm:$0xff] }
 0x1e3   : > { %v1524_v56 = vmul.f32 0.25, %v1498_v53  ;;  %12631 = vmatprep.mubr.msk.bf16.mxu0 %vm15135_vm0, %v20372_v13  ;;  %12547 = vmatprep.subr.bf16.mxu1 %v20372_v13  ;;  %v1654_v32 = vsel %vm1594_vm1, %v1649_v14, %v1653_v29  ;;  %v15961_v15 = vshll.u32 %v15840_v52, 16  ;;  %v15964_v34 = vshrl.u32 %v15840_v52, 16 }
 0x1e4   : > { %v1522_v19 = vmul.f32 0.25, %v1496_v24  ;;  %12716 = vmatpush3.bf16.msra.mxu0 %v14395_v20  ;;  %v1657_v37 = vor.u32 %v15942_v12, %v1653_v29  ;;  %v15969_v20 = vld [vmem:[#allocation2] sm:$0x80]  ;;  %v2268_v53 = vsel %vm2232_vm2, %v2263_v35, %v2267_v61  ;;  %v20367_v24 = vrot.slane %v15840_v52, 2 }
 0x1e5   : > { %v1537_v23 = vpack.c.bf16 %v1524_v56, %v1523_v11  ;;  %12476 = vmatmul.mubr.bf16.gmra.mrb[16].mxu1 %v1638_v38  ;;  %12717 = vmatprep.subr.bf16.mxu0 %v20372_v13  ;;  %v1661_v27 = vrot.slane %v15961_v15, 1  ;;  %v2269_v48 = vrot.slane %v15964_v34, 1  ;;  %v2270_v40 = vrot.slane %v15961_v15, 2 }
 0x1e6   : > { %v1536_v16 = vpack.c.bf16 %v1522_v19, %v1521_v57  ;;  %12479 = vmatprep.mubr.msk.bf16.mxu1 %vm15135_vm0, %v20372_v13  ;;  %v2923_v11 = vshrl.u32 %v15969_v20, 16  ;;  %v2926_v56 = vrot.slane %v15721_v36, 7  ;;  %v15981_v19 = vshrl.u32 %v3327_v51, 16 }
 0x1e7   : > { %1550 = vst [vmem:[#allocation2 + $0x60] sm:$0xff] %v1537_v23  ;;  %v1576_v50 = vld [vmem:[#allocation2 + $0x48] sm:$0x1]  ;;  %v1662_v57 = vsel %vm1594_vm1, %v1657_v37, %v1661_v27  ;;  %v2271_v36 = vor.u32 %v2270_v40, %v2269_v48  ;;  %v15994_v28 = vshll.u32 %v3327_v51, 16  ;;  %v2929_v0 = vrot.slane %v15754_v22, 7 }
 0x1e8   : > { %1549 = vst [vmem:[#allocation2 + $0x58] sm:$0xff] %v1536_v16  ;;  %12718 = vmatpush3.bf16.msra.mxu0 %v14397_v10  ;;  %v2032_v49 = vrot.slane %v1576_v50, 1  ;;  %v2214_v7 = vld [vmem:[#allocation2 + $0x48] sm:$0x3]  ;;  %v1667_v38 = vshll.u32 %v1576_v50, 16  ;;  %v2925_v23 = vrot.slane %v2923_v11, 7  ;;  %v2927_v33 = vor.u32 %v2926_v56, %v15718_v9 }
 0x1e9   : > { %12807 = vmatprep.subr.bf16.mxu0 %v20372_v13  ;;  %v2500_v46 = vrot.slane %v2214_v7, 2  ;;  %v2274_v16 = vshrl.u32 %v2214_v7, 16  ;;  %v2277_v60 = vshll.u32 %v2214_v7, 16  ;;  %v4546_v4 = vrot.slane %v15981_v19, 7 }
 0x1ea   : > { %12632 = vmatmul.mubr.bf16.gmra.mrb[120].mxu0 %v2260_v42  ;;  %v15954_v31 = vsel %vm2014_vm3, %v20368_v2, %v2032_v49  ;;  %v15992_v42 = vsel %vm2921_vm5, %v2925_v23, %v2927_v33  ;;  %v2930_v50 = vor.u32 %v2929_v0, %v15724_v3  ;;  %v2272_v35 = vsel %vm2232_vm2, %v2267_v61, %v2271_v36  ;;  %v14407_v2 = vld [vmem:[%s20358_s3 + $0x1d8] sm:$0xff]  }
 0x1eb   : > { %12635 = vmatprep.mubr.msk.bf16.mxu0 %vm15135_vm0, %v20372_v13  ;;  %v15986_v10 = vsel %vm2482_vm4, %v20367_v24, %v2500_v46  ;;  %v16001_v9 = vor.u32 %v4546_v4, %v15994_v28  ;;  %v2276_v49 = vrot.slane %v2274_v16, 1  ;;  %v2279_v29 = vrot.slane %v2277_v60, 2  ;;  %v3331_v60 = vld [vmem:[#allocation2 + $0x30] sm:$0xff] }
 0x1ec   : > { %v1665_v21 = vor.u32 %v15964_v34, %v1661_v27  ;;  %v16008_v43 = vsel %vm2921_vm5, %v2926_v56, %v2930_v50  ;;  %v2932_v22 = vrot.slane %v15791_v41, 7  ;;  %v2935_v14 = vrot.slane %v15833_v25, 7  ;;  %v3328_v27 = vld [vmem:[#allocation2 + $0x18] sm:$0xff] }
 0x1ed   : > { %12480 = vmatmul.mubr.bf16.gmra.mrb[20].mxu1 %v1646_v39  ;;  %v1669_v39 = vrot.slane %v1667_v38, 1  ;;  %v2938_v37 = vrot.slane %v15887_v18, 7  ;;  %v2280_v7 = vor.u32 %v2279_v29, %v2276_v49  ;;  %v2944_v48 = vrot.slane %v15942_v12, 7  ;;  %v3329_v38 = vld [vmem:[#allocation2 + $0x20] sm:$0xff]  ;;  %v3332_v49 = vld [vmem:[#allocation2 + $0x38] sm:$0xff] }
 0x1ee   : > { %12483 = vmatprep.mubr.msk.bf16.mxu1 %vm15135_vm0, %v20372_v13  ;;  %v2936_v61 = vor.u32 %v2935_v14, %v15824_v1  ;;  %v2941_v1 = vrot.slane %v15924_v8, 7  ;;  %v2704_v56 = vrot.slane %v15969_v20, 7  ;;  %v2705_v12 = vrot.slane %v15711_v62, 7 }
 0x1ef   : > { %v1670_v3 = vsel %vm1594_vm1, %v1665_v21, %v1669_v39  ;;  %v2281_v40 = vsel %vm2232_vm2, %v2271_v36, %v2280_v7  ;;  %v2945_v8 = vor.u32 %v2944_v48, %v15939_v58  ;;  %v2947_v20 = vrot.slane %v15964_v34, 7  ;;  %v3330_v58 = vld [vmem:[#allocation2 + $0x28] sm:$0xff]  ;;  %v3333_v21 = vld [vmem:[#allocation2 + $0x40] sm:$0xff] }
 0x1f0   : > { %v16024_v25 = vsel %vm2921_vm5, %v2932_v22, %v2936_v61  ;;  %v2942_v11 = vor.u32 %v2941_v1, %v15921_v17  ;;  %v16054_v33 = vshll.u32 %v3328_v27, 16  ;;  %v14399_v34 = vld [vmem:[%s20358_s3 + $0x88] sm:$0xff]   ;;  %v2706_v50 = vsel %vm2703_vm6, %v2704_v56, %v2705_v12 }
 0x1f1   : > { %v16051_v23 = vsel %vm2921_vm5, %v2941_v1, %v2945_v8  ;;  %v2948_v36 = vor.u32 %v2947_v20, %v15961_v15  ;;  %v4305_v39 = vld [vmem:[#allocation2 + $0x8] sm:$0x80]  ;;  %v16089_v61 = vshll.u32 %v3331_v60, 16 }
 0x1f2   : > { %12636 = vmatmul.mubr.bf16.gmra.mrb[124].mxu0 %v2264_v54  ;;  %v2951_v54 = vshrl.u32 %v15890_v30, 16  ;;  %v16047_v17 = vsel %vm2921_vm5, %v2938_v37, %v2942_v11  ;;  %20422 = vst [vmem:[#allocation8_spill] sm:$0xff] %v16051_v23  ;;  %v4543_v7 = vshrl.u32 %v4305_v39, 16  ;;  %v16109_v11 = vshll.u32 %v3333_v21, 16  ;;  %v14404_v8 = vld [vmem:[%s20358_s3 + $0x1c8] sm:$0xff]  }
 0x1f3   : > { %12639 = vmatprep.mubr.msk.bf16.mxu0 %vm15135_vm0, %v20372_v13  ;;  %20421 = vst [vmem:[#allocation7_spill] sm:$0xff] %v16047_v17  ;;  %v16077_v29 = vsel %vm2921_vm5, %v2944_v48, %v2948_v36  ;;  %v16502_v23 = vld [vmem:[#allocation2 + $0x18] sm:$0xe0] }
 0x1f4   : > { %v2953_v51 = vrot.slane %v2951_v54, 7  ;;  %20424 = vst [vmem:[#allocation10_spill] sm:$0xff] %v16077_v29  ;;  %v14403_v54 = vld [vmem:[%s20358_s3 + $0x1c0] sm:$0xff]   ;;  %20427 = vst [vmem:[#allocation13_spill] sm:$0xff] %v16109_v11  ;;  %v4545_v56 = vrot.slane %v4543_v7, 7  ;;  %v6919_v17 = vshrl.u32 %v16502_v23, 16 }
 0x1f5   : > { %12484 = vmatmul.mubr.bf16.gmra.mrb[24].mxu1 %v1654_v32  ;;  %v2933_v32 = vor.u32 %v2932_v22, %v15772_v5  ;;  %v2954_v5 = vshll.u32 %v15890_v30, 16  ;;  %v16039_v30 = vshrl.u32 %v3328_v27, 16  ;;  %v16082_v22 = vshrl.u32 %v3329_v38, 16 }
 0x1f6   : > { %12487 = vmatprep.mubr.msk.bf16.mxu1 %vm15135_vm0, %v20372_v13  ;;  %v16097_v27 = vshll.u32 %v3332_v49, 16 }
 0x1f7   : > { %v16021_v41 = vsel %vm2921_vm5, %v2929_v0, %v2933_v32  ;;  %v2956_v46 = vor.u32 %v2954_v5, %v2953_v51  ;;  %v16065_v0 = vshll.u32 %v3329_v38, 16  ;;  %v20366_v32 = vrot.slane %v15994_v28, 1  ;;  %v3334_v5 = vld [vmem:[#allocation2 + $0x48] sm:$0xff] }
 0x1f8   : > { %v3371_v51 = vrot.slane %v16054_v33, 1  ;;  %20425 = vst [vmem:[#allocation11_spill] sm:$0xff] %v16097_v27  ;;  %v16128_v36 = vshll.u32 %v3334_v5, 16 }
 0x1f9   : > { %v16058_v16 = vsel %vm2921_vm5, %v2947_v20, %v2956_v46  ;;  %v3367_v1 = vor.u32 %v15981_v19, %v20366_v32  ;;  %v16107_v46 = vshrl.u32 %v3332_v49, 16 }
 0x1fa   : > { %12640 = vmatmul.mubr.bf16.gmra.mrb[128].mxu0 %v2268_v53  ;;  %v2939_v53 = vor.u32 %v2938_v37, %v15881_v45  ;;  %v14398_v45 = vld [vmem:[%s20358_s3 + $0x80] sm:$0xff]   ;;  %20423 = vst [vmem:[#allocation9_spill] sm:$0xff] %v16058_v16  ;;  %v16091_v37 = vshrl.u32 %v3331_v60, 16  ;;  %20431 = vst [vmem:[#allocation17_spill] sm:$0xff] %v16128_v36  ;;  %v16473_v16 = vld [vmem:[#allocation2 + $0x38] sm:$0xff] }
 0x1fb   : > { %12643 = vmatprep.mubr.msk.bf16.mxu0 %vm15135_vm0, %v20372_v13  ;;  %20426 = vst [vmem:[#allocation12_spill] sm:$0xff] %v16107_v46  ;;  %v16118_v38 = vsel %vm1594_vm1, %v3367_v1, %v3371_v51  ;;  %20478 = vst [vmem:[#allocation57_spill] sm:$0xff] %v16473_v16 }
 0x1fc   : > { %v16030_v18 = vsel %vm2921_vm5, %v2935_v14, %v2939_v53  ;;  %v16084_v14 = vshll.u32 %v3330_v58, 16  ;;  %v14400_v53 = vld [vmem:[%s20358_s3 + $0x90] sm:$0xff]   ;;  %20429 = vst [vmem:[#allocation15_spill] sm:$0xff] %v16118_v38  ;;  %v4558_v7 = vrot.slane %v16091_v37, 7 }
 0x1fd   : > { %12488 = vmatmul.mubr.bf16.gmra.mrb[28].mxu1 %v1662_v57  ;;  %20420 = vst [vmem:[#allocation6_spill] sm:$0xff] %v16030_v18  ;;  %v20369_v57 = vrot.slane %v15708_v26, 7 }
 0x1fe   : > { %12491 = vmatprep.mubr.msk.bf16.mxu1 %vm15135_vm0, %v20372_v13  ;;  %v3387_v39 = vrot.slane %v16084_v14, 1 }
 0x1ff   : > { %v16072_v15 = vsel %vm2703_vm6, %v2705_v12, %v20369_v57  ;;  %v16115_v12 = vshrl.u32 %v3333_v21, 16  ;;  %v3395_v21 = vrot.slane %v16089_v61, 1 }
 0x201   : > { %20428 = vst [vmem:[#allocation14_spill] sm:$0xff] %v16115_v12  ;;  %v4564_v24 = vrot.slane %v16115_v12, 7 }
 0x202   : > { %12644 = vmatmul.mubr.bf16.gmra.mrb[132].mxu0 %v2272_v35 }
 0x203   : > { %12647 = vmatprep.mubr.msk.bf16.mxu0 %vm15135_vm0, %v20372_v13 }
 0x205   : > { %12492 = vmatmul.mubr.bf16.gmra.mrb[32].mxu1 %v1670_v3  ;;  %v16086_v3 = vshrl.u32 %v3330_v58, 16  ;;  %v4552_v58 = vrot.slane %v16082_v22, 7 }
 0x206   : > { %12511 = vmatprep.mubr.msk.bf16.mxu1 %vm15135_vm0, %v20372_v13 }
 0x207   : > { %v4555_v49 = vrot.slane %v16086_v3, 7 }
 0x20a   : > { %12648 = vmatmul.mubr.bf16.gmra.mrb[136].mxu0 %v2281_v40  ;;  %v3379_v40 = vrot.slane %v16065_v0, 1 }
 0x20b   : > { %12719 = vmatprep.mubr.msk.bf16.mxu0 %vm15135_vm0, %v20372_v13 }
 0x20d   : > { %12512 = vmatmul.mubr.bf16.vlgmr.msra.gmra.mrb[36].mxu1 %v15695_v44  ;;  %v4549_v44 = vrot.slane %v16039_v30, 7 }
 0x20e   : > { %12548 = vmatpush3.bf16.msra.mxu1 %v14398_v45  ;;  %12515 = vmatprep.mubr.msk.bf16.mxu1 %vm15135_vm0, %v20372_v13  ;;  %v3375_v45 = vor.u32 %v16039_v30, %v3371_v51  ;;  %v3403_v51 = vrot.slane %v16097_v27, 1 }
 0x20f   : > { %12549 = vmatprep.subr.bf16.mxu1 %v20372_v13  ;;  %v4550_v48 = vor.u32 %v4549_v44, %v16054_v33 }
 0x210   : > { %v16135_v60 = vsel %vm1594_vm1, %v3375_v45, %v3379_v40  ;;  %v4559_v45 = vor.u32 %v4558_v7, %v16089_v61  ;;  %v3407_v32 = vor.u32 %v16107_v46, %v3403_v51 }
 0x211   : > { %v16123_v20 = vsel %vm2921_vm5, %v4546_v4, %v4550_v48  ;;  %20433 = vst [vmem:[#allocation19_spill] sm:$0xff] %v16135_v60  ;;  %v16143_v4 = vshrl.u32 %v3334_v5, 16  ;;  %v4556_v48 = vor.u32 %v4555_v49, %v16084_v14 }
 0x212   : > { %12720 = vmatmul.mubr.bf16.vlgmr.msra.gmra.mrb[140].mxu0 %v2706_v50  ;;  %12550 = vmatpush3.bf16.msra.mxu1 %v14399_v34  ;;  %20430 = vst [vmem:[#allocation16_spill] sm:$0xff] %v16123_v20  ;;  %v16132_v34 = vsel %vm2921_vm5, %v4545_v56, %v16001_v9  ;;  %v4553_v50 = vor.u32 %v4552_v58, %v16065_v0 }
 0x213   : > { %12723 = vmatprep.mubr.msk.bf16.mxu0 %vm15135_vm0, %v20372_v13  ;;  %12551 = vmatprep.subr.bf16.mxu1 %v20372_v13  ;;  %20432 = vst [vmem:[#allocation18_spill] sm:$0xff] %v16132_v34  ;;  %20434 = vst [vmem:[#allocation20_spill] sm:$0xff] %v16143_v4  ;;  %v3383_v9 = vor.u32 %v16082_v22, %v3379_v40  ;;  %v4561_v40 = vrot.slane %v16107_v46, 7 }
 0x214   : > { %12808 = vmatpush3.bf16.msra.mxu0 %v14403_v54  ;;  %v3391_v54 = vor.u32 %v16086_v3, %v3387_v39  ;;  %v16157_v5 = vsel %vm2921_vm5, %v4549_v44, %v4553_v50  ;;  %v14402_v44 = vld [vmem:[%s20358_s3 + $0xa0] sm:$0xff]   ;;  %v16176_v50 = vsel %vm2921_vm5, %v4552_v58, %v4556_v48  ;;  %v3419_v58 = vrot.slane %v16128_v36, 1 }
 0x215   : > { %12516 = vmatmul.mubr.bf16.gmra.mrb[40].mxu1 %v15711_v62  ;;  %12809 = vmatprep.subr.bf16.mxu0 %v20372_v13  ;;  %v14401_v62 = vld [vmem:[%s20358_s3 + $0x98] sm:$0xff]   ;;  %20435 = vst [vmem:[#allocation21_spill] sm:$0xff] %v16157_v5  ;;  %v16160_v1 = vsel %vm1594_vm1, %v3383_v9, %v3387_v39  ;;  %v3335_v39 = vld [vmem:[#allocation2 + $0x50] sm:$0x1]  ;;  %20438 = vst [vmem:[#allocation24_spill] sm:$0xff] %v16176_v50  ;;  %v4562_v9 = vor.u32 %v4561_v40, %v16097_v27  ;;  %v4567_v48 = vrot.slane %v16143_v4, 7 }
 0x216   : > { %12519 = vmatprep.mubr.msk.bf16.mxu1 %vm15135_vm0, %v20372_v13  ;;  %12552 = vmatpush3.bf16.msra.mxu1 %v14400_v53  ;;  %v14406_v53 = vld [vmem:[%s20358_s3 + $0x1d0] sm:$0xff]   ;;  %20436 = vst [vmem:[#allocation22_spill] sm:$0xff] %v16160_v1  ;;  %v16166_v56 = vsel %vm1594_vm1, %v3391_v54, %v3395_v21  ;;  %v3411_v54 = vrot.slane %v16109_v11, 1 }
 0x217   : > { %12553 = vmatprep.subr.bf16.mxu1 %v20372_v13  ;;  %20437 = vst [vmem:[#allocation23_spill] sm:$0xff] %v16166_v56  ;;  %v16196_v57 = vsel %vm2921_vm5, %v4558_v7, %v4562_v9  ;;  %v16418_v1 = vld [vmem:[#allocation2 + $0x10] sm:$0xff] }
 0x218   : > { %12810 = vmatpush3.bf16.msra.mxu0 %v14404_v8  ;;  %v3399_v8 = vor.u32 %v16091_v37, %v3395_v21  ;;  %v4524_v21 = vld [vmem:[#allocation2 + $0x50] sm:$0xff]  ;;  %20441 = vst [vmem:[#allocation27_spill] sm:$0xff] %v16196_v57  ;;  %v16199_v35 = vsel %vm1594_vm1, %v3407_v32, %v3411_v54  ;;  %v14405_v32 = vld [vmem:[%s20358_s3 + $0xa8] sm:$0xff]  }
 0x219   : > { %12811 = vmatprep.subr.bf16.mxu0 %v20372_v13  ;;  %20442 = vst [vmem:[#allocation28_spill] sm:$0xff] %v16199_v35  ;;  %v16225_v57 = vshll.u32 %v4524_v21, 16  ;;  %v16445_v50 = vld [vmem:[#allocation2 + $0x30] sm:$0xff] }
 0x21a   : > { %12724 = vmatmul.mubr.bf16.gmra.mrb[144].mxu0 %v16072_v15  ;;  %12554 = vmatpush3.bf16.msra.mxu1 %v14401_v62  ;;  %v16185_v15 = vsel %vm2921_vm5, %v4555_v49, %v4559_v45  ;;  %v16188_v62 = vsel %vm1594_vm1, %v3399_v8, %v3403_v51  ;;  %v4565_v49 = vor.u32 %v4564_v24, %v16109_v11  ;;  %v3425_v8 = vshll.u32 %v3335_v39, 16  ;;  %v16506_v11 = vld [vmem:[#allocation2 + $0x58] sm:$0xff] }
 0x21b   : > { %12727 = vmatprep.mubr.msk.bf16.mxu0 %vm15135_vm0, %v20372_v13  ;;  %12555 = vmatprep.subr.bf16.mxu1 %v20372_v13  ;;  %20439 = vst [vmem:[#allocation25_spill] sm:$0xff] %v16185_v15  ;;  %20440 = vst [vmem:[#allocation26_spill] sm:$0xff] %v16188_v62  ;;  %v3415_v51 = vor.u32 %v16115_v12, %v3411_v54  ;;  %v3423_v45 = vor.u32 %v16143_v4, %v3419_v58  ;;  %v16207_v62 = vshrl.u32 %v4524_v21, 16  ;;  %v14410_v21 = vld [vmem:[%s20358_s3 + $0x1e8] sm:$0xff]   ;;  %v16496_v4 = vld [vmem:[#allocation2 + $0x50] sm:$0xff] }
 0x21c   : > { %12812 = vmatpush3.bf16.msra.mxu0 %v14406_v53  ;;  %v4568_v53 = vor.u32 %v4567_v48, %v16128_v36  ;;  %v16215_v7 = vsel %vm2921_vm5, %v4561_v40, %v4565_v49  ;;  %v3427_v54 = vrot.slane %v3425_v8, 1  ;;  %v20446_v40 = vrot.slane %v15741_v59, 7  ;;  %v16266_v8 = vld [vmem:[#allocation2 + $0x20] sm:$0xff]  ;;  %20473 = vst [vmem:[#allocation54_spill] sm:$0xff] %v16445_v50  ;;  %20483 = vst [vmem:[#allocation62_spill] sm:$0xff] %v16496_v4 }
 0x21d   : > { %12520 = vmatmul.mubr.bf16.gmra.mrb[44].mxu1 %v15708_v26  ;;  %12813 = vmatprep.subr.bf16.mxu0 %v20372_v13  ;;  %20443 = vst [vmem:[#allocation29_spill] sm:$0xff] %v16215_v7  ;;  %v16218_v9 = vsel %vm1594_vm1, %v3415_v51, %v3419_v58  ;;  %v4573_v35 = vrot.slane %v16207_v62, 7  ;;  %v20447_v58 = vrot.slane %v15708_v26, 7  ;;  %20484 = vst [vmem:[#allocation63_spill] sm:$0xff] %v16506_v11 }
 0x21e   : > { %12523 = vmatprep.mubr.msk.bf16.mxu1 %vm15135_vm0, %v20372_v13  ;;  %12556 = vmatpush3.bf16.msra.mxu1 %v14402_v44  ;;  %20444 = vst [vmem:[#allocation30_spill] sm:$0xff] %v16218_v9  ;;  %v16222_v39 = vsel %vm2921_vm5, %v4564_v24, %v4568_v53  ;;  %v14409_v44 = vld [vmem:[%s20358_s3 + $0x1e0] sm:$0xff]   ;;  %v16237_v24 = vsel %vm1594_vm1, %v3423_v45, %v3427_v54  ;;  %v16261_v53 = vld [vmem:[#allocation2 + $0x18] sm:$0xff]  ;;  %v14411_v45 = vld [vmem:[%s20358_s3 + $0x1f0] sm:$0xff]   ;;  %v20451_v54 = vmov %v20446_v40 }
 0x21f   : > { %12557 = vmatprep.subr.bf16.mxu1 %v20372_v13  ;;  %20445 = vst [vmem:[#allocation31_spill] sm:$0xff] %v16222_v39  ;;  %v2710_v49 = vsel %vm2703_vm6, %v20447_v58, %v20446_v40  ;;  %20448 = vst [vmem:[#allocation32_spill] sm:$0xff] %v16237_v24  ;;  %v4576_v51 = vor.u32 %v16225_v57, %v4573_v35  ;;  %v2711_v35 = vrot.slane %v15737_v63, 7  ;;  %v16274_v40 = vld [vmem:[#allocation2 + $0x30] sm:$0xff]  ;;  %v20370_v58 = vrot.slane %v16261_v53, 6 }
 0x220   : > { %12814 = vmatpush3.bf16.msra.mxu0 %v14407_v2  ;;  %v14408_v2 = vld [vmem:[%s20358_s3 + $0xb0] sm:$0xff]   ;;  %20450 = vst [vmem:[#allocation34_spill] sm:$0xff] %v16261_v53  ;;  %v20377_v56 = vshll.u32 %v16261_v53, 16 }
 0x221   : > { %12815 = vmatprep.subr.bf16.mxu0 %v20372_v13  ;;  %v16247_v26 = vsel %vm2921_vm5, %v4567_v48, %v4576_v51  ;;  %v14412_v48 = vld [vmem:[%s20358_s3 + $0xb8] sm:$0xff]   ;;  %v5494_v51 = vrot.slane %v16266_v8, 6 }
 0x222   : > { %12728 = vmatmul.mubr.bf16.gmra.mrb[148].mxu0 %v2710_v49  ;;  %12558 = vmatpush3.bf16.msra.mxu1 %v14405_v32  ;;  %20449 = vst [vmem:[#allocation33_spill] sm:$0xff] %v16247_v26  ;;  %v16268_v32 = vld [vmem:[#allocation2 + $0x28] sm:$0xff]  ;;  %v16280_v49 = vld [vmem:[#allocation2 + $0x38] sm:$0xff] }
 0x223   : > { %12731 = vmatprep.mubr.msk.bf16.mxu0 %vm15135_vm0, %v20372_v13  ;;  %12559 = vmatprep.subr.bf16.mxu1 %v20372_v13 }
 0x224   : > { %12816 = vmatpush3.bf16.msra.mxu0 %v14409_v44  ;;  %v2712_v44 = vsel %vm2703_vm6, %v20451_v54, %v2711_v35  ;;  %v5498_v54 = vrot.slane %v16274_v40, 6 }
 0x225   : > { %12524 = vmatmul.mubr.bf16.gmra.mrb[48].mxu1 %v15741_v59  ;;  %12817 = vmatprep.subr.bf16.mxu0 %v20372_v13  ;;  %v5496_v59 = vrot.slane %v16268_v32, 6 }
 0x226   : > { %12527 = vmatprep.mubr.msk.bf16.mxu1 %vm15135_vm0, %v20372_v13  ;;  %12560 = vmatpush3.bf16.msra.mxu1 %v14408_v2  ;;  %v14413_v2 = vld [vmem:[%s20358_s3 + $0x1f8] sm:$0xff]  }
 0x227   : > { %12561 = vmatprep.subr.bf16.mxu1 %v20372_v13  ;;  %v16301_v26 = vsel %vm3857_vm7, %v5494_v51, %v5496_v59  ;;  %v16306_v24 = vsel %vm3857_vm7, %v5496_v59, %v5498_v54 }
 0x228   : > { %12818 = vmatpush3.bf16.msra.mxu0 %v14410_v21  ;;  %v16287_v21 = vld [vmem:[#allocation2 + $0x40] sm:$0xff]  ;;  %20454 = vst [vmem:[#allocation37_spill] sm:$0xff] %v16301_v26  ;;  %20455 = vst [vmem:[#allocation38_spill] sm:$0xff] %v16306_v24  ;;  %v5964_v24 = vrot.slane %v16274_v40, 7 }
 0x229   : > { %12819 = vmatprep.subr.bf16.mxu0 %v20372_v13  ;;  %v5502_v39 = vrot.slane %v16287_v21, 6  ;;  %v20470_v5 = vshll.u32 %v16287_v21, 16 }
 0x22a   : > { %12732 = vmatmul.mubr.bf16.gmra.mrb[152].mxu0 %v2712_v44  ;;  %12562 = vmatpush3.bf16.msra.mxu1 %v14412_v48  ;;  %v16289_v48 = vld [vmem:[#allocation2 + $0x48] sm:$0xff]  ;;  %v2713_v44 = vrot.slane %v15794_v6, 7 }
 0x22b   : > { %12735 = vmatprep.mubr.msk.bf16.mxu0 %vm15135_vm0, %v20372_v13  ;;  %12651 = vmatprep.subr.bf16.mxu1 %v20372_v13  ;;  %20452 = vst [vmem:[#allocation35_spill] sm:$0xff] %v16289_v48  ;;  %v20371_v9 = vrot.slane %v16289_v48, 6  ;;  %v5261_v60 = vrot.slane %v20470_v5, 6 }
 0x22c   : > { %12820 = vmatpush3.bf16.msra.mxu0 %v14411_v45  ;;  %v16298_v45 = vsel %vm3857_vm7, %v20370_v58, %v5494_v51  ;;  %v2714_v58 = vsel %vm2703_vm6, %v2711_v35, %v2713_v44  ;;  %v5962_v35 = vrot.slane %v16268_v32, 7 }
 0x22d   : > { %12528 = vmatmul.mubr.bf16.gmra.mrb[52].mxu1 %v15737_v63  ;;  %12821 = vmatprep.subr.bf16.mxu0 %v20372_v13  ;;  %20453 = vst [vmem:[#allocation36_spill] sm:$0xff] %v16298_v45  ;;  %v5500_v63 = vrot.slane %v16280_v49, 6  ;;  %v16322_v59 = vsel %vm3857_vm7, %v5502_v39, %v20371_v9 }
 0x22e   : > { %12531 = vmatprep.mubr.msk.bf16.mxu1 %vm15135_vm0, %v20372_v13  ;;  %20458 = vst [vmem:[#allocation41_spill] sm:$0xff] %v16322_v59  ;;  %v20461_v59 = vmov 0.0   ;;  %v16346_v26 = vsel %vm2703_vm6, %v5962_v35, %v5964_v24 }
 0x22f   : > { %v16312_v7 = vsel %vm3857_vm7, %v5498_v54, %v5500_v63  ;;  %v16317_v51 = vsel %vm3857_vm7, %v5500_v63, %v5502_v39  ;;  %v5960_v54 = vrot.slane %v16266_v8, 7  ;;  %v5966_v63 = vrot.slane %v16280_v49, 7  ;;  %20462 = vst [vmem:[#allocation44_spill] sm:$0xff] %v16346_v26 }
 0x230   : > { %12822 = vmatpush3.bf16.msra.mxu0 %v14413_v2  ;;  %20456 = vst [vmem:[#allocation39_spill] sm:$0xff] %v16312_v7  ;;  %20457 = vst [vmem:[#allocation40_spill] sm:$0xff] %v16317_v51  ;;  %v20374_v2 = vrot.slane %v16261_v53, 7  ;;  %v4946_v7 = vld [vmem:[#allocation2 + $0x10] sm:$0xe0]  ;;  %v5968_v51 = vrot.slane %v16287_v21, 7 }
 0x231   : > { %12911 = vmatprep.subr.bf16.mxu0 %v20372_v13  ;;  %v2715_v39 = vrot.slane %v15787_v55, 7  ;;  %v16340_v9 = vsel %vm2703_vm6, %v5960_v54, %v5962_v35  ;;  %v16349_v45 = vsel %vm2703_vm6, %v5964_v24, %v5966_v63 }
 0x232   : > { %12736 = vmatmul.mubr.bf16.gmra.mrb[156].mxu0 %v2714_v58  ;;  %v16337_v58 = vsel %vm2703_vm6, %v20374_v2, %v5960_v54  ;;  %20460 = vst [vmem:[#allocation43_spill] sm:$0xff] %v16340_v9  ;;  %20463 = vst [vmem:[#allocation45_spill] sm:$0xff] %v16349_v45  ;;  %v16352_v15 = vsel %vm2703_vm6, %v5966_v63, %v5968_v51  ;;  %v5203_v54 = vshrl.u32 %v4946_v7, 16  ;;  %v5206_v9 = vshll.u32 %v4946_v7, 16 }
 0x233   : > { %12739 = vmatprep.mubr.msk.bf16.mxu0 %vm15135_vm0, %v20372_v13  ;;  %20459 = vst [vmem:[#allocation42_spill] sm:$0xff] %v16337_v58  ;;  %v20375_v13 = vrot.slane %v16289_v48, 7  ;;  %20464 = vst [vmem:[#allocation46_spill] sm:$0xff] %v16352_v15  ;;  %v20382_v58 = vshrl.u32 %v16261_v53, 16  ;;  %v2716_v35 = vsel %vm2703_vm6, %v2713_v44, %v2715_v39  ;;  %v5216_v15 = vrot.slane %v20377_v56, 6 }
 0x234   : > { %v5205_v26 = vrot.slane %v5203_v54, 5  ;;  %v5208_v24 = vrot.slane %v5206_v9, 6  ;;  %v20376_v7 = vshrl.u32 %v16266_v8, 16  ;;  %v2717_v9 = vrot.slane %v15846_v47, 7 }
 0x235   : > { %12532 = vmatmul.mubr.bf16.gmra.mrb[56].mxu1 %v15794_v6  ;;  %v16357_v2 = vsel %vm2703_vm6, %v5968_v51, %v20375_v13  ;;  %v5213_v63 = vrot.slane %v20382_v58, 5  ;;  %v20381_v56 = vshrl.u32 %v16274_v40, 16 }
 0x236   : > { %12535 = vmatprep.mubr.msk.bf16.mxu1 %vm15135_vm0, %v20461_v59  ;;  %20465 = vst [vmem:[#allocation47_spill] sm:$0xff] %v16357_v2  ;;  %v5209_v51 = vor.u32 %v5208_v24, %v5205_v26  ;;  %v20378_v2 = vshll.u32 %v16266_v8, 16  ;;  %v5222_v44 = vrot.slane %v20376_v7, 5  ;;  %v20380_v26 = vshll.u32 %v16268_v32, 16 }
 0x237   : > { %v5217_v13 = vor.u32 %v5216_v15, %v5213_v63  ;;  %v20379_v15 = vshrl.u32 %v16268_v32, 16 }
 0x238   : > { %v5234_v7 = vrot.slane %v20380_v26, 6  ;;  %v20385_v26 = vshrl.u32 %v16280_v49, 16 }
 0x239   : > { %v16377_v54 = vsel %vm5201_vm8, %v5209_v51, %v5217_v13  ;;  %v5231_v63 = vrot.slane %v20379_v15, 5  ;;  %v2683_v15 = vld [vmem:[#allocation2 + $0x48] sm:$0x7f] }
 0x23a   : > { %12740 = vmatmul.mubr.bf16.gmra.mrb[160].mxu0 %v2716_v35  ;;  %20466 = vst [vmem:[#allocation48_spill] sm:$0xff] %v16377_v54  ;;  %v5225_v35 = vrot.slane %v20378_v2, 6 }
 0x23b   : > { %12743 = vmatprep.mubr.msk.bf16.mxu0 %vm15135_vm0, %v20461_v59  ;;  %v5235_v2 = vor.u32 %v5234_v7, %v5231_v63  ;;  %v20384_v7 = vshll.u32 %v16280_v49, 16  ;;  %v5249_v63 = vrot.slane %v20385_v26, 5  ;;  %v16429_v26 = vld [vmem:[#allocation2 + $0x20] sm:$0xff] }
 0x23c   : > { %v5226_v24 = vor.u32 %v5225_v35, %v5222_v44  ;;  %v5240_v44 = vrot.slane %v20381_v56, 5  ;;  %v2719_v35 = vrot.slane %v15840_v52, 7  ;;  %v2721_v56 = vrot.slane %v2683_v15, 7 }
 0x23d   : > { %12536 = vmatmul.mubr.bf16.gmra.mrb[60].mxu1 %v15787_v55  ;;  %v2718_v55 = vsel %vm2703_vm6, %v2715_v39, %v2717_v9  ;;  %v20383_v39 = vshll.u32 %v16274_v40, 16  ;;  %v2018_v15 = vrot.slane %v16418_v1, 1 }
 0x23e   : > { %12539 = vmatprep.mubr.msk.bf16.mxu1 %vm15135_vm0, %v20461_v59  ;;  %v16390_v51 = vsel %vm5201_vm8, %v5217_v13, %v5226_v24 }
 0x23f   : > { %20467 = vst [vmem:[#allocation49_spill] sm:$0xff] %v16390_v51  ;;  %v5243_v13 = vrot.slane %v20383_v39, 6  ;;  %v5252_v51 = vrot.slane %v20384_v7, 6  ;;  %v16414_v39 = vld [vmem:[#allocation2 + $0x8] sm:$0xff] }
 0x240   : > { %v2016_v45 = vrot.slane %v16414_v39, 1 }
 0x241   : > { %v5244_v58 = vor.u32 %v5243_v13, %v5240_v44  ;;  %v5253_v13 = vor.u32 %v5252_v51, %v5249_v63  ;;  %v20387_v51 = vshrl.u32 %v16289_v48, 16 }
 0x242   : > { %12744 = vmatmul.mubr.bf16.gmra.mrb[164].mxu0 %v2718_v55  ;;  %v16401_v55 = vsel %vm5201_vm8, %v5226_v24, %v5235_v2  ;;  %v2720_v24 = vsel %vm2703_vm6, %v2717_v9, %v2719_v35  ;;  %v16426_v9 = vld [vmem:[#allocation2 + $0x18] sm:$0xff]  ;;  %v16449_v5 = vsel %vm2014_vm3, %v2016_v45, %v2018_v15 }
 0x243   : > { %12747 = vmatprep.mubr.msk.bf16.mxu0 %vm15135_vm0, %v20461_v59  ;;  %20468 = vst [vmem:[#allocation50_spill] sm:$0xff] %v16401_v55  ;;  %v15027_v55 = vld [vmem:[#allocation2] sm:$0xfe]  ;;  %v16422_v44 = vsel %vm5201_vm8, %v5235_v2, %v5244_v58  ;;  %v16437_v2 = vsel %vm5201_vm8, %v5244_v58, %v5253_v13  ;;  %v5183_v58 = vld [vmem:[#allocation2 + $0x58] sm:$0x3f]  ;;  %v5267_v63 = vrot.slane %v20387_v51, 5 }
 0x244   : > { %v2015_v54 = vrot.slane %v15027_v55, 1  ;;  %20469 = vst [vmem:[#allocation51_spill] sm:$0xff] %v16422_v44  ;;  %v2020_v55 = vrot.slane %v16426_v9, 1  ;;  %20471 = vst [vmem:[#allocation52_spill] sm:$0xff] %v16437_v2  ;;  %v16443_v44 = vld [vmem:[#allocation2 + $0x20] sm:$0xff]  ;;  %v16451_v2 = vld [vmem:[#allocation2 + $0x28] sm:$0xff] }
 0x245   : > { %12540 = vmatmul.mubr.bf16.gmra.mrb[64].mxu1 %v15846_v47  ;;  %v20386_v47 = vshrl.u32 %v16287_v21, 16  ;;  %20472 = vst [vmem:[#allocation53_spill] sm:$0xff] %v16443_v44  ;;  %20474 = vst [vmem:[#allocation55_spill] sm:$0xff] %v16451_v2  ;;  %v5471_v51 = vld [vmem:[#allocation2 + $0x10] sm:$0xc0] }
 0x246   : > { %12543 = vmatprep.mubr.msk.bf16.mxu1 %vm15135_vm0, %v20461_v59 }
 0x247   : > { %v5258_v7 = vrot.slane %v20386_v47, 5  ;;  %v2017_v47 = vsel %vm2014_vm3, %v2015_v54, %v2016_v45  ;;  %v16460_v54 = vsel %vm2014_vm3, %v2018_v15, %v2020_v55  ;;  %v14415_v15 = vld [vmem:[%s20358_s3 + $0x108] sm:$0xff]  }
 0x249   : > { %v5262_v20 = vor.u32 %v5261_v60, %v5258_v7  ;;  %v20476_v60 = vrot.slane %v16429_v26, 1  ;;  %v5283_v7 = vshrl.u32 %v5183_v58, 16 }
 0x24a   : > { %12748 = vmatmul.mubr.bf16.gmra.mrb[168].mxu0 %v2720_v24  ;;  %v2722_v24 = vsel %vm2703_vm6, %v2719_v35, %v2721_v56  ;;  %v20475_v56 = vshll.u32 %v16289_v48, 16 }
 0x24b   : > { %12751 = vmatprep.mubr.msk.bf16.mxu0 %vm15135_vm0, %v20461_v59  ;;  %v16465_v45 = vsel %vm2014_vm3, %v2020_v55, %v20476_v60  ;;  %v16469_v38 = vsel %vm5201_vm8, %v5253_v13, %v5262_v20  ;;  %v16480_v60 = vld [vmem:[#allocation2 + $0x40] sm:$0xff]  ;;  %v16482_v13 = vld [vmem:[#allocation2 + $0x48] sm:$0xff] }
 0x24c   : > { %v5270_v35 = vrot.slane %v20475_v56, 6  ;;  %20477 = vst [vmem:[#allocation56_spill] sm:$0xff] %v16469_v38  ;;  %20480 = vst [vmem:[#allocation59_spill] sm:$0xff] %v16480_v60  ;;  %v5276_v56 = vrot.slane %v16207_v62, 5  ;;  %v14414_v55 = vld [vmem:[%s20358_s3 + $0x100] sm:$0xff]   ;;  %v5712_v38 = vshll.u32 %v5471_v51, 16 }
 0x24d   : > { %12544 = vmatmul.mubr.bf16.gmra.mrb[68].mxu1 %v15840_v52  ;;  %20481 = vst [vmem:[#allocation60_spill] sm:$0xff] %v16482_v13 }
 0x24e   : > { %12563 = vmatprep.mubr.msk.bf16.mxu1 %vm15135_vm0, %v20461_v59  ;;  %v16475_v29 = vor.u32 %v5270_v35, %v5267_v63  ;;  %v5279_v63 = vrot.slane %v16225_v57, 6  ;;  %v5286_v35 = vshll.u32 %v5183_v58, 16  ;;  %v5714_v36 = vrot.slane %v5712_v38, 7  ;;  %v14419_v38 = vld [vmem:[%s20358_s3 + $0x240] sm:$0xff]  }
 0x250   : > { %20479 = vst [vmem:[#allocation58_spill] sm:$0xff] %v16475_v29  ;;  %v16486_v34 = vsel %vm5201_vm8, %v5262_v20, %v16475_v29  ;;  %v5285_v20 = vrot.slane %v5283_v7, 5  ;;  %v5288_v58 = vrot.slane %v5286_v35, 6  ;;  %v20485_v7 = vshrl.u32 %v16261_v53, 16 }
 0x251   : > { %20482 = vst [vmem:[#allocation61_spill] sm:$0xff] %v16486_v34  ;;  %v5709_v34 = vshrl.u32 %v5471_v51, 16  ;;  %v16511_v29 = vor.u32 %v5279_v63, %v5276_v56  ;;  %v20489_v63 = vshrl.u32 %v16443_v44, 16  ;;  %v6921_v51 = vrot.slane %v6919_v17, 5 }
 0x252   : > { %12752 = vmatmul.mubr.bf16.gmra.mrb[172].mxu0 %v2722_v24  ;;  %v5716_v12 = vrot.slane %v20485_v7, 6  ;;  %v5289_v24 = vor.u32 %v5288_v58, %v5285_v20  ;;  %v20487_v7 = vshll.u32 %v16261_v53, 16  ;;  %v20490_v53 = vshll.u32 %v16443_v44, 16 }
 0x253   : > { %12823 = vmatprep.mubr.msk.bf16.mxu0 %vm15135_vm0, %v20461_v59  ;;  %20486 = vst [vmem:[#allocation64_spill] sm:$0xff] %v16511_v29  ;;  %v5711_v35 = vrot.slane %v5709_v34, 6  ;;  %v6926_v20 = vrot.slane %v20489_v63, 5  ;;  %v20499_v34 = vshll.u32 %v16445_v50, 16 }
 0x254   : > { %v16526_v56 = vsel %vm5201_vm8, %v16511_v29, %v5289_v24  ;;  %v6927_v27 = vrot.slane %v20490_v53, 6  ;;  %v20491_v24 = vshrl.u32 %v16266_v8, 16  ;;  %v20492_v29 = vshll.u32 %v16266_v8, 16 }
 0x255   : > { %12564 = vmatmul.mubr.bf16.vlgmr.msra.gmra.mrb[72].mxu1 %v2017_v47  ;;  %v5717_v47 = vrot.slane %v20487_v7, 7  ;;  %20488 = vst [vmem:[#allocation65_spill] sm:$0xff] %v16526_v56  ;;  %v5715_v58 = vor.u32 %v5714_v36, %v5711_v35  ;;  %v20494_v53 = vshrl.u32 %v16451_v2, 16 }
 0x256   : > { %12652 = vmatpush3.bf16.msra.mxu1 %v14414_v55  ;;  %12567 = vmatprep.mubr.msk.bf16.mxu1 %vm15135_vm0, %v20461_v59  ;;  %v6922_v55 = vshll.u32 %v16502_v23, 16  ;;  %v5720_v56 = vrot.slane %v20491_v24, 6  ;;  %v5721_v18 = vrot.slane %v20492_v29, 7  ;;  %v6928_v36 = vor.u32 %v6927_v27, %v6926_v20  ;;  %v14420_v27 = vld [vmem:[%s20358_s3 + $0x248] sm:$0xff]  }
 0x257   : > { %12653 = vmatprep.subr.bf16.mxu1 %v20461_v59  ;;  %v5718_v7 = vor.u32 %v5717_v47, %v5716_v12  ;;  %v14416_v12 = vld [vmem:[%s20358_s3 + $0x110] sm:$0xff]   ;;  %v6930_v35 = vrot.slane %v20494_v53, 5  ;;  %v20495_v47 = vshll.u32 %v16451_v2, 16  ;;  %v20498_v53 = vshrl.u32 %v16445_v50, 16 }
 0x258   : > { %v6924_v46 = vrot.slane %v6922_v55, 6  ;;  %v5722_v8 = vor.u32 %v5721_v18, %v5720_v56  ;;  %v20500_v18 = vshrl.u32 %v16274_v40, 16 }
 0x259   : > { %v16546_v17 = vsel %vm4075_vm9, %v5715_v58, %v5718_v7  ;;  %v6931_v55 = vrot.slane %v20495_v47, 6  ;;  %v20497_v58 = vshll.u32 %v16268_v32, 16  ;;  %v6934_v47 = vrot.slane %v20498_v53, 5 }
 0x25a   : > { %12824 = vmatmul.mubr.bf16.vlgmr.msra.gmra.mrb[176].mxu0 %v16414_v39  ;;  %12654 = vmatpush3.bf16.msra.mxu1 %v14415_v15  ;;  %20493 = vst [vmem:[#allocation66_spill] sm:$0xff] %v16546_v17  ;;  %v6925_v29 = vor.u32 %v6924_v46, %v6921_v51  ;;  %v20496_v15 = vshrl.u32 %v16268_v32, 16  ;;  %v6935_v17 = vrot.slane %v20499_v34, 6  ;;  %v5728_v46 = vrot.slane %v20500_v18, 6 }
 0x25b   : > { %12827 = vmatprep.mubr.msk.bf16.mxu0 %vm15135_vm0, %v20461_v59  ;;  %12655 = vmatprep.subr.bf16.mxu1 %v20461_v59  ;;  %v5725_v24 = vrot.slane %v20497_v58, 7  ;;  %v6932_v20 = vor.u32 %v6931_v55, %v6930_v35  ;;  %v16574_v51 = vsel %vm4075_vm9, %v5718_v7, %v5722_v8  ;;  %v20508_v58 = vshrl.u32 %v16280_v49, 16 }
 0x25c   : > { %v5724_v63 = vrot.slane %v20496_v15, 6  ;;  %12912 = vmatpush3.bf16.msra.mxu0 %v14419_v38  ;;  %v16571_v32 = vsel %vm5201_vm8, %v6925_v29, %v6928_v36  ;;  %20502 = vst [vmem:[#allocation68_spill] sm:$0xff] %v16574_v51  ;;  %v20503_v38 = vshll.u32 %v16274_v40, 16  ;;  %v6936_v55 = vor.u32 %v6935_v17, %v6934_v47  ;;  %v14422_v17 = vld [vmem:[%s20358_s3 + $0x250] sm:$0xff]  }
 0x25d   : > { %12568 = vmatmul.mubr.bf16.gmra.mrb[76].mxu1 %v16449_v5  ;;  %12913 = vmatprep.subr.bf16.mxu0 %v20461_v59  ;;  %20501 = vst [vmem:[#allocation67_spill] sm:$0xff] %v16571_v32  ;;  %v14417_v5 = vld [vmem:[%s20358_s3 + $0x118] sm:$0xff]   ;;  %v16584_v34 = vsel %vm5201_vm8, %v6928_v36, %v6932_v20  ;;  %v20505_v29 = vshrl.u32 %v16473_v16, 16  ;;  %v20506_v15 = vshll.u32 %v16473_v16, 16  ;;  %v20509_v53 = vshll.u32 %v16280_v49, 16 }
 0x25e   : > { %v5726_v56 = vor.u32 %v5725_v24, %v5724_v63  ;;  %v5729_v35 = vrot.slane %v20503_v38, 7  ;;  %12571 = vmatprep.mubr.msk.bf16.mxu1 %vm15135_vm0, %v20461_v59  ;;  %12656 = vmatpush3.bf16.msra.mxu1 %v14416_v12  ;;  %20504 = vst [vmem:[#allocation69_spill] sm:$0xff] %v16584_v34  ;;  %v5732_v24 = vrot.slane %v20508_v58, 6  ;;  %v16602_v47 = vsel %vm5201_vm8, %v6932_v20, %v6936_v55 }
 0x25f   : > { %v6938_v7 = vrot.slane %v20505_v29, 5  ;;  %v6939_v63 = vrot.slane %v20506_v15, 6  ;;  %12657 = vmatprep.subr.bf16.mxu1 %v20461_v59  ;;  %v5733_v36 = vrot.slane %v20509_v53, 7  ;;  %20510 = vst [vmem:[#allocation71_spill] sm:$0xff] %v16602_v47  ;;  %v20511_v38 = vshrl.u32 %v16480_v60, 16 }
 0x260   : > { %v16592_v40 = vsel %vm4075_vm9, %v5722_v8, %v5726_v56  ;;  %v5730_v12 = vor.u32 %v5729_v35, %v5728_v46  ;;  %12914 = vmatpush3.bf16.msra.mxu0 %v14420_v27  ;;  %v20512_v46 = vshll.u32 %v16480_v60, 16  ;;  %v20514_v29 = vshrl.u32 %v16287_v21, 16 }
 0x261   : > { %20507 = vst [vmem:[#allocation70_spill] sm:$0xff] %v16592_v40  ;;  %v6940_v18 = vor.u32 %v6939_v63, %v6938_v7  ;;  %v6942_v8 = vrot.slane %v20511_v38, 5  ;;  %12915 = vmatprep.subr.bf16.mxu0 %v20461_v59  ;;  %v5734_v27 = vor.u32 %v5733_v36, %v5732_v24  ;;  %v20515_v58 = vshll.u32 %v16287_v21, 16  ;;  %v14418_v7 = vld [vmem:[%s20358_s3 + $0x120] sm:$0xff]   ;;  %v15042_v40 = vld [vmem:[#allocation2 + $0x38] sm:$0xff] }
 0x262   : > { %v6943_v35 = vrot.slane %v20512_v46, 6  ;;  %v16610_v49 = vsel %vm4075_vm9, %v5726_v56, %v5730_v12  ;;  %v5736_v15 = vrot.slane %v20514_v29, 6  ;;  %12828 = vmatmul.mubr.bf16.gmra.mrb[180].mxu0 %v16418_v1  ;;  %12658 = vmatpush3.bf16.msra.mxu1 %v14417_v5  ;;  %v20517_v56 = vshrl.u32 %v16482_v13, 16  ;;  %v14423_v29 = vld [vmem:[%s20358_s3 + $0x258] sm:$0xff]  }
 0x263   : > { %20513 = vst [vmem:[#allocation72_spill] sm:$0xff] %v16610_v49  ;;  %v5737_v20 = vrot.slane %v20515_v58, 7  ;;  %v16621_v63 = vsel %vm5201_vm8, %v6936_v55, %v6940_v18  ;;  %v20518_v36 = vshll.u32 %v16482_v13, 16  ;;  %12831 = vmatprep.mubr.msk.bf16.mxu0 %vm15135_vm0, %v20461_v59  ;;  %12659 = vmatprep.subr.bf16.mxu1 %v20461_v59  ;;  %v16631_v21 = vsel %vm4075_vm9, %v5730_v12, %v5734_v27  ;;  %v5690_v58 = vld [vmem:[#allocation2 + $0x58] sm:$0x7f] }
 0x264   : > { %20516 = vst [vmem:[#allocation73_spill] sm:$0xff] %v16621_v63  ;;  %v6944_v53 = vor.u32 %v6943_v35, %v6942_v8  ;;  %v6946_v24 = vrot.slane %v20517_v56, 5  ;;  %20519 = vst [vmem:[#allocation74_spill] sm:$0xff] %v16631_v21  ;;  %v20520_v46 = vshrl.u32 %v16289_v48, 16  ;;  %v20521_v8 = vshll.u32 %v16289_v48, 16  ;;  %12916 = vmatpush3.bf16.msra.mxu0 %v14422_v17 }
 0x265   : > { %v6947_v38 = vrot.slane %v20518_v36, 6  ;;  %v5738_v5 = vor.u32 %v5737_v20, %v5736_v15  ;;  %v20523_v12 = vshrl.u32 %v16496_v4, 16  ;;  %v20524_v15 = vshll.u32 %v16496_v4, 16  ;;  %12572 = vmatmul.mubr.bf16.gmra.mrb[80].mxu1 %v16460_v54  ;;  %12917 = vmatprep.subr.bf16.mxu0 %v20461_v59  ;;  %v14421_v54 = vld [vmem:[%s20358_s3 + $0x128] sm:$0xff]  }
 0x266   : > { %v5740_v55 = vrot.slane %v20520_v46, 6  ;;  %v5741_v35 = vrot.slane %v20521_v8, 7  ;;  %v16641_v56 = vsel %vm5201_vm8, %v6940_v18, %v6944_v53  ;;  %v5744_v8 = vrot.slane %v16207_v62, 6  ;;  %12575 = vmatprep.mubr.msk.bf16.mxu1 %vm15135_vm0, %v20461_v59  ;;  %12660 = vmatpush3.bf16.msra.mxu1 %v14418_v7 }
 0x267   : > { %20522 = vst [vmem:[#allocation75_spill] sm:$0xff] %v16641_v56  ;;  %v6948_v36 = vor.u32 %v6947_v38, %v6946_v24  ;;  %v6950_v21 = vrot.slane %v20523_v12, 5  ;;  %v6951_v20 = vrot.slane %v20524_v15, 6  ;;  %v16650_v17 = vsel %vm4075_vm9, %v5734_v27, %v5738_v5  ;;  %v16654_v56 = vld [vmem:[#allocation2 + $0x60] sm:$0x3f]  ;;  %12661 = vmatprep.subr.bf16.mxu1 %v20461_v59 }
 0x268   : > { %20525 = vst [vmem:[#allocation76_spill] sm:$0xff] %v16650_v17  ;;  %v5742_v46 = vor.u32 %v5741_v35, %v5740_v55  ;;  %v5745_v18 = vrot.slane %v16225_v57, 7  ;;  %v20527_v38 = vshrl.u32 %v16506_v11, 16  ;;  %v20528_v62 = vshll.u32 %v16506_v11, 16  ;;  %v6156_v35 = vld [vmem:[#allocation2 + $0x18] sm:$0xf0]  ;;  %12918 = vmatpush3.bf16.msra.mxu0 %v14423_v29 }
 0x269   : > { %v16662_v24 = vsel %vm5201_vm8, %v6944_v53, %v6948_v36  ;;  %v6952_v27 = vor.u32 %v6951_v20, %v6950_v21  ;;  %v5749_v15 = vshrl.u32 %v5690_v58, 16  ;;  %v5752_v17 = vshll.u32 %v5690_v58, 16  ;;  %v14425_v53 = vld [vmem:[%s20358_s3 + $0x260] sm:$0xff]   ;;  %12919 = vmatprep.subr.bf16.mxu0 %v20461_v59  ;;  %v14424_v29 = vld [vmem:[%s20358_s3 + $0x130] sm:$0xff]  }
 0x26a   : > { %20526 = vst [vmem:[#allocation77_spill] sm:$0xff] %v16662_v24  ;;  %v6954_v55 = vrot.slane %v20527_v38, 5  ;;  %v6955_v57 = vrot.slane %v20528_v62, 6  ;;  %v16670_v7 = vsel %vm4075_vm9, %v5738_v5, %v5742_v46  ;;  %v5746_v12 = vor.u32 %v5745_v18, %v5744_v8  ;;  %12832 = vmatmul.mubr.bf16.gmra.mrb[184].mxu0 %v16426_v9  ;;  %12662 = vmatpush3.bf16.msra.mxu1 %v14421_v54 }
 0x26b   : > { %20529 = vst [vmem:[#allocation78_spill] sm:$0xff] %v16670_v7  ;;  %v16676_v21 = vsel %vm5201_vm8, %v6948_v36, %v6952_v27  ;;  %v6959_v38 = vshrl.u32 %v16654_v56, 16  ;;  %v6962_v62 = vshll.u32 %v16654_v56, 16  ;;  %v5751_v8 = vrot.slane %v5749_v15, 6  ;;  %12835 = vmatprep.mubr.msk.bf16.mxu0 %vm15135_vm0, %v20461_v59  ;;  %12663 = vmatprep.subr.bf16.mxu1 %v20461_v59 }
 0x26c   : > { %20530 = vst [vmem:[#allocation79_spill] sm:$0xff] %v16676_v21  ;;  %v6956_v20 = vor.u32 %v6955_v57, %v6954_v55  ;;  %v16682_v5 = vsel %vm4075_vm9, %v5742_v46, %v5746_v12  ;;  %v5754_v58 = vrot.slane %v5752_v17, 7  ;;  %v6194_v57 = vrot.slane %v6156_v35, 4  ;;  %12920 = vmatpush3.bf16.msra.mxu0 %v14425_v53 }
 0x26d   : > { %20531 = vst [vmem:[#allocation80_spill] sm:$0xff] %v16682_v5  ;;  %v6961_v18 = vrot.slane %v6959_v38, 5  ;;  %v6964_v55 = vrot.slane %v6962_v62, 6  ;;  %v6195_v46 = vrot.slane %v16443_v44, 4  ;;  %v6197_v54 = vrot.slane %v16451_v2, 4  ;;  %12576 = vmatmul.mubr.bf16.gmra.mrb[84].mxu1 %v16465_v45  ;;  %12921 = vmatprep.subr.bf16.mxu0 %v20461_v59  ;;  %v14428_v45 = vld [vmem:[%s20358_s3 + $0x138] sm:$0xff]  }
 0x26e   : > { %v16689_v36 = vsel %vm5201_vm8, %v6952_v27, %v6956_v20  ;;  %v5755_v17 = vor.u32 %v5754_v58, %v5751_v8  ;;  %v6199_v15 = vrot.slane %v16445_v50, 4  ;;  %v14426_v27 = vld [vmem:[%s20358_s3 + $0x268] sm:$0xff]   ;;  %v6201_v35 = vrot.slane %v16473_v16, 4  ;;  %v6165_v5 = vld [vmem:[#allocation2 + $0x60] sm:$0xf]  ;;  %12579 = vmatprep.mubr.msk.bf16.mxu1 %vm15135_vm0, %v20461_v59  ;;  %12664 = vmatpush3.bf16.msra.mxu1 %v14424_v29 }
 0x26f   : > { %20532 = vst [vmem:[#allocation81_spill] sm:$0xff] %v16689_v36  ;;  %v6965_v38 = vor.u32 %v6964_v55, %v6961_v18  ;;  %v6203_v62 = vrot.slane %v16480_v60, 4  ;;  %v6205_v36 = vrot.slane %v16482_v13, 4  ;;  %v16709_v53 = vsel %vm6193_vm11, %v6194_v57, %v6195_v46  ;;  %12665 = vmatprep.subr.bf16.mxu1 %v20461_v59 }
 0x270   : > { %v16706_v8 = vsel %vm4075_vm9, %v5746_v12, %v5755_v17  ;;  %20534 = vst [vmem:[#allocation83_spill] sm:$0xff] %v16709_v53  ;;  %v16712_v58 = vsel %vm6193_vm11, %v6195_v46, %v6197_v54  ;;  %v6207_v18 = vrot.slane %v16496_v4, 4  ;;  %v16724_v12 = vsel %vm6193_vm11, %v6197_v54, %v6199_v15  ;;  %12922 = vmatpush3.bf16.msra.mxu0 %v14426_v27  ;;  %v14427_v54 = vld [vmem:[%s20358_s3 + $0x270] sm:$0xff]  }
 0x271   : > { %20533 = vst [vmem:[#allocation82_spill] sm:$0xff] %v16706_v8  ;;  %20535 = vst [vmem:[#allocation84_spill] sm:$0xff] %v16712_v58  ;;  %v16721_v55 = vsel %vm5201_vm8, %v6956_v20, %v6965_v38  ;;  %v16727_v57 = vsel %vm6193_vm11, %v6199_v15, %v6201_v35  ;;  %v6209_v17 = vrot.slane %v16506_v11, 4  ;;  %v16732_v46 = vsel %vm6193_vm11, %v6201_v35, %v6203_v62 }
 0x272   : > { %20536 = vst [vmem:[#allocation85_spill] sm:$0xff] %v16721_v55  ;;  %20537 = vst [vmem:[#allocation86_spill] sm:$0xff] %v16724_v12  ;;  %v16735_v29 = vsel %vm6193_vm11, %v6203_v62, %v6205_v36  ;;  %v16738_v58 = vsel %vm6193_vm11, %v6205_v36, %v6207_v18  ;;  %v6211_v20 = vrot.slane %v6165_v5, 4  ;;  %v6701_v38 = vrot.slane %v16502_v23, 5  ;;  %12923 = vmatprep.subr.bf16.mxu0 %v20461_v59  ;;  %v6393_v62 = vld [vmem:[#allocation2 + $0x60] sm:$0x1f] }
 0x273   : > { %20538 = vst [vmem:[#allocation87_spill] sm:$0xff] %v16727_v57  ;;  %20539 = vst [vmem:[#allocation88_spill] sm:$0xff] %v16732_v46  ;;  %v16744_v15 = vsel %vm6193_vm11, %v6207_v18, %v6209_v17  ;;  %v6702_v35 = vrot.slane %v16443_v44, 5  ;;  %v6704_v46 = vrot.slane %v16451_v2, 5  ;;  %v6706_v5 = vrot.slane %v16445_v50, 5  ;;  %12836 = vmatmul.mubr.bf16.gmra.mrb[188].mxu0 %v16429_v26  ;;  %12666 = vmatpush3.bf16.msra.mxu1 %v14428_v45 }
 0x274   : > { %20540 = vst [vmem:[#allocation89_spill] sm:$0xff] %v16735_v29  ;;  %20541 = vst [vmem:[#allocation90_spill] sm:$0xff] %v16738_v58  ;;  %v16751_v36 = vsel %vm6193_vm11, %v6209_v17, %v6211_v20  ;;  %v6708_v27 = vrot.slane %v16473_v16, 5  ;;  %v6710_v58 = vrot.slane %v16480_v60, 5  ;;  %v6714_v17 = vrot.slane %v16496_v4, 5  ;;  %12839 = vmatprep.mubr.msk.bf16.mxu0 %vm15135_vm0, %v20461_v59  ;;  %12755 = vmatprep.subr.bf16.mxu1 %v20461_v59 }
 0x275   : > { %20542 = vst [vmem:[#allocation91_spill] sm:$0xff] %v16744_v15  ;;  %20543 = vst [vmem:[#allocation92_spill] sm:$0xff] %v16751_v36  ;;  %v16758_v23 = vsel %vm4983_vm10, %v6701_v38, %v6702_v35  ;;  %v16761_v18 = vsel %vm4983_vm10, %v6702_v35, %v6704_v46  ;;  %v6712_v15 = vrot.slane %v16482_v13, 5  ;;  %v16769_v20 = vsel %vm4983_vm10, %v6704_v46, %v6706_v5  ;;  %v14429_v46 = vld [vmem:[%s20358_s3 + $0x278] sm:$0xff]  }
 0x276   : > { %20544 = vst [vmem:[#allocation93_spill] sm:$0xff] %v16758_v23  ;;  %20545 = vst [vmem:[#allocation94_spill] sm:$0xff] %v16761_v18  ;;  %v16772_v45 = vsel %vm4983_vm10, %v6706_v5, %v6708_v27  ;;  %v16775_v38 = vsel %vm4983_vm10, %v6708_v27, %v6710_v58  ;;  %v6716_v35 = vrot.slane %v16506_v11, 5  ;;  %v20549_v18 = vrot.slane %v15794_v6, 1  ;;  %12924 = vmatpush3.bf16.msra.mxu0 %v14427_v54 }
 0x277   : > { %20546 = vst [vmem:[#allocation95_spill] sm:$0xff] %v16769_v20  ;;  %20547 = vst [vmem:[#allocation96_spill] sm:$0xff] %v16772_v45  ;;  %v20550_v23 = vrot.slane %v16429_v26, 1  ;;  %v16787_v20 = vsel %vm4983_vm10, %v6710_v58, %v6712_v15  ;;  %v16790_v5 = vsel %vm4983_vm10, %v6712_v15, %v6714_v17  ;;  %v6718_v27 = vrot.slane %v6393_v62, 5  ;;  %12925 = vmatprep.subr.bf16.mxu0 %v20461_v59 }
 0x278   : > { %20548 = vst [vmem:[#allocation97_spill] sm:$0xff] %v16775_v38  ;;  %20551 = vst [vmem:[#allocation98_spill] sm:$0xff] %v16787_v20  ;;  %v16794_v38 = vsel %vm4983_vm10, %v6714_v17, %v6716_v35  ;;  %v7170_v54 = vrot.slane %v16451_v2, 6  ;;  %v7174_v15 = vrot.slane %v16473_v16, 6  ;;  %v7176_v62 = vrot.slane %v16480_v60, 6  ;;  %v16807_v17 = vld [vmem:[#allocation2 + $0x30] sm:$0xff] }
 0x279   : > { %v2025_v36 = vsel %vm2014_vm3, %v20550_v23, %v20549_v18  ;;  %20552 = vst [vmem:[#allocation99_spill] sm:$0xff] %v16790_v5  ;;  %20553 = vst [vmem:[#allocation100_spill] sm:$0xff] %v16794_v38  ;;  %v7172_v18 = vrot.slane %v16445_v50, 6  ;;  %v16802_v58 = vsel %vm4983_vm10, %v6716_v35, %v6718_v27  ;;  %v2026_v23 = vrot.slane %v16807_v17, 1 }
 0x27a   : > { %12580 = vmatmul.mubr.bf16.gmra.mrb[88].mxu1 %v2025_v36  ;;  %20554 = vst [vmem:[#allocation101_spill] sm:$0xff] %v16802_v58  ;;  %v7178_v36 = vrot.slane %v16482_v13, 6  ;;  %v20555_v38 = vrot.slane %v16443_v44, 6  ;;  %v7180_v35 = vrot.slane %v16496_v4, 6  ;;  %12926 = vmatpush3.bf16.msra.mxu0 %v14429_v46  ;;  %v16823_v58 = vsel %vm3857_vm7, %v7174_v15, %v7176_v62 }
 0x27b   : > { %12583 = vmatprep.mubr.msk.bf16.mxu1 %vm15135_vm0, %v20461_v59  ;;  %v16816_v20 = vsel %vm3857_vm7, %v7170_v54, %v7172_v18  ;;  %v16820_v27 = vsel %vm3857_vm7, %v7172_v18, %v7174_v15  ;;  %20559 = vst [vmem:[#allocation105_spill] sm:$0xff] %v16823_v58  ;;  %v7182_v29 = vrot.slane %v16506_v11, 6  ;;  %13015 = vmatprep.subr.bf16.mxu0 %v20461_v59  ;;  %v20564_v15 = vrot.slane %v15794_v6, 1 }
 0x27c   : > { %v16813_v5 = vsel %vm3857_vm7, %v20555_v38, %v7170_v54  ;;  %20557 = vst [vmem:[#allocation103_spill] sm:$0xff] %v16816_v20  ;;  %20558 = vst [vmem:[#allocation104_spill] sm:$0xff] %v16820_v27  ;;  %v16826_v45 = vsel %vm3857_vm7, %v7176_v62, %v7178_v36  ;;  %v16831_v38 = vsel %vm3857_vm7, %v7178_v36, %v7180_v35  ;;  %v7184_v54 = vrot.slane %v16654_v56, 6  ;;  %v16834_v20 = vld [vmem:[#allocation2 + $0x28] sm:$0xff]  ;;  %v16850_v56 = vld [vmem:[#allocation2 + $0x38] sm:$0xff] }
 0x27d   : > { %20556 = vst [vmem:[#allocation102_spill] sm:$0xff] %v16813_v5  ;;  %20560 = vst [vmem:[#allocation106_spill] sm:$0xff] %v16826_v45  ;;  %12840 = vmatmul.mubr.bf16.gmra.mrb[192].mxu0 %v16834_v20  ;;  %v16838_v46 = vsel %vm3857_vm7, %v7180_v35, %v7182_v29  ;;  %v2027_v62 = vsel %vm2014_vm3, %v20564_v15, %v2026_v23  ;;  %v2028_v36 = vrot.slane %v16850_v56, 1  ;;  %v20565_v6 = vrot.slane %v15840_v52, 1  ;;  %v14432_v27 = vld [vmem:[%s20358_s3 + $0x190] sm:$0xff]  }
 0x27e   : > { %20561 = vst [vmem:[#allocation107_spill] sm:$0xff] %v16831_v38  ;;  %20562 = vst [vmem:[#allocation108_spill] sm:$0xff] %v16838_v46  ;;  %12843 = vmatprep.mubr.msk.bf16.mxu0 %vm15135_vm0, %v20461_v59  ;;  %v16843_v18 = vsel %vm3857_vm7, %v7182_v29, %v7184_v54  ;;  %v15035_v54 = vld [vmem:[#allocation2 + $0x40] sm:$0xff] }
 0x27f   : > { %20563 = vst [vmem:[#allocation109_spill] sm:$0xff] %v16843_v18  ;;  %v2029_v29 = vsel %vm2014_vm3, %v2026_v23, %v2028_v36  ;;  %v2031_v35 = vsel %vm2014_vm3, %v2028_v36, %v20565_v6  ;;  %v2462_v23 = vld [vmem:[#allocation2] sm:$0xfc]  ;;  %v2484_v36 = vrot.slane %v16414_v39, 2  ;;  %v15036_v6 = vld [vmem:[#allocation2 + $0x48] sm:$0xff] }
 0x280   : > { %v14430_v18 = vld [vmem:[%s20358_s3 + $0x180] sm:$0xff]  }
 0x282   : > { %12584 = vmatmul.mubr.bf16.gmra.mrb[92].mxu1 %v2027_v62  ;;  %v2483_v62 = vrot.slane %v2462_v23, 2  ;;  %v15037_v23 = vld [vmem:[#allocation2 + $0x10] sm:$0xff] }
 0x283   : > { %12587 = vmatprep.mubr.msk.bf16.mxu1 %vm15135_vm0, %v20461_v59 }
 0x284   : > { %v2485_v46 = vsel %vm2482_vm4, %v2483_v62, %v2484_v36 }
 0x285   : > { %12844 = vmatmul.mubr.bf16.gmra.mrb[196].mxu0 %v16807_v17 }
 0x286   : > { %12847 = vmatprep.mubr.msk.bf16.mxu0 %vm15135_vm0, %v20461_v59 }
 0x28a   : > { %12588 = vmatmul.mubr.bf16.gmra.mrb[96].mxu1 %v2029_v29 }
 0x28b   : > { %12591 = vmatprep.mubr.msk.bf16.mxu1 %vm15135_vm0, %v20461_v59 }
 0x28d   : > { %12848 = vmatmul.mubr.bf16.gmra.mrb[200].mxu0 %v16850_v56 }
 0x28e   : > { %12851 = vmatprep.mubr.msk.bf16.mxu0 %vm15135_vm0, %v20461_v59 }
 0x292   : > { %12592 = vmatmul.mubr.bf16.gmra.mrb[100].mxu1 %v2031_v35 }
 0x293   : > { %12595 = vmatprep.mubr.msk.bf16.mxu1 %vm15135_vm0, %v20461_v59 }
 0x295   : > { %12852 = vmatmul.mubr.bf16.gmra.mrb[204].mxu0 %v15035_v54  ;;  %v3609_v54 = vld [vmem:[#allocation2 + $0x8] sm:$0xfe] }
 0x296   : > { %12855 = vmatprep.mubr.msk.bf16.mxu0 %vm15135_vm0, %v20461_v59  ;;  %v3637_v39 = vrot.slane %v3609_v54, 1 }
 0x298   : > { %v16872_v15 = vpop.f32.mrb[0].mxu1 }
 0x299   : > { %v12461_v29 = vpop.f32.mrb[1].mxu1 }
 0x29a   : > { %12596 = vmatmul.mubr.bf16.gmra.mrb[104].mxu1 %v15954_v31  ;;  %v16875_v35 = vpop.f32.mrb[2].mxu1  ;;  %v3638_v29 = vrot.slane %v15037_v23, 1 }
 0x29b   : > { %12667 = vmatprep.mubr.msk.bf16.mxu1 %vm15135_vm0, %v20461_v59  ;;  %v12462_v31 = vpop.f32.mrb[3].mxu1 }
 0x29c   : > { %v14431_v31 = vld [vmem:[%s20358_s3 + $0x188] sm:$0xff]   ;;  %v3639_v54 = vsel %vm2014_vm3, %v3637_v39, %v3638_v29 }
 0x29d   : > { %12856 = vmatmul.mubr.bf16.gmra.mrb[208].mxu0 %v15036_v6  ;;  %v16883_v38 = vpop.f32.mrb[104].mxu0  ;;  %v14436_v39 = vld [vmem:[%s20358_s3 + $0x2c8] sm:$0xff]  }
 0x29e   : > { %12927 = vmatprep.mubr.msk.bf16.mxu0 %vm15135_vm0, %v20461_v59  ;;  %v12617_v6 = vpop.f32.mrb[105].mxu0 }
 0x29f   : > { %v16890_v45 = vpop.f32.mrb[106].mxu0 }
 0x2a0   : > { %v12618_v62 = vpop.f32.mrb[107].mxu0  ;;  %v16893_v58 = vpop.f32.mrb[4].mxu1 }
 0x2a1   : > { %v12465_v23 = vpop.f32.mrb[5].mxu1 }
 0x2a2   : > { %12668 = vmatmul.mubr.bf16.vlgmr.msra.gmra.mrb[108].mxu1 %v2485_v46  ;;  %v2486_v46 = vrot.slane %v16418_v1, 2  ;;  %v16900_v6 = vpop.f32.mrb[6].mxu1 }
 0x2a3   : > { %12756 = vmatpush3.bf16.msra.mxu1 %v14430_v18  ;;  %12671 = vmatprep.mubr.msk.bf16.mxu1 %vm15135_vm0, %v20461_v59  ;;  %v14435_v18 = vld [vmem:[%s20358_s3 + $0x2c0] sm:$0xff]   ;;  %v12466_v62 = vpop.f32.mrb[7].mxu1 }
 0x2a4   : > { %12757 = vmatprep.subr.bf16.mxu1 %v20461_v59  ;;  %v2487_v1 = vsel %vm2482_vm4, %v2484_v36, %v2486_v46  ;;  %v14433_v36 = vld [vmem:[%s20358_s3 + $0x198] sm:$0xff]  }
 0x2a5   : > { %12928 = vmatmul.mubr.bf16.vlgmr.msra.gmra.mrb[212].mxu0 %v3639_v54  ;;  %v16912_v54 = vpop.f32.mrb[108].mxu0 }
 0x2a6   : > { %12931 = vmatprep.mubr.msk.bf16.mxu0 %vm15135_vm0, %v20461_v59  ;;  %13016 = vmatpush3.bf16.msra.mxu0 %v14435_v18  ;;  %v12621_v62 = vpop.f32.mrb[109].mxu0 }
 0x2a7   : > { %12758 = vmatpush3.bf16.msra.mxu1 %v14431_v31  ;;  %v15038_v31 = vld [vmem:[#allocation2 + $0x18] sm:$0xff]  ;;  %13017 = vmatprep.subr.bf16.mxu0 %v20461_v59  ;;  %v16920_v18 = vpop.f32.mrb[110].mxu0 }
 0x2a8   : > { %12759 = vmatprep.subr.bf16.mxu1 %v20461_v59  ;;  %v3640_v23 = vrot.slane %v15038_v31, 1  ;;  %v12622_v5 = vpop.f32.mrb[111].mxu0  ;;  %v16923_v57 = vpop.f32.mrb[8].mxu1  ;;  %v14438_v31 = vld [vmem:[%s20358_s3 + $0x2d0] sm:$0xff]  }
 0x2a9   : > { %v12469_v62 = vpop.f32.mrb[9].mxu1  ;;  %v14434_v5 = vld [vmem:[%s20358_s3 + $0x1a0] sm:$0xff]  }
 0x2aa   : > { %12672 = vmatmul.mubr.bf16.gmra.mrb[112].mxu1 %v2487_v1  ;;  %v2488_v1 = vrot.slane %v16426_v9, 2  ;;  %13018 = vmatpush3.bf16.msra.mxu0 %v14436_v39  ;;  %v16931_v12 = vpop.f32.mrb[10].mxu1 }
 0x2ab   : > { %12675 = vmatprep.mubr.msk.bf16.mxu1 %vm15135_vm0, %v20461_v59  ;;  %12760 = vmatpush3.bf16.msra.mxu1 %v14432_v27  ;;  %v3641_v27 = vsel %vm2014_vm3, %v3638_v29, %v3640_v23  ;;  %v12470_v53 = vpop.f32.mrb[11].mxu1  ;;  %v14439_v29 = vld [vmem:[%s20358_s3 + $0x2d8] sm:$0xff]  }
 0x2ac   : > { %12761 = vmatprep.subr.bf16.mxu1 %v20461_v59  ;;  %13019 = vmatprep.subr.bf16.mxu0 %v20461_v59  ;;  %v2489_v9 = vsel %vm2482_vm4, %v2486_v46, %v2488_v1  ;;  %v14437_v46 = vld [vmem:[%s20358_s3 + $0x1a8] sm:$0xff]  }
 0x2ad   : > { %12932 = vmatmul.mubr.bf16.gmra.mrb[216].mxu0 %v3641_v27  ;;  %v16943_v39 = vpop.f32.mrb[112].mxu0 }
 0x2ae   : > { %12935 = vmatprep.mubr.msk.bf16.mxu0 %vm15135_vm0, %v20461_v59  ;;  %13020 = vmatpush3.bf16.msra.mxu0 %v14438_v31  ;;  %v12625_v53 = vpop.f32.mrb[113].mxu0 }
 0x2af   : > { %12762 = vmatpush3.bf16.msra.mxu1 %v14433_v36  ;;  %v15039_v36 = vld [vmem:[#allocation2 + $0x20] sm:$0xff]  ;;  %13021 = vmatprep.subr.bf16.mxu0 %v20461_v59  ;;  %v16951_v31 = vpop.f32.mrb[114].mxu0 }
 0x2b0   : > { %12763 = vmatprep.subr.bf16.mxu1 %v20461_v59  ;;  %v3642_v27 = vrot.slane %v15039_v36, 1  ;;  %v12626_v62 = vpop.f32.mrb[115].mxu0  ;;  %v16954_v55 = vpop.f32.mrb[12].mxu1  ;;  %v14441_v36 = vld [vmem:[%s20358_s3 + $0x2e0] sm:$0xff]  }
 0x2b1   : > { %v12473_v53 = vpop.f32.mrb[13].mxu1  ;;  %v14440_v62 = vld [vmem:[%s20358_s3 + $0x1b0] sm:$0xff]  }
 0x2b2   : > { %12676 = vmatmul.mubr.bf16.gmra.mrb[116].mxu1 %v2489_v9  ;;  %v2490_v9 = vrot.slane %v16429_v26, 2  ;;  %13022 = vmatpush3.bf16.msra.mxu0 %v14439_v29  ;;  %v16962_v8 = vpop.f32.mrb[14].mxu1 }
 0x2b3   : > { %12679 = vmatprep.mubr.msk.bf16.mxu1 %vm15135_vm0, %v20461_v59  ;;  %12764 = vmatpush3.bf16.msra.mxu1 %v14434_v5  ;;  %v3643_v5 = vsel %vm2014_vm3, %v3640_v23, %v3642_v27  ;;  %v12474_v21 = vpop.f32.mrb[15].mxu1  ;;  %v14442_v23 = vld [vmem:[%s20358_s3 + $0x2e8] sm:$0xff]  }
 0x2b4   : > { %12765 = vmatprep.subr.bf16.mxu1 %v20461_v59  ;;  %13023 = vmatprep.subr.bf16.mxu0 %v20461_v59  ;;  %v2491_v26 = vsel %vm2482_vm4, %v2488_v1, %v2490_v9  ;;  %v14444_v1 = vld [vmem:[%s20358_s3 + $0x1b8] sm:$0xff]  }
 0x2b5   : > { %12936 = vmatmul.mubr.bf16.gmra.mrb[220].mxu0 %v3643_v5  ;;  %v16974_v29 = vpop.f32.mrb[116].mxu0 }
 0x2b6   : > { %12939 = vmatprep.mubr.msk.bf16.mxu0 %vm15135_vm0, %v20461_v59  ;;  %13024 = vmatpush3.bf16.msra.mxu0 %v14441_v36  ;;  %v12629_v21 = vpop.f32.mrb[117].mxu0 }
 0x2b7   : > { %12766 = vmatpush3.bf16.msra.mxu1 %v14437_v46  ;;  %v15040_v46 = vld [vmem:[#allocation2 + $0x28] sm:$0xff]  ;;  %13025 = vmatprep.subr.bf16.mxu0 %v20461_v59  ;;  %v16982_v36 = vpop.f32.mrb[118].mxu0 }
 0x2b8   : > { %12767 = vmatprep.subr.bf16.mxu1 %v20461_v59  ;;  %v3644_v5 = vrot.slane %v15040_v46, 1  ;;  %v12630_v53 = vpop.f32.mrb[119].mxu0  ;;  %v16985_v7 = vpop.f32.mrb[16].mxu1  ;;  %v14443_v46 = vld [vmem:[%s20358_s3 + $0x2f0] sm:$0xff]  }
 0x2b9   : > { %v12477_v21 = vpop.f32.mrb[17].mxu1  ;;  %v15041_v53 = vld [vmem:[#allocation2 + $0x30] sm:$0xff] }
 0x2ba   : > { %12680 = vmatmul.mubr.bf16.gmra.mrb[120].mxu1 %v2491_v26  ;;  %v2492_v26 = vrot.slane %v16834_v20, 2  ;;  %13026 = vmatpush3.bf16.msra.mxu0 %v14442_v23  ;;  %v16993_v24 = vpop.f32.mrb[18].mxu1 }
 0x2bb   : > { %12683 = vmatprep.mubr.msk.bf16.mxu1 %vm15135_vm0, %v20461_v59  ;;  %12768 = vmatpush3.bf16.msra.mxu1 %v14440_v62  ;;  %v3645_v62 = vsel %vm2014_vm3, %v3642_v27, %v3644_v5  ;;  %v12478_v63 = vpop.f32.mrb[19].mxu1  ;;  %v14445_v27 = vld [vmem:[%s20358_s3 + $0x2f8] sm:$0xff]  }
 0x2bc   : > { %12769 = vmatprep.subr.bf16.mxu1 %v20461_v59  ;;  %13027 = vmatprep.subr.bf16.mxu0 %v20461_v59  ;;  %v2493_v20 = vsel %vm2482_vm4, %v2490_v9, %v2492_v26 }
 0x2bd   : > { %12940 = vmatmul.mubr.bf16.gmra.mrb[224].mxu0 %v3645_v62  ;;  %v17002_v23 = vpop.f32.mrb[120].mxu0  ;;  %v3646_v62 = vrot.slane %v15041_v53, 1 }
 0x2be   : > { %12943 = vmatprep.mubr.msk.bf16.mxu0 %vm15135_vm0, %v20461_v59  ;;  %13028 = vmatpush3.bf16.msra.mxu0 %v14443_v46  ;;  %v12633_v63 = vpop.f32.mrb[121].mxu0  ;;  %v2494_v46 = vrot.slane %v16807_v17, 2  ;;  %v3648_v17 = vrot.slane %v15042_v40, 1 }
 0x2bf   : > { %12770 = vmatpush3.bf16.msra.mxu1 %v14444_v1  ;;  %13029 = vmatprep.subr.bf16.mxu0 %v20461_v59  ;;  %v17007_v1 = vpop.f32.mrb[122].mxu0  ;;  %v3647_v49 = vsel %vm2014_vm3, %v3644_v5, %v3646_v62 }
 0x2c0   : > { %12859 = vmatprep.subr.bf16.mxu1 %v20461_v59  ;;  %v12634_v21 = vpop.f32.mrb[123].mxu0  ;;  %v17009_v9 = vpop.f32.mrb[20].mxu1  ;;  %v2495_v63 = vsel %vm2482_vm4, %v2492_v26, %v2494_v46  ;;  %v3649_v34 = vsel %vm2014_vm3, %v3646_v62, %v3648_v17 }
 0x2c1   : > { %v12481_v47 = vpop.f32.mrb[21].mxu1 }
 0x2c2   : > { %12684 = vmatmul.mubr.bf16.gmra.mrb[124].mxu1 %v2493_v20  ;;  %13030 = vmatpush3.bf16.msra.mxu0 %v14445_v27  ;;  %v17014_v20 = vpop.f32.mrb[22].mxu1 }
 0x2c3   : > { %12687 = vmatprep.mubr.msk.bf16.mxu1 %vm15135_vm0, %v20461_v59  ;;  %13119 = vmatprep.subr.bf16.mxu0 %v20461_v59  ;;  %v12482_v53 = vpop.f32.mrb[23].mxu1 }
 0x2c4   : > { %v2496_v53 = vrot.slane %v16850_v56, 2 }
 0x2c5   : > { %12944 = vmatmul.mubr.bf16.gmra.mrb[228].mxu0 %v3647_v49  ;;  %v17019_v21 = vpop.f32.mrb[124].mxu0 }
 0x2c6   : > { %12947 = vmatprep.mubr.msk.bf16.mxu0 %vm15135_vm0, %v20461_v59  ;;  %v12637_v27 = vpop.f32.mrb[125].mxu0  ;;  %v2497_v40 = vsel %vm2482_vm4, %v2494_v46, %v2496_v53 }
 0x2c7   : > { %v17023_v47 = vpop.f32.mrb[126].mxu0 }
 0x2c8   : > { %v12638_v49 = vpop.f32.mrb[127].mxu0  ;;  %v17025_v5 = vpop.f32.mrb[24].mxu1 }
 0x2c9   : > { %v12485_v51 = vpop.f32.mrb[25].mxu1  ;;  %v15043_v49 = vld [vmem:[#allocation2 + $0x40] sm:$0xff] }
 0x2ca   : > { %12688 = vmatmul.mubr.bf16.gmra.mrb[128].mxu1 %v2495_v63  ;;  %v17029_v26 = vpop.f32.mrb[26].mxu1  ;;  %v3650_v32 = vrot.slane %v15043_v49, 1 }
 0x2cb   : > { %12691 = vmatprep.mubr.msk.bf16.mxu1 %vm15135_vm0, %v20461_v59  ;;  %v12486_v63 = vpop.f32.mrb[27].mxu1 }
 0x2cc   : > { %v3651_v62 = vsel %vm2014_vm3, %v3648_v17, %v3650_v32 }
 0x2cd   : > { %12948 = vmatmul.mubr.bf16.gmra.mrb[232].mxu0 %v3649_v34  ;;  %v17034_v27 = vpop.f32.mrb[128].mxu0 }
 0x2ce   : > { %12951 = vmatprep.mubr.msk.bf16.mxu0 %vm15135_vm0, %v20461_v59  ;;  %v12641_v11 = vpop.f32.mrb[129].mxu0 }
 0x2cf   : > { %v17038_v56 = vpop.f32.mrb[130].mxu0  ;;  %v20566_v11 = vrot.slane %v15840_v52, 2  ;;  %v17059_v52 = vld [vmem:[#allocation2 + $0x8] sm:$0xc0] }
 0x2d0   : > { %v12642_v51 = vpop.f32.mrb[131].mxu0  ;;  %v17040_v34 = vpop.f32.mrb[28].mxu1  ;;  %20567 = vst [vmem:[#allocation110_spill] sm:$0xff] %v17059_v52 }
 0x2d1   : > { %v12489_v63 = vpop.f32.mrb[29].mxu1  ;;  %v15044_v51 = vld [vmem:[#allocation2 + $0x48] sm:$0xff] }
 0x2d2   : > { %12692 = vmatmul.mubr.bf16.gmra.mrb[132].mxu1 %v2497_v40  ;;  %v17043_v4 = vpop.f32.mrb[30].mxu1  ;;  %v2499_v40 = vsel %vm2482_vm4, %v2496_v53, %v20566_v11  ;;  %v3652_v13 = vrot.slane %v15044_v51, 1  ;;  %v4077_v51 = vshrl.u32 %v17059_v52, 16 }
 0x2d3   : > { %12695 = vmatprep.mubr.msk.bf16.mxu1 %vm15135_vm0, %v20461_v59  ;;  %v12490_v46 = vpop.f32.mrb[31].mxu1 }
 0x2d4   : > { %v3653_v46 = vsel %vm2014_vm3, %v3650_v32, %v3652_v13  ;;  %v4080_v32 = vshll.u32 %v17059_v52, 16  ;;  %v4079_v44 = vrot.slane %v4077_v51, 6  ;;  %v4085_v52 = vrot.slane %v15994_v28, 7 }
 0x2d5   : > { %12952 = vmatmul.mubr.bf16.gmra.mrb[236].mxu0 %v3651_v62  ;;  %v17050_v49 = vpop.f32.mrb[132].mxu0 }
 0x2d6   : > { %12955 = vmatprep.mubr.msk.bf16.mxu0 %vm15135_vm0, %v20461_v59  ;;  %v12645_v60 = vpop.f32.mrb[133].mxu0 }
 0x2d7   : > { %v17054_v17 = vpop.f32.mrb[134].mxu0  ;;  %v15045_v60 = vld [vmem:[#allocation2 + $0x50] sm:$0x1] }
 0x2d8   : > { %v12646_v62 = vpop.f32.mrb[135].mxu0  ;;  %v17056_v63 = vpop.f32.mrb[32].mxu1 }
 0x2d9   : > { %v12493_v16 = vpop.f32.mrb[33].mxu1 }
 0x2da   : > { %12696 = vmatmul.mubr.bf16.gmra.mrb[136].mxu1 %v2499_v40  ;;  %v17061_v53 = vpop.f32.mrb[34].mxu1  ;;  %v3654_v40 = vrot.slane %v15045_v60, 1 }
 0x2db   : > { %12699 = vmatprep.mubr.msk.bf16.mxu1 %vm15135_vm0, %v20461_v59  ;;  %v12494_v11 = vpop.f32.mrb[35].mxu1 }
 0x2dc   : > { %v3655_v11 = vsel %vm2014_vm3, %v3652_v13, %v3654_v40 }
 0x2dd   : > { %12956 = vmatmul.mubr.bf16.gmra.mrb[240].mxu0 %v3653_v46  ;;  %v17066_v50 = vpop.f32.mrb[136].mxu0 }
 0x2de   : > { %12959 = vmatprep.mubr.msk.bf16.mxu0 %vm15135_vm0, %v20461_v59  ;;  %20568 = vst [vmem:[#allocation111_spill] sm:$0xff] %v17066_v50  ;;  %v12649_v16 = vpop.f32.mrb[137].mxu0  ;;  %v4082_v50 = vrot.slane %v4080_v32, 7 }
 0x2df   : > { %v17072_v62 = vpop.f32.mrb[138].mxu0 }
 0x2e0   : > { %20569 = vst [vmem:[#allocation112_spill] sm:$0xff] %v17072_v62  ;;  %v12650_v46 = vpop.f32.mrb[139].mxu0  ;;  %v1915_v2 = vpop.f32.mrb[36].mxu1  ;;  %v14446_v62 = vld [vmem:[%s20358_s3 + $0x200] sm:$0xff]  }
 0x2e1   : > { %v17076_v60 = vadd.f32 %v1915_v2, %v16872_v15  ;;  %v12513_v48 = vpop.f32.mrb[37].mxu1 }
 0x2e2   : > { %12700 = vmatmul.mubr.bf16.gmra.mrb[140].mxu1 %v15986_v10  ;;  %v4084_v10 = vrot.slane %v15981_v19, 6  ;;  %v1918_v16 = vpop.f32.mrb[38].mxu1  ;;  %v4083_v19 = vor.u32 %v4082_v50, %v4079_v44 }
 0x2e3   : > { %12771 = vmatprep.mubr.msk.bf16.mxu1 %vm15135_vm0, %v20461_v59  ;;  %v17084_v46 = vadd.f32 %v1918_v16, %v16875_v35  ;;  %v12514_v13 = vpop.f32.mrb[39].mxu1  ;;  %v14447_v35 = vld [vmem:[%s20358_s3 + $0x208] sm:$0xff]   ;;  %v14448_v16 = vld [vmem:[%s20358_s3 + $0x210] sm:$0xff]  }
 0x2e4   : > { %v4086_v48 = vor.u32 %v4085_v52, %v4084_v10 }
 0x2e5   : > { %12960 = vmatmul.mubr.bf16.gmra.mrb[244].mxu0 %v3655_v11  ;;  %v17088_v2 = vpop.f32.mrb[140].mxu0  ;;  %v4089_v11 = vrot.slane %v16054_v33, 7 }
 0x2e6   : > { %13031 = vmatprep.mubr.msk.bf16.mxu0 %vm15135_vm0, %v20461_v59  ;;  %v12721_v15 = vpop.f32.mrb[141].mxu0  ;;  %v4087_v50 = vsel %vm4075_vm9, %v4083_v19, %v4086_v48  ;;  %v14449_v19 = vld [vmem:[%s20358_s3 + $0x218] sm:$0xff]  }
 0x2e7   : > { %v17096_v40 = vpop.f32.mrb[142].mxu0 }
 0x2e8   : > { %v12722_v51 = vpop.f32.mrb[143].mxu0  ;;  %v1923_v32 = vpop.f32.mrb[40].mxu1 }
 0x2e9   : > { %v17104_v44 = vadd.f32 %v1923_v32, %v16893_v58  ;;  %v12517_v52 = vpop.f32.mrb[41].mxu1 }
 0x2ea   : > { %12772 = vmatmul.mubr.bf16.vlgmr.msra.gmra.mrb[144].mxu1 %v15992_v42  ;;  %v14451_v42 = vld [vmem:[%s20358_s3 + $0x340] sm:$0xff]   ;;  %v1926_v10 = vpop.f32.mrb[42].mxu1  ;;  %v4093_v52 = vrot.slane %v16065_v0, 7  ;;  %v14455_v0 = vld [vmem:[%s20358_s3 + $0x358] sm:$0xff]  }
 0x2eb   : > { %12860 = vmatpush3.bf16.msra.mxu1 %v14446_v62  ;;  %12775 = vmatprep.mubr.msk.bf16.mxu1 %vm15135_vm0, %v20461_v59  ;;  %v4088_v62 = vrot.slane %v16039_v30, 6  ;;  %v17112_v13 = vadd.f32 %v1926_v10, %v16900_v6  ;;  %v12518_v15 = vpop.f32.mrb[43].mxu1  ;;  %v14452_v30 = vld [vmem:[%s20358_s3 + $0x348] sm:$0xff]  }
 0x2ec   : > { %12861 = vmatprep.subr.bf16.mxu1 %v20461_v59 }
 0x2ed   : > { %13032 = vmatmul.mubr.bf16.vlgmr.msra.gmra.mrb[248].mxu0 %v4087_v50  ;;  %v17120_v33 = vpop.f32.mrb[144].mxu0  ;;  %v4090_v58 = vor.u32 %v4089_v11, %v4088_v62  ;;  %v4092_v50 = vrot.slane %v16082_v22, 6 }
 0x2ee   : > { %13035 = vmatprep.mubr.msk.bf16.mxu0 %vm15135_vm0, %v20461_v59  ;;  %13120 = vmatpush3.bf16.msra.mxu0 %v14451_v42  ;;  %v12725_v6 = vpop.f32.mrb[145].mxu0 }
 0x2ef   : > { %12862 = vmatpush3.bf16.msra.mxu1 %v14447_v35  ;;  %13121 = vmatprep.subr.bf16.mxu0 %v20461_v59  ;;  %v17129_v35 = vpop.f32.mrb[146].mxu0  ;;  %v4091_v42 = vsel %vm4075_vm9, %v4086_v48, %v4090_v58  ;;  %v4094_v22 = vor.u32 %v4093_v52, %v4092_v50  ;;  %v4096_v50 = vrot.slane %v16086_v3, 6  ;;  %v4097_v52 = vrot.slane %v16084_v14, 7  ;;  %v14458_v14 = vld [vmem:[%s20358_s3 + $0x368] sm:$0xff]  }
 0x2f0   : > { %12863 = vmatprep.subr.bf16.mxu1 %v20461_v59  ;;  %v12726_v51 = vpop.f32.mrb[147].mxu0  ;;  %v1931_v32 = vpop.f32.mrb[44].mxu1 }
 0x2f1   : > { %v17139_v62 = vadd.f32 %v1931_v32, %v16923_v57  ;;  %v12521_v11 = vpop.f32.mrb[45].mxu1  ;;  %v4095_v32 = vsel %vm4075_vm9, %v4090_v58, %v4094_v22 }
 0x2f2   : > { %12776 = vmatmul.mubr.bf16.gmra.mrb[148].mxu1 %v16008_v43  ;;  %13122 = vmatpush3.bf16.msra.mxu0 %v14452_v30  ;;  %v14454_v43 = vld [vmem:[%s20358_s3 + $0x350] sm:$0xff]   ;;  %v1934_v10 = vpop.f32.mrb[46].mxu1  ;;  %v14453_v30 = vld [vmem:[%s20358_s3 + $0x228] sm:$0xff]  }
 0x2f3   : > { %12779 = vmatprep.mubr.msk.bf16.mxu1 %vm15135_vm0, %v20461_v59  ;;  %12864 = vmatpush3.bf16.msra.mxu1 %v14448_v16  ;;  %v14450_v16 = vld [vmem:[%s20358_s3 + $0x220] sm:$0xff]   ;;  %v17146_v15 = vadd.f32 %v1934_v10, %v16931_v12  ;;  %v12522_v48 = vpop.f32.mrb[47].mxu1  ;;  %v14456_v10 = vld [vmem:[%s20358_s3 + $0x230] sm:$0xff]  }
 0x2f4   : > { %12865 = vmatprep.subr.bf16.mxu1 %v20461_v59  ;;  %13123 = vmatprep.subr.bf16.mxu0 %v20461_v59  ;;  %v14460_v48 = vld [vmem:[%s20358_s3 + $0x238] sm:$0xff]  }
 0x2f5   : > { %13036 = vmatmul.mubr.bf16.gmra.mrb[252].mxu0 %v4091_v42  ;;  %v17154_v57 = vpop.f32.mrb[148].mxu0 }
 0x2f6   : > { %13039 = vmatprep.mubr.msk.bf16.mxu0 %vm15135_vm0, %v20461_v59  ;;  %13124 = vmatpush3.bf16.msra.mxu0 %v14454_v43  ;;  %v12729_v12 = vpop.f32.mrb[149].mxu0 }
 0x2f7   : > { %12866 = vmatpush3.bf16.msra.mxu1 %v14449_v19  ;;  %13125 = vmatprep.subr.bf16.mxu0 %v20461_v59  ;;  %v17163_v6 = vpop.f32.mrb[150].mxu0 }
 0x2f8   : > { %12867 = vmatprep.subr.bf16.mxu1 %v20461_v59  ;;  %v12730_v19 = vpop.f32.mrb[151].mxu0  ;;  %v1939_v51 = vpop.f32.mrb[48].mxu1 }
 0x2f9   : > { %v17171_v43 = vadd.f32 %v1939_v51, %v16954_v55  ;;  %v12525_v42 = vpop.f32.mrb[49].mxu1  ;;  %v4098_v55 = vor.u32 %v4097_v52, %v4096_v50 }
 0x2fa   : > { %12780 = vmatmul.mubr.bf16.gmra.mrb[152].mxu1 %v16021_v41  ;;  %13126 = vmatpush3.bf16.msra.mxu0 %v14455_v0  ;;  %v14457_v41 = vld [vmem:[%s20358_s3 + $0x360] sm:$0xff]   ;;  %v1942_v11 = vpop.f32.mrb[50].mxu1  ;;  %v4101_v42 = vrot.slane %v16089_v61, 7 }
 0x2fb   : > { %12783 = vmatprep.mubr.msk.bf16.mxu1 %vm15135_vm0, %v20461_v59  ;;  %12868 = vmatpush3.bf16.msra.mxu1 %v14450_v16  ;;  %v17180_v16 = vadd.f32 %v1942_v11, %v16962_v8  ;;  %v12526_v58 = vpop.f32.mrb[51].mxu1  ;;  %v4099_v19 = vsel %vm4075_vm9, %v4094_v22, %v4098_v55 }
 0x2fc   : > { %12869 = vmatprep.subr.bf16.mxu1 %v20461_v59  ;;  %13127 = vmatprep.subr.bf16.mxu0 %v20461_v59 }
 0x2fd   : > { %13040 = vmatmul.mubr.bf16.gmra.mrb[0].mxu0 %v4095_v32  ;;  %v17188_v3 = vpop.f32.mrb[152].mxu0  ;;  %v4100_v32 = vrot.slane %v16091_v37, 6  ;;  %v14461_v37 = vld [vmem:[%s20358_s3 + $0x378] sm:$0xff]  }
 0x2fe   : > { %13043 = vmatprep.mubr.msk.bf16.mxu0 %vm15135_vm0, %v20461_v59  ;;  %13128 = vmatpush3.bf16.msra.mxu0 %v14457_v41  ;;  %v12733_v8 = vpop.f32.mrb[153].mxu0 }
 0x2ff   : > { %12870 = vmatpush3.bf16.msra.mxu1 %v14453_v30  ;;  %13129 = vmatprep.subr.bf16.mxu0 %v20461_v59  ;;  %v17197_v0 = vpop.f32.mrb[154].mxu0  ;;  %v4102_v22 = vor.u32 %v4101_v42, %v4100_v32 }
 0x300   : > { %12871 = vmatprep.subr.bf16.mxu1 %v20461_v59  ;;  %v12734_v12 = vpop.f32.mrb[155].mxu0  ;;  %v1947_v30 = vpop.f32.mrb[52].mxu1 }
 0x301   : > { %v17205_v51 = vadd.f32 %v1947_v30, %v16985_v7  ;;  %v12529_v41 = vpop.f32.mrb[53].mxu1  ;;  %v20570_v7 = vld [vmem:[#allocation6_spill] sm:$0xff]  ;;  %v4103_v8 = vsel %vm4075_vm9, %v4098_v55, %v4102_v22  ;;  %v20571_v30 = vld [vmem:[#allocation12_spill] sm:$0xff] }
 0x302   : > { %12784 = vmatmul.mubr.bf16.gmra.mrb[156].mxu1 %v16024_v25  ;;  %13130 = vmatpush3.bf16.msra.mxu0 %v14458_v14  ;;  %v14459_v25 = vld [vmem:[%s20358_s3 + $0x370] sm:$0xff]   ;;  %v1950_v50 = vpop.f32.mrb[54].mxu1 }
 0x303   : > { %12787 = vmatprep.mubr.msk.bf16.mxu1 %vm15135_vm0, %v20461_v59  ;;  %12872 = vmatpush3.bf16.msra.mxu1 %v14456_v10  ;;  %v17211_v52 = vadd.f32 %v1950_v50, %v16993_v24  ;;  %v12530_v11 = vpop.f32.mrb[55].mxu1 }
 0x304   : > { %12873 = vmatprep.subr.bf16.mxu1 %v20461_v59  ;;  %13131 = vmatprep.subr.bf16.mxu0 %v20461_v59 }
 0x305   : > { %13044 = vmatmul.mubr.bf16.gmra.mrb[4].mxu0 %v4099_v19  ;;  %v17219_v61 = vpop.f32.mrb[156].mxu0  ;;  %v20572_v19 = vld [vmem:[#allocation11_spill] sm:$0xff] }
 0x306   : > { %13047 = vmatprep.mubr.msk.bf16.mxu0 %vm15135_vm0, %v20461_v59  ;;  %13132 = vmatpush3.bf16.msra.mxu0 %v14459_v25  ;;  %v12737_v24 = vpop.f32.mrb[157].mxu0  ;;  %v4104_v25 = vrot.slane %v20571_v30, 6  ;;  %v4105_v41 = vrot.slane %v20572_v19, 7  ;;  %v20577_v19 = vld [vmem:[#allocation13_spill] sm:$0xff] }
 0x307   : > { %12874 = vmatpush3.bf16.msra.mxu1 %v14460_v48  ;;  %13133 = vmatprep.subr.bf16.mxu0 %v20461_v59  ;;  %v17225_v10 = vpop.f32.mrb[158].mxu0 }
 0x308   : > { %12963 = vmatprep.subr.bf16.mxu1 %v20461_v59  ;;  %v12738_v58 = vpop.f32.mrb[159].mxu0  ;;  %v1955_v14 = vpop.f32.mrb[56].mxu1  ;;  %v4106_v11 = vor.u32 %v4105_v41, %v4104_v25 }
 0x309   : > { %v17229_v48 = vadd.f32 %v1955_v14, %v17009_v9  ;;  %v12533_v12 = vpop.f32.mrb[57].mxu1  ;;  %v20574_v9 = vld [vmem:[#allocation7_spill] sm:$0xff] }
 0x30a   : > { %12788 = vmatmul.mubr.bf16.gmra.mrb[160].mxu1 %v20570_v7  ;;  %13134 = vmatpush3.bf16.msra.mxu0 %v14461_v37  ;;  %v1958_v32 = vpop.f32.mrb[58].mxu1  ;;  %v20576_v12 = vld [vmem:[#allocation14_spill] sm:$0xff] }
 0x30b   : > { %12791 = vmatprep.mubr.msk.bf16.mxu1 %vm15135_vm0, %v20461_v59  ;;  %13223 = vmatprep.subr.bf16.mxu0 %v20461_v59  ;;  %v17235_v42 = vadd.f32 %v1958_v32, %v17014_v20  ;;  %v12534_v50 = vpop.f32.mrb[59].mxu1  ;;  %v4107_v20 = vsel %vm4075_vm9, %v4102_v22, %v4106_v11  ;;  %v4108_v30 = vrot.slane %v20576_v12, 6  ;;  %v4109_v32 = vrot.slane %v20577_v19, 7  ;;  %v20579_v22 = vld [vmem:[#allocation8_spill] sm:$0xff] }
 0x30c   : > { %v20581_v19 = vld [vmem:[#allocation20_spill] sm:$0xff] }
 0x30d   : > { %13048 = vmatmul.mubr.bf16.gmra.mrb[8].mxu0 %v4103_v8  ;;  %v17239_v55 = vpop.f32.mrb[160].mxu0 }
 0x30e   : > { %13051 = vmatprep.mubr.msk.bf16.mxu0 %vm15135_vm0, %v20461_v59  ;;  %20573 = vst [vmem:[#allocation6_spill] sm:$0xff] %v17239_v55  ;;  %v12741_v37 = vpop.f32.mrb[161].mxu0  ;;  %v20586_v55 = vld [vmem:[#allocation9_spill] sm:$0xff] }
 0x30f   : > { %v17244_v7 = vpop.f32.mrb[162].mxu0 }
 0x310   : > { %20575 = vst [vmem:[#allocation12_spill] sm:$0xff] %v17244_v7  ;;  %v12742_v24 = vpop.f32.mrb[163].mxu0  ;;  %v1963_v58 = vpop.f32.mrb[60].mxu1 }
 0x311   : > { %v17248_v14 = vadd.f32 %v1963_v58, %v17025_v5  ;;  %v12537_v8 = vpop.f32.mrb[61].mxu1  ;;  %v4110_v5 = vor.u32 %v4109_v32, %v4108_v30  ;;  %v4057_v32 = vld [vmem:[#allocation2 + $0x50] sm:$0x7f] }
 0x312   : > { %12792 = vmatmul.mubr.bf16.gmra.mrb[164].mxu1 %v20574_v9  ;;  %v1966_v25 = vpop.f32.mrb[62].mxu1 }
 0x313   : > { %12795 = vmatprep.mubr.msk.bf16.mxu1 %vm15135_vm0, %v20461_v59  ;;  %v17253_v41 = vadd.f32 %v1966_v25, %v17029_v26  ;;  %v12538_v50 = vpop.f32.mrb[63].mxu1  ;;  %v4111_v26 = vsel %vm4075_vm9, %v4106_v11, %v4110_v5  ;;  %v4112_v25 = vrot.slane %v20581_v19, 6  ;;  %v20584_v11 = vld [vmem:[#allocation10_spill] sm:$0xff] }
 0x314   : > { %v20582_v50 = vld [vmem:[#allocation17_spill] sm:$0xff] }
 0x315   : > { %13052 = vmatmul.mubr.bf16.gmra.mrb[12].mxu0 %v4107_v20  ;;  %v17257_v9 = vpop.f32.mrb[164].mxu0  ;;  %v3326_v19 = vld [vmem:[#allocation2 + $0x8] sm:$0xff] }
 0x316   : > { %13055 = vmatprep.mubr.msk.bf16.mxu0 %vm15135_vm0, %v20461_v59  ;;  %20578 = vst [vmem:[#allocation11_spill] sm:$0xff] %v17257_v9  ;;  %v12745_v37 = vpop.f32.mrb[165].mxu0  ;;  %v4113_v9 = vrot.slane %v20582_v50, 7 }
 0x317   : > { %v17262_v24 = vpop.f32.mrb[166].mxu0 }
 0x318   : > { %20580 = vst [vmem:[#allocation7_spill] sm:$0xff] %v17262_v24  ;;  %v12746_v58 = vpop.f32.mrb[167].mxu0  ;;  %v1971_v20 = vpop.f32.mrb[64].mxu1 }
 0x319   : > { %v17266_v8 = vadd.f32 %v1971_v20, %v17040_v34  ;;  %v12541_v12 = vpop.f32.mrb[65].mxu1  ;;  %v4114_v34 = vor.u32 %v4113_v9, %v4112_v25  ;;  %v4117_v20 = vshrl.u32 %v4057_v32, 16 }
 0x31a   : > { %12796 = vmatmul.mubr.bf16.gmra.mrb[168].mxu1 %v20579_v22  ;;  %v1974_v30 = vpop.f32.mrb[66].mxu1  ;;  %v4120_v12 = vshll.u32 %v4057_v32, 16 }
 0x31b   : > { %12799 = vmatprep.mubr.msk.bf16.mxu1 %vm15135_vm0, %v20461_v59  ;;  %v17271_v22 = vadd.f32 %v1974_v30, %v17043_v4  ;;  %v12542_v37 = vpop.f32.mrb[67].mxu1  ;;  %v3356_v30 = vshll.u32 %v3326_v19, 16 }
 0x31c   : > { %v4115_v37 = vsel %vm4075_vm9, %v4110_v5, %v4114_v34  ;;  %v4122_v9 = vrot.slane %v4120_v12, 7 }
 0x31d   : > { %13056 = vmatmul.mubr.bf16.gmra.mrb[16].mxu0 %v4111_v26  ;;  %v17275_v58 = vpop.f32.mrb[168].mxu0 }
 0x31e   : > { %13059 = vmatprep.mubr.msk.bf16.mxu0 %vm15135_vm0, %v20461_v59  ;;  %20583 = vst [vmem:[#allocation14_spill] sm:$0xff] %v17275_v58  ;;  %v12749_v24 = vpop.f32.mrb[169].mxu0 }
 0x31f   : > { %v17280_v26 = vpop.f32.mrb[170].mxu0 }
 0x320   : > { %20585 = vst [vmem:[#allocation13_spill] sm:$0xff] %v17280_v26  ;;  %v12750_v4 = vpop.f32.mrb[171].mxu0  ;;  %v1979_v50 = vpop.f32.mrb[68].mxu1 }
 0x321   : > { %v17284_v7 = vadd.f32 %v1979_v50, %v17056_v63  ;;  %v12545_v58 = vpop.f32.mrb[69].mxu1  ;;  %v3358_v4 = vrot.slane %v3356_v30, 1 }
 0x322   : > { %12800 = vmatmul.mubr.bf16.gmra.mrb[172].mxu1 %v20584_v11  ;;  %v4119_v11 = vrot.slane %v4117_v20, 6  ;;  %v1982_v25 = vpop.f32.mrb[70].mxu1  ;;  %v3354_v58 = vshrl.u32 %v3326_v19, 16 }
 0x323   : > { %12803 = vmatprep.mubr.msk.bf16.mxu1 %vm15135_vm0, %v20461_v59  ;;  %v17287_v24 = vadd.f32 %v1982_v25, %v17061_v53  ;;  %v12546_v32 = vpop.f32.mrb[71].mxu1 }
 0x324   : > { %v4123_v5 = vor.u32 %v4122_v9, %v4119_v11  ;;  %v3359_v50 = vor.u32 %v3358_v4, %v3354_v58 }
 0x325   : > { %13060 = vmatmul.mubr.bf16.gmra.mrb[20].mxu0 %v4115_v37  ;;  %v17291_v26 = vpop.f32.mrb[172].mxu0 }
 0x326   : > { %13063 = vmatprep.mubr.msk.bf16.mxu0 %vm15135_vm0, %v20461_v59  ;;  %v12753_v63 = vpop.f32.mrb[173].mxu0  ;;  %v4124_v37 = vsel %vm4075_vm9, %v4114_v34, %v4123_v5  ;;  %v20587_v34 = vrot.slane %v15994_v28, 1 }
 0x327   : > { %v17296_v20 = vpop.f32.mrb[174].mxu0 }
 0x328   : > { %v12754_v12 = vpop.f32.mrb[175].mxu0  ;;  %v2125_v53 = vpop.f32.mrb[72].mxu1 }
 0x329   : > { %v2196_v25 = vadd.f32 %v2125_v53, %v17076_v60  ;;  %v12565_v30 = vpop.f32.mrb[73].mxu1  ;;  %v3364_v60 = vsel %vm1594_vm1, %v3359_v50, %v20587_v34  ;;  %v20588_v50 = vld [vmem:[#allocation18_spill] sm:$0xff] }
 0x32a   : > { %12804 = vmatmul.mubr.bf16.gmra.mrb[176].mxu1 %v20586_v55  ;;  %v2128_v32 = vpop.f32.mrb[74].mxu1  ;;  %v14462_v55 = vld [vmem:[%s20358_s3 + $0x280] sm:$0xff]  }
 0x32b   : > { %12875 = vmatprep.mubr.msk.bf16.mxu1 %vm15135_vm0, %v20461_v59  ;;  %v2197_v11 = vadd.f32 %v2128_v32, %v17084_v46  ;;  %v12566_v9 = vpop.f32.mrb[75].mxu1  ;;  %v17307_v19 = vadd.f32 %v16883_v38, %v2196_v25  ;;  %v14463_v38 = vld [vmem:[%s20358_s3 + $0x288] sm:$0xff]   ;;  %v14464_v25 = vld [vmem:[%s20358_s3 + $0x290] sm:$0xff]  }
 0x32c   : > { %v20589_v9 = vld [vmem:[#allocation15_spill] sm:$0xff] }
 0x32d   : > { %13064 = vmatmul.mubr.bf16.gmra.mrb[24].mxu0 %v4124_v37  ;;  %v17312_v4 = vpop.f32.mrb[176].mxu0  ;;  %v17315_v5 = vadd.f32 %v16890_v45, %v2197_v11  ;;  %v14467_v45 = vld [vmem:[%s20358_s3 + $0x3c0] sm:$0xff]  }
 0x32e   : > { %13135 = vmatprep.mubr.msk.bf16.mxu0 %vm15135_vm0, %v20461_v59  ;;  %v12825_v63 = vpop.f32.mrb[177].mxu0 }
 0x32f   : > { %v17322_v46 = vpop.f32.mrb[178].mxu0 }
 0x330   : > { %v12826_v28 = vpop.f32.mrb[179].mxu0  ;;  %v2133_v58 = vpop.f32.mrb[76].mxu1 }
 0x331   : > { %v2198_v12 = vadd.f32 %v2133_v58, %v17104_v44  ;;  %v12569_v53 = vpop.f32.mrb[77].mxu1  ;;  %v14468_v44 = vld [vmem:[%s20358_s3 + $0x3c8] sm:$0xff]  }
 0x332   : > { %12876 = vmatmul.mubr.bf16.vlgmr.msra.gmra.mrb[180].mxu1 %v3364_v60  ;;  %v2136_v37 = vpop.f32.mrb[78].mxu1  ;;  %v14466_v53 = vld [vmem:[%s20358_s3 + $0x2a0] sm:$0xff]  }
 0x333   : > { %12964 = vmatpush3.bf16.msra.mxu1 %v14462_v55  ;;  %12879 = vmatprep.mubr.msk.bf16.mxu1 %vm15135_vm0, %v20461_v59  ;;  %v2199_v30 = vadd.f32 %v2136_v37, %v17112_v13  ;;  %v12570_v32 = vpop.f32.mrb[79].mxu1  ;;  %v17338_v55 = vadd.f32 %v16912_v54, %v2198_v12  ;;  %v14465_v54 = vld [vmem:[%s20358_s3 + $0x298] sm:$0xff]  }
 0x334   : > { %12965 = vmatprep.subr.bf16.mxu1 %v20461_v59  ;;  %v20591_v32 = vld [vmem:[#allocation19_spill] sm:$0xff] }
 0x335   : > { %13136 = vmatmul.mubr.bf16.vlgmr.msra.gmra.mrb[28].mxu0 %v20588_v50  ;;  %v17343_v11 = vpop.f32.mrb[180].mxu0  ;;  %v17348_v13 = vadd.f32 %v16920_v18, %v2199_v30  ;;  %v14470_v18 = vld [vmem:[%s20358_s3 + $0x3d0] sm:$0xff]  }
 0x336   : > { %13139 = vmatprep.mubr.msk.bf16.mxu0 %vm15135_vm0, %v20461_v59  ;;  %13224 = vmatpush3.bf16.msra.mxu0 %v14467_v45  ;;  %v12829_v34 = vpop.f32.mrb[181].mxu0  ;;  %v20590_v45 = vld [vmem:[#allocation16_spill] sm:$0xff] }
 0x337   : > { %12966 = vmatpush3.bf16.msra.mxu1 %v14463_v38  ;;  %13225 = vmatprep.subr.bf16.mxu0 %v20461_v59  ;;  %v17355_v60 = vpop.f32.mrb[182].mxu0 }
 0x338   : > { %12967 = vmatprep.subr.bf16.mxu1 %v20461_v59  ;;  %v12830_v63 = vpop.f32.mrb[183].mxu0  ;;  %v2141_v38 = vpop.f32.mrb[80].mxu1 }
 0x339   : > { %v2200_v28 = vadd.f32 %v2141_v38, %v17139_v62  ;;  %v12573_v58 = vpop.f32.mrb[81].mxu1 }
 0x33a   : > { %12880 = vmatmul.mubr.bf16.gmra.mrb[184].mxu1 %v20589_v9  ;;  %13226 = vmatpush3.bf16.msra.mxu0 %v14468_v44  ;;  %v2144_v12 = vpop.f32.mrb[82].mxu1  ;;  %v14472_v58 = vld [vmem:[%s20358_s3 + $0x2b0] sm:$0xff]  }
 0x33b   : > { %12883 = vmatprep.mubr.msk.bf16.mxu1 %vm15135_vm0, %v20461_v59  ;;  %12968 = vmatpush3.bf16.msra.mxu1 %v14464_v25  ;;  %v2201_v50 = vadd.f32 %v2144_v12, %v17146_v15  ;;  %v12574_v37 = vpop.f32.mrb[83].mxu1  ;;  %v17372_v62 = vadd.f32 %v16943_v39, %v2200_v28  ;;  %v14471_v25 = vld [vmem:[%s20358_s3 + $0x3d8] sm:$0xff]   ;;  %v14469_v39 = vld [vmem:[%s20358_s3 + $0x2a8] sm:$0xff]  }
 0x33c   : > { %12969 = vmatprep.subr.bf16.mxu1 %v20461_v59  ;;  %13227 = vmatprep.subr.bf16.mxu0 %v20461_v59  ;;  %v20593_v37 = vld [vmem:[#allocation22_spill] sm:$0xff] }
 0x33d   : > { %13140 = vmatmul.mubr.bf16.gmra.mrb[32].mxu0 %v20590_v45  ;;  %v17377_v30 = vpop.f32.mrb[184].mxu0  ;;  %v17382_v15 = vadd.f32 %v16951_v31, %v2201_v50  ;;  %v14473_v31 = vld [vmem:[%s20358_s3 + $0x3e0] sm:$0xff]  }
 0x33e   : > { %13143 = vmatprep.mubr.msk.bf16.mxu0 %vm15135_vm0, %v20461_v59  ;;  %13228 = vmatpush3.bf16.msra.mxu0 %v14470_v18  ;;  %v12833_v44 = vpop.f32.mrb[185].mxu0  ;;  %v20592_v18 = vld [vmem:[#allocation21_spill] sm:$0xff] }
 0x33f   : > { %12970 = vmatpush3.bf16.msra.mxu1 %v14465_v54  ;;  %13229 = vmatprep.subr.bf16.mxu0 %v20461_v59  ;;  %v17389_v9 = vpop.f32.mrb[186].mxu0 }
 0x340   : > { %12971 = vmatprep.subr.bf16.mxu1 %v20461_v59  ;;  %v12834_v34 = vpop.f32.mrb[187].mxu0  ;;  %v2149_v54 = vpop.f32.mrb[84].mxu1 }
 0x341   : > { %v2202_v63 = vadd.f32 %v2149_v54, %v17171_v43  ;;  %v12577_v38 = vpop.f32.mrb[85].mxu1 }
 0x342   : > { %12884 = vmatmul.mubr.bf16.gmra.mrb[188].mxu1 %v20591_v32  ;;  %13230 = vmatpush3.bf16.msra.mxu0 %v14471_v25  ;;  %v2152_v28 = vpop.f32.mrb[86].mxu1 }
 0x343   : > { %12887 = vmatprep.mubr.msk.bf16.mxu1 %vm15135_vm0, %v20461_v59  ;;  %12972 = vmatpush3.bf16.msra.mxu1 %v14466_v53  ;;  %v2203_v45 = vadd.f32 %v2152_v28, %v17180_v16  ;;  %v12578_v12 = vpop.f32.mrb[87].mxu1  ;;  %v17406_v43 = vadd.f32 %v16974_v29, %v2202_v63  ;;  %v14474_v53 = vld [vmem:[%s20358_s3 + $0x3e8] sm:$0xff]   ;;  %v14476_v29 = vld [vmem:[%s20358_s3 + $0x2b8] sm:$0xff]  }
 0x344   : > { %12973 = vmatprep.subr.bf16.mxu1 %v20461_v59  ;;  %13231 = vmatprep.subr.bf16.mxu0 %v20461_v59 }
 0x345   : > { %13144 = vmatmul.mubr.bf16.gmra.mrb[36].mxu0 %v20592_v18  ;;  %v17416_v16 = vadd.f32 %v16982_v36, %v2203_v45  ;;  %v14475_v36 = vld [vmem:[%s20358_s3 + $0x3f0] sm:$0xff]  }
 0x346   : > { %13147 = vmatprep.mubr.msk.bf16.mxu0 %vm15135_vm0, %v20461_v59  ;;  %13232 = vmatpush3.bf16.msra.mxu0 %v14473_v31  ;;  %v17411_v50 = vpop.f32.mrb[188].mxu0  ;;  %v20594_v31 = vld [vmem:[#allocation24_spill] sm:$0xff]  ;;  %v20595_v45 = vld [vmem:[#allocation23_spill] sm:$0xff] }
 0x347   : > { %12974 = vmatpush3.bf16.msra.mxu1 %v14469_v39  ;;  %13233 = vmatprep.subr.bf16.mxu0 %v20461_v59  ;;  %v12837_v25 = vpop.f32.mrb[189].mxu0 }
 0x348   : > { %12975 = vmatprep.subr.bf16.mxu1 %v20461_v59  ;;  %v17423_v32 = vpop.f32.mrb[190].mxu0 }
 0x349   : > { %v12838_v44 = vpop.f32.mrb[191].mxu0 }
 0x34a   : > { %12888 = vmatmul.mubr.bf16.gmra.mrb[192].mxu1 %v20593_v37  ;;  %13234 = vmatpush3.bf16.msra.mxu0 %v14474_v53  ;;  %v20596_v44 = vld [vmem:[#allocation25_spill] sm:$0xff] }
 0x34b   : > { %12891 = vmatprep.mubr.msk.bf16.mxu1 %vm15135_vm0, %v20461_v59  ;;  %12976 = vmatpush3.bf16.msra.mxu1 %v14472_v58 }
 0x34c   : > { %12977 = vmatprep.subr.bf16.mxu1 %v20461_v59  ;;  %13235 = vmatprep.subr.bf16.mxu0 %v20461_v59 }
 0x34d   : > { %v2157_v39 = vpop.f32.mrb[88].mxu1  ;;  %13148 = vmatmul.mubr.bf16.gmra.mrb[40].mxu0 %v20594_v31  ;;  %v20597_v31 = vld [vmem:[#allocation26_spill] sm:$0xff] }
 0x34e   : > { %v2204_v34 = vadd.f32 %v2157_v39, %v17205_v51  ;;  %v12581_v54 = vpop.f32.mrb[89].mxu1  ;;  %13151 = vmatprep.mubr.msk.bf16.mxu0 %vm15135_vm0, %v20461_v59  ;;  %13236 = vmatpush3.bf16.msra.mxu0 %v14475_v36  ;;  %v14477_v51 = vld [vmem:[%s20358_s3 + $0x3f8] sm:$0xff]  }
 0x34f   : > { %v2160_v63 = vpop.f32.mrb[90].mxu1  ;;  %12978 = vmatpush3.bf16.msra.mxu1 %v14476_v29  ;;  %13237 = vmatprep.subr.bf16.mxu0 %v20461_v59 }
 0x350   : > { %v2205_v38 = vadd.f32 %v2160_v63, %v17211_v52  ;;  %v12582_v18 = vpop.f32.mrb[91].mxu1  ;;  %13067 = vmatprep.subr.bf16.mxu1 %v20461_v59  ;;  %v17437_v28 = vadd.f32 %v17002_v23, %v2204_v34  ;;  %v17442_v58 = vpop.f32.mrb[192].mxu0 }
 0x351   : > { %v12841_v12 = vpop.f32.mrb[193].mxu0 }
 0x352   : > { %12892 = vmatmul.mubr.bf16.gmra.mrb[196].mxu1 %v20595_v45  ;;  %v17447_v52 = vadd.f32 %v17007_v1, %v2205_v38  ;;  %v17451_v23 = vpop.f32.mrb[194].mxu0  ;;  %13238 = vmatpush3.bf16.msra.mxu0 %v14477_v51 }
 0x353   : > { %12895 = vmatprep.mubr.msk.bf16.mxu1 %vm15135_vm0, %v20461_v59  ;;  %v12842_v53 = vpop.f32.mrb[195].mxu0  ;;  %13327 = vmatprep.subr.bf16.mxu0 %v20461_v59 }
 0x355   : > { %v2165_v37 = vpop.f32.mrb[92].mxu1  ;;  %13152 = vmatmul.mubr.bf16.gmra.mrb[44].mxu0 %v20596_v44 }
 0x356   : > { %v2206_v25 = vadd.f32 %v2165_v37, %v17229_v48  ;;  %v12585_v29 = vpop.f32.mrb[93].mxu1  ;;  %13155 = vmatprep.mubr.msk.bf16.mxu0 %vm15135_vm0, %v20461_v59 }
 0x357   : > { %v2168_v39 = vpop.f32.mrb[94].mxu1  ;;  %v20599_v29 = vld [vmem:[#allocation28_spill] sm:$0xff] }
 0x358   : > { %v2207_v1 = vadd.f32 %v2168_v39, %v17235_v42  ;;  %v12586_v36 = vpop.f32.mrb[95].mxu1  ;;  %v17460_v34 = vadd.f32 %v17019_v21, %v2206_v25  ;;  %v17462_v54 = vpop.f32.mrb[196].mxu0  ;;  %v20598_v21 = vld [vmem:[#allocation27_spill] sm:$0xff] }
 0x359   : > { %v12845_v63 = vpop.f32.mrb[197].mxu0 }
 0x35a   : > { %12896 = vmatmul.mubr.bf16.gmra.mrb[200].mxu1 %v20597_v31  ;;  %v17466_v48 = vadd.f32 %v17023_v47, %v2207_v1  ;;  %v17470_v38 = vpop.f32.mrb[198].mxu0 }
 0x35b   : > { %12899 = vmatprep.mubr.msk.bf16.mxu1 %vm15135_vm0, %v20461_v59  ;;  %v12846_v42 = vpop.f32.mrb[199].mxu0 }
 0x35d   : > { %v2173_v18 = vpop.f32.mrb[96].mxu1  ;;  %13156 = vmatmul.mubr.bf16.gmra.mrb[48].mxu0 %v20598_v21 }
 0x35e   : > { %v2208_v51 = vadd.f32 %v2173_v18, %v17248_v14  ;;  %v12589_v45 = vpop.f32.mrb[97].mxu1  ;;  %13159 = vmatprep.mubr.msk.bf16.mxu0 %vm15135_vm0, %v20461_v59 }
 0x35f   : > { %v2176_v12 = vpop.f32.mrb[98].mxu1  ;;  %v20601_v45 = vld [vmem:[#allocation30_spill] sm:$0xff] }
 0x360   : > { %v2209_v53 = vadd.f32 %v2176_v12, %v17253_v41  ;;  %v12590_v37 = vpop.f32.mrb[99].mxu1  ;;  %v17478_v47 = vadd.f32 %v17034_v27, %v2208_v51  ;;  %v17480_v25 = vpop.f32.mrb[200].mxu0  ;;  %v20600_v27 = vld [vmem:[#allocation29_spill] sm:$0xff] }
 0x361   : > { %v12849_v14 = vpop.f32.mrb[201].mxu0 }
 0x362   : > { %12900 = vmatmul.mubr.bf16.gmra.mrb[204].mxu1 %v20599_v29  ;;  %v17484_v44 = vadd.f32 %v17038_v56, %v2209_v53  ;;  %v17488_v39 = vpop.f32.mrb[202].mxu0 }
 0x363   : > { %12903 = vmatprep.mubr.msk.bf16.mxu1 %vm15135_vm0, %v20461_v59  ;;  %v12850_v41 = vpop.f32.mrb[203].mxu0 }
 0x365   : > { %v2181_v1 = vpop.f32.mrb[100].mxu1  ;;  %13160 = vmatmul.mubr.bf16.gmra.mrb[52].mxu0 %v20600_v27  ;;  %v20604_v27 = vld [vmem:[#allocation32_spill] sm:$0xff] }
 0x366   : > { %v2210_v36 = vadd.f32 %v2181_v1, %v17266_v8  ;;  %v12593_v31 = vpop.f32.mrb[101].mxu1  ;;  %13163 = vmatprep.mubr.msk.bf16.mxu0 %vm15135_vm0, %v20461_v59 }
 0x367   : > { %v2184_v63 = vpop.f32.mrb[102].mxu1 }
 0x368   : > { %v2211_v42 = vadd.f32 %v2184_v63, %v17271_v22  ;;  %v12594_v18 = vpop.f32.mrb[103].mxu1  ;;  %v17496_v56 = vadd.f32 %v17050_v49, %v2210_v36  ;;  %v17498_v51 = vpop.f32.mrb[204].mxu0  ;;  %v20602_v49 = vld [vmem:[#allocation31_spill] sm:$0xff]  ;;  %v20605_v63 = vld [vmem:[#allocation112_spill] sm:$0xff] }
 0x369   : > { %v12853_v8 = vpop.f32.mrb[205].mxu0 }
 0x36a   : > { %12904 = vmatmul.mubr.bf16.gmra.mrb[208].mxu1 %v20601_v45  ;;  %v17502_v21 = vadd.f32 %v17054_v17, %v2211_v42  ;;  %v17506_v12 = vpop.f32.mrb[206].mxu0  ;;  %v20603_v17 = vld [vmem:[#allocation111_spill] sm:$0xff]  ;;  %v20606_v8 = vld [vmem:[#allocation110_spill] sm:$0xff] }
 0x36b   : > { %12907 = vmatprep.mubr.msk.bf16.mxu1 %vm15135_vm0, %v20461_v59  ;;  %v12854_v22 = vpop.f32.mrb[207].mxu0 }
 0x36c   : > { %v3858_v22 = vrot.slane %v20606_v8, 6 }
 0x36d   : > { %v2189_v53 = vpop.f32.mrb[104].mxu1  ;;  %13164 = vmatmul.mubr.bf16.gmra.mrb[56].mxu0 %v20602_v49 }
 0x36e   : > { %v2212_v37 = vadd.f32 %v2189_v53, %v17284_v7  ;;  %v12597_v29 = vpop.f32.mrb[105].mxu1  ;;  %13167 = vmatprep.mubr.msk.bf16.mxu0 %vm15135_vm0, %v20461_v59  ;;  %v17527_v53 = vld [vmem:[#allocation2 + $0x10] sm:$0xff] }
 0x36f   : > { %v2192_v14 = vpop.f32.mrb[106].mxu1 }
 0x370   : > { %v2213_v41 = vadd.f32 %v2192_v14, %v17287_v24  ;;  %v12598_v1 = vpop.f32.mrb[107].mxu1  ;;  %v17514_v36 = vadd.f32 %v20603_v17, %v2212_v37  ;;  %v17516_v31 = vpop.f32.mrb[208].mxu0  ;;  %v3859_v37 = vrot.slane %v17527_v53, 6  ;;  %v20607_v14 = vld [vmem:[#allocation33_spill] sm:$0xff] }
 0x371   : > { %v12857_v7 = vpop.f32.mrb[209].mxu0  ;;  %v14478_v1 = vld [vmem:[%s20358_s3 + $0x300] sm:$0xff]  }
 0x372   : > { %12908 = vmatmul.mubr.bf16.gmra.mrb[212].mxu1 %v20604_v27  ;;  %v17520_v42 = vadd.f32 %v20605_v63, %v2213_v41  ;;  %v17524_v18 = vpop.f32.mrb[210].mxu0  ;;  %v3860_v7 = vsel %vm3857_vm7, %v3858_v22, %v3859_v37  ;;  %v15048_v22 = vld [vmem:[#allocation2 + $0x10] sm:$0xe0] }
 0x373   : > { %12979 = vmatprep.mubr.msk.bf16.mxu1 %vm15135_vm0, %v20461_v59  ;;  %v12858_v24 = vpop.f32.mrb[211].mxu0 }
 0x374   : > { %v15047_v24 = vld [vmem:[#allocation2 + $0x18] sm:$0xff] }
 0x375   : > { %v2593_v45 = vpop.f32.mrb[108].mxu1  ;;  %13168 = vmatmul.mubr.bf16.gmra.mrb[60].mxu0 %v20607_v14 }
 0x376   : > { %v2664_v29 = vadd.f32 %v2593_v45, %v17307_v19  ;;  %v12669_v49 = vpop.f32.mrb[109].mxu1  ;;  %13239 = vmatprep.mubr.msk.bf16.mxu0 %vm15135_vm0, %v20461_v59  ;;  %v4985_v45 = vrot.slane %v15047_v24, 5 }
 0x377   : > { %v2596_v41 = vpop.f32.mrb[110].mxu1 }
 0x378   : > { %v2665_v17 = vadd.f32 %v2596_v41, %v17315_v5  ;;  %v12670_v27 = vpop.f32.mrb[111].mxu1  ;;  %v17539_v63 = vadd.f32 %v17088_v2, %v2664_v29  ;;  %v17542_v19 = vpop.f32.mrb[212].mxu0  ;;  %v14479_v2 = vld [vmem:[%s20358_s3 + $0x308] sm:$0xff]   ;;  %v4984_v29 = vrot.slane %v15048_v22, 5  ;;  %v14480_v22 = vld [vmem:[%s20358_s3 + $0x310] sm:$0xff]  }
 0x379   : > { %20608 = vst [vmem:[#allocation8_spill] sm:$0xff] %v17542_v19  ;;  %v12929_v49 = vpop.f32.mrb[213].mxu0  ;;  %v17555_v27 = vld [vmem:[#allocation2 + $0x18] sm:$0xff] }
 0x37a   : > { %12980 = vmatmul.mubr.bf16.vlgmr.msra.gmra.mrb[216].mxu1 %v3860_v7  ;;  %v17545_v8 = vadd.f32 %v17096_v40, %v2665_v17  ;;  %v17552_v5 = vpop.f32.mrb[214].mxu0  ;;  %v3861_v40 = vrot.slane %v17555_v27, 6  ;;  %v4986_v17 = vsel %vm4983_vm10, %v4984_v29, %v4985_v45  ;;  %v4955_v19 = vld [vmem:[#allocation2 + $0x58] sm:$0x1f] }
 0x37b   : > { %13068 = vmatpush3.bf16.msra.mxu1 %v14478_v1  ;;  %12983 = vmatprep.mubr.msk.bf16.mxu1 %vm15135_vm0, %v20461_v59  ;;  %20609 = vst [vmem:[#allocation20_spill] sm:$0xff] %v17552_v5  ;;  %v12930_v14 = vpop.f32.mrb[215].mxu0  ;;  %v14483_v1 = vld [vmem:[%s20358_s3 + $0x440] sm:$0xff]  }
 0x37c   : > { %13069 = vmatprep.subr.bf16.mxu1 %v20461_v59 }
 0x37d   : > { %v2601_v41 = vpop.f32.mrb[112].mxu1  ;;  %13240 = vmatmul.mubr.bf16.vlgmr.msra.gmra.mrb[64].mxu0 %v4986_v17 }
 0x37e   : > { %v2666_v7 = vadd.f32 %v2601_v41, %v17338_v55  ;;  %v12673_v24 = vpop.f32.mrb[113].mxu1  ;;  %13243 = vmatprep.mubr.msk.bf16.mxu0 %vm15135_vm0, %v20461_v59  ;;  %v3862_v55 = vsel %vm3857_vm7, %v3859_v37, %v3861_v40  ;;  %13328 = vmatpush3.bf16.msra.mxu0 %v14483_v1 }
 0x37f   : > { %v2604_v49 = vpop.f32.mrb[114].mxu1  ;;  %13070 = vmatpush3.bf16.msra.mxu1 %v14479_v2  ;;  %v14484_v2 = vld [vmem:[%s20358_s3 + $0x448] sm:$0xff]   ;;  %13329 = vmatprep.subr.bf16.mxu0 %v20461_v59 }
 0x380   : > { %v2667_v14 = vadd.f32 %v2604_v49, %v17348_v13  ;;  %v12674_v5 = vpop.f32.mrb[115].mxu1  ;;  %13071 = vmatprep.subr.bf16.mxu1 %v20461_v59  ;;  %v17571_v29 = vadd.f32 %v17120_v33, %v2666_v7  ;;  %v17577_v41 = vpop.f32.mrb[216].mxu0  ;;  %v15050_v13 = vld [vmem:[#allocation2 + $0x20] sm:$0xff]  ;;  %v14481_v33 = vld [vmem:[%s20358_s3 + $0x318] sm:$0xff]  }
 0x381   : > { %20610 = vst [vmem:[#allocation17_spill] sm:$0xff] %v17577_v41  ;;  %v4987_v5 = vrot.slane %v15050_v13, 5  ;;  %v12933_v24 = vpop.f32.mrb[217].mxu0  ;;  %v17591_v49 = vld [vmem:[#allocation2 + $0x20] sm:$0xff] }
 0x382   : > { %12984 = vmatmul.mubr.bf16.gmra.mrb[220].mxu1 %v3862_v55  ;;  %v17581_v17 = vadd.f32 %v17129_v35, %v2667_v14  ;;  %v17588_v37 = vpop.f32.mrb[218].mxu0  ;;  %v3863_v35 = vrot.slane %v17591_v49, 6  ;;  %13330 = vmatpush3.bf16.msra.mxu0 %v14484_v2  ;;  %v14486_v14 = vld [vmem:[%s20358_s3 + $0x450] sm:$0xff]  }
 0x383   : > { %12987 = vmatprep.mubr.msk.bf16.mxu1 %vm15135_vm0, %v20461_v59  ;;  %13072 = vmatpush3.bf16.msra.mxu1 %v14480_v22  ;;  %20611 = vst [vmem:[#allocation10_spill] sm:$0xff] %v17588_v37  ;;  %v12934_v1 = vpop.f32.mrb[219].mxu0  ;;  %v4988_v22 = vsel %vm4983_vm10, %v4985_v45, %v4987_v5 }
 0x384   : > { %13073 = vmatprep.subr.bf16.mxu1 %v20461_v59  ;;  %13331 = vmatprep.subr.bf16.mxu0 %v20461_v59  ;;  %v14482_v1 = vld [vmem:[%s20358_s3 + $0x320] sm:$0xff]   ;;  %v3864_v45 = vsel %vm3857_vm7, %v3861_v40, %v3863_v35 }
 0x385   : > { %v2609_v7 = vpop.f32.mrb[116].mxu1  ;;  %13244 = vmatmul.mubr.bf16.gmra.mrb[68].mxu0 %v4988_v22 }
 0x386   : > { %v2668_v55 = vadd.f32 %v2609_v7, %v17372_v62  ;;  %v12677_v13 = vpop.f32.mrb[117].mxu1  ;;  %13247 = vmatprep.mubr.msk.bf16.mxu0 %vm15135_vm0, %v20461_v59  ;;  %13332 = vmatpush3.bf16.msra.mxu0 %v14486_v14 }
 0x387   : > { %v2612_v24 = vpop.f32.mrb[118].mxu1  ;;  %13074 = vmatpush3.bf16.msra.mxu1 %v14481_v33  ;;  %v14487_v33 = vld [vmem:[%s20358_s3 + $0x458] sm:$0xff]   ;;  %13333 = vmatprep.subr.bf16.mxu0 %v20461_v59 }
 0x388   : > { %v2669_v2 = vadd.f32 %v2612_v24, %v17382_v15  ;;  %v12678_v37 = vpop.f32.mrb[119].mxu1  ;;  %13075 = vmatprep.subr.bf16.mxu1 %v20461_v59  ;;  %v17608_v62 = vadd.f32 %v17154_v57, %v2668_v55  ;;  %v17614_v7 = vpop.f32.mrb[220].mxu0  ;;  %v15052_v15 = vld [vmem:[#allocation2 + $0x28] sm:$0xff] }
 0x389   : > { %20612 = vst [vmem:[#allocation9_spill] sm:$0xff] %v17614_v7  ;;  %v4989_v37 = vrot.slane %v15052_v15, 5  ;;  %v12937_v13 = vpop.f32.mrb[221].mxu0  ;;  %v14485_v57 = vld [vmem:[%s20358_s3 + $0x328] sm:$0xff]  }
 0x38a   : > { %12988 = vmatmul.mubr.bf16.gmra.mrb[224].mxu1 %v3864_v45  ;;  %v17618_v22 = vadd.f32 %v17163_v6, %v2669_v2  ;;  %v17625_v40 = vpop.f32.mrb[222].mxu0  ;;  %v17628_v24 = vld [vmem:[#allocation2 + $0x28] sm:$0xff]  ;;  %13334 = vmatpush3.bf16.msra.mxu0 %v14487_v33  ;;  %v14489_v2 = vld [vmem:[%s20358_s3 + $0x460] sm:$0xff]  }
 0x38b   : > { %12991 = vmatprep.mubr.msk.bf16.mxu1 %vm15135_vm0, %v20461_v59  ;;  %13076 = vmatpush3.bf16.msra.mxu1 %v14482_v1  ;;  %20613 = vst [vmem:[#allocation18_spill] sm:$0xff] %v17625_v40  ;;  %v12938_v14 = vpop.f32.mrb[223].mxu0  ;;  %v3865_v6 = vrot.slane %v17628_v24, 6  ;;  %v4990_v1 = vsel %vm4983_vm10, %v4987_v5, %v4989_v37 }
 0x38c   : > { %13077 = vmatprep.subr.bf16.mxu1 %v20461_v59  ;;  %13335 = vmatprep.subr.bf16.mxu0 %v20461_v59  ;;  %v14488_v14 = vld [vmem:[%s20358_s3 + $0x330] sm:$0xff]  }
 0x38d   : > { %v2617_v55 = vpop.f32.mrb[120].mxu1  ;;  %13248 = vmatmul.mubr.bf16.gmra.mrb[72].mxu0 %v4990_v1  ;;  %v3866_v5 = vsel %vm3857_vm7, %v3863_v35, %v3865_v6 }
 0x38e   : > { %v2670_v45 = vadd.f32 %v2617_v55, %v17406_v43  ;;  %v12681_v15 = vpop.f32.mrb[121].mxu1  ;;  %13251 = vmatprep.mubr.msk.bf16.mxu0 %vm15135_vm0, %v20461_v59  ;;  %13336 = vmatpush3.bf16.msra.mxu0 %v14489_v2 }
 0x38f   : > { %v2620_v13 = vpop.f32.mrb[122].mxu1  ;;  %13078 = vmatpush3.bf16.msra.mxu1 %v14485_v57  ;;  %v14490_v57 = vld [vmem:[%s20358_s3 + $0x468] sm:$0xff]   ;;  %13337 = vmatprep.subr.bf16.mxu0 %v20461_v59 }
 0x390   : > { %v2671_v33 = vadd.f32 %v2620_v13, %v17416_v16  ;;  %v12682_v40 = vpop.f32.mrb[123].mxu1  ;;  %13079 = vmatprep.subr.bf16.mxu1 %v20461_v59  ;;  %v17645_v43 = vadd.f32 %v17188_v3, %v2670_v45  ;;  %v17651_v55 = vpop.f32.mrb[224].mxu0  ;;  %v15054_v16 = vld [vmem:[#allocation2 + $0x30] sm:$0xff]  ;;  %v14492_v3 = vld [vmem:[%s20358_s3 + $0x338] sm:$0xff]  }
 0x391   : > { %20614 = vst [vmem:[#allocation15_spill] sm:$0xff] %v17651_v55  ;;  %v4991_v40 = vrot.slane %v15054_v16, 5  ;;  %v12941_v15 = vpop.f32.mrb[225].mxu0  ;;  %v17665_v13 = vld [vmem:[#allocation2 + $0x30] sm:$0xff] }
 0x392   : > { %12992 = vmatmul.mubr.bf16.gmra.mrb[228].mxu1 %v3866_v5  ;;  %v17655_v1 = vadd.f32 %v17197_v0, %v2671_v33  ;;  %v17662_v35 = vpop.f32.mrb[226].mxu0  ;;  %v3867_v0 = vrot.slane %v17665_v13, 6  ;;  %13338 = vmatpush3.bf16.msra.mxu0 %v14490_v57  ;;  %v14491_v33 = vld [vmem:[%s20358_s3 + $0x470] sm:$0xff]  }
 0x393   : > { %12995 = vmatprep.mubr.msk.bf16.mxu1 %vm15135_vm0, %v20461_v59  ;;  %13080 = vmatpush3.bf16.msra.mxu1 %v14488_v14  ;;  %20615 = vst [vmem:[#allocation16_spill] sm:$0xff] %v17662_v35  ;;  %v12942_v2 = vpop.f32.mrb[227].mxu0  ;;  %v4992_v14 = vsel %vm4983_vm10, %v4989_v37, %v4991_v40 }
 0x394   : > { %13081 = vmatprep.subr.bf16.mxu1 %v20461_v59  ;;  %13339 = vmatprep.subr.bf16.mxu0 %v20461_v59  ;;  %v3868_v37 = vsel %vm3857_vm7, %v3865_v6, %v3867_v0 }
 0x395   : > { %v2625_v45 = vpop.f32.mrb[124].mxu1  ;;  %13252 = vmatmul.mubr.bf16.gmra.mrb[76].mxu0 %v4992_v14 }
 0x396   : > { %v2672_v5 = vadd.f32 %v2625_v45, %v17437_v28  ;;  %v12685_v16 = vpop.f32.mrb[125].mxu1  ;;  %13255 = vmatprep.mubr.msk.bf16.mxu0 %vm15135_vm0, %v20461_v59  ;;  %13340 = vmatpush3.bf16.msra.mxu0 %v14491_v33  ;;  %v14493_v28 = vld [vmem:[%s20358_s3 + $0x478] sm:$0xff]  }
 0x397   : > { %v2628_v15 = vpop.f32.mrb[126].mxu1  ;;  %13082 = vmatpush3.bf16.msra.mxu1 %v14492_v3  ;;  %13341 = vmatprep.subr.bf16.mxu0 %v20461_v59 }
 0x398   : > { %v2673_v2 = vadd.f32 %v2628_v15, %v17447_v52  ;;  %v12686_v35 = vpop.f32.mrb[127].mxu1  ;;  %13171 = vmatprep.subr.bf16.mxu1 %v20461_v59  ;;  %v17679_v57 = vadd.f32 %v17219_v61, %v2672_v5  ;;  %v17685_v45 = vpop.f32.mrb[228].mxu0  ;;  %v15056_v52 = vld [vmem:[#allocation2 + $0x38] sm:$0xff] }
 0x399   : > { %20616 = vst [vmem:[#allocation19_spill] sm:$0xff] %v17685_v45  ;;  %v4993_v3 = vrot.slane %v15056_v52, 5  ;;  %v12945_v14 = vpop.f32.mrb[229].mxu0  ;;  %v17695_v5 = vld [vmem:[#allocation2 + $0x38] sm:$0xff] }
 0x39a   : > { %12996 = vmatmul.mubr.bf16.gmra.mrb[232].mxu1 %v3868_v37  ;;  %v17689_v35 = vadd.f32 %v17225_v10, %v2673_v2  ;;  %v17693_v61 = vpop.f32.mrb[230].mxu0  ;;  %v3869_v16 = vrot.slane %v17695_v5, 6  ;;  %13342 = vmatpush3.bf16.msra.mxu0 %v14493_v28 }
 0x39b   : > { %12999 = vmatprep.mubr.msk.bf16.mxu1 %vm15135_vm0, %v20461_v59  ;;  %20617 = vst [vmem:[#allocation21_spill] sm:$0xff] %v17693_v61  ;;  %v12946_v6 = vpop.f32.mrb[231].mxu0  ;;  %v4994_v15 = vsel %vm4983_vm10, %v4991_v40, %v4993_v3  ;;  %13431 = vmatprep.subr.bf16.mxu0 %v20461_v59 }
 0x39c   : > { %v20618_v6 = vld [vmem:[#allocation6_spill] sm:$0xff]  ;;  %v3870_v28 = vsel %vm3857_vm7, %v3867_v0, %v3869_v16 }
 0x39d   : > { %v2633_v33 = vpop.f32.mrb[128].mxu1  ;;  %13256 = vmatmul.mubr.bf16.gmra.mrb[80].mxu0 %v4994_v15 }
 0x39e   : > { %v2674_v37 = vadd.f32 %v2633_v33, %v17460_v34  ;;  %v12689_v52 = vpop.f32.mrb[129].mxu1  ;;  %13259 = vmatprep.mubr.msk.bf16.mxu0 %vm15135_vm0, %v20461_v59  ;;  %v15058_v34 = vld [vmem:[#allocation2 + $0x40] sm:$0xff] }
 0x39f   : > { %v2636_v10 = vpop.f32.mrb[130].mxu1  ;;  %v4995_v40 = vrot.slane %v15058_v34, 5  ;;  %v20620_v33 = vld [vmem:[#allocation12_spill] sm:$0xff] }
 0x3a0   : > { %v2675_v2 = vadd.f32 %v2636_v10, %v17466_v48  ;;  %v12690_v14 = vpop.f32.mrb[131].mxu1  ;;  %v17705_v61 = vadd.f32 %v20618_v6, %v2674_v37  ;;  %v17708_v45 = vpop.f32.mrb[232].mxu0  ;;  %v17717_v37 = vld [vmem:[#allocation2 + $0x40] sm:$0xff] }
 0x3a1   : > { %20619 = vst [vmem:[#allocation22_spill] sm:$0xff] %v17708_v45  ;;  %v12949_v15 = vpop.f32.mrb[233].mxu0  ;;  %v3871_v0 = vrot.slane %v17717_v37, 6  ;;  %v4996_v6 = vsel %vm4983_vm10, %v4993_v3, %v4995_v40  ;;  %v15060_v3 = vld [vmem:[#allocation2 + $0x48] sm:$0xff] }
 0x3a2   : > { %13000 = vmatmul.mubr.bf16.gmra.mrb[236].mxu1 %v3870_v28  ;;  %v17711_v52 = vadd.f32 %v20620_v33, %v2675_v2  ;;  %v17715_v48 = vpop.f32.mrb[234].mxu0  ;;  %v4997_v7 = vrot.slane %v15060_v3, 5 }
 0x3a3   : > { %13003 = vmatprep.mubr.msk.bf16.mxu1 %vm15135_vm0, %v20461_v59  ;;  %20621 = vst [vmem:[#allocation24_spill] sm:$0xff] %v17715_v48  ;;  %v12950_v10 = vpop.f32.mrb[235].mxu0  ;;  %v20622_v48 = vld [vmem:[#allocation11_spill] sm:$0xff]  ;;  %v3872_v45 = vsel %vm3857_vm7, %v3869_v16, %v3871_v0 }
 0x3a5   : > { %v2641_v14 = vpop.f32.mrb[132].mxu1  ;;  %13260 = vmatmul.mubr.bf16.gmra.mrb[84].mxu0 %v4996_v6 }
 0x3a6   : > { %v2676_v28 = vadd.f32 %v2641_v14, %v17478_v47  ;;  %v12693_v34 = vpop.f32.mrb[133].mxu1  ;;  %13263 = vmatprep.mubr.msk.bf16.mxu0 %vm15135_vm0, %v20461_v59  ;;  %v20624_v47 = vld [vmem:[#allocation7_spill] sm:$0xff] }
 0x3a7   : > { %v2644_v2 = vpop.f32.mrb[134].mxu1 }
 0x3a8   : > { %v2677_v33 = vadd.f32 %v2644_v2, %v17484_v44  ;;  %v12694_v15 = vpop.f32.mrb[135].mxu1  ;;  %v17726_v10 = vadd.f32 %v20622_v48, %v2676_v28  ;;  %v17729_v55 = vpop.f32.mrb[236].mxu0  ;;  %v17738_v48 = vld [vmem:[#allocation2 + $0x48] sm:$0xff]  ;;  %v4998_v28 = vsel %vm4983_vm10, %v4995_v40, %v4997_v7  ;;  %v17752_v40 = vld [vmem:[#allocation2 + $0x50] sm:$0xff] }
 0x3a9   : > { %20623 = vst [vmem:[#allocation23_spill] sm:$0xff] %v17729_v55  ;;  %v12953_v6 = vpop.f32.mrb[237].mxu0  ;;  %v3873_v16 = vrot.slane %v17738_v48, 6 }
 0x3aa   : > { %13004 = vmatmul.mubr.bf16.gmra.mrb[240].mxu1 %v3872_v45  ;;  %v17732_v14 = vadd.f32 %v20624_v47, %v2677_v33  ;;  %v17736_v44 = vpop.f32.mrb[238].mxu0  ;;  %v20626_v6 = vld [vmem:[#allocation14_spill] sm:$0xff] }
 0x3ab   : > { %13007 = vmatprep.mubr.msk.bf16.mxu1 %vm15135_vm0, %v20461_v59  ;;  %20625 = vst [vmem:[#allocation25_spill] sm:$0xff] %v17736_v44  ;;  %v12954_v34 = vpop.f32.mrb[239].mxu0  ;;  %v3874_v44 = vsel %vm3857_vm7, %v3871_v0, %v3873_v16 }
 0x3ad   : > { %v2649_v2 = vpop.f32.mrb[136].mxu1  ;;  %13264 = vmatmul.mubr.bf16.gmra.mrb[88].mxu0 %v4998_v28  ;;  %v20628_v28 = vld [vmem:[#allocation13_spill] sm:$0xff] }
 0x3ae   : > { %v2678_v45 = vadd.f32 %v2649_v2, %v17496_v56  ;;  %v12697_v15 = vpop.f32.mrb[137].mxu1  ;;  %13267 = vmatprep.mubr.msk.bf16.mxu0 %vm15135_vm0, %v20461_v59  ;;  %v4999_v56 = vrot.slane %v17752_v40, 5  ;;  %v3837_v2 = vld [vmem:[#allocation2 + $0x50] sm:$0x3f] }
 0x3af   : > { %v2652_v33 = vpop.f32.mrb[138].mxu1  ;;  %v3875_v0 = vrot.slane %v3837_v2, 6 }
 0x3b0   : > { %v2679_v3 = vadd.f32 %v2652_v33, %v17502_v21  ;;  %v12698_v47 = vpop.f32.mrb[139].mxu1  ;;  %v17747_v34 = vadd.f32 %v20626_v6, %v2678_v45  ;;  %v17750_v55 = vpop.f32.mrb[240].mxu0  ;;  %v5000_v6 = vsel %vm4983_vm10, %v4997_v7, %v4999_v56  ;;  %v5001_v7 = vrot.slane %v4955_v19, 5 }
 0x3b1   : > { %20627 = vst [vmem:[#allocation26_spill] sm:$0xff] %v17750_v55  ;;  %v12957_v21 = vpop.f32.mrb[241].mxu0 }
 0x3b2   : > { %13008 = vmatmul.mubr.bf16.gmra.mrb[244].mxu1 %v3874_v44  ;;  %v17756_v15 = vadd.f32 %v20628_v28, %v2679_v3  ;;  %v17760_v33 = vpop.f32.mrb[242].mxu0 }
 0x3b3   : > { %13011 = vmatprep.mubr.msk.bf16.mxu1 %vm15135_vm0, %v20461_v59  ;;  %v12958_v45 = vpop.f32.mrb[243].mxu0 }
 0x3b4   : > { %v3876_v45 = vsel %vm3857_vm7, %v3873_v16, %v3875_v0  ;;  %v5002_v16 = vsel %vm4983_vm10, %v4999_v56, %v5001_v7 }
 0x3b5   : > { %v2657_v47 = vpop.f32.mrb[140].mxu1  ;;  %13268 = vmatmul.mubr.bf16.gmra.mrb[92].mxu0 %v5000_v6  ;;  %v15063_v6 = vld [vmem:[#allocation2 + $0x8] sm:$0x80] }
 0x3b6   : > { %v2680_v44 = vadd.f32 %v2657_v47, %v17514_v36  ;;  %v12701_v55 = vpop.f32.mrb[141].mxu1  ;;  %13271 = vmatprep.mubr.msk.bf16.mxu0 %vm15135_vm0, %v20461_v59 }
 0x3b7   : > { %v2660_v41 = vpop.f32.mrb[142].mxu1 }
 0x3b8   : > { %v2681_v3 = vadd.f32 %v2660_v41, %v17520_v42  ;;  %v12702_v28 = vpop.f32.mrb[143].mxu1  ;;  %v17768_v21 = vadd.f32 %v17291_v26, %v2680_v44  ;;  %v17771_v2 = vpop.f32.mrb[244].mxu0  ;;  %v4325_v26 = vrot.slane %v15063_v6, 7  ;;  %v4326_v44 = vrot.slane %v17527_v53, 7 }
 0x3b9   : > { %v12961_v55 = vpop.f32.mrb[245].mxu0 }
 0x3ba   : > { %13012 = vmatmul.mubr.bf16.gmra.mrb[248].mxu1 %v3876_v45  ;;  %v17774_v36 = vadd.f32 %v17296_v20, %v2681_v3  ;;  %v17778_v42 = vpop.f32.mrb[246].mxu0  ;;  %v14494_v3 = vld [vmem:[%s20358_s3 + $0x380] sm:$0xff]   ;;  %v4327_v56 = vsel %vm2703_vm6, %v4325_v26, %v4326_v44 }
 0x3bb   : > { %13083 = vmatprep.mubr.msk.bf16.mxu1 %vm15135_vm0, %v20461_v59  ;;  %v12962_v41 = vpop.f32.mrb[247].mxu0 }
 0x3bd   : > { %v3049_v47 = vpop.f32.mrb[144].mxu1  ;;  %13272 = vmatmul.mubr.bf16.gmra.mrb[96].mxu0 %v5002_v16 }
 0x3be   : > { %v3120_v0 = vadd.f32 %v3049_v47, %v17539_v63  ;;  %v12773_v19 = vpop.f32.mrb[145].mxu1  ;;  %13343 = vmatprep.mubr.msk.bf16.mxu0 %vm15135_vm0, %v20461_v59 }
 0x3bf   : > { %v3052_v20 = vpop.f32.mrb[146].mxu1  ;;  %v20629_v19 = vld [vmem:[#allocation34_spill] sm:$0xff] }
 0x3c0   : > { %v3121_v28 = vadd.f32 %v3052_v20, %v17545_v8  ;;  %v12774_v45 = vpop.f32.mrb[147].mxu1  ;;  %v17790_v55 = vadd.f32 %v17312_v4, %v3120_v0  ;;  %v17793_v7 = vpop.f32.mrb[248].mxu0  ;;  %v14495_v8 = vld [vmem:[%s20358_s3 + $0x388] sm:$0xff]   ;;  %v15064_v4 = vld [vmem:[#allocation2 + $0x10] sm:$0xc0]  ;;  %v14499_v0 = vld [vmem:[%s20358_s3 + $0x4c0] sm:$0xff]  }
 0x3c1   : > { %v13033_v41 = vpop.f32.mrb[249].mxu0  ;;  %v5491_v6 = vrot.slane %v15064_v4, 6  ;;  %v20630_v20 = vrot.slane %v20629_v19, 6 }
 0x3c2   : > { %13084 = vmatmul.mubr.bf16.vlgmr.msra.gmra.mrb[252].mxu1 %v4327_v56  ;;  %v17796_v63 = vadd.f32 %v17322_v46, %v3121_v28  ;;  %v17803_v47 = vpop.f32.mrb[250].mxu0  ;;  %v4328_v46 = vrot.slane %v17555_v27, 7  ;;  %v14496_v41 = vld [vmem:[%s20358_s3 + $0x390] sm:$0xff]  }
 0x3c3   : > { %13172 = vmatpush3.bf16.msra.mxu1 %v14494_v3  ;;  %13087 = vmatprep.mubr.msk.bf16.mxu1 %vm15135_vm0, %v20461_v59  ;;  %v13034_v26 = vpop.f32.mrb[251].mxu0  ;;  %v5493_v3 = vsel %vm3857_vm7, %v5491_v6, %v20630_v20 }
 0x3c4   : > { %13173 = vmatprep.subr.bf16.mxu1 %v20461_v59 }
 0x3c5   : > { %v3057_v16 = vpop.f32.mrb[148].mxu1  ;;  %13344 = vmatmul.mubr.bf16.vlgmr.msra.gmra.mrb[100].mxu0 %v5493_v3 }
 0x3c6   : > { %v3122_v28 = vadd.f32 %v3057_v16, %v17571_v29  ;;  %v12777_v45 = vpop.f32.mrb[149].mxu1  ;;  %13347 = vmatprep.mubr.msk.bf16.mxu0 %vm15135_vm0, %v20461_v59  ;;  %v4329_v29 = vsel %vm2703_vm6, %v4326_v44, %v4328_v46  ;;  %13432 = vmatpush3.bf16.msra.mxu0 %v14499_v0 }
 0x3c7   : > { %v3060_v56 = vpop.f32.mrb[150].mxu1  ;;  %13174 = vmatpush3.bf16.msra.mxu1 %v14495_v8  ;;  %v14500_v8 = vld [vmem:[%s20358_s3 + $0x4c8] sm:$0xff]   ;;  %13433 = vmatprep.subr.bf16.mxu0 %v20461_v59 }
 0x3c8   : > { %v3123_v4 = vadd.f32 %v3060_v56, %v17581_v17  ;;  %v12778_v26 = vpop.f32.mrb[151].mxu1  ;;  %13175 = vmatprep.subr.bf16.mxu1 %v20461_v59  ;;  %v17822_v6 = vadd.f32 %v17343_v11, %v3122_v28  ;;  %v17828_v16 = vpop.f32.mrb[252].mxu0  ;;  %v14497_v11 = vld [vmem:[%s20358_s3 + $0x398] sm:$0xff]   ;;  %v4330_v28 = vrot.slane %v17591_v49, 7 }
 0x3c9   : > { %v13037_v20 = vpop.f32.mrb[253].mxu0  ;;  %v14498_v26 = vld [vmem:[%s20358_s3 + $0x3a0] sm:$0xff]  }
 0x3ca   : > { %13088 = vmatmul.mubr.bf16.gmra.mrb[0].mxu1 %v4329_v29  ;;  %v17832_v17 = vadd.f32 %v17355_v60, %v3123_v4  ;;  %v17839_v44 = vpop.f32.mrb[254].mxu0  ;;  %13434 = vmatpush3.bf16.msra.mxu0 %v14500_v8  ;;  %v14502_v60 = vld [vmem:[%s20358_s3 + $0x4d0] sm:$0xff]   ;;  %v4331_v20 = vsel %vm2703_vm6, %v4328_v46, %v4330_v28 }
 0x3cb   : > { %13091 = vmatprep.mubr.msk.bf16.mxu1 %vm15135_vm0, %v20461_v59  ;;  %13176 = vmatpush3.bf16.msra.mxu1 %v14496_v41  ;;  %v13038_v0 = vpop.f32.mrb[255].mxu0  ;;  %v20631_v41 = vld [vmem:[#allocation36_spill] sm:$0xff] }
 0x3cc   : > { %13177 = vmatprep.subr.bf16.mxu1 %v20461_v59  ;;  %13435 = vmatprep.subr.bf16.mxu0 %v20461_v59 }
 0x3cd   : > { %v3065_v3 = vpop.f32.mrb[152].mxu1  ;;  %13348 = vmatmul.mubr.bf16.gmra.mrb[104].mxu0 %v20631_v41 }
 0x3ce   : > { %v3124_v45 = vadd.f32 %v3065_v3, %v17608_v62  ;;  %v12781_v56 = vpop.f32.mrb[153].mxu1  ;;  %13351 = vmatprep.mubr.msk.bf16.mxu0 %vm15135_vm0, %v20461_v59  ;;  %13436 = vmatpush3.bf16.msra.mxu0 %v14502_v60 }
 0x3cf   : > { %v3068_v4 = vpop.f32.mrb[154].mxu1  ;;  %13178 = vmatpush3.bf16.msra.mxu1 %v14497_v11  ;;  %v14503_v11 = vld [vmem:[%s20358_s3 + $0x4d8] sm:$0xff]   ;;  %13437 = vmatprep.subr.bf16.mxu0 %v20461_v59  ;;  %v4332_v56 = vrot.slane %v17628_v24, 7 }
 0x3d0   : > { %v3125_v29 = vadd.f32 %v3068_v4, %v17618_v22  ;;  %v12782_v8 = vpop.f32.mrb[155].mxu1  ;;  %13179 = vmatprep.subr.bf16.mxu1 %v20461_v59  ;;  %v17857_v62 = vadd.f32 %v17377_v30, %v3124_v45  ;;  %v17863_v0 = vpop.f32.mrb[0].mxu0  ;;  %v14501_v30 = vld [vmem:[%s20358_s3 + $0x3a8] sm:$0xff]  }
 0x3d1   : > { %v13041_v3 = vpop.f32.mrb[1].mxu0  ;;  %v14504_v8 = vld [vmem:[%s20358_s3 + $0x3b0] sm:$0xff]  }
 0x3d2   : > { %13092 = vmatmul.mubr.bf16.gmra.mrb[4].mxu1 %v4331_v20  ;;  %v17867_v22 = vadd.f32 %v17389_v9, %v3125_v29  ;;  %v17874_v46 = vpop.f32.mrb[2].mxu0  ;;  %13438 = vmatpush3.bf16.msra.mxu0 %v14503_v11  ;;  %v14505_v9 = vld [vmem:[%s20358_s3 + $0x4e0] sm:$0xff]   ;;  %v4333_v3 = vsel %vm2703_vm6, %v4330_v28, %v4332_v56 }
 0x3d3   : > { %13095 = vmatprep.mubr.msk.bf16.mxu1 %vm15135_vm0, %v20461_v59  ;;  %13180 = vmatpush3.bf16.msra.mxu1 %v14498_v26  ;;  %v13042_v60 = vpop.f32.mrb[3].mxu0  ;;  %v20632_v26 = vld [vmem:[#allocation37_spill] sm:$0xff] }
 0x3d4   : > { %13181 = vmatprep.subr.bf16.mxu1 %v20461_v59  ;;  %13439 = vmatprep.subr.bf16.mxu0 %v20461_v59 }
 0x3d5   : > { %v3073_v45 = vpop.f32.mrb[156].mxu1  ;;  %13352 = vmatmul.mubr.bf16.gmra.mrb[108].mxu0 %v20632_v26 }
 0x3d6   : > { %v3126_v41 = vadd.f32 %v3073_v45, %v17645_v43  ;;  %v12785_v4 = vpop.f32.mrb[157].mxu1  ;;  %13355 = vmatprep.mubr.msk.bf16.mxu0 %vm15135_vm0, %v20461_v59  ;;  %13440 = vmatpush3.bf16.msra.mxu0 %v14505_v9 }
 0x3d7   : > { %v3076_v29 = vpop.f32.mrb[158].mxu1  ;;  %13182 = vmatpush3.bf16.msra.mxu1 %v14501_v30  ;;  %v14506_v30 = vld [vmem:[%s20358_s3 + $0x4e8] sm:$0xff]   ;;  %13441 = vmatprep.subr.bf16.mxu0 %v20461_v59  ;;  %v4334_v4 = vrot.slane %v17665_v13, 7 }
 0x3d8   : > { %v3127_v20 = vadd.f32 %v3076_v29, %v17655_v1  ;;  %v12786_v11 = vpop.f32.mrb[159].mxu1  ;;  %13183 = vmatprep.subr.bf16.mxu1 %v20461_v59  ;;  %v17892_v43 = vadd.f32 %v17411_v50, %v3126_v41  ;;  %v17898_v60 = vpop.f32.mrb[4].mxu0  ;;  %v14508_v50 = vld [vmem:[%s20358_s3 + $0x3b8] sm:$0xff]  }
 0x3d9   : > { %v13045_v45 = vpop.f32.mrb[5].mxu0 }
 0x3da   : > { %13096 = vmatmul.mubr.bf16.gmra.mrb[8].mxu1 %v4333_v3  ;;  %v17902_v1 = vadd.f32 %v17423_v32, %v3127_v20  ;;  %v17909_v28 = vpop.f32.mrb[6].mxu0  ;;  %13442 = vmatpush3.bf16.msra.mxu0 %v14506_v30  ;;  %v14507_v32 = vld [vmem:[%s20358_s3 + $0x4f0] sm:$0xff]   ;;  %v14509_v45 = vld [vmem:[%s20358_s3 + $0x4f8] sm:$0xff]  }
 0x3db   : > { %13099 = vmatprep.mubr.msk.bf16.mxu1 %vm15135_vm0, %v20461_v59  ;;  %13184 = vmatpush3.bf16.msra.mxu1 %v14504_v8  ;;  %v13046_v9 = vpop.f32.mrb[7].mxu0  ;;  %v20633_v8 = vld [vmem:[#allocation38_spill] sm:$0xff] }
 0x3dc   : > { %13185 = vmatprep.subr.bf16.mxu1 %v20461_v59  ;;  %13443 = vmatprep.subr.bf16.mxu0 %v20461_v59 }
 0x3dd   : > { %v3081_v41 = vpop.f32.mrb[160].mxu1  ;;  %13356 = vmatmul.mubr.bf16.gmra.mrb[112].mxu0 %v20633_v8  ;;  %v20634_v8 = vld [vmem:[#allocation39_spill] sm:$0xff] }
 0x3de   : > { %v3128_v26 = vadd.f32 %v3081_v41, %v17679_v57  ;;  %v12789_v29 = vpop.f32.mrb[161].mxu1  ;;  %13359 = vmatprep.mubr.msk.bf16.mxu0 %vm15135_vm0, %v20461_v59  ;;  %v4335_v57 = vsel %vm2703_vm6, %v4332_v56, %v4334_v4  ;;  %13444 = vmatpush3.bf16.msra.mxu0 %v14507_v32  ;;  %v4336_v32 = vrot.slane %v17695_v5, 7 }
 0x3df   : > { %v3084_v20 = vpop.f32.mrb[162].mxu1  ;;  %13186 = vmatpush3.bf16.msra.mxu1 %v14508_v50  ;;  %13445 = vmatprep.subr.bf16.mxu0 %v20461_v59 }
 0x3e0   : > { %v3129_v11 = vadd.f32 %v3084_v20, %v17689_v35  ;;  %v12790_v3 = vpop.f32.mrb[163].mxu1  ;;  %13275 = vmatprep.subr.bf16.mxu1 %v20461_v59  ;;  %v17924_v30 = vadd.f32 %v17442_v58, %v3128_v26  ;;  %v17930_v9 = vpop.f32.mrb[8].mxu0 }
 0x3e1   : > { %v13049_v50 = vpop.f32.mrb[9].mxu0 }
 0x3e2   : > { %13100 = vmatmul.mubr.bf16.gmra.mrb[12].mxu1 %v4335_v57  ;;  %v17934_v35 = vadd.f32 %v17451_v23, %v3129_v11  ;;  %v17938_v58 = vpop.f32.mrb[10].mxu0  ;;  %13446 = vmatpush3.bf16.msra.mxu0 %v14509_v45  ;;  %v4337_v57 = vsel %vm2703_vm6, %v4334_v4, %v4336_v32  ;;  %v20635_v4 = vld [vmem:[#allocation40_spill] sm:$0xff] }
 0x3e3   : > { %13103 = vmatprep.mubr.msk.bf16.mxu1 %vm15135_vm0, %v20461_v59  ;;  %v13050_v56 = vpop.f32.mrb[11].mxu0  ;;  %13535 = vmatprep.subr.bf16.mxu0 %v20461_v59 }
 0x3e5   : > { %v3089_v41 = vpop.f32.mrb[164].mxu1  ;;  %13360 = vmatmul.mubr.bf16.gmra.mrb[116].mxu0 %v20634_v8 }
 0x3e6   : > { %v3130_v26 = vadd.f32 %v3089_v41, %v17705_v61  ;;  %v12793_v29 = vpop.f32.mrb[165].mxu1  ;;  %13363 = vmatprep.mubr.msk.bf16.mxu0 %vm15135_vm0, %v20461_v59 }
 0x3e7   : > { %v3092_v23 = vpop.f32.mrb[166].mxu1  ;;  %v4338_v29 = vrot.slane %v17717_v37, 7 }
 0x3e8   : > { %v3131_v20 = vadd.f32 %v3092_v23, %v17711_v52  ;;  %v12794_v11 = vpop.f32.mrb[167].mxu1  ;;  %v17948_v3 = vadd.f32 %v17462_v54, %v3130_v26  ;;  %v17951_v45 = vpop.f32.mrb[12].mxu0 }
 0x3e9   : > { %v13053_v50 = vpop.f32.mrb[13].mxu0  ;;  %v4339_v11 = vsel %vm2703_vm6, %v4336_v32, %v4338_v29  ;;  %v20636_v32 = vld [vmem:[#allocation41_spill] sm:$0xff] }
 0x3ea   : > { %13104 = vmatmul.mubr.bf16.gmra.mrb[16].mxu1 %v4337_v57  ;;  %v17954_v61 = vadd.f32 %v17470_v38, %v3131_v20  ;;  %v17958_v52 = vpop.f32.mrb[14].mxu0 }
 0x3eb   : > { %13107 = vmatprep.mubr.msk.bf16.mxu1 %vm15135_vm0, %v20461_v59  ;;  %v13054_v56 = vpop.f32.mrb[15].mxu0 }
 0x3ed   : > { %v3097_v41 = vpop.f32.mrb[168].mxu1  ;;  %13364 = vmatmul.mubr.bf16.gmra.mrb[120].mxu0 %v20635_v4 }
 0x3ee   : > { %v3132_v54 = vadd.f32 %v3097_v41, %v17726_v10  ;;  %v12797_v26 = vpop.f32.mrb[169].mxu1  ;;  %13367 = vmatprep.mubr.msk.bf16.mxu0 %vm15135_vm0, %v20461_v59 }
 0x3ef   : > { %v3100_v8 = vpop.f32.mrb[170].mxu1  ;;  %v4340_v26 = vrot.slane %v17738_v48, 7 }
 0x3f0   : > { %v3133_v23 = vadd.f32 %v3100_v8, %v17732_v14  ;;  %v12798_v38 = vpop.f32.mrb[171].mxu1  ;;  %v17967_v20 = vadd.f32 %v17480_v25, %v3132_v54  ;;  %v17970_v57 = vpop.f32.mrb[16].mxu0 }
 0x3f1   : > { %v13057_v50 = vpop.f32.mrb[17].mxu0  ;;  %v4341_v38 = vsel %vm2703_vm6, %v4338_v29, %v4340_v26 }
 0x3f2   : > { %13108 = vmatmul.mubr.bf16.gmra.mrb[20].mxu1 %v4339_v11  ;;  %v17973_v10 = vadd.f32 %v17488_v39, %v3133_v23  ;;  %v17977_v14 = vpop.f32.mrb[18].mxu0 }
 0x3f3   : > { %13111 = vmatprep.mubr.msk.bf16.mxu1 %vm15135_vm0, %v20461_v59  ;;  %v13058_v56 = vpop.f32.mrb[19].mxu0 }
 0x3f5   : > { %v3105_v41 = vpop.f32.mrb[172].mxu1  ;;  %13368 = vmatmul.mubr.bf16.gmra.mrb[124].mxu0 %v20636_v32  ;;  %v20639_v32 = vld [vmem:[#allocation35_spill] sm:$0xff] }
 0x3f6   : > { %v3134_v25 = vadd.f32 %v3105_v41, %v17747_v34  ;;  %v12801_v54 = vpop.f32.mrb[173].mxu1  ;;  %13371 = vmatprep.mubr.msk.bf16.mxu0 %vm15135_vm0, %v20461_v59  ;;  %v5506_v34 = vrot.slane %v17752_v40, 6  ;;  %v20640_v29 = vrot.slane %v20639_v32, 6 }
 0x3f7   : > { %v3108_v4 = vpop.f32.mrb[174].mxu1 }
 0x3f8   : > { %v3135_v8 = vadd.f32 %v3108_v4, %v17756_v15  ;;  %v12802_v39 = vpop.f32.mrb[175].mxu1  ;;  %v17986_v23 = vadd.f32 %v17498_v51, %v3134_v25  ;;  %v17989_v11 = vpop.f32.mrb[20].mxu0  ;;  %v15065_v51 = vld [vmem:[#allocation2 + $0x50] sm:$0x7f]  ;;  %v5507_v4 = vsel %vm3857_vm7, %v20640_v29, %v5506_v34  ;;  %v15066_v29 = vld [vmem:[#allocation2 + $0x58] sm:$0x3f] }
 0x3f9   : > { %20637 = vst [vmem:[#allocation27_spill] sm:$0xff] %v17989_v11  ;;  %v13061_v56 = vpop.f32.mrb[21].mxu0  ;;  %v4342_v25 = vrot.slane %v15065_v51, 7  ;;  %v5508_v11 = vrot.slane %v15066_v29, 6  ;;  %v5937_v29 = vld [vmem:[#allocation2 + $0x10] sm:$0x80] }
 0x3fa   : > { %13112 = vmatmul.mubr.bf16.gmra.mrb[24].mxu1 %v4341_v38  ;;  %v17993_v50 = vadd.f32 %v17506_v12, %v3135_v8  ;;  %v17997_v15 = vpop.f32.mrb[22].mxu0 }
 0x3fb   : > { %13115 = vmatprep.mubr.msk.bf16.mxu1 %vm15135_vm0, %v20461_v59  ;;  %20638 = vst [vmem:[#allocation28_spill] sm:$0xff] %v17997_v15  ;;  %v13062_v41 = vpop.f32.mrb[23].mxu0  ;;  %v4343_v51 = vsel %vm2703_vm6, %v4340_v26, %v4342_v25 }
 0x3fd   : > { %v3113_v54 = vpop.f32.mrb[176].mxu1  ;;  %13372 = vmatmul.mubr.bf16.gmra.mrb[128].mxu0 %v5507_v4 }
 0x3fe   : > { %v3136_v39 = vadd.f32 %v3113_v54, %v17768_v21  ;;  %v12805_v38 = vpop.f32.mrb[177].mxu1  ;;  %13375 = vmatprep.mubr.msk.bf16.mxu0 %vm15135_vm0, %v20461_v59 }
 0x3ff   : > { %v3116_v12 = vpop.f32.mrb[178].mxu1 }
 0x400   : > { %v3137_v8 = vadd.f32 %v3116_v12, %v17774_v36  ;;  %v12806_v56 = vpop.f32.mrb[179].mxu1  ;;  %v18007_v41 = vadd.f32 %v17516_v31, %v3136_v39  ;;  %v18010_v15 = vpop.f32.mrb[24].mxu0  ;;  %v5509_v31 = vsel %vm3857_vm7, %v5506_v34, %v5508_v11 }
 0x401   : > { %v13065_v54 = vpop.f32.mrb[25].mxu0  ;;  %v20641_v56 = vld [vmem:[#allocation8_spill] sm:$0xff] }
 0x402   : > { %13116 = vmatmul.mubr.bf16.gmra.mrb[28].mxu1 %v4343_v51  ;;  %v18013_v21 = vadd.f32 %v17524_v18, %v3137_v8  ;;  %v18017_v36 = vpop.f32.mrb[26].mxu0  ;;  %v14510_v18 = vld [vmem:[%s20358_s3 + $0x400] sm:$0xff]  }
 0x403   : > { %13187 = vmatprep.mubr.msk.bf16.mxu1 %vm15135_vm0, %v20461_v59  ;;  %v13066_v4 = vpop.f32.mrb[27].mxu0 }
 0x405   : > { %v3520_v38 = vpop.f32.mrb[180].mxu1  ;;  %13376 = vmatmul.mubr.bf16.gmra.mrb[132].mxu0 %v5509_v31 }
 0x406   : > { %v3591_v26 = vadd.f32 %v3520_v38, %v17790_v55  ;;  %v12877_v25 = vpop.f32.mrb[181].mxu1  ;;  %13447 = vmatprep.mubr.msk.bf16.mxu0 %vm15135_vm0, %v20461_v59  ;;  %v20642_v55 = vld [vmem:[#allocation20_spill] sm:$0xff]  ;;  %v5957_v38 = vrot.slane %v5937_v29, 7 }
 0x407   : > { %v3523_v39 = vpop.f32.mrb[182].mxu1  ;;  %v20643_v25 = vrot.slane %v20629_v19, 7  ;;  %v20644_v19 = vld [vmem:[#allocation17_spill] sm:$0xff] }
 0x408   : > { %v3592_v12 = vadd.f32 %v3523_v39, %v17796_v63  ;;  %v12878_v8 = vpop.f32.mrb[183].mxu1  ;;  %v18028_v51 = vadd.f32 %v20641_v56, %v3591_v26  ;;  %v18030_v11 = vpop.f32.mrb[28].mxu0  ;;  %v14511_v63 = vld [vmem:[%s20358_s3 + $0x408] sm:$0xff]   ;;  %v14512_v56 = vld [vmem:[%s20358_s3 + $0x410] sm:$0xff]  }
 0x409   : > { %v13137_v54 = vpop.f32.mrb[29].mxu0  ;;  %v5959_v39 = vsel %vm2703_vm6, %v5957_v38, %v20643_v25 }
 0x40a   : > { %13188 = vmatmul.mubr.bf16.vlgmr.msra.gmra.mrb[32].mxu1 %v17527_v53  ;;  %v18034_v34 = vadd.f32 %v20642_v55, %v3592_v12  ;;  %v18041_v4 = vpop.f32.mrb[30].mxu0  ;;  %v14515_v53 = vld [vmem:[%s20358_s3 + $0x540] sm:$0xff]  }
 0x40b   : > { %13276 = vmatpush3.bf16.msra.mxu1 %v14510_v18  ;;  %13191 = vmatprep.mubr.msk.bf16.mxu1 %vm15135_vm0, %v20461_v59  ;;  %v13138_v31 = vpop.f32.mrb[31].mxu0 }
 0x40c   : > { %13277 = vmatprep.subr.bf16.mxu1 %v20461_v59 }
 0x40d   : > { %v3528_v26 = vpop.f32.mrb[184].mxu1  ;;  %13448 = vmatmul.mubr.bf16.vlgmr.msra.gmra.mrb[136].mxu0 %v5959_v39  ;;  %v14518_v39 = vld [vmem:[%s20358_s3 + $0x550] sm:$0xff]  }
 0x40e   : > { %v3593_v18 = vadd.f32 %v3528_v26, %v17822_v6  ;;  %v12881_v12 = vpop.f32.mrb[185].mxu1  ;;  %13451 = vmatprep.mubr.msk.bf16.mxu0 %vm15135_vm0, %v20461_v59  ;;  %13536 = vmatpush3.bf16.msra.mxu0 %v14515_v53  ;;  %v14516_v6 = vld [vmem:[%s20358_s3 + $0x548] sm:$0xff]   ;;  %v14513_v26 = vld [vmem:[%s20358_s3 + $0x418] sm:$0xff]  }
 0x40f   : > { %v3531_v8 = vpop.f32.mrb[186].mxu1  ;;  %13278 = vmatpush3.bf16.msra.mxu1 %v14511_v63  ;;  %13537 = vmatprep.subr.bf16.mxu0 %v20461_v59 }
 0x410   : > { %v3594_v29 = vadd.f32 %v3531_v8, %v17832_v17  ;;  %v12882_v55 = vpop.f32.mrb[187].mxu1  ;;  %13279 = vmatprep.subr.bf16.mxu1 %v20461_v59  ;;  %v18059_v54 = vadd.f32 %v20644_v19, %v3593_v18  ;;  %v18064_v63 = vpop.f32.mrb[32].mxu0  ;;  %v20645_v17 = vld [vmem:[#allocation10_spill] sm:$0xff] }
 0x411   : > { %v13141_v31 = vpop.f32.mrb[33].mxu0  ;;  %v20646_v8 = vld [vmem:[#allocation42_spill] sm:$0xff] }
 0x412   : > { %13192 = vmatmul.mubr.bf16.gmra.mrb[36].mxu1 %v17555_v27  ;;  %v18069_v38 = vadd.f32 %v20645_v17, %v3594_v29  ;;  %v18076_v53 = vpop.f32.mrb[34].mxu0  ;;  %13538 = vmatpush3.bf16.msra.mxu0 %v14516_v6  ;;  %v14514_v29 = vld [vmem:[%s20358_s3 + $0x420] sm:$0xff]   ;;  %v14519_v17 = vld [vmem:[%s20358_s3 + $0x558] sm:$0xff]  }
 0x413   : > { %13195 = vmatprep.mubr.msk.bf16.mxu1 %vm15135_vm0, %v20461_v59  ;;  %13280 = vmatpush3.bf16.msra.mxu1 %v14512_v56  ;;  %v13142_v25 = vpop.f32.mrb[35].mxu0 }
 0x414   : > { %13281 = vmatprep.subr.bf16.mxu1 %v20461_v59  ;;  %13539 = vmatprep.subr.bf16.mxu0 %v20461_v59 }
 0x415   : > { %v3536_v27 = vpop.f32.mrb[188].mxu1  ;;  %13452 = vmatmul.mubr.bf16.gmra.mrb[140].mxu0 %v20646_v8 }
 0x416   : > { %v3595_v18 = vadd.f32 %v3536_v27, %v17857_v62  ;;  %v12885_v12 = vpop.f32.mrb[189].mxu1  ;;  %13455 = vmatprep.mubr.msk.bf16.mxu0 %vm15135_vm0, %v20461_v59  ;;  %v20647_v62 = vld [vmem:[#allocation9_spill] sm:$0xff]  ;;  %13540 = vmatpush3.bf16.msra.mxu0 %v14518_v39 }
 0x417   : > { %v3539_v56 = vpop.f32.mrb[190].mxu1  ;;  %13282 = vmatpush3.bf16.msra.mxu1 %v14513_v26  ;;  %13541 = vmatprep.subr.bf16.mxu0 %v20461_v59  ;;  %v14517_v27 = vld [vmem:[%s20358_s3 + $0x428] sm:$0xff]   ;;  %v14521_v12 = vld [vmem:[%s20358_s3 + $0x560] sm:$0xff]  }
 0x418   : > { %v3596_v55 = vadd.f32 %v3539_v56, %v17867_v22  ;;  %v12886_v19 = vpop.f32.mrb[191].mxu1  ;;  %13283 = vmatprep.subr.bf16.mxu1 %v20461_v59  ;;  %v18093_v6 = vadd.f32 %v20647_v62, %v3595_v18  ;;  %v18098_v31 = vpop.f32.mrb[36].mxu0  ;;  %v20648_v22 = vld [vmem:[#allocation18_spill] sm:$0xff] }
 0x419   : > { %v13145_v25 = vpop.f32.mrb[37].mxu0  ;;  %v14520_v19 = vld [vmem:[%s20358_s3 + $0x430] sm:$0xff]  }
 0x41a   : > { %13196 = vmatmul.mubr.bf16.gmra.mrb[40].mxu1 %v17591_v49  ;;  %v18103_v26 = vadd.f32 %v20648_v22, %v3596_v55  ;;  %v18110_v39 = vpop.f32.mrb[38].mxu0  ;;  %13542 = vmatpush3.bf16.msra.mxu0 %v14519_v17  ;;  %v14522_v25 = vld [vmem:[%s20358_s3 + $0x568] sm:$0xff]  }
 0x41b   : > { %13199 = vmatprep.mubr.msk.bf16.mxu1 %vm15135_vm0, %v20461_v59  ;;  %13284 = vmatpush3.bf16.msra.mxu1 %v14514_v29  ;;  %v13146_v18 = vpop.f32.mrb[39].mxu0  ;;  %v20649_v29 = vld [vmem:[#allocation43_spill] sm:$0xff] }
 0x41c   : > { %13285 = vmatprep.subr.bf16.mxu1 %v20461_v59  ;;  %13543 = vmatprep.subr.bf16.mxu0 %v20461_v59 }
 0x41d   : > { %v3544_v49 = vpop.f32.mrb[192].mxu1  ;;  %13456 = vmatmul.mubr.bf16.gmra.mrb[144].mxu0 %v20649_v29  ;;  %v14523_v29 = vld [vmem:[%s20358_s3 + $0x570] sm:$0xff]  }
 0x41e   : > { %v3597_v8 = vadd.f32 %v3544_v49, %v17892_v43  ;;  %v12889_v56 = vpop.f32.mrb[193].mxu1  ;;  %13459 = vmatprep.mubr.msk.bf16.mxu0 %vm15135_vm0, %v20461_v59  ;;  %v20650_v43 = vld [vmem:[#allocation15_spill] sm:$0xff]  ;;  %13544 = vmatpush3.bf16.msra.mxu0 %v14521_v12 }
 0x41f   : > { %v3547_v55 = vpop.f32.mrb[194].mxu1  ;;  %13286 = vmatpush3.bf16.msra.mxu1 %v14517_v27  ;;  %13545 = vmatprep.subr.bf16.mxu0 %v20461_v59  ;;  %v14524_v12 = vld [vmem:[%s20358_s3 + $0x438] sm:$0xff]  }
 0x420   : > { %v3598_v62 = vadd.f32 %v3547_v55, %v17902_v1  ;;  %v12890_v17 = vpop.f32.mrb[195].mxu1  ;;  %13287 = vmatprep.subr.bf16.mxu1 %v20461_v59  ;;  %v18127_v22 = vadd.f32 %v20650_v43, %v3597_v8  ;;  %v18132_v27 = vpop.f32.mrb[40].mxu0  ;;  %v20651_v1 = vld [vmem:[#allocation16_spill] sm:$0xff] }
 0x421   : > { %v13149_v49 = vpop.f32.mrb[41].mxu0 }
 0x422   : > { %13200 = vmatmul.mubr.bf16.gmra.mrb[44].mxu1 %v17628_v24  ;;  %v18137_v18 = vadd.f32 %v20651_v1, %v3598_v62  ;;  %v18144_v8 = vpop.f32.mrb[42].mxu0  ;;  %13546 = vmatpush3.bf16.msra.mxu0 %v14522_v25  ;;  %v20653_v25 = vld [vmem:[#allocation19_spill] sm:$0xff] }
 0x423   : > { %13203 = vmatprep.mubr.msk.bf16.mxu1 %vm15135_vm0, %v20461_v59  ;;  %13288 = vmatpush3.bf16.msra.mxu1 %v14520_v19  ;;  %v13150_v56 = vpop.f32.mrb[43].mxu0  ;;  %v20652_v19 = vld [vmem:[#allocation44_spill] sm:$0xff] }
 0x424   : > { %13289 = vmatprep.subr.bf16.mxu1 %v20461_v59  ;;  %13547 = vmatprep.subr.bf16.mxu0 %v20461_v59 }
 0x425   : > { %v3552_v24 = vpop.f32.mrb[196].mxu1  ;;  %13460 = vmatmul.mubr.bf16.gmra.mrb[148].mxu0 %v20652_v19 }
 0x426   : > { %v3599_v55 = vadd.f32 %v3552_v24, %v17924_v30  ;;  %v12893_v62 = vpop.f32.mrb[197].mxu1  ;;  %13463 = vmatprep.mubr.msk.bf16.mxu0 %vm15135_vm0, %v20461_v59  ;;  %13548 = vmatpush3.bf16.msra.mxu0 %v14523_v29  ;;  %v14525_v30 = vld [vmem:[%s20358_s3 + $0x578] sm:$0xff]  }
 0x427   : > { %v3555_v17 = vpop.f32.mrb[198].mxu1  ;;  %13290 = vmatpush3.bf16.msra.mxu1 %v14524_v12  ;;  %13549 = vmatprep.subr.bf16.mxu0 %v20461_v59 }
 0x428   : > { %v3600_v43 = vadd.f32 %v3555_v17, %v17934_v35  ;;  %v12894_v1 = vpop.f32.mrb[199].mxu1  ;;  %13379 = vmatprep.subr.bf16.mxu1 %v20461_v59  ;;  %v18158_v49 = vadd.f32 %v20653_v25, %v3599_v55  ;;  %v18163_v56 = vpop.f32.mrb[44].mxu0  ;;  %v20654_v35 = vld [vmem:[#allocation21_spill] sm:$0xff] }
 0x429   : > { %v13153_v24 = vpop.f32.mrb[45].mxu0 }
 0x42a   : > { %13204 = vmatmul.mubr.bf16.gmra.mrb[48].mxu1 %v17665_v13  ;;  %v18168_v12 = vadd.f32 %v20654_v35, %v3600_v43  ;;  %v18172_v55 = vpop.f32.mrb[46].mxu0  ;;  %13550 = vmatpush3.bf16.msra.mxu0 %v14525_v30  ;;  %v20655_v13 = vld [vmem:[#allocation45_spill] sm:$0xff]  ;;  %v20656_v35 = vld [vmem:[#allocation22_spill] sm:$0xff] }
 0x42b   : > { %13207 = vmatprep.mubr.msk.bf16.mxu1 %vm15135_vm0, %v20461_v59  ;;  %v13154_v29 = vpop.f32.mrb[47].mxu0  ;;  %13639 = vmatprep.subr.bf16.mxu0 %v20461_v59 }
 0x42d   : > { %v3560_v62 = vpop.f32.mrb[200].mxu1  ;;  %13464 = vmatmul.mubr.bf16.gmra.mrb[152].mxu0 %v20655_v13 }
 0x42e   : > { %v3601_v19 = vadd.f32 %v3560_v62, %v17948_v3  ;;  %v12897_v17 = vpop.f32.mrb[201].mxu1  ;;  %13467 = vmatprep.mubr.msk.bf16.mxu0 %vm15135_vm0, %v20461_v59  ;;  %v20658_v3 = vld [vmem:[#allocation24_spill] sm:$0xff] }
 0x42f   : > { %v3563_v1 = vpop.f32.mrb[202].mxu1 }
 0x430   : > { %v3602_v43 = vadd.f32 %v3563_v1, %v17954_v61  ;;  %v12898_v25 = vpop.f32.mrb[203].mxu1  ;;  %v18181_v24 = vadd.f32 %v20656_v35, %v3601_v19  ;;  %v18183_v29 = vpop.f32.mrb[48].mxu0  ;;  %v20660_v19 = vld [vmem:[#allocation46_spill] sm:$0xff] }
 0x431   : > { %20657 = vst [vmem:[#allocation29_spill] sm:$0xff] %v18183_v29  ;;  %v13157_v62 = vpop.f32.mrb[49].mxu0 }
 0x432   : > { %13208 = vmatmul.mubr.bf16.gmra.mrb[52].mxu1 %v17695_v5  ;;  %v18187_v30 = vadd.f32 %v20658_v3, %v3602_v43  ;;  %v18191_v17 = vpop.f32.mrb[50].mxu0  ;;  %v20661_v43 = vld [vmem:[#allocation23_spill] sm:$0xff] }
 0x433   : > { %13211 = vmatprep.mubr.msk.bf16.mxu1 %vm15135_vm0, %v20461_v59  ;;  %20659 = vst [vmem:[#allocation30_spill] sm:$0xff] %v18191_v17  ;;  %v13158_v61 = vpop.f32.mrb[51].mxu0 }
 0x434   : > { %v20662_v61 = vld [vmem:[#allocation25_spill] sm:$0xff] }
 0x435   : > { %v3568_v13 = vpop.f32.mrb[204].mxu1  ;;  %13468 = vmatmul.mubr.bf16.gmra.mrb[156].mxu0 %v20660_v19 }
 0x436   : > { %v3603_v1 = vadd.f32 %v3568_v13, %v17967_v20  ;;  %v12901_v25 = vpop.f32.mrb[205].mxu1  ;;  %13471 = vmatprep.mubr.msk.bf16.mxu0 %vm15135_vm0, %v20461_v59 }
 0x437   : > { %v3571_v35 = vpop.f32.mrb[206].mxu1 }
 0x438   : > { %v3604_v29 = vadd.f32 %v3571_v35, %v17973_v10  ;;  %v12902_v5 = vpop.f32.mrb[207].mxu1  ;;  %v18199_v3 = vadd.f32 %v20661_v43, %v3603_v1  ;;  %v18201_v62 = vpop.f32.mrb[52].mxu0  ;;  %v20664_v1 = vld [vmem:[#allocation47_spill] sm:$0xff] }
 0x439   : > { %v13161_v20 = vpop.f32.mrb[53].mxu0 }
 0x43a   : > { %13212 = vmatmul.mubr.bf16.gmra.mrb[56].mxu1 %v17717_v37  ;;  %v18205_v17 = vadd.f32 %v20662_v61, %v3604_v29  ;;  %v18209_v13 = vpop.f32.mrb[54].mxu0  ;;  %v20665_v29 = vld [vmem:[#allocation26_spill] sm:$0xff] }
 0x43b   : > { %13215 = vmatprep.mubr.msk.bf16.mxu1 %vm15135_vm0, %v20461_v59  ;;  %20663 = vst [vmem:[#allocation31_spill] sm:$0xff] %v18209_v13  ;;  %v13162_v10 = vpop.f32.mrb[55].mxu0 }
 0x43c   : > { %v5972_v10 = vrot.slane %v17752_v40, 7 }
 0x43d   : > { %v3576_v25 = vpop.f32.mrb[208].mxu1  ;;  %13472 = vmatmul.mubr.bf16.gmra.mrb[160].mxu0 %v20664_v1 }
 0x43e   : > { %v3605_v19 = vadd.f32 %v3576_v25, %v17986_v23  ;;  %v12905_v35 = vpop.f32.mrb[209].mxu1  ;;  %13475 = vmatprep.mubr.msk.bf16.mxu0 %vm15135_vm0, %v20461_v59 }
 0x43f   : > { %v3579_v5 = vpop.f32.mrb[210].mxu1 }
 0x440   : > { %v3606_v43 = vadd.f32 %v3579_v5, %v17993_v50  ;;  %v12906_v37 = vpop.f32.mrb[211].mxu1  ;;  %v18217_v61 = vadd.f32 %v20665_v29, %v3605_v19  ;;  %v18219_v20 = vpop.f32.mrb[56].mxu0  ;;  %v20668_v19 = vrot.slane %v20639_v32, 7 }
 0x441   : > { %20666 = vst [vmem:[#allocation111_spill] sm:$0xff] %v18219_v20  ;;  %v13165_v25 = vpop.f32.mrb[57].mxu0  ;;  %v15068_v20 = vld [vmem:[#allocation2 + $0x18] sm:$0xf0] }
 0x442   : > { %13216 = vmatmul.mubr.bf16.gmra.mrb[60].mxu1 %v17738_v48  ;;  %v18224_v23 = vadd.f32 %v17760_v33, %v3606_v43  ;;  %v18228_v50 = vpop.f32.mrb[58].mxu0  ;;  %v5973_v5 = vsel %vm2703_vm6, %v20668_v19, %v5972_v10  ;;  %v6413_v32 = vshrl.u32 %v15068_v20, 16 }
 0x443   : > { %13219 = vmatprep.mubr.msk.bf16.mxu1 %vm15135_vm0, %v20461_v59  ;;  %20667 = vst [vmem:[#allocation32_spill] sm:$0xff] %v18228_v50  ;;  %v13166_v35 = vpop.f32.mrb[59].mxu0 }
 0x444   : > { %v15067_v35 = vld [vmem:[#allocation2 + $0x58] sm:$0x7f] }
 0x445   : > { %v3584_v1 = vpop.f32.mrb[212].mxu1  ;;  %13476 = vmatmul.mubr.bf16.gmra.mrb[164].mxu0 %v5973_v5  ;;  %v5974_v50 = vrot.slane %v15067_v35, 7 }
 0x446   : > { %v3607_v37 = vadd.f32 %v3584_v1, %v18007_v41  ;;  %v12909_v48 = vpop.f32.mrb[213].mxu1  ;;  %13479 = vmatprep.mubr.msk.bf16.mxu0 %vm15135_vm0, %v20461_v59  ;;  %v6416_v41 = vshll.u32 %v15068_v20, 16 }
 0x447   : > { %v3587_v29 = vpop.f32.mrb[214].mxu1  ;;  %v5975_v5 = vsel %vm2703_vm6, %v5972_v10, %v5974_v50  ;;  %v6415_v48 = vrot.slane %v6413_v32, 4 }
 0x448   : > { %v3608_v33 = vadd.f32 %v3587_v29, %v18013_v21  ;;  %v12910_v43 = vpop.f32.mrb[215].mxu1  ;;  %v18238_v25 = vadd.f32 %v17771_v2, %v3607_v37  ;;  %v18240_v13 = vpop.f32.mrb[60].mxu0  ;;  %v6418_v35 = vrot.slane %v6416_v41, 5  ;;  %v20673_v41 = vld [vmem:[#allocation48_spill] sm:$0xff] }
 0x449   : > { %20669 = vst [vmem:[#allocation112_spill] sm:$0xff] %v18240_v13  ;;  %v13169_v21 = vpop.f32.mrb[61].mxu0 }
 0x44a   : > { %13220 = vmatmul.mubr.bf16.gmra.mrb[64].mxu1 %v17752_v40  ;;  %v18244_v1 = vadd.f32 %v17778_v42, %v3608_v33  ;;  %v18248_v19 = vpop.f32.mrb[62].mxu0  ;;  %v20670_v40 = vld [vmem:[#allocation53_spill] sm:$0xff] }
 0x44b   : > { %13291 = vmatprep.mubr.msk.bf16.mxu1 %vm15135_vm0, %v20461_v59  ;;  %v13170_v2 = vpop.f32.mrb[63].mxu0  ;;  %v20671_v20 = vshrl.u32 %v20670_v40, 16  ;;  %v20672_v42 = vshll.u32 %v20670_v40, 16 }
 0x44c   : > { %v14526_v2 = vld [vmem:[%s20358_s3 + $0x480] sm:$0xff]  }
 0x44d   : > { %v3968_v37 = vpop.f32.mrb[216].mxu1  ;;  %v6423_v13 = vrot.slane %v20671_v20, 4  ;;  %v6426_v33 = vrot.slane %v20672_v42, 5  ;;  %13480 = vmatmul.mubr.bf16.gmra.mrb[168].mxu0 %v5975_v5 }
 0x44e   : > { %v4039_v29 = vadd.f32 %v3968_v37, %v18028_v51  ;;  %v12981_v43 = vpop.f32.mrb[217].mxu1  ;;  %13551 = vmatprep.mubr.msk.bf16.mxu0 %vm15135_vm0, %v20461_v59  ;;  %v6419_v37 = vor.u32 %v6418_v35, %v6415_v48 }
 0x44f   : > { %v3971_v21 = vpop.f32.mrb[218].mxu1  ;;  %v6427_v5 = vor.u32 %v6426_v33, %v6423_v13  ;;  %v20674_v33 = vld [vmem:[#allocation55_spill] sm:$0xff] }
 0x450   : > { %v4040_v10 = vadd.f32 %v3971_v21, %v18034_v34  ;;  %v12982_v50 = vpop.f32.mrb[219].mxu1  ;;  %v18263_v51 = vadd.f32 %v17793_v7, %v4039_v29  ;;  %v18265_v32 = vpop.f32.mrb[64].mxu0  ;;  %v14527_v7 = vld [vmem:[%s20358_s3 + $0x488] sm:$0xff]   ;;  %v20675_v21 = vshrl.u32 %v20674_v33, 16 }
 0x451   : > { %v13241_v20 = vpop.f32.mrb[65].mxu0  ;;  %v6428_v13 = vsel %vm6411_vm12, %v6419_v37, %v6427_v5  ;;  %v14532_v37 = vld [vmem:[%s20358_s3 + $0x5c8] sm:$0xff]  }
 0x452   : > { %13292 = vmatmul.mubr.bf16.vlgmr.msra.gmra.mrb[68].mxu1 %v20673_v41  ;;  %v18269_v43 = vadd.f32 %v17803_v47, %v4040_v10  ;;  %v18276_v34 = vpop.f32.mrb[66].mxu0  ;;  %v14531_v47 = vld [vmem:[%s20358_s3 + $0x5c0] sm:$0xff]   ;;  %v20676_v10 = vshll.u32 %v20674_v33, 16  ;;  %v14528_v20 = vld [vmem:[%s20358_s3 + $0x490] sm:$0xff]  }
 0x453   : > { %13380 = vmatpush3.bf16.msra.mxu1 %v14526_v2  ;;  %13295 = vmatprep.mubr.msk.bf16.mxu1 %vm15135_vm0, %v20461_v59  ;;  %v13242_v29 = vpop.f32.mrb[67].mxu0  ;;  %v6432_v2 = vrot.slane %v20675_v21, 4 }
 0x454   : > { %13381 = vmatprep.subr.bf16.mxu1 %v20461_v59  ;;  %v6435_v50 = vrot.slane %v20676_v10, 5  ;;  %v20678_v10 = vld [vmem:[#allocation54_spill] sm:$0xff] }
 0x455   : > { %v3976_v48 = vpop.f32.mrb[220].mxu1  ;;  %13552 = vmatmul.mubr.bf16.vlgmr.msra.gmra.mrb[172].mxu0 %v6428_v13 }
 0x456   : > { %v4041_v35 = vadd.f32 %v3976_v48, %v18059_v54  ;;  %v12985_v42 = vpop.f32.mrb[221].mxu1  ;;  %13555 = vmatprep.mubr.msk.bf16.mxu0 %vm15135_vm0, %v20461_v59  ;;  %13640 = vmatpush3.bf16.msra.mxu0 %v14531_v47  ;;  %v20677_v48 = vld [vmem:[#allocation49_spill] sm:$0xff]  ;;  %v6436_v13 = vor.u32 %v6435_v50, %v6432_v2  ;;  %v20679_v50 = vshrl.u32 %v20678_v10, 16 }
 0x457   : > { %v3979_v41 = vpop.f32.mrb[222].mxu1  ;;  %13382 = vmatpush3.bf16.msra.mxu1 %v14527_v7  ;;  %13641 = vmatprep.subr.bf16.mxu0 %v20461_v59 }
 0x458   : > { %v4042_v29 = vadd.f32 %v3979_v41, %v18069_v38  ;;  %v12986_v40 = vpop.f32.mrb[223].mxu1  ;;  %13383 = vmatprep.subr.bf16.mxu1 %v20461_v59  ;;  %v18296_v54 = vadd.f32 %v17828_v16, %v4041_v35  ;;  %v18301_v7 = vpop.f32.mrb[68].mxu0  ;;  %v14529_v16 = vld [vmem:[%s20358_s3 + $0x498] sm:$0xff]   ;;  %v6437_v33 = vsel %vm6411_vm12, %v6427_v5, %v6436_v13  ;;  %v6441_v41 = vrot.slane %v20679_v50, 4 }
 0x459   : > { %v13245_v40 = vpop.f32.mrb[69].mxu0 }
 0x45a   : > { %13296 = vmatmul.mubr.bf16.gmra.mrb[72].mxu1 %v20677_v48  ;;  %v18306_v38 = vadd.f32 %v17839_v44, %v4042_v29  ;;  %v18313_v47 = vpop.f32.mrb[70].mxu0  ;;  %13642 = vmatpush3.bf16.msra.mxu0 %v14532_v37  ;;  %v14534_v44 = vld [vmem:[%s20358_s3 + $0x5d0] sm:$0xff]   ;;  %v14530_v37 = vld [vmem:[%s20358_s3 + $0x4a0] sm:$0xff]  }
 0x45b   : > { %13299 = vmatprep.mubr.msk.bf16.mxu1 %vm15135_vm0, %v20461_v59  ;;  %13384 = vmatpush3.bf16.msra.mxu1 %v14528_v20  ;;  %v13246_v35 = vpop.f32.mrb[71].mxu0  ;;  %v20680_v20 = vshll.u32 %v20678_v10, 16 }
 0x45c   : > { %13385 = vmatprep.subr.bf16.mxu1 %v20461_v59  ;;  %13643 = vmatprep.subr.bf16.mxu0 %v20461_v59 }
 0x45d   : > { %v3984_v42 = vpop.f32.mrb[224].mxu1  ;;  %v6444_v29 = vrot.slane %v20680_v20, 5  ;;  %13556 = vmatmul.mubr.bf16.gmra.mrb[176].mxu0 %v6437_v33 }
 0x45e   : > { %v4043_v21 = vadd.f32 %v3984_v42, %v18093_v6  ;;  %v12989_v2 = vpop.f32.mrb[225].mxu1  ;;  %13559 = vmatprep.mubr.msk.bf16.mxu0 %vm15135_vm0, %v20461_v59  ;;  %13644 = vmatpush3.bf16.msra.mxu0 %v14534_v44  ;;  %v20681_v42 = vld [vmem:[#allocation50_spill] sm:$0xff] }
 0x45f   : > { %v3987_v48 = vpop.f32.mrb[226].mxu1  ;;  %13386 = vmatpush3.bf16.msra.mxu1 %v14529_v16  ;;  %v14535_v16 = vld [vmem:[%s20358_s3 + $0x5d8] sm:$0xff]   ;;  %v6445_v33 = vor.u32 %v6444_v29, %v6441_v41  ;;  %13645 = vmatprep.subr.bf16.mxu0 %v20461_v59  ;;  %v20682_v29 = vld [vmem:[#allocation57_spill] sm:$0xff] }
 0x460   : > { %v4044_v5 = vadd.f32 %v3987_v48, %v18103_v26  ;;  %v12990_v40 = vpop.f32.mrb[227].mxu1  ;;  %13387 = vmatprep.subr.bf16.mxu1 %v20461_v59  ;;  %v18334_v6 = vadd.f32 %v17863_v0, %v4043_v21  ;;  %v18339_v35 = vpop.f32.mrb[72].mxu0  ;;  %v14533_v0 = vld [vmem:[%s20358_s3 + $0x4a8] sm:$0xff]   ;;  %v20683_v48 = vshrl.u32 %v20682_v29, 16 }
 0x461   : > { %v13249_v2 = vpop.f32.mrb[73].mxu0  ;;  %v6446_v50 = vsel %vm6411_vm12, %v6436_v13, %v6445_v33 }
 0x462   : > { %13300 = vmatmul.mubr.bf16.gmra.mrb[76].mxu1 %v20681_v42  ;;  %v18344_v26 = vadd.f32 %v17874_v46, %v4044_v5  ;;  %v18351_v44 = vpop.f32.mrb[74].mxu0  ;;  %13646 = vmatpush3.bf16.msra.mxu0 %v14535_v16  ;;  %v14537_v46 = vld [vmem:[%s20358_s3 + $0x5e0] sm:$0xff]   ;;  %v20684_v5 = vshll.u32 %v20682_v29, 16  ;;  %v14536_v16 = vld [vmem:[%s20358_s3 + $0x4b0] sm:$0xff]  }
 0x463   : > { %13303 = vmatprep.mubr.msk.bf16.mxu1 %vm15135_vm0, %v20461_v59  ;;  %13388 = vmatpush3.bf16.msra.mxu1 %v14530_v37  ;;  %v13250_v21 = vpop.f32.mrb[75].mxu0  ;;  %v6450_v37 = vrot.slane %v20683_v48, 4 }
 0x464   : > { %13389 = vmatprep.subr.bf16.mxu1 %v20461_v59  ;;  %v6453_v40 = vrot.slane %v20684_v5, 5  ;;  %13647 = vmatprep.subr.bf16.mxu0 %v20461_v59 }
 0x465   : > { %v3992_v10 = vpop.f32.mrb[228].mxu1  ;;  %13560 = vmatmul.mubr.bf16.gmra.mrb[180].mxu0 %v6446_v50 }
 0x466   : > { %v4045_v41 = vadd.f32 %v3992_v10, %v18127_v22  ;;  %v12993_v20 = vpop.f32.mrb[229].mxu1  ;;  %13563 = vmatprep.mubr.msk.bf16.mxu0 %vm15135_vm0, %v20461_v59  ;;  %13648 = vmatpush3.bf16.msra.mxu0 %v14537_v46  ;;  %v20685_v10 = vld [vmem:[#allocation51_spill] sm:$0xff]  ;;  %v6454_v50 = vor.u32 %v6453_v40, %v6450_v37 }
 0x467   : > { %v3995_v42 = vpop.f32.mrb[230].mxu1  ;;  %13390 = vmatpush3.bf16.msra.mxu1 %v14533_v0  ;;  %v14538_v0 = vld [vmem:[%s20358_s3 + $0x5e8] sm:$0xff]   ;;  %13649 = vmatprep.subr.bf16.mxu0 %v20461_v59  ;;  %v20686_v40 = vld [vmem:[#allocation59_spill] sm:$0xff] }
 0x468   : > { %v4046_v13 = vadd.f32 %v3995_v42, %v18137_v18  ;;  %v12994_v2 = vpop.f32.mrb[231].mxu1  ;;  %13391 = vmatprep.subr.bf16.mxu1 %v20461_v59  ;;  %v18372_v22 = vadd.f32 %v17898_v60, %v4045_v41  ;;  %v18377_v21 = vpop.f32.mrb[76].mxu0  ;;  %v14540_v60 = vld [vmem:[%s20358_s3 + $0x4b8] sm:$0xff]   ;;  %v6455_v48 = vsel %vm6411_vm12, %v6445_v33, %v6454_v50  ;;  %v20687_v42 = vshrl.u32 %v20686_v40, 16 }
 0x469   : > { %v13253_v20 = vpop.f32.mrb[77].mxu0  ;;  %v14541_v33 = vld [vmem:[%s20358_s3 + $0x5f8] sm:$0xff]  }
 0x46a   : > { %13304 = vmatmul.mubr.bf16.gmra.mrb[80].mxu1 %v20685_v10  ;;  %v18382_v18 = vadd.f32 %v17909_v28, %v4046_v13  ;;  %v18389_v46 = vpop.f32.mrb[78].mxu0  ;;  %13650 = vmatpush3.bf16.msra.mxu0 %v14538_v0  ;;  %v14539_v28 = vld [vmem:[%s20358_s3 + $0x5f0] sm:$0xff]   ;;  %v20688_v13 = vshll.u32 %v20686_v40, 16 }
 0x46b   : > { %13307 = vmatprep.mubr.msk.bf16.mxu1 %vm15135_vm0, %v20461_v59  ;;  %13392 = vmatpush3.bf16.msra.mxu1 %v14536_v16  ;;  %v13254_v41 = vpop.f32.mrb[79].mxu0  ;;  %v6459_v16 = vrot.slane %v20687_v42, 4 }
 0x46c   : > { %13393 = vmatprep.subr.bf16.mxu1 %v20461_v59  ;;  %v6462_v2 = vrot.slane %v20688_v13, 5  ;;  %13651 = vmatprep.subr.bf16.mxu0 %v20461_v59 }
 0x46d   : > { %v4000_v29 = vpop.f32.mrb[232].mxu1  ;;  %13564 = vmatmul.mubr.bf16.gmra.mrb[184].mxu0 %v6455_v48 }
 0x46e   : > { %v4047_v37 = vadd.f32 %v4000_v29, %v18158_v49  ;;  %v12997_v5 = vpop.f32.mrb[233].mxu1  ;;  %13567 = vmatprep.mubr.msk.bf16.mxu0 %vm15135_vm0, %v20461_v59  ;;  %13652 = vmatpush3.bf16.msra.mxu0 %v14539_v28  ;;  %v20689_v29 = vld [vmem:[#allocation52_spill] sm:$0xff] }
 0x46f   : > { %v4003_v10 = vpop.f32.mrb[234].mxu1  ;;  %13394 = vmatpush3.bf16.msra.mxu1 %v14540_v60  ;;  %v6463_v60 = vor.u32 %v6462_v2, %v6459_v16  ;;  %13653 = vmatprep.subr.bf16.mxu0 %v20461_v59  ;;  %v20690_v16 = vld [vmem:[#allocation60_spill] sm:$0xff] }
 0x470   : > { %v4048_v0 = vadd.f32 %v4003_v10, %v18168_v12  ;;  %v12998_v20 = vpop.f32.mrb[235].mxu1  ;;  %13483 = vmatprep.subr.bf16.mxu1 %v20461_v59  ;;  %v18407_v49 = vadd.f32 %v17930_v9, %v4047_v37  ;;  %v18412_v41 = vpop.f32.mrb[80].mxu0  ;;  %v20691_v13 = vshrl.u32 %v20690_v16, 16 }
 0x471   : > { %v13257_v48 = vpop.f32.mrb[81].mxu0  ;;  %v6464_v5 = vsel %vm6411_vm12, %v6454_v50, %v6463_v60 }
 0x472   : > { %13308 = vmatmul.mubr.bf16.gmra.mrb[84].mxu1 %v20689_v29  ;;  %v18417_v12 = vadd.f32 %v17938_v58, %v4048_v0  ;;  %v18421_v9 = vpop.f32.mrb[82].mxu0  ;;  %13654 = vmatpush3.bf16.msra.mxu0 %v14541_v33  ;;  %v6468_v2 = vrot.slane %v20691_v13, 4  ;;  %v20692_v58 = vshll.u32 %v20690_v16, 16  ;;  %v20694_v13 = vld [vmem:[#allocation62_spill] sm:$0xff] }
 0x473   : > { %13311 = vmatprep.mubr.msk.bf16.mxu1 %vm15135_vm0, %v20461_v59  ;;  %v13258_v28 = vpop.f32.mrb[83].mxu0 }
 0x474   : > { %v6471_v10 = vrot.slane %v20692_v58, 5  ;;  %v20695_v58 = vshrl.u32 %v20694_v13, 16 }
 0x475   : > { %v4008_v37 = vpop.f32.mrb[236].mxu1  ;;  %13568 = vmatmul.mubr.bf16.gmra.mrb[188].mxu0 %v6464_v5 }
 0x476   : > { %v4049_v40 = vadd.f32 %v4008_v37, %v18181_v24  ;;  %v13001_v42 = vpop.f32.mrb[237].mxu1  ;;  %13571 = vmatprep.mubr.msk.bf16.mxu0 %vm15135_vm0, %v20461_v59  ;;  %v20693_v24 = vld [vmem:[#allocation56_spill] sm:$0xff]  ;;  %v6472_v48 = vor.u32 %v6471_v10, %v6468_v2  ;;  %v20696_v2 = vshll.u32 %v20694_v13, 16 }
 0x477   : > { %v4011_v0 = vpop.f32.mrb[238].mxu1 }
 0x478   : > { %v4050_v20 = vadd.f32 %v4011_v0, %v18187_v30  ;;  %v13002_v29 = vpop.f32.mrb[239].mxu1  ;;  %v18433_v33 = vadd.f32 %v17951_v45, %v4049_v40  ;;  %v18435_v50 = vpop.f32.mrb[84].mxu0  ;;  %v6473_v16 = vsel %vm6411_vm12, %v6463_v60, %v6472_v48  ;;  %v6477_v0 = vrot.slane %v20695_v58, 4  ;;  %v20698_v58 = vld [vmem:[#allocation63_spill] sm:$0xff] }
 0x479   : > { %v13261_v37 = vpop.f32.mrb[85].mxu0 }
 0x47a   : > { %13312 = vmatmul.mubr.bf16.gmra.mrb[88].mxu1 %v20693_v24  ;;  %v18439_v28 = vadd.f32 %v17958_v52, %v4050_v20  ;;  %v18443_v30 = vpop.f32.mrb[86].mxu0  ;;  %v6480_v52 = vrot.slane %v20696_v2, 5  ;;  %v20699_v2 = vshrl.u32 %v20698_v58, 16 }
 0x47b   : > { %13315 = vmatprep.mubr.msk.bf16.mxu1 %vm15135_vm0, %v20461_v59  ;;  %v13262_v5 = vpop.f32.mrb[87].mxu0 }
 0x47c   : > { %v6481_v37 = vor.u32 %v6480_v52, %v6477_v0  ;;  %v20700_v0 = vshll.u32 %v20698_v58, 16  ;;  %v15069_v58 = vld [vmem:[#allocation2 + $0x60] sm:$0x1f] }
 0x47d   : > { %v4016_v42 = vpop.f32.mrb[240].mxu1  ;;  %13572 = vmatmul.mubr.bf16.gmra.mrb[192].mxu0 %v6473_v16 }
 0x47e   : > { %v4051_v45 = vadd.f32 %v4016_v42, %v18199_v3  ;;  %v13005_v40 = vpop.f32.mrb[241].mxu1  ;;  %13575 = vmatprep.mubr.msk.bf16.mxu0 %vm15135_vm0, %v20461_v59  ;;  %v20697_v3 = vld [vmem:[#allocation61_spill] sm:$0xff]  ;;  %v6482_v13 = vsel %vm6411_vm12, %v6472_v48, %v6481_v37  ;;  %v20702_v48 = vld [vmem:[#allocation64_spill] sm:$0xff] }
 0x47f   : > { %v4019_v10 = vpop.f32.mrb[242].mxu1 }
 0x480   : > { %v4052_v20 = vadd.f32 %v4019_v10, %v18205_v17  ;;  %v13006_v29 = vpop.f32.mrb[243].mxu1  ;;  %v18455_v24 = vadd.f32 %v17970_v57, %v4051_v45  ;;  %v18457_v60 = vpop.f32.mrb[88].mxu0  ;;  %v6486_v10 = vrot.slane %v20699_v2, 4  ;;  %v6496_v2 = vshll.u32 %v15069_v58, 16 }
 0x481   : > { %v13265_v42 = vpop.f32.mrb[89].mxu0 }
 0x482   : > { %13316 = vmatmul.mubr.bf16.gmra.mrb[92].mxu1 %v20697_v3  ;;  %v18461_v5 = vadd.f32 %v17977_v14, %v4052_v20  ;;  %v18465_v17 = vpop.f32.mrb[90].mxu0  ;;  %v6489_v14 = vrot.slane %v20700_v0, 5  ;;  %v20701_v3 = vld [vmem:[#allocation27_spill] sm:$0xff]  ;;  %v20704_v0 = vld [vmem:[#allocation28_spill] sm:$0xff] }
 0x483   : > { %13319 = vmatprep.mubr.msk.bf16.mxu1 %vm15135_vm0, %v20461_v59  ;;  %v13266_v16 = vpop.f32.mrb[91].mxu0 }
 0x485   : > { %v4024_v40 = vpop.f32.mrb[244].mxu1  ;;  %13576 = vmatmul.mubr.bf16.gmra.mrb[196].mxu0 %v6482_v13  ;;  %v6493_v13 = vshrl.u32 %v15069_v58, 16 }
 0x486   : > { %v4053_v57 = vadd.f32 %v4024_v40, %v18217_v61  ;;  %v13009_v45 = vpop.f32.mrb[245].mxu1  ;;  %13579 = vmatprep.mubr.msk.bf16.mxu0 %vm15135_vm0, %v20461_v59  ;;  %v20703_v61 = vld [vmem:[#allocation58_spill] sm:$0xff] }
 0x487   : > { %v4027_v52 = vpop.f32.mrb[246].mxu1  ;;  %v5281_v16 = vsel %vm5201_vm8, %v20703_v61, %v20702_v48  ;;  %v6490_v45 = vor.u32 %v6489_v14, %v6486_v10  ;;  %v6495_v10 = vrot.slane %v6493_v13, 4  ;;  %v6498_v14 = vrot.slane %v6496_v2, 5 }
 0x488   : > { %v4054_v20 = vadd.f32 %v4027_v52, %v18224_v23  ;;  %v13010_v29 = vpop.f32.mrb[247].mxu1  ;;  %v18477_v42 = vadd.f32 %v20701_v3, %v4053_v57  ;;  %v18482_v40 = vpop.f32.mrb[92].mxu0 }
 0x489   : > { %v13269_v52 = vpop.f32.mrb[93].mxu0  ;;  %v6491_v48 = vsel %vm6411_vm12, %v6481_v37, %v6490_v45  ;;  %v6499_v37 = vor.u32 %v6498_v14, %v6495_v10 }
 0x48a   : > { %13320 = vmatmul.mubr.bf16.gmra.mrb[96].mxu1 %v5281_v16  ;;  %v18485_v23 = vadd.f32 %v20704_v0, %v4054_v20  ;;  %v18489_v57 = vpop.f32.mrb[94].mxu0 }
 0x48b   : > { %13323 = vmatprep.mubr.msk.bf16.mxu1 %vm15135_vm0, %v20461_v59  ;;  %20705 = vst [vmem:[#allocation110_spill] sm:$0xff] %v18489_v57  ;;  %v13270_v29 = vpop.f32.mrb[95].mxu0  ;;  %v20706_v57 = vld [vmem:[#allocation65_spill] sm:$0xff] }
 0x48d   : > { %v4032_v3 = vpop.f32.mrb[248].mxu1  ;;  %13580 = vmatmul.mubr.bf16.gmra.mrb[200].mxu0 %v6491_v48  ;;  %v6500_v48 = vsel %vm6411_vm12, %v6490_v45, %v6499_v37  ;;  %v20707_v45 = vld [vmem:[#allocation66_spill] sm:$0xff] }
 0x48e   : > { %v4055_v61 = vadd.f32 %v4032_v3, %v18238_v25  ;;  %v13013_v16 = vpop.f32.mrb[249].mxu1  ;;  %13583 = vmatprep.mubr.msk.bf16.mxu0 %vm15135_vm0, %v20461_v59 }
 0x48f   : > { %v4035_v58 = vpop.f32.mrb[250].mxu1 }
 0x490   : > { %v4056_v20 = vadd.f32 %v4035_v58, %v18244_v1  ;;  %v13014_v0 = vpop.f32.mrb[251].mxu1  ;;  %v18497_v52 = vadd.f32 %v18010_v15, %v4055_v61  ;;  %v18499_v29 = vpop.f32.mrb[96].mxu0 }
 0x491   : > { %v13273_v13 = vpop.f32.mrb[97].mxu0 }
 0x492   : > { %13324 = vmatmul.mubr.bf16.gmra.mrb[100].mxu1 %v20706_v57  ;;  %v18503_v25 = vadd.f32 %v18017_v36, %v4056_v20  ;;  %v18507_v1 = vpop.f32.mrb[98].mxu0  ;;  %v14542_v36 = vld [vmem:[%s20358_s3 + $0x500] sm:$0xff]  }
 0x493   : > { %13395 = vmatprep.mubr.msk.bf16.mxu1 %vm15135_vm0, %v20461_v59  ;;  %v13274_v2 = vpop.f32.mrb[99].mxu0 }
 0x495   : > { %v4435_v3 = vpop.f32.mrb[252].mxu1  ;;  %13584 = vmatmul.mubr.bf16.gmra.mrb[204].mxu0 %v6500_v48  ;;  %v14544_v48 = vld [vmem:[%s20358_s3 + $0x510] sm:$0xff]  }
 0x496   : > { %v4506_v15 = vadd.f32 %v4435_v3, %v18263_v51  ;;  %v13085_v61 = vpop.f32.mrb[253].mxu1  ;;  %13655 = vmatprep.mubr.msk.bf16.mxu0 %vm15135_vm0, %v20461_v59 }
 0x497   : > { %v4438_v16 = vpop.f32.mrb[254].mxu1 }
 0x498   : > { %v4507_v57 = vadd.f32 %v4438_v16, %v18269_v43  ;;  %v13086_v10 = vpop.f32.mrb[255].mxu1  ;;  %v18518_v14 = vadd.f32 %v18030_v11, %v4506_v15  ;;  %v18520_v58 = vpop.f32.mrb[100].mxu0  ;;  %v14543_v43 = vld [vmem:[%s20358_s3 + $0x508] sm:$0xff]  }
 0x499   : > { %v13345_v20 = vpop.f32.mrb[101].mxu0 }
 0x49a   : > { %13396 = vmatmul.mubr.bf16.vlgmr.msra.gmra.mrb[104].mxu1 %v20707_v45  ;;  %v18524_v51 = vadd.f32 %v18041_v4, %v4507_v57  ;;  %v18531_v0 = vpop.f32.mrb[102].mxu0  ;;  %v20708_v4 = vld [vmem:[#allocation67_spill] sm:$0xff] }
 0x49b   : > { %13484 = vmatpush3.bf16.msra.mxu1 %v14542_v36  ;;  %13399 = vmatprep.mubr.msk.bf16.mxu1 %vm15135_vm0, %v20461_v59  ;;  %v13346_v11 = vpop.f32.mrb[103].mxu0  ;;  %v20709_v36 = vld [vmem:[#allocation68_spill] sm:$0xff] }
 0x49c   : > { %13485 = vmatprep.subr.bf16.mxu1 %v20461_v59 }
 0x49d   : > { %v4443_v37 = vpop.f32.mrb[0].mxu1  ;;  %13656 = vmatmul.mubr.bf16.vlgmr.msra.gmra.mrb[208].mxu0 %v20708_v4 }
 0x49e   : > { %v4508_v13 = vadd.f32 %v4443_v37, %v18296_v54  ;;  %v13089_v2 = vpop.f32.mrb[1].mxu1  ;;  %13659 = vmatprep.mubr.msk.bf16.mxu0 %vm15135_vm0, %v20461_v59 }
 0x49f   : > { %v4446_v3 = vpop.f32.mrb[2].mxu1  ;;  %13486 = vmatpush3.bf16.msra.mxu1 %v14543_v43 }
 0x4a0   : > { %v4509_v15 = vadd.f32 %v4446_v3, %v18306_v38  ;;  %v13090_v61 = vpop.f32.mrb[3].mxu1  ;;  %13487 = vmatprep.subr.bf16.mxu1 %v20461_v59  ;;  %v18544_v16 = vadd.f32 %v18064_v63, %v4508_v13  ;;  %v18546_v54 = vpop.f32.mrb[104].mxu0  ;;  %v14545_v38 = vld [vmem:[%s20358_s3 + $0x518] sm:$0xff]   ;;  %v14546_v13 = vld [vmem:[%s20358_s3 + $0x520] sm:$0xff]  }
 0x4a1   : > { %v13349_v10 = vpop.f32.mrb[105].mxu0 }
 0x4a2   : > { %13400 = vmatmul.mubr.bf16.gmra.mrb[108].mxu1 %v20709_v36  ;;  %v18550_v57 = vadd.f32 %v18076_v53, %v4509_v15  ;;  %v18557_v45 = vpop.f32.mrb[106].mxu0  ;;  %v20710_v53 = vld [vmem:[#allocation69_spill] sm:$0xff] }
 0x4a3   : > { %13403 = vmatprep.mubr.msk.bf16.mxu1 %vm15135_vm0, %v20461_v59  ;;  %13488 = vmatpush3.bf16.msra.mxu1 %v14544_v48  ;;  %v13350_v63 = vpop.f32.mrb[107].mxu0  ;;  %v20711_v48 = vld [vmem:[#allocation70_spill] sm:$0xff] }
 0x4a4   : > { %13489 = vmatprep.subr.bf16.mxu1 %v20461_v59 }
 0x4a5   : > { %v4451_v20 = vpop.f32.mrb[4].mxu1  ;;  %13660 = vmatmul.mubr.bf16.gmra.mrb[212].mxu0 %v20710_v53 }
 0x4a6   : > { %v4510_v43 = vadd.f32 %v4451_v20, %v18334_v6  ;;  %v13093_v11 = vpop.f32.mrb[5].mxu1  ;;  %13663 = vmatprep.mubr.msk.bf16.mxu0 %vm15135_vm0, %v20461_v59 }
 0x4a7   : > { %v4454_v37 = vpop.f32.mrb[6].mxu1  ;;  %13490 = vmatpush3.bf16.msra.mxu1 %v14545_v38 }
 0x4a8   : > { %v4511_v2 = vadd.f32 %v4454_v37, %v18344_v26  ;;  %v13094_v4 = vpop.f32.mrb[7].mxu1  ;;  %13491 = vmatprep.subr.bf16.mxu1 %v20461_v59  ;;  %v18570_v3 = vadd.f32 %v18098_v31, %v4510_v43  ;;  %v18572_v6 = vpop.f32.mrb[108].mxu0  ;;  %v14547_v26 = vld [vmem:[%s20358_s3 + $0x528] sm:$0xff]   ;;  %v14548_v43 = vld [vmem:[%s20358_s3 + $0x530] sm:$0xff]  }
 0x4a9   : > { %v13353_v61 = vpop.f32.mrb[109].mxu0 }
 0x4aa   : > { %13404 = vmatmul.mubr.bf16.gmra.mrb[112].mxu1 %v20711_v48  ;;  %v18576_v15 = vadd.f32 %v18110_v39, %v4511_v2  ;;  %v18583_v36 = vpop.f32.mrb[110].mxu0  ;;  %v20712_v39 = vld [vmem:[#allocation71_spill] sm:$0xff] }
 0x4ab   : > { %13407 = vmatprep.mubr.msk.bf16.mxu1 %vm15135_vm0, %v20461_v59  ;;  %13492 = vmatpush3.bf16.msra.mxu1 %v14546_v13  ;;  %v13354_v31 = vpop.f32.mrb[111].mxu0  ;;  %v20713_v13 = vld [vmem:[#allocation72_spill] sm:$0xff] }
 0x4ac   : > { %13493 = vmatprep.subr.bf16.mxu1 %v20461_v59 }
 0x4ad   : > { %v4459_v10 = vpop.f32.mrb[8].mxu1  ;;  %13664 = vmatmul.mubr.bf16.gmra.mrb[216].mxu0 %v20712_v39 }
 0x4ae   : > { %v4512_v38 = vadd.f32 %v4459_v10, %v18372_v22  ;;  %v13097_v63 = vpop.f32.mrb[9].mxu1  ;;  %13667 = vmatprep.mubr.msk.bf16.mxu0 %vm15135_vm0, %v20461_v59 }
 0x4af   : > { %v4462_v20 = vpop.f32.mrb[10].mxu1  ;;  %13494 = vmatpush3.bf16.msra.mxu1 %v14547_v26 }
 0x4b0   : > { %v4513_v11 = vadd.f32 %v4462_v20, %v18382_v18  ;;  %v13098_v53 = vpop.f32.mrb[11].mxu1  ;;  %13495 = vmatprep.subr.bf16.mxu1 %v20461_v59  ;;  %v18596_v37 = vadd.f32 %v18132_v27, %v4512_v38  ;;  %v18598_v22 = vpop.f32.mrb[112].mxu0  ;;  %v14549_v18 = vld [vmem:[%s20358_s3 + $0x538] sm:$0xff]  }
 0x4b1   : > { %v13357_v4 = vpop.f32.mrb[113].mxu0 }
 0x4b2   : > { %13408 = vmatmul.mubr.bf16.gmra.mrb[116].mxu1 %v20713_v13  ;;  %v18602_v2 = vadd.f32 %v18144_v8, %v4513_v11  ;;  %v18609_v48 = vpop.f32.mrb[114].mxu0  ;;  %v20714_v8 = vld [vmem:[#allocation73_spill] sm:$0xff] }
 0x4b3   : > { %13411 = vmatprep.mubr.msk.bf16.mxu1 %vm15135_vm0, %v20461_v59  ;;  %13496 = vmatpush3.bf16.msra.mxu1 %v14548_v43  ;;  %v13358_v27 = vpop.f32.mrb[115].mxu0  ;;  %v20715_v43 = vld [vmem:[#allocation74_spill] sm:$0xff] }
 0x4b4   : > { %13497 = vmatprep.subr.bf16.mxu1 %v20461_v59 }
 0x4b5   : > { %v4467_v61 = vpop.f32.mrb[12].mxu1  ;;  %13668 = vmatmul.mubr.bf16.gmra.mrb[220].mxu0 %v20714_v8 }
 0x4b6   : > { %v4514_v26 = vadd.f32 %v4467_v61, %v18407_v49  ;;  %v13101_v31 = vpop.f32.mrb[13].mxu1  ;;  %13671 = vmatprep.mubr.msk.bf16.mxu0 %vm15135_vm0, %v20461_v59 }
 0x4b7   : > { %v4470_v10 = vpop.f32.mrb[14].mxu1  ;;  %13498 = vmatpush3.bf16.msra.mxu1 %v14549_v18 }
 0x4b8   : > { %v4515_v38 = vadd.f32 %v4470_v10, %v18417_v12  ;;  %v13102_v63 = vpop.f32.mrb[15].mxu1  ;;  %13587 = vmatprep.subr.bf16.mxu1 %v20461_v59  ;;  %v18619_v39 = vadd.f32 %v18163_v56, %v4514_v26  ;;  %v18621_v20 = vpop.f32.mrb[116].mxu0  ;;  %v20716_v56 = vld [vmem:[#allocation75_spill] sm:$0xff]  ;;  %v20718_v10 = vld [vmem:[#allocation76_spill] sm:$0xff] }
 0x4b9   : > { %v13361_v11 = vpop.f32.mrb[117].mxu0 }
 0x4ba   : > { %13412 = vmatmul.mubr.bf16.gmra.mrb[120].mxu1 %v20715_v43  ;;  %v18625_v49 = vadd.f32 %v18172_v55, %v4515_v38  ;;  %v18629_v12 = vpop.f32.mrb[118].mxu0  ;;  %v20717_v55 = vld [vmem:[#allocation29_spill] sm:$0xff]  ;;  %v20719_v38 = vld [vmem:[#allocation30_spill] sm:$0xff] }
 0x4bb   : > { %13415 = vmatprep.mubr.msk.bf16.mxu1 %vm15135_vm0, %v20461_v59  ;;  %v13362_v53 = vpop.f32.mrb[119].mxu0 }
 0x4bd   : > { %v4475_v13 = vpop.f32.mrb[16].mxu1  ;;  %13672 = vmatmul.mubr.bf16.gmra.mrb[224].mxu0 %v20716_v56 }
 0x4be   : > { %v4516_v4 = vadd.f32 %v4475_v13, %v18433_v33  ;;  %v13105_v18 = vpop.f32.mrb[17].mxu1  ;;  %13675 = vmatprep.mubr.msk.bf16.mxu0 %vm15135_vm0, %v20461_v59 }
 0x4bf   : > { %v4478_v27 = vpop.f32.mrb[18].mxu1 }
 0x4c0   : > { %v4517_v61 = vadd.f32 %v4478_v27, %v18439_v28  ;;  %v13106_v26 = vpop.f32.mrb[19].mxu1  ;;  %v18637_v31 = vadd.f32 %v20717_v55, %v4516_v4  ;;  %v18639_v8 = vpop.f32.mrb[120].mxu0  ;;  %v20720_v4 = vld [vmem:[#allocation77_spill] sm:$0xff]  ;;  %v20721_v55 = vld [vmem:[#allocation78_spill] sm:$0xff] }
 0x4c1   : > { %v13365_v33 = vpop.f32.mrb[121].mxu0 }
 0x4c2   : > { %13416 = vmatmul.mubr.bf16.gmra.mrb[124].mxu1 %v20718_v10  ;;  %v18643_v63 = vadd.f32 %v20719_v38, %v4517_v61  ;;  %v18647_v43 = vpop.f32.mrb[122].mxu0  ;;  %v20722_v10 = vld [vmem:[#allocation31_spill] sm:$0xff] }
 0x4c3   : > { %13419 = vmatprep.mubr.msk.bf16.mxu1 %vm15135_vm0, %v20461_v59  ;;  %v13366_v28 = vpop.f32.mrb[123].mxu0 }
 0x4c5   : > { %v4483_v11 = vpop.f32.mrb[20].mxu1  ;;  %13676 = vmatmul.mubr.bf16.gmra.mrb[228].mxu0 %v20720_v4 }
 0x4c6   : > { %v4518_v53 = vadd.f32 %v4483_v11, %v18455_v24  ;;  %v13109_v13 = vpop.f32.mrb[21].mxu1  ;;  %13679 = vmatprep.mubr.msk.bf16.mxu0 %vm15135_vm0, %v20461_v59 }
 0x4c7   : > { %v4486_v18 = vpop.f32.mrb[22].mxu1 }
 0x4c8   : > { %v4519_v56 = vadd.f32 %v4486_v18, %v18461_v5  ;;  %v13110_v27 = vpop.f32.mrb[23].mxu1  ;;  %v18655_v61 = vadd.f32 %v18201_v62, %v4518_v53  ;;  %v18657_v26 = vpop.f32.mrb[124].mxu0  ;;  %v20723_v62 = vld [vmem:[#allocation79_spill] sm:$0xff] }
 0x4c9   : > { %v13369_v24 = vpop.f32.mrb[125].mxu0 }
 0x4ca   : > { %13420 = vmatmul.mubr.bf16.gmra.mrb[128].mxu1 %v20721_v55  ;;  %v18661_v38 = vadd.f32 %v20722_v10, %v4519_v56  ;;  %v18665_v33 = vpop.f32.mrb[126].mxu0  ;;  %v20724_v56 = vld [vmem:[#allocation111_spill] sm:$0xff]  ;;  %v20725_v10 = vld [vmem:[#allocation80_spill] sm:$0xff] }
 0x4cb   : > { %13423 = vmatprep.mubr.msk.bf16.mxu1 %vm15135_vm0, %v20461_v59  ;;  %v13370_v5 = vpop.f32.mrb[127].mxu0  ;;  %v20726_v24 = vld [vmem:[#allocation32_spill] sm:$0xff] }
 0x4cd   : > { %v4491_v28 = vpop.f32.mrb[24].mxu1  ;;  %13680 = vmatmul.mubr.bf16.gmra.mrb[232].mxu0 %v20723_v62 }
 0x4ce   : > { %v4520_v11 = vadd.f32 %v4491_v28, %v18477_v42  ;;  %v13113_v13 = vpop.f32.mrb[25].mxu1  ;;  %13683 = vmatprep.mubr.msk.bf16.mxu0 %vm15135_vm0, %v20461_v59 }
 0x4cf   : > { %v4494_v53 = vpop.f32.mrb[26].mxu1 }
 0x4d0   : > { %v4521_v4 = vadd.f32 %v4494_v53, %v18485_v23  ;;  %v13114_v18 = vpop.f32.mrb[27].mxu1  ;;  %v18673_v27 = vadd.f32 %v20724_v56, %v4520_v11  ;;  %v18675_v55 = vpop.f32.mrb[128].mxu0  ;;  %v20728_v11 = vld [vmem:[#allocation81_spill] sm:$0xff] }
 0x4d1   : > { %v13373_v42 = vpop.f32.mrb[129].mxu0 }
 0x4d2   : > { %13424 = vmatmul.mubr.bf16.gmra.mrb[132].mxu1 %v20725_v10  ;;  %v18679_v5 = vadd.f32 %v20726_v24, %v4521_v4  ;;  %v18683_v28 = vpop.f32.mrb[130].mxu0  ;;  %v20729_v4 = vld [vmem:[#allocation112_spill] sm:$0xff] }
 0x4d3   : > { %13427 = vmatprep.mubr.msk.bf16.mxu1 %vm15135_vm0, %v20461_v59  ;;  %20727 = vst [vmem:[#allocation33_spill] sm:$0xff] %v18683_v28  ;;  %v13374_v23 = vpop.f32.mrb[131].mxu0  ;;  %v20730_v28 = vld [vmem:[#allocation82_spill] sm:$0xff] }
 0x4d5   : > { %v4499_v13 = vpop.f32.mrb[28].mxu1  ;;  %13684 = vmatmul.mubr.bf16.gmra.mrb[236].mxu0 %v20728_v11 }
 0x4d6   : > { %v4522_v62 = vadd.f32 %v4499_v13, %v18497_v52  ;;  %v13117_v53 = vpop.f32.mrb[29].mxu1  ;;  %13687 = vmatprep.mubr.msk.bf16.mxu0 %vm15135_vm0, %v20461_v59 }
 0x4d7   : > { %v4502_v18 = vpop.f32.mrb[30].mxu1 }
 0x4d8   : > { %v4523_v56 = vadd.f32 %v4502_v18, %v18503_v25  ;;  %v13118_v10 = vpop.f32.mrb[31].mxu1  ;;  %v18691_v24 = vadd.f32 %v20729_v4, %v4522_v62  ;;  %v18693_v42 = vpop.f32.mrb[132].mxu0  ;;  %v20731_v62 = vld [vmem:[#allocation85_spill] sm:$0xff] }
 0x4d9   : > { %v13377_v52 = vpop.f32.mrb[133].mxu0 }
 0x4da   : > { %13428 = vmatmul.mubr.bf16.gmra.mrb[136].mxu1 %v20730_v28  ;;  %v18697_v23 = vadd.f32 %v18248_v19, %v4523_v56  ;;  %v18701_v13 = vpop.f32.mrb[134].mxu0  ;;  %v14550_v28 = vld [vmem:[%s20358_s3 + $0x580] sm:$0xff]  }
 0x4db   : > { %13499 = vmatprep.mubr.msk.bf16.mxu1 %vm15135_vm0, %v20461_v59  ;;  %v13378_v25 = vpop.f32.mrb[135].mxu0 }
 0x4dc   : > { %v20732_v25 = vld [vmem:[#allocation83_spill] sm:$0xff] }
 0x4dd   : > { %v4857_v53 = vpop.f32.mrb[32].mxu1  ;;  %13688 = vmatmul.mubr.bf16.gmra.mrb[240].mxu0 %v20731_v62 }
 0x4de   : > { %v4928_v11 = vadd.f32 %v4857_v53, %v18518_v14  ;;  %v13189_v18 = vpop.f32.mrb[33].mxu1 }
 0x4df   : > { %v4860_v10 = vpop.f32.mrb[34].mxu1 }
 0x4e0   : > { %v4929_v19 = vadd.f32 %v4860_v10, %v18524_v51  ;;  %v13190_v56 = vpop.f32.mrb[35].mxu1  ;;  %v18710_v4 = vadd.f32 %v18265_v32, %v4928_v11  ;;  %v18712_v52 = vpop.f32.mrb[136].mxu0  ;;  %v14551_v51 = vld [vmem:[%s20358_s3 + $0x588] sm:$0xff]  }
 0x4e1   : > { %v13449_v53 = vpop.f32.mrb[137].mxu0 }
 0x4e2   : > { %13500 = vmatmul.mubr.bf16.vlgmr.msra.gmra.mrb[140].mxu1 %v20732_v25  ;;  %v18716_v14 = vadd.f32 %v18276_v34, %v4929_v19  ;;  %v18723_v18 = vpop.f32.mrb[138].mxu0 }
 0x4e3   : > { %13588 = vmatpush3.bf16.msra.mxu1 %v14550_v28  ;;  %13503 = vmatprep.mubr.msk.bf16.mxu1 %vm15135_vm0, %v20461_v59  ;;  %v13450_v32 = vpop.f32.mrb[139].mxu0  ;;  %v14552_v28 = vld [vmem:[%s20358_s3 + $0x590] sm:$0xff]  }
 0x4e4   : > { %13589 = vmatprep.subr.bf16.mxu1 %v20461_v59  ;;  %v20733_v32 = vld [vmem:[#allocation84_spill] sm:$0xff] }
 0x4e5   : > { %v4865_v11 = vpop.f32.mrb[36].mxu1 }
 0x4e6   : > { %v4930_v62 = vadd.f32 %v4865_v11, %v18544_v16  ;;  %v13193_v10 = vpop.f32.mrb[37].mxu1 }
 0x4e7   : > { %v4868_v34 = vpop.f32.mrb[38].mxu1  ;;  %13590 = vmatpush3.bf16.msra.mxu1 %v14551_v51 }
 0x4e8   : > { %v4931_v19 = vadd.f32 %v4868_v34, %v18550_v57  ;;  %v13194_v56 = vpop.f32.mrb[39].mxu1  ;;  %13591 = vmatprep.subr.bf16.mxu1 %v20461_v59  ;;  %v18733_v25 = vadd.f32 %v18301_v7, %v4930_v62  ;;  %v18735_v53 = vpop.f32.mrb[140].mxu0  ;;  %v14553_v57 = vld [vmem:[%s20358_s3 + $0x598] sm:$0xff]  }
 0x4e9   : > { %v13453_v51 = vpop.f32.mrb[141].mxu0 }
 0x4ea   : > { %13504 = vmatmul.mubr.bf16.gmra.mrb[144].mxu1 %v20733_v32  ;;  %v18739_v16 = vadd.f32 %v18313_v47, %v4931_v19  ;;  %v18746_v11 = vpop.f32.mrb[142].mxu0  ;;  %v14554_v19 = vld [vmem:[%s20358_s3 + $0x5a0] sm:$0xff]  }
 0x4eb   : > { %13507 = vmatprep.mubr.msk.bf16.mxu1 %vm15135_vm0, %v20461_v59  ;;  %13592 = vmatpush3.bf16.msra.mxu1 %v14552_v28  ;;  %v13454_v7 = vpop.f32.mrb[143].mxu0 }
 0x4ec   : > { %13593 = vmatprep.subr.bf16.mxu1 %v20461_v59  ;;  %v20734_v7 = vld [vmem:[#allocation86_spill] sm:$0xff] }
 0x4ed   : > { %v4873_v62 = vpop.f32.mrb[40].mxu1 }
 0x4ee   : > { %v4932_v10 = vadd.f32 %v4873_v62, %v18570_v3  ;;  %v13197_v34 = vpop.f32.mrb[41].mxu1 }
 0x4ef   : > { %v4876_v47 = vpop.f32.mrb[42].mxu1  ;;  %13594 = vmatpush3.bf16.msra.mxu1 %v14553_v57 }
 0x4f0   : > { %v4933_v28 = vadd.f32 %v4876_v47, %v18576_v15  ;;  %v13198_v56 = vpop.f32.mrb[43].mxu1  ;;  %13595 = vmatprep.subr.bf16.mxu1 %v20461_v59  ;;  %v18756_v32 = vadd.f32 %v18339_v35, %v4932_v10  ;;  %v18758_v51 = vpop.f32.mrb[144].mxu0  ;;  %v14555_v15 = vld [vmem:[%s20358_s3 + $0x5a8] sm:$0xff]  }
 0x4f1   : > { %v13457_v57 = vpop.f32.mrb[145].mxu0 }
 0x4f2   : > { %13508 = vmatmul.mubr.bf16.gmra.mrb[148].mxu1 %v20734_v7  ;;  %v18762_v3 = vadd.f32 %v18351_v44, %v4933_v28  ;;  %v18769_v62 = vpop.f32.mrb[146].mxu0  ;;  %v14556_v28 = vld [vmem:[%s20358_s3 + $0x5b0] sm:$0xff]  }
 0x4f3   : > { %13511 = vmatprep.mubr.msk.bf16.mxu1 %vm15135_vm0, %v20461_v59  ;;  %13596 = vmatpush3.bf16.msra.mxu1 %v14554_v19  ;;  %v13458_v35 = vpop.f32.mrb[147].mxu0 }
 0x4f4   : > { %13597 = vmatprep.subr.bf16.mxu1 %v20461_v59  ;;  %v20735_v35 = vld [vmem:[#allocation87_spill] sm:$0xff] }
 0x4f5   : > { %v4881_v10 = vpop.f32.mrb[44].mxu1 }
 0x4f6   : > { %v4934_v34 = vadd.f32 %v4881_v10, %v18596_v37  ;;  %v13201_v47 = vpop.f32.mrb[45].mxu1 }
 0x4f7   : > { %v4884_v44 = vpop.f32.mrb[46].mxu1  ;;  %13598 = vmatpush3.bf16.msra.mxu1 %v14555_v15 }
 0x4f8   : > { %v4935_v19 = vadd.f32 %v4884_v44, %v18602_v2  ;;  %v13202_v56 = vpop.f32.mrb[47].mxu1  ;;  %13599 = vmatprep.subr.bf16.mxu1 %v20461_v59  ;;  %v18779_v7 = vadd.f32 %v18377_v21, %v4934_v34  ;;  %v18781_v57 = vpop.f32.mrb[148].mxu0  ;;  %v14557_v2 = vld [vmem:[%s20358_s3 + $0x5b8] sm:$0xff]  }
 0x4f9   : > { %v13461_v15 = vpop.f32.mrb[149].mxu0 }
 0x4fa   : > { %13512 = vmatmul.mubr.bf16.gmra.mrb[152].mxu1 %v20735_v35  ;;  %v18785_v37 = vadd.f32 %v18389_v46, %v4935_v19  ;;  %v18792_v10 = vpop.f32.mrb[150].mxu0  ;;  %v20737_v15 = vld [vmem:[#allocation88_spill] sm:$0xff] }
 0x4fb   : > { %13515 = vmatprep.mubr.msk.bf16.mxu1 %vm15135_vm0, %v20461_v59  ;;  %13600 = vmatpush3.bf16.msra.mxu1 %v14556_v28  ;;  %20736 = vst [vmem:[#allocation6_spill] sm:$0xff] %v18792_v10  ;;  %v13462_v21 = vpop.f32.mrb[151].mxu0 }
 0x4fc   : > { %13601 = vmatprep.subr.bf16.mxu1 %v20461_v59 }
 0x4fd   : > { %v4889_v34 = vpop.f32.mrb[48].mxu1 }
 0x4fe   : > { %v4936_v47 = vadd.f32 %v4889_v34, %v18619_v39  ;;  %v13205_v44 = vpop.f32.mrb[49].mxu1 }
 0x4ff   : > { %v4892_v46 = vpop.f32.mrb[50].mxu1  ;;  %13602 = vmatpush3.bf16.msra.mxu1 %v14557_v2 }
 0x500   : > { %v4937_v19 = vadd.f32 %v4892_v46, %v18625_v49  ;;  %v13206_v56 = vpop.f32.mrb[51].mxu1  ;;  %13691 = vmatprep.subr.bf16.mxu1 %v20461_v59  ;;  %v18799_v28 = vadd.f32 %v18412_v41, %v4936_v47  ;;  %v18801_v35 = vpop.f32.mrb[152].mxu0 }
 0x501   : > { %v13465_v10 = vpop.f32.mrb[153].mxu0 }
 0x502   : > { %13516 = vmatmul.mubr.bf16.gmra.mrb[156].mxu1 %v20737_v15  ;;  %v18805_v21 = vadd.f32 %v18421_v9, %v4937_v19  ;;  %v18809_v39 = vpop.f32.mrb[154].mxu0  ;;  %v20738_v10 = vld [vmem:[#allocation89_spill] sm:$0xff] }
 0x503   : > { %13519 = vmatprep.mubr.msk.bf16.mxu1 %vm15135_vm0, %v20461_v59  ;;  %v13466_v49 = vpop.f32.mrb[155].mxu0 }
 0x505   : > { %v4897_v2 = vpop.f32.mrb[52].mxu1 }
 0x506   : > { %v4938_v34 = vadd.f32 %v4897_v2, %v18637_v31  ;;  %v13209_v44 = vpop.f32.mrb[53].mxu1 }
 0x507   : > { %v4900_v41 = vpop.f32.mrb[54].mxu1 }
 0x508   : > { %v4939_v47 = vadd.f32 %v4900_v41, %v18643_v63  ;;  %v13210_v46 = vpop.f32.mrb[55].mxu1  ;;  %v18814_v56 = vadd.f32 %v18435_v50, %v4938_v34  ;;  %v18816_v9 = vpop.f32.mrb[156].mxu0 }
 0x509   : > { %v13469_v15 = vpop.f32.mrb[157].mxu0 }
 0x50a   : > { %13520 = vmatmul.mubr.bf16.gmra.mrb[160].mxu1 %v20738_v10  ;;  %v18820_v19 = vadd.f32 %v18443_v30, %v4939_v47  ;;  %v18824_v31 = vpop.f32.mrb[158].mxu0  ;;  %v20739_v47 = vld [vmem:[#allocation90_spill] sm:$0xff] }
 0x50b   : > { %13523 = vmatprep.mubr.msk.bf16.mxu1 %vm15135_vm0, %v20461_v59  ;;  %v13470_v49 = vpop.f32.mrb[159].mxu0 }
 0x50d   : > { %v4905_v2 = vpop.f32.mrb[56].mxu1 }
 0x50e   : > { %v4940_v63 = vadd.f32 %v4905_v2, %v18655_v61  ;;  %v13213_v44 = vpop.f32.mrb[57].mxu1 }
 0x50f   : > { %v4908_v50 = vpop.f32.mrb[58].mxu1 }
 0x510   : > { %v4941_v34 = vadd.f32 %v4908_v50, %v18661_v38  ;;  %v13214_v41 = vpop.f32.mrb[59].mxu1  ;;  %v18829_v46 = vadd.f32 %v18457_v60, %v4940_v63  ;;  %v18831_v30 = vpop.f32.mrb[160].mxu0 }
 0x511   : > { %v13473_v15 = vpop.f32.mrb[161].mxu0 }
 0x512   : > { %13524 = vmatmul.mubr.bf16.gmra.mrb[164].mxu1 %v20739_v47  ;;  %v18835_v10 = vadd.f32 %v18465_v17, %v4941_v34  ;;  %v18839_v61 = vpop.f32.mrb[162].mxu0  ;;  %v20741_v34 = vld [vmem:[#allocation91_spill] sm:$0xff]  ;;  %v20742_v47 = vld [vmem:[#allocation110_spill] sm:$0xff] }
 0x513   : > { %13527 = vmatprep.mubr.msk.bf16.mxu1 %vm15135_vm0, %v20461_v59  ;;  %20740 = vst [vmem:[#allocation12_spill] sm:$0xff] %v18839_v61  ;;  %v13474_v49 = vpop.f32.mrb[163].mxu0 }
 0x515   : > { %v4913_v2 = vpop.f32.mrb[60].mxu1 }
 0x516   : > { %v4942_v38 = vadd.f32 %v4913_v2, %v18673_v27  ;;  %v13217_v44 = vpop.f32.mrb[61].mxu1 }
 0x517   : > { %v4916_v60 = vpop.f32.mrb[62].mxu1 }
 0x518   : > { %v4943_v63 = vadd.f32 %v4916_v60, %v18679_v5  ;;  %v13218_v50 = vpop.f32.mrb[63].mxu1  ;;  %v18844_v41 = vadd.f32 %v18482_v40, %v4942_v38  ;;  %v18846_v17 = vpop.f32.mrb[164].mxu0 }
 0x519   : > { %v13477_v61 = vpop.f32.mrb[165].mxu0 }
 0x51a   : > { %13528 = vmatmul.mubr.bf16.gmra.mrb[168].mxu1 %v20741_v34  ;;  %v18850_v15 = vadd.f32 %v20742_v47, %v4943_v63  ;;  %v18854_v27 = vpop.f32.mrb[166].mxu0  ;;  %v20743_v61 = vld [vmem:[#allocation92_spill] sm:$0xff] }
 0x51b   : > { %13531 = vmatprep.mubr.msk.bf16.mxu1 %vm15135_vm0, %v20461_v59  ;;  %v13478_v49 = vpop.f32.mrb[167].mxu0 }
 0x51d   : > { %v4921_v2 = vpop.f32.mrb[64].mxu1 }
 0x51e   : > { %v4944_v5 = vadd.f32 %v4921_v2, %v18691_v24  ;;  %v13221_v44 = vpop.f32.mrb[65].mxu1 }
 0x51f   : > { %v4924_v40 = vpop.f32.mrb[66].mxu1 }
 0x520   : > { %v4945_v38 = vadd.f32 %v4924_v40, %v18697_v23  ;;  %v13222_v60 = vpop.f32.mrb[67].mxu1  ;;  %v18859_v50 = vadd.f32 %v18499_v29, %v4944_v5  ;;  %v18861_v63 = vpop.f32.mrb[168].mxu0  ;;  %v14558_v5 = vld [vmem:[%s20358_s3 + $0x600] sm:$0xff]  }
 0x521   : > { %v13481_v47 = vpop.f32.mrb[169].mxu0 }
 0x522   : > { %13532 = vmatmul.mubr.bf16.gmra.mrb[172].mxu1 %v20743_v61  ;;  %v18865_v34 = vadd.f32 %v18507_v1, %v4945_v38  ;;  %v18869_v24 = vpop.f32.mrb[170].mxu0  ;;  %v20744_v61 = vld [vmem:[#allocation93_spill] sm:$0xff] }
 0x523   : > { %13603 = vmatprep.mubr.msk.bf16.mxu1 %vm15135_vm0, %v20461_v59  ;;  %v13482_v49 = vpop.f32.mrb[171].mxu0 }
 0x525   : > { %v5382_v2 = vpop.f32.mrb[68].mxu1 }
 0x526   : > { %v5453_v23 = vadd.f32 %v5382_v2, %v18710_v4  ;;  %v13293_v44 = vpop.f32.mrb[69].mxu1 }
 0x527   : > { %v5385_v29 = vpop.f32.mrb[70].mxu1 }
 0x528   : > { %v5454_v40 = vadd.f32 %v5385_v29, %v18716_v14  ;;  %v13294_v1 = vpop.f32.mrb[71].mxu1  ;;  %v18877_v38 = vadd.f32 %v18520_v58, %v5453_v23  ;;  %v18879_v60 = vpop.f32.mrb[172].mxu0  ;;  %v14559_v14 = vld [vmem:[%s20358_s3 + $0x608] sm:$0xff]   ;;  %v14560_v29 = vld [vmem:[%s20358_s3 + $0x610] sm:$0xff]  }
 0x529   : > { %v13553_v4 = vpop.f32.mrb[173].mxu0 }
 0x52a   : > { %13604 = vmatmul.mubr.bf16.vlgmr.msra.gmra.mrb[176].mxu1 %v20744_v61  ;;  %v18883_v47 = vadd.f32 %v18531_v0, %v5454_v40  ;;  %v18890_v49 = vpop.f32.mrb[174].mxu0  ;;  %v20745_v4 = vld [vmem:[#allocation94_spill] sm:$0xff] }
 0x52b   : > { %13692 = vmatpush3.bf16.msra.mxu1 %v14558_v5  ;;  %13607 = vmatprep.mubr.msk.bf16.mxu1 %vm15135_vm0, %v20461_v59  ;;  %v13554_v58 = vpop.f32.mrb[175].mxu0 }
 0x52c   : > { %13693 = vmatprep.subr.bf16.mxu1 %v20461_v59 }
 0x52d   : > { %v5390_v2 = vpop.f32.mrb[72].mxu1 }
 0x52e   : > { %v5455_v23 = vadd.f32 %v5390_v2, %v18733_v25  ;;  %v13297_v44 = vpop.f32.mrb[73].mxu1 }
 0x52f   : > { %v5393_v0 = vpop.f32.mrb[74].mxu1  ;;  %13694 = vmatpush3.bf16.msra.mxu1 %v14559_v14 }
 0x530   : > { %v5456_v5 = vadd.f32 %v5393_v0, %v18739_v16  ;;  %v13298_v40 = vpop.f32.mrb[75].mxu1  ;;  %13695 = vmatprep.subr.bf16.mxu1 %v20461_v59  ;;  %v18900_v1 = vadd.f32 %v18546_v54, %v5455_v23  ;;  %v18902_v61 = vpop.f32.mrb[176].mxu0  ;;  %v14561_v16 = vld [vmem:[%s20358_s3 + $0x618] sm:$0xff]   ;;  %v14562_v0 = vld [vmem:[%s20358_s3 + $0x620] sm:$0xff]  }
 0x531   : > { %v13557_v14 = vpop.f32.mrb[177].mxu0 }
 0x532   : > { %13608 = vmatmul.mubr.bf16.gmra.mrb[180].mxu1 %v20745_v4  ;;  %v18906_v25 = vadd.f32 %v18557_v45, %v5456_v5  ;;  %v18913_v58 = vpop.f32.mrb[178].mxu0  ;;  %v20746_v14 = vld [vmem:[#allocation95_spill] sm:$0xff] }
 0x533   : > { %13611 = vmatprep.mubr.msk.bf16.mxu1 %vm15135_vm0, %v20461_v59  ;;  %13696 = vmatpush3.bf16.msra.mxu1 %v14560_v29  ;;  %v13558_v54 = vpop.f32.mrb[179].mxu0 }
 0x534   : > { %13697 = vmatprep.subr.bf16.mxu1 %v20461_v59 }
 0x535   : > { %v5398_v2 = vpop.f32.mrb[76].mxu1 }
 0x536   : > { %v5457_v23 = vadd.f32 %v5398_v2, %v18756_v32  ;;  %v13301_v44 = vpop.f32.mrb[77].mxu1 }
 0x537   : > { %v5401_v45 = vpop.f32.mrb[78].mxu1  ;;  %13698 = vmatpush3.bf16.msra.mxu1 %v14561_v16 }
 0x538   : > { %v5458_v29 = vadd.f32 %v5401_v45, %v18762_v3  ;;  %v13302_v5 = vpop.f32.mrb[79].mxu1  ;;  %13699 = vmatprep.subr.bf16.mxu1 %v20461_v59  ;;  %v18923_v40 = vadd.f32 %v18572_v6, %v5457_v23  ;;  %v18925_v4 = vpop.f32.mrb[180].mxu0  ;;  %v14563_v3 = vld [vmem:[%s20358_s3 + $0x628] sm:$0xff]   ;;  %v14564_v45 = vld [vmem:[%s20358_s3 + $0x630] sm:$0xff]  }
 0x539   : > { %v13561_v16 = vpop.f32.mrb[181].mxu0 }
 0x53a   : > { %13612 = vmatmul.mubr.bf16.gmra.mrb[184].mxu1 %v20746_v14  ;;  %v18929_v32 = vadd.f32 %v18583_v36, %v5458_v29  ;;  %v18936_v54 = vpop.f32.mrb[182].mxu0  ;;  %v20747_v16 = vld [vmem:[#allocation96_spill] sm:$0xff] }
 0x53b   : > { %13615 = vmatprep.mubr.msk.bf16.mxu1 %vm15135_vm0, %v20461_v59  ;;  %13700 = vmatpush3.bf16.msra.mxu1 %v14562_v0  ;;  %v13562_v6 = vpop.f32.mrb[183].mxu0 }
 0x53c   : > { %13701 = vmatprep.subr.bf16.mxu1 %v20461_v59 }
 0x53d   : > { %v5406_v2 = vpop.f32.mrb[80].mxu1 }
 0x53e   : > { %v5459_v23 = vadd.f32 %v5406_v2, %v18779_v7  ;;  %v13305_v44 = vpop.f32.mrb[81].mxu1 }
 0x53f   : > { %v5409_v36 = vpop.f32.mrb[82].mxu1  ;;  %13702 = vmatpush3.bf16.msra.mxu1 %v14563_v3 }
 0x540   : > { %v5460_v0 = vadd.f32 %v5409_v36, %v18785_v37  ;;  %v13306_v29 = vpop.f32.mrb[83].mxu1  ;;  %13703 = vmatprep.subr.bf16.mxu1 %v20461_v59  ;;  %v18946_v5 = vadd.f32 %v18598_v22, %v5459_v23  ;;  %v18948_v14 = vpop.f32.mrb[184].mxu0  ;;  %v14565_v37 = vld [vmem:[%s20358_s3 + $0x638] sm:$0xff]  }
 0x541   : > { %v13565_v3 = vpop.f32.mrb[185].mxu0 }
 0x542   : > { %13616 = vmatmul.mubr.bf16.gmra.mrb[188].mxu1 %v20747_v16  ;;  %v18952_v7 = vadd.f32 %v18609_v48, %v5460_v0  ;;  %v18959_v6 = vpop.f32.mrb[186].mxu0  ;;  %v20748_v16 = vld [vmem:[#allocation97_spill] sm:$0xff] }
 0x543   : > { %13619 = vmatprep.mubr.msk.bf16.mxu1 %vm15135_vm0, %v20461_v59  ;;  %13704 = vmatpush3.bf16.msra.mxu1 %v14564_v45  ;;  %v13566_v22 = vpop.f32.mrb[187].mxu0 }
 0x544   : > { %13705 = vmatprep.subr.bf16.mxu1 %v20461_v59 }
 0x545   : > { %v5414_v2 = vpop.f32.mrb[84].mxu1 }
 0x546   : > { %v5461_v23 = vadd.f32 %v5414_v2, %v18799_v28  ;;  %v13309_v44 = vpop.f32.mrb[85].mxu1 }
 0x547   : > { %v5417_v48 = vpop.f32.mrb[86].mxu1  ;;  %13706 = vmatpush3.bf16.msra.mxu1 %v14565_v37 }
 0x548   : > { %v5462_v36 = vadd.f32 %v5417_v48, %v18805_v21  ;;  %v13310_v0 = vpop.f32.mrb[87].mxu1  ;;  %v18965_v45 = vadd.f32 %v18621_v20, %v5461_v23  ;;  %13743 = vmatprep.subr.bf16.mxu1 %v20461_v59  ;;  %v18968_v29 = vpop.f32.mrb[188].mxu0 }
 0x549   : > { %v13569_v22 = vpop.f32.mrb[189].mxu0 }
 0x54a   : > { %13620 = vmatmul.mubr.bf16.gmra.mrb[192].mxu1 %v20748_v16  ;;  %v18972_v3 = vadd.f32 %v18629_v12, %v5462_v36  ;;  %v18976_v28 = vpop.f32.mrb[190].mxu0  ;;  %v20749_v36 = vld [vmem:[#allocation98_spill] sm:$0xff] }
 0x54b   : > { %13623 = vmatprep.mubr.msk.bf16.mxu1 %vm15135_vm0, %v20461_v59  ;;  %v13570_v21 = vpop.f32.mrb[191].mxu0 }
 0x54d   : > { %v5422_v37 = vpop.f32.mrb[88].mxu1 }
 0x54e   : > { %v5463_v20 = vadd.f32 %v5422_v37, %v18814_v56  ;;  %v13313_v2 = vpop.f32.mrb[89].mxu1 }
 0x54f   : > { %v5425_v23 = vpop.f32.mrb[90].mxu1 }
 0x550   : > { %v5464_v44 = vadd.f32 %v5425_v23, %v18820_v19  ;;  %v13314_v48 = vpop.f32.mrb[91].mxu1  ;;  %v18981_v0 = vadd.f32 %v18639_v8, %v5463_v20  ;;  %v18983_v12 = vpop.f32.mrb[192].mxu0 }
 0x551   : > { %v13573_v22 = vpop.f32.mrb[193].mxu0 }
 0x552   : > { %13624 = vmatmul.mubr.bf16.gmra.mrb[196].mxu1 %v20749_v36  ;;  %v18987_v16 = vadd.f32 %v18647_v43, %v5464_v44  ;;  %v18991_v56 = vpop.f32.mrb[194].mxu0  ;;  %v20750_v44 = vld [vmem:[#allocation99_spill] sm:$0xff] }
 0x553   : > { %13627 = vmatprep.mubr.msk.bf16.mxu1 %vm15135_vm0, %v20461_v59  ;;  %v13574_v21 = vpop.f32.mrb[195].mxu0 }
 0x555   : > { %v5430_v37 = vpop.f32.mrb[92].mxu1 }
 0x556   : > { %v5465_v19 = vadd.f32 %v5430_v37, %v18829_v46  ;;  %v13317_v2 = vpop.f32.mrb[93].mxu1 }
 0x557   : > { %v5433_v8 = vpop.f32.mrb[94].mxu1 }
 0x558   : > { %v5466_v20 = vadd.f32 %v5433_v8, %v18835_v10  ;;  %v13318_v23 = vpop.f32.mrb[95].mxu1  ;;  %v18996_v48 = vadd.f32 %v18657_v26, %v5465_v19  ;;  %v18998_v43 = vpop.f32.mrb[196].mxu0 }
 0x559   : > { %v13577_v22 = vpop.f32.mrb[197].mxu0 }
 0x55a   : > { %13628 = vmatmul.mubr.bf16.gmra.mrb[200].mxu1 %v20750_v44  ;;  %v19002_v36 = vadd.f32 %v18665_v33, %v5466_v20  ;;  %v19006_v46 = vpop.f32.mrb[198].mxu0  ;;  %v20752_v20 = vld [vmem:[#allocation100_spill] sm:$0xff]  ;;  %v20753_v44 = vld [vmem:[#allocation33_spill] sm:$0xff] }
 0x55b   : > { %13631 = vmatprep.mubr.msk.bf16.mxu1 %vm15135_vm0, %v20461_v59  ;;  %20751 = vst [vmem:[#allocation11_spill] sm:$0xff] %v19006_v46  ;;  %v13578_v21 = vpop.f32.mrb[199].mxu0 }
 0x55d   : > { %v5438_v37 = vpop.f32.mrb[96].mxu1 }
 0x55e   : > { %v5467_v10 = vadd.f32 %v5438_v37, %v18844_v41  ;;  %v13321_v2 = vpop.f32.mrb[97].mxu1 }
 0x55f   : > { %v5441_v26 = vpop.f32.mrb[98].mxu1 }
 0x560   : > { %v5468_v19 = vadd.f32 %v5441_v26, %v18850_v15  ;;  %v13322_v8 = vpop.f32.mrb[99].mxu1  ;;  %v19011_v23 = vadd.f32 %v18675_v55, %v5467_v10  ;;  %v19013_v33 = vpop.f32.mrb[200].mxu0 }
 0x561   : > { %v13581_v46 = vpop.f32.mrb[201].mxu0 }
 0x562   : > { %13632 = vmatmul.mubr.bf16.gmra.mrb[204].mxu1 %v20752_v20  ;;  %v19017_v22 = vadd.f32 %v20753_v44, %v5468_v19  ;;  %v19021_v41 = vpop.f32.mrb[202].mxu0  ;;  %v20756_v46 = vld [vmem:[#allocation101_spill] sm:$0xff]  ;;  %v7147_v20 = vld [vmem:[#allocation2 + $0x18] sm:$0xc0] }
 0x563   : > { %13635 = vmatprep.mubr.msk.bf16.mxu1 %vm15135_vm0, %v20461_v59  ;;  %20754 = vst [vmem:[#allocation7_spill] sm:$0xff] %v19021_v41  ;;  %v13582_v21 = vpop.f32.mrb[203].mxu0 }
 0x565   : > { %v5446_v37 = vpop.f32.mrb[100].mxu1 }
 0x566   : > { %v5469_v15 = vadd.f32 %v5446_v37, %v18859_v50  ;;  %v13325_v2 = vpop.f32.mrb[101].mxu1 }
 0x567   : > { %v5449_v55 = vpop.f32.mrb[102].mxu1  ;;  %v7167_v2 = vrot.slane %v7147_v20, 6 }
 0x568   : > { %v5470_v10 = vadd.f32 %v5449_v55, %v18865_v34  ;;  %v13326_v26 = vpop.f32.mrb[103].mxu1  ;;  %v19026_v8 = vadd.f32 %v18693_v42, %v5469_v15  ;;  %v19028_v19 = vpop.f32.mrb[204].mxu0 }
 0x569   : > { %20755 = vst [vmem:[#allocation14_spill] sm:$0xff] %v19028_v19  ;;  %v13585_v21 = vpop.f32.mrb[205].mxu0 }
 0x56a   : > { %13636 = vmatmul.mubr.bf16.gmra.mrb[208].mxu1 %v20756_v46  ;;  %v19032_v44 = vadd.f32 %v18701_v13, %v5470_v10  ;;  %v19036_v50 = vpop.f32.mrb[206].mxu0  ;;  %v20757_v13 = vld [vmem:[#allocation53_spill] sm:$0xff] }
 0x56b   : > { %13707 = vmatprep.mubr.msk.bf16.mxu1 %vm15135_vm0, %v20461_v59  ;;  %v13586_v37 = vpop.f32.mrb[207].mxu0  ;;  %v20758_v10 = vrot.slane %v20757_v13, 6 }
 0x56d   : > { %v5848_v34 = vpop.f32.mrb[104].mxu1  ;;  %v7169_v21 = vsel %vm3857_vm7, %v7167_v2, %v20758_v10 }
 0x56e   : > { %v5919_v42 = vadd.f32 %v5848_v34, %v18877_v38  ;;  %v13397_v15 = vpop.f32.mrb[105].mxu1 }
 0x56f   : > { %v5851_v55 = vpop.f32.mrb[106].mxu1 }
 0x570   : > { %v5920_v26 = vadd.f32 %v5851_v55, %v18883_v47  ;;  %v13398_v46 = vpop.f32.mrb[107].mxu1  ;;  %v19041_v19 = vadd.f32 %v18712_v52, %v5919_v42  ;;  %v19046_v41 = vpop.f32.mrb[208].mxu0 }
 0x571   : > { %v13657_v20 = vpop.f32.mrb[209].mxu0 }
 0x572   : > { %13708 = vmatmul.mubr.bf16.vlgmr.msra.gmra.mrb[212].mxu1 %v7169_v21  ;;  %v19049_v37 = vadd.f32 %v18723_v18, %v5920_v26  ;;  %v19053_v38 = vpop.f32.mrb[210].mxu0  ;;  %v20759_v26 = vld [vmem:[#allocation102_spill] sm:$0xff] }
 0x573   : > { %13711 = vmatprep.mubr.msk.bf16.mxu1 %vm15135_vm0, %v20461_v59  ;;  %v13658_v47 = vpop.f32.mrb[211].mxu0 }
 0x575   : > { %v5856_v34 = vpop.f32.mrb[108].mxu1 }
 0x576   : > { %v5921_v52 = vadd.f32 %v5856_v34, %v18900_v1  ;;  %v13401_v42 = vpop.f32.mrb[109].mxu1 }
 0x577   : > { %v5859_v15 = vpop.f32.mrb[110].mxu1 }
 0x578   : > { %v5922_v2 = vadd.f32 %v5859_v15, %v18906_v25  ;;  %v13402_v55 = vpop.f32.mrb[111].mxu1  ;;  %v19058_v46 = vadd.f32 %v18735_v53, %v5921_v52  ;;  %v19060_v18 = vpop.f32.mrb[212].mxu0  ;;  %v20760_v15 = vld [vmem:[#allocation103_spill] sm:$0xff] }
 0x579   : > { %v13661_v10 = vpop.f32.mrb[213].mxu0 }
 0x57a   : > { %13712 = vmatmul.mubr.bf16.gmra.mrb[216].mxu1 %v20759_v26  ;;  %v19064_v13 = vadd.f32 %v18746_v11, %v5922_v2  ;;  %v19068_v1 = vpop.f32.mrb[214].mxu0 }
 0x57b   : > { %13715 = vmatprep.mubr.msk.bf16.mxu1 %vm15135_vm0, %v20461_v59  ;;  %v13662_v21 = vpop.f32.mrb[215].mxu0 }
 0x57d   : > { %v5864_v20 = vpop.f32.mrb[112].mxu1 }
 0x57e   : > { %v5923_v25 = vadd.f32 %v5864_v20, %v18923_v40  ;;  %v13405_v47 = vpop.f32.mrb[113].mxu1 }
 0x57f   : > { %v5867_v53 = vpop.f32.mrb[114].mxu1 }
 0x580   : > { %v5924_v34 = vadd.f32 %v5867_v53, %v18929_v32  ;;  %v13406_v52 = vpop.f32.mrb[115].mxu1  ;;  %v19073_v42 = vadd.f32 %v18758_v51, %v5923_v25  ;;  %v19075_v11 = vpop.f32.mrb[216].mxu0  ;;  %v20761_v53 = vld [vmem:[#allocation104_spill] sm:$0xff] }
 0x581   : > { %v13665_v55 = vpop.f32.mrb[217].mxu0 }
 0x582   : > { %13716 = vmatmul.mubr.bf16.gmra.mrb[220].mxu1 %v20760_v15  ;;  %v19079_v2 = vadd.f32 %v18769_v62, %v5924_v34  ;;  %v19083_v40 = vpop.f32.mrb[218].mxu0  ;;  %v20762_v34 = vld [vmem:[#allocation6_spill] sm:$0xff] }
 0x583   : > { %13719 = vmatprep.mubr.msk.bf16.mxu1 %vm15135_vm0, %v20461_v59  ;;  %v13666_v26 = vpop.f32.mrb[219].mxu0 }
 0x585   : > { %v5872_v10 = vpop.f32.mrb[116].mxu1 }
 0x586   : > { %v5925_v32 = vadd.f32 %v5872_v10, %v18946_v5  ;;  %v13409_v21 = vpop.f32.mrb[117].mxu1 }
 0x587   : > { %v5875_v51 = vpop.f32.mrb[118].mxu1 }
 0x588   : > { %v5926_v20 = vadd.f32 %v5875_v51, %v18952_v7  ;;  %v13410_v25 = vpop.f32.mrb[119].mxu1  ;;  %v19088_v47 = vadd.f32 %v18781_v57, %v5925_v32  ;;  %v19090_v62 = vpop.f32.mrb[220].mxu0 }
 0x589   : > { %v13669_v15 = vpop.f32.mrb[221].mxu0  ;;  %v20763_v25 = vld [vmem:[#allocation105_spill] sm:$0xff] }
 0x58a   : > { %13720 = vmatmul.mubr.bf16.gmra.mrb[224].mxu1 %v20761_v53  ;;  %v19094_v52 = vadd.f32 %v20762_v34, %v5926_v20  ;;  %v19098_v5 = vpop.f32.mrb[222].mxu0 }
 0x58b   : > { %13723 = vmatprep.mubr.msk.bf16.mxu1 %vm15135_vm0, %v20461_v59  ;;  %v13670_v55 = vpop.f32.mrb[223].mxu0 }
 0x58d   : > { %v5880_v26 = vpop.f32.mrb[120].mxu1 }
 0x58e   : > { %v5927_v7 = vadd.f32 %v5880_v26, %v18965_v45  ;;  %v13413_v10 = vpop.f32.mrb[121].mxu1 }
 0x58f   : > { %v5883_v57 = vpop.f32.mrb[122].mxu1 }
 0x590   : > { %v5928_v32 = vadd.f32 %v5883_v57, %v18972_v3  ;;  %v13414_v21 = vpop.f32.mrb[123].mxu1  ;;  %v19103_v51 = vadd.f32 %v18801_v35, %v5927_v7  ;;  %v19105_v20 = vpop.f32.mrb[224].mxu0 }
 0x591   : > { %v13673_v34 = vpop.f32.mrb[225].mxu0 }
 0x592   : > { %13724 = vmatmul.mubr.bf16.gmra.mrb[228].mxu1 %v20763_v25  ;;  %v19109_v53 = vadd.f32 %v18809_v39, %v5928_v32  ;;  %v19113_v45 = vpop.f32.mrb[226].mxu0  ;;  %v20764_v32 = vld [vmem:[#allocation106_spill] sm:$0xff] }
 0x593   : > { %13727 = vmatprep.mubr.msk.bf16.mxu1 %vm15135_vm0, %v20461_v59  ;;  %v13674_v15 = vpop.f32.mrb[227].mxu0 }
 0x595   : > { %v5888_v55 = vpop.f32.mrb[124].mxu1 }
 0x596   : > { %v5929_v3 = vadd.f32 %v5888_v55, %v18981_v0  ;;  %v13417_v26 = vpop.f32.mrb[125].mxu1 }
 0x597   : > { %v5891_v35 = vpop.f32.mrb[126].mxu1 }
 0x598   : > { %v5930_v7 = vadd.f32 %v5891_v35, %v18987_v16  ;;  %v13418_v10 = vpop.f32.mrb[127].mxu1  ;;  %v19118_v57 = vadd.f32 %v18816_v9, %v5929_v3  ;;  %v19120_v39 = vpop.f32.mrb[228].mxu0 }
 0x599   : > { %v13677_v25 = vpop.f32.mrb[229].mxu0  ;;  %v20766_v10 = vld [vmem:[#allocation12_spill] sm:$0xff] }
 0x59a   : > { %13728 = vmatmul.mubr.bf16.gmra.mrb[232].mxu1 %v20764_v32  ;;  %v19124_v21 = vadd.f32 %v18824_v31, %v5930_v7  ;;  %v19128_v0 = vpop.f32.mrb[230].mxu0  ;;  %v20765_v7 = vld [vmem:[#allocation107_spill] sm:$0xff] }
 0x59b   : > { %13731 = vmatprep.mubr.msk.bf16.mxu1 %vm15135_vm0, %v20461_v59  ;;  %v13678_v34 = vpop.f32.mrb[231].mxu0 }
 0x59d   : > { %v5896_v15 = vpop.f32.mrb[128].mxu1 }
 0x59e   : > { %v5931_v16 = vadd.f32 %v5896_v15, %v18996_v48  ;;  %v13421_v55 = vpop.f32.mrb[129].mxu1 }
 0x59f   : > { %v5899_v9 = vpop.f32.mrb[130].mxu1 }
 0x5a0   : > { %v5932_v3 = vadd.f32 %v5899_v9, %v19002_v36  ;;  %v13422_v26 = vpop.f32.mrb[131].mxu1  ;;  %v19133_v35 = vadd.f32 %v18831_v30, %v5931_v16  ;;  %v19135_v31 = vpop.f32.mrb[232].mxu0 }
 0x5a1   : > { %v13681_v25 = vpop.f32.mrb[233].mxu0 }
 0x5a2   : > { %13732 = vmatmul.mubr.bf16.gmra.mrb[236].mxu1 %v20765_v7  ;;  %v19139_v32 = vadd.f32 %v20766_v10, %v5932_v3  ;;  %v19143_v48 = vpop.f32.mrb[234].mxu0  ;;  %v20767_v7 = vld [vmem:[#allocation108_spill] sm:$0xff] }
 0x5a3   : > { %13735 = vmatprep.mubr.msk.bf16.mxu1 %vm15135_vm0, %v20461_v59  ;;  %v13682_v34 = vpop.f32.mrb[235].mxu0 }
 0x5a5   : > { %v5904_v15 = vpop.f32.mrb[132].mxu1 }
 0x5a6   : > { %v5933_v36 = vadd.f32 %v5904_v15, %v19011_v23  ;;  %v13425_v55 = vpop.f32.mrb[133].mxu1 }
 0x5a7   : > { %v5907_v30 = vpop.f32.mrb[134].mxu1 }
 0x5a8   : > { %v5934_v16 = vadd.f32 %v5907_v30, %v19017_v22  ;;  %v13426_v9 = vpop.f32.mrb[135].mxu1  ;;  %v19148_v26 = vadd.f32 %v18846_v17, %v5933_v36  ;;  %v19150_v3 = vpop.f32.mrb[236].mxu0 }
 0x5a9   : > { %v13685_v25 = vpop.f32.mrb[237].mxu0 }
 0x5aa   : > { %13736 = vmatmul.mubr.bf16.gmra.mrb[240].mxu1 %v20767_v7  ;;  %v19154_v10 = vadd.f32 %v18854_v27, %v5934_v16  ;;  %v19158_v23 = vpop.f32.mrb[238].mxu0  ;;  %v20769_v16 = vld [vmem:[#allocation109_spill] sm:$0xff] }
 0x5ab   : > { %13739 = vmatprep.mubr.msk.bf16.mxu1 %vm15135_vm0, %v20461_v59  ;;  %v13686_v34 = vpop.f32.mrb[239].mxu0 }
 0x5ad   : > { %v5912_v15 = vpop.f32.mrb[136].mxu1 }
 0x5ae   : > { %v5935_v22 = vadd.f32 %v5912_v15, %v19026_v8  ;;  %v13429_v55 = vpop.f32.mrb[137].mxu1 }
 0x5af   : > { %v5915_v17 = vpop.f32.mrb[138].mxu1 }
 0x5b0   : > { %v5936_v36 = vadd.f32 %v5915_v17, %v19032_v44  ;;  %v13430_v30 = vpop.f32.mrb[139].mxu1  ;;  %v19163_v9 = vadd.f32 %v18861_v63, %v5935_v22  ;;  %v19165_v27 = vpop.f32.mrb[240].mxu0 }
 0x5b1   : > { %20768 = vst [vmem:[#allocation13_spill] sm:$0xff] %v19165_v27  ;;  %v13689_v25 = vpop.f32.mrb[241].mxu0 }
 0x5b2   : > { %13740 = vmatmul.mubr.bf16.gmra.mrb[244].mxu1 %v20769_v16  ;;  %v19169_v7 = vadd.f32 %v18869_v24, %v5936_v36  ;;  %v19173_v8 = vpop.f32.mrb[242].mxu0 }
 0x5b3   : > { %13759 = vmatprep.mubr.msk.bf16.mxu1 %vm15135_vm0, %v20461_v59  ;;  %20770 = vst [vmem:[#allocation34_spill] sm:$0xff] %v19173_v8  ;;  %v13690_v34 = vpop.f32.mrb[243].mxu0 }
 0x5b5   : > { %v6304_v15 = vpop.f32.mrb[140].mxu1 }
 0x5b6   : > { %v6375_v44 = vadd.f32 %v6304_v15, %v19041_v19  ;;  %v13501_v55 = vpop.f32.mrb[141].mxu1 }
 0x5b7   : > { %v6307_v63 = vpop.f32.mrb[142].mxu1 }
 0x5b8   : > { %v6376_v22 = vadd.f32 %v6307_v63, %v19049_v37  ;;  %v13502_v17 = vpop.f32.mrb[143].mxu1  ;;  %v19178_v30 = vadd.f32 %v18879_v60, %v6375_v44 }
 0x5ba   : > { %v19181_v24 = vadd.f32 %v18890_v49, %v6376_v22 }
 0x5bd   : > { %v6312_v36 = vpop.f32.mrb[144].mxu1 }
 0x5be   : > { %v6377_v16 = vadd.f32 %v6312_v36, %v19058_v46  ;;  %v13505_v25 = vpop.f32.mrb[145].mxu1 }
 0x5bf   : > { %v6315_v8 = vpop.f32.mrb[146].mxu1 }
 0x5c0   : > { %v6378_v34 = vadd.f32 %v6315_v8, %v19064_v13  ;;  %v13506_v27 = vpop.f32.mrb[147].mxu1  ;;  %v19186_v19 = vadd.f32 %v18902_v61, %v6377_v16 }
 0x5c2   : > { %v19189_v37 = vadd.f32 %v18913_v58, %v6378_v34 }
 0x5c5   : > { %v6320_v15 = vpop.f32.mrb[148].mxu1 }
 0x5c6   : > { %v6379_v60 = vadd.f32 %v6320_v15, %v19073_v42  ;;  %v13509_v44 = vpop.f32.mrb[149].mxu1 }
 0x5c7   : > { %v6323_v49 = vpop.f32.mrb[150].mxu1 }
 0x5c8   : > { %v6380_v55 = vadd.f32 %v6323_v49, %v19079_v2  ;;  %v13510_v63 = vpop.f32.mrb[151].mxu1  ;;  %v19194_v46 = vadd.f32 %v18925_v4, %v6379_v60 }
 0x5ca   : > { %v19197_v13 = vadd.f32 %v18936_v54, %v6380_v55 }
 0x5cd   : > { %v6328_v27 = vpop.f32.mrb[152].mxu1 }
 0x5ce   : > { %v6381_v61 = vadd.f32 %v6328_v27, %v19088_v47  ;;  %v13513_v8 = vpop.f32.mrb[153].mxu1 }
 0x5cf   : > { %v6331_v58 = vpop.f32.mrb[154].mxu1 }
 0x5d0   : > { %v6382_v22 = vadd.f32 %v6331_v58, %v19094_v52  ;;  %v13514_v17 = vpop.f32.mrb[155].mxu1  ;;  %v19202_v42 = vadd.f32 %v18948_v14, %v6381_v61  ;;  %v15136_v14 = vmov 0   ;;  %v20771_v58 = vld [vmem:[#allocation11_spill] sm:$0xff] }
 0x5d1   : > { %7442 = vmatprep.subr.bf16.mxu0 %v15136_v14 }
 0x5d2   : > { %v19205_v2 = vadd.f32 %v18959_v6, %v6382_v22 }
 0x5d5   : > { %v6336_v36 = vpop.f32.mrb[156].mxu1 }
 0x5d6   : > { %v6383_v4 = vadd.f32 %v6336_v36, %v19103_v51  ;;  %v13517_v16 = vpop.f32.mrb[157].mxu1 }
 0x5d7   : > { %v6339_v54 = vpop.f32.mrb[158].mxu1  ;;  %v20772_v16 = vld [vmem:[#allocation7_spill] sm:$0xff] }
 0x5d8   : > { %v6384_v25 = vadd.f32 %v6339_v54, %v19109_v53  ;;  %v13518_v34 = vpop.f32.mrb[159].mxu1  ;;  %v19210_v47 = vadd.f32 %v18968_v29, %v6383_v4 }
 0x5da   : > { %v19213_v52 = vadd.f32 %v18976_v28, %v6384_v25 }
 0x5dd   : > { %v6344_v15 = vpop.f32.mrb[160].mxu1 }
 0x5de   : > { %v6385_v6 = vadd.f32 %v6344_v15, %v19118_v57  ;;  %v13521_v60 = vpop.f32.mrb[161].mxu1 }
 0x5df   : > { %v6347_v44 = vpop.f32.mrb[162].mxu1 }
 0x5e0   : > { %v6386_v51 = vadd.f32 %v6347_v44, %v19124_v21  ;;  %v13522_v49 = vpop.f32.mrb[163].mxu1  ;;  %v19219_v53 = vadd.f32 %v18983_v12, %v6385_v6 }
 0x5e2   : > { %v19222_v29 = vadd.f32 %v18991_v56, %v6386_v51 }
 0x5e5   : > { %v6352_v55 = vpop.f32.mrb[164].mxu1 }
 0x5e6   : > { %v6387_v28 = vadd.f32 %v6352_v55, %v19133_v35  ;;  %v13525_v63 = vpop.f32.mrb[165].mxu1 }
 0x5e7   : > { %v6355_v27 = vpop.f32.mrb[166].mxu1 }
 0x5e8   : > { %v6388_v61 = vadd.f32 %v6355_v27, %v19139_v32  ;;  %v13526_v8 = vpop.f32.mrb[167].mxu1  ;;  %v19227_v57 = vadd.f32 %v18998_v43, %v6387_v28 }
 0x5ea   : > { %v19230_v21 = vadd.f32 %v20771_v58, %v6388_v61 }
 0x5ed   : > { %v6360_v22 = vpop.f32.mrb[168].mxu1 }
 0x5ee   : > { %v6389_v12 = vadd.f32 %v6360_v22, %v19148_v26  ;;  %v13529_v17 = vpop.f32.mrb[169].mxu1  ;;  %v20773_v26 = vld [vmem:[#allocation14_spill] sm:$0xff] }
 0x5ef   : > { %v6363_v56 = vpop.f32.mrb[170].mxu1 }
 0x5f0   : > { %v6390_v36 = vadd.f32 %v6363_v56, %v19154_v10  ;;  %v13530_v4 = vpop.f32.mrb[171].mxu1  ;;  %v19235_v35 = vadd.f32 %v19013_v33, %v6389_v12 }
 0x5f2   : > { %v19238_v32 = vadd.f32 %v20772_v16, %v6390_v36 }
 0x5f5   : > { %v6368_v54 = vpop.f32.mrb[172].mxu1 }
 0x5f6   : > { %v6391_v43 = vadd.f32 %v6368_v54, %v19163_v9  ;;  %v13533_v25 = vpop.f32.mrb[173].mxu1 }
 0x5f7   : > { %v6371_v34 = vpop.f32.mrb[174].mxu1 }
 0x5f8   : > { %v6392_v15 = vadd.f32 %v6371_v34, %v19169_v7  ;;  %v13534_v6 = vpop.f32.mrb[175].mxu1  ;;  %v19243_v60 = vadd.f32 %v20773_v26, %v6391_v43 }
 0x5fa   : > { %v19246_v10 = vadd.f32 %v19036_v50, %v6392_v15 }
 0x5fd   : > { %v6811_v44 = vpop.f32.mrb[176].mxu1 }
 0x5fe   : > { %v6882_v33 = vadd.f32 %v6811_v44, %v19178_v30  ;;  %v13605_v51 = vpop.f32.mrb[177].mxu1 }
 0x5ff   : > { %v6814_v49 = vpop.f32.mrb[178].mxu1 }
 0x600   : > { %v6883_v55 = vadd.f32 %v6814_v49, %v19181_v24  ;;  %v13606_v28 = vpop.f32.mrb[179].mxu1  ;;  %v19251_v9 = vadd.f32 %v19046_v41, %v6882_v33 }
 0x602   : > { %v19254_v7 = vadd.f32 %v19053_v38, %v6883_v55 }
 0x605   : > { %v6819_v63 = vpop.f32.mrb[180].mxu1 }
 0x606   : > { %v6884_v27 = vadd.f32 %v6819_v63, %v19186_v19  ;;  %v13609_v61 = vpop.f32.mrb[181].mxu1 }
 0x607   : > { %v6822_v50 = vpop.f32.mrb[182].mxu1 }
 0x608   : > { %v6885_v8 = vadd.f32 %v6822_v50, %v19189_v37  ;;  %v13610_v58 = vpop.f32.mrb[183].mxu1  ;;  %v19259_v30 = vadd.f32 %v19060_v18, %v6884_v27 }
 0x60a   : > { %v19262_v24 = vadd.f32 %v19068_v1, %v6885_v8 }
 0x60d   : > { %v6827_v22 = vpop.f32.mrb[184].mxu1 }
 0x60e   : > { %v6886_v41 = vadd.f32 %v6827_v22, %v19194_v46  ;;  %v13613_v12 = vpop.f32.mrb[185].mxu1 }
 0x60f   : > { %v6830_v38 = vpop.f32.mrb[186].mxu1 }
 0x610   : > { %v6887_v17 = vadd.f32 %v6830_v38, %v19197_v13  ;;  %v13614_v56 = vpop.f32.mrb[187].mxu1  ;;  %v19267_v19 = vadd.f32 %v19075_v11, %v6886_v41  ;;  %v14568_v13 = vld [vmem:[%s20360_s5 + $0x4] ss:$8 sps:$4 sm:$0xff]  }
 0x611   : > { %11007 = vmatprep.mubr.msk.bf16.mxu0 %vm7435_vm13, %v14568_v13 }
 0x612   : > { %v19270_v37 = vadd.f32 %v19083_v40, %v6887_v17  ;;  %v14569_v40 = vld [vmem:[%s20361_s6 + $0x40] sm:$0xff]  }
 0x613   : > { %13744 = vmatpush3.bf16.msra.mxu1 %v14569_v40 }
 0x614   : > { %13745 = vmatprep.subr.bf16.mxu1 %v20461_v59 }
 0x615   : > { %v6835_v36 = vpop.f32.mrb[188].mxu1 }
 0x616   : > { %v6888_v18 = vadd.f32 %v6835_v36, %v19202_v42  ;;  %v13617_v4 = vpop.f32.mrb[189].mxu1 }
 0x617   : > { %v6838_v1 = vpop.f32.mrb[190].mxu1 }
 0x618   : > { %v6889_v16 = vadd.f32 %v6838_v1, %v19205_v2  ;;  %v13618_v54 = vpop.f32.mrb[191].mxu1  ;;  %v19275_v46 = vadd.f32 %v19090_v62, %v6888_v18  ;;  %v14570_v62 = vld [vmem:[%s20361_s6 + $0x48] sm:$0xff]  }
 0x619   : > { %13746 = vmatpush3.bf16.msra.mxu1 %v14570_v62  ;;  %v20774_v1 = vld [vmem:[#allocation13_spill] sm:$0xff]  ;;  %v20775_v54 = vld [vmem:[#allocation34_spill] sm:$0xff] }
 0x61a   : > { %v19281_v11 = vadd.f32 %v19098_v5, %v6889_v16  ;;  %13747 = vmatprep.subr.bf16.mxu1 %v20461_v59 }
 0x61d   : > { %v6843_v42 = vpop.f32.mrb[192].mxu1 }
 0x61e   : > { %v6890_v2 = vadd.f32 %v6843_v42, %v19210_v47  ;;  %v13621_v43 = vpop.f32.mrb[193].mxu1  ;;  %v14571_v47 = vld [vmem:[%s20361_s6 + $0x50] sm:$0xff]  }
 0x61f   : > { %v6846_v25 = vpop.f32.mrb[194].mxu1  ;;  %13748 = vmatpush3.bf16.msra.mxu1 %v14571_v47 }
 0x620   : > { %v6891_v5 = vadd.f32 %v6846_v25, %v19213_v52  ;;  %v13622_v34 = vpop.f32.mrb[195].mxu1  ;;  %v19294_v15 = vadd.f32 %v19105_v20, %v6890_v2  ;;  %v14572_v20 = vld [vmem:[%s20361_s6 + $0x58] sm:$0xff]   ;;  %13749 = vmatprep.subr.bf16.mxu1 %v20461_v59 }
 0x622   : > { %v19297_v6 = vadd.f32 %v19113_v45, %v6891_v5 }
 0x623   : > { %13750 = vmatpush3.bf16.msra.mxu1 %v14572_v20 }
 0x624   : > { %13751 = vmatprep.subr.bf16.mxu1 %v20461_v59 }
 0x625   : > { %v6851_v26 = vpop.f32.mrb[196].mxu1 }
 0x626   : > { %v6892_v44 = vadd.f32 %v6851_v26, %v19219_v53  ;;  %v13625_v33 = vpop.f32.mrb[197].mxu1  ;;  %v14574_v53 = vld [vmem:[%s20361_s6 + $0x60] sm:$0xff]  }
 0x627   : > { %v6854_v52 = vpop.f32.mrb[198].mxu1  ;;  %13752 = vmatpush3.bf16.msra.mxu1 %v14574_v53 }
 0x628   : > { %v6893_v45 = vadd.f32 %v6854_v52, %v19222_v29  ;;  %v13626_v51 = vpop.f32.mrb[199].mxu1  ;;  %v19310_v49 = vadd.f32 %v19120_v39, %v6892_v44  ;;  %v14577_v39 = vld [vmem:[%s20361_s6 + $0x68] sm:$0xff]   ;;  %13753 = vmatprep.subr.bf16.mxu1 %v20461_v59 }
 0x62a   : > { %v19313_v55 = vadd.f32 %v19128_v0, %v6893_v45 }
 0x62b   : > { %13754 = vmatpush3.bf16.msra.mxu1 %v14577_v39 }
 0x62c   : > { %13755 = vmatprep.subr.bf16.mxu1 %v20461_v59 }
 0x62d   : > { %v6859_v28 = vpop.f32.mrb[200].mxu1 }
 0x62e   : > { %v6894_v63 = vadd.f32 %v6859_v28, %v19227_v57  ;;  %v13629_v27 = vpop.f32.mrb[201].mxu1  ;;  %v14581_v57 = vld [vmem:[%s20361_s6 + $0x70] sm:$0xff]  }
 0x62f   : > { %v6862_v29 = vpop.f32.mrb[202].mxu1  ;;  %13756 = vmatpush3.bf16.msra.mxu1 %v14581_v57 }
 0x630   : > { %v6895_v0 = vadd.f32 %v6862_v29, %v19230_v21  ;;  %v13630_v61 = vpop.f32.mrb[203].mxu1  ;;  %v19326_v50 = vadd.f32 %v19135_v31, %v6894_v63  ;;  %13757 = vmatprep.subr.bf16.mxu1 %v20461_v59 }
 0x632   : > { %v19329_v8 = vadd.f32 %v19143_v48, %v6895_v0 }
 0x635   : > { %v6867_v58 = vpop.f32.mrb[204].mxu1 }
 0x636   : > { %v6896_v22 = vadd.f32 %v6867_v58, %v19235_v35  ;;  %v13633_v41 = vpop.f32.mrb[205].mxu1 }
 0x637   : > { %v6870_v21 = vpop.f32.mrb[206].mxu1 }
 0x638   : > { %v6897_v31 = vadd.f32 %v6870_v21, %v19238_v32  ;;  %v13634_v12 = vpop.f32.mrb[207].mxu1  ;;  %v19339_v48 = vadd.f32 %v19150_v3, %v6896_v22  ;;  %v19355_v3 = vld [vmem:[%s20359_s4] ss:$0 sm:$0xff] }
 0x63a   : > { %v19342_v38 = vadd.f32 %v19158_v23, %v6897_v31 }
 0x63d   : > { %v6875_v17 = vpop.f32.mrb[208].mxu1 }
 0x63e   : > { %v6898_v56 = vadd.f32 %v6875_v17, %v19243_v60  ;;  %v13637_v36 = vpop.f32.mrb[209].mxu1 }
 0x63f   : > { %v6878_v18 = vpop.f32.mrb[210].mxu1 }
 0x640   : > { %v6899_v35 = vadd.f32 %v6878_v18, %v19246_v10  ;;  %v13638_v4 = vpop.f32.mrb[211].mxu1  ;;  %v19347_v16 = vadd.f32 %v20774_v1, %v6898_v56 }
 0x642   : > { %v19350_v32 = vadd.f32 %v20775_v54, %v6899_v35 }
 0x645   : > { %v7277_v23 = vpop.f32.mrb[212].mxu1 }
 0x646   : > { %v7348_v13 = vadd.f32 %v7277_v23, %v19251_v9  ;;  %v13709_v60 = vpop.f32.mrb[213].mxu1 }
 0x647   : > { %v7280_v40 = vpop.f32.mrb[214].mxu1 }
 0x648   : > { %v7372_v42 = vadd.f32 %v19355_v3, %v7348_v13  ;;  %v7349_v10 = vadd.f32 %v7280_v40, %v19254_v7  ;;  %v13710_v2 = vpop.f32.mrb[215].mxu1 }
 0x64a   : > { %v7373_v43 = vadd.f32 %v19355_v3, %v7349_v10  ;;  %14988 = vtanh.f32 %v7372_v42 }
 0x64c   : > { %14990 = vtanh.f32 %v7373_v43 }
 0x64d   : > { %v7285_v62 = vpop.f32.mrb[216].mxu1 }
 0x64e   : > { %v7350_v25 = vadd.f32 %v7285_v62, %v19259_v30  ;;  %v13713_v5 = vpop.f32.mrb[217].mxu1 }
 0x64f   : > { %v7288_v34 = vpop.f32.mrb[218].mxu1 }
 0x650   : > { %v7374_v47 = vadd.f32 %v19355_v3, %v7350_v25  ;;  %v7351_v9 = vadd.f32 %v7288_v34, %v19262_v24  ;;  %v13714_v26 = vpop.f32.mrb[219].mxu1 }
 0x652   : > { %v7375_v44 = vadd.f32 %v19355_v3, %v7351_v9  ;;  %14992 = vtanh.f32 %v7374_v47 }
 0x654   : > { %14994 = vtanh.f32 %v7375_v44  ;;  %v14989_v7 = vpop.eup %14988 }
 0x655   : > { %v7293_v33 = vpop.f32.mrb[220].mxu1 }
 0x656   : > { %v14991_v20 = vpop.eup %14990  ;;  %v7352_v52 = vadd.f32 %v7293_v33, %v19267_v19  ;;  %v13717_v45 = vpop.f32.mrb[221].mxu1 }
 0x657   : > { %v7296_v51 = vpop.f32.mrb[222].mxu1  ;;  %v7408_v53 = vpack.c.bf16 %v14991_v20, %v14989_v7 }
 0x658   : > { %v7376_v30 = vadd.f32 %v19355_v3, %v7352_v52  ;;  %v7353_v28 = vadd.f32 %v7296_v51, %v19270_v37  ;;  %v13718_v63 = vpop.f32.mrb[223].mxu1 }
 0x659   : > { %7443 = vmatpush1.bf16.msra.mxu0 %v7408_v53 }
 0x65a   : > { %v7377_v24 = vadd.f32 %v19355_v3, %v7353_v28  ;;  %7444 = vmatprep.subr.bf16.mxu0 %v15136_v14  ;;  %14996 = vtanh.f32 %v7376_v30 }
 0x65c   : > { %14998 = vtanh.f32 %v7377_v24  ;;  %v14993_v27 = vpop.eup %14992 }
 0x65d   : > { %v7301_v39 = vpop.f32.mrb[224].mxu1 }
 0x65e   : > { %v14995_v29 = vpop.eup %14994  ;;  %v7354_v19 = vadd.f32 %v7301_v39, %v19275_v46  ;;  %v13721_v0 = vpop.f32.mrb[225].mxu1 }
 0x65f   : > { %v7304_v61 = vpop.f32.mrb[226].mxu1  ;;  %v7409_v57 = vpack.c.bf16 %v14995_v29, %v14993_v27 }
 0x660   : > { %v7378_v58 = vadd.f32 %v19355_v3, %v7354_v19  ;;  %v7355_v37 = vadd.f32 %v7304_v61, %v19281_v11  ;;  %v13722_v22 = vpop.f32.mrb[227].mxu1 }
 0x661   : > { %7445 = vmatpush1.bf16.msra.mxu0 %v7409_v57 }
 0x662   : > { %v7379_v41 = vadd.f32 %v19355_v3, %v7355_v37  ;;  %7446 = vmatprep.subr.bf16.mxu0 %v15136_v14  ;;  %15000 = vtanh.f32 %v7378_v58 }
 0x664   : > { %15002 = vtanh.f32 %v7379_v41  ;;  %v14997_v21 = vpop.eup %14996 }
 0x665   : > { %v7309_v31 = vpop.f32.mrb[228].mxu1 }
 0x666   : > { %v14999_v12 = vpop.eup %14998  ;;  %v7356_v46 = vadd.f32 %v7309_v31, %v19294_v15  ;;  %v13725_v17 = vpop.f32.mrb[229].mxu1  ;;  %v14584_v31 = vld [vmem:[%s20360_s5 + $0x14] ss:$8 sps:$4 sm:$0xff]  }
 0x667   : > { %v7312_v56 = vpop.f32.mrb[230].mxu1  ;;  %v7410_v36 = vpack.c.bf16 %v14999_v12, %v14997_v21  ;;  %v14582_v12 = vld [vmem:[%s20360_s5 + $0x10] ss:$8 sps:$4 sm:$0xff]  }
 0x668   : > { %v7380_v18 = vadd.f32 %v19355_v3, %v7356_v46  ;;  %v7357_v11 = vadd.f32 %v7312_v56, %v19297_v6  ;;  %v13726_v35 = vpop.f32.mrb[231].mxu1  ;;  %v14576_v46 = vld [vmem:[%s20361_s6 + $0x10] sm:$0xff]   ;;  %v14578_v17 = vld [vmem:[%s20361_s6 + $0x18] sm:$0xff]   ;;  %v14579_v56 = vld [vmem:[%s20361_s6 + $0x20] sm:$0xff]  }
 0x669   : > { %7447 = vmatpush1.bf16.msra.mxu0 %v7410_v36  ;;  %v14580_v36 = vld [vmem:[%s20361_s6 + $0x28] sm:$0xff]   ;;  %v14587_v35 = vld [vmem:[%s20361_s6 + $0x78] sm:$0xff]  }
 0x66a   : > { %v7381_v4 = vadd.f32 %v19355_v3, %v7357_v11  ;;  %7448 = vmatprep.subr.bf16.mxu0 %v15136_v14  ;;  %15004 = vtanh.f32 %v7380_v18  ;;  %v14585_v18 = vld [vmem:[%s20361_s6 + $0x30] sm:$0xff]   ;;  %v14586_v11 = vld [vmem:[%s20361_s6 + $0x38] sm:$0xff]   ;;  %13758 = vmatpush3.bf16.msra.mxu1 %v14587_v35 }
 0x66b   : > { %13783 = vmatprep.subr.bf16.mxu1 %v20461_v59  ;;  %v14635_v35 = vld [vmem:[%s20361_s6 + $0x1b8] sm:$0xff]  }
 0x66c   : > { %15006 = vtanh.f32 %v7381_v4  ;;  %v15001_v1 = vpop.eup %15000 }
 0x66d   : > { %v7317_v54 = vpop.f32.mrb[232].mxu1 }
 0x66e   : > { %v15003_v23 = vpop.eup %15002  ;;  %v7358_v15 = vadd.f32 %v7317_v54, %v19310_v49  ;;  %v13729_v13 = vpop.f32.mrb[233].mxu1 }
 0x66f   : > { %v7320_v60 = vpop.f32.mrb[234].mxu1  ;;  %v7411_v40 = vpack.c.bf16 %v15003_v23, %v15001_v1  ;;  %v14588_v23 = vld [vmem:[%s20361_s6 + $0xc0] sm:$0xff]  }
 0x670   : > { %v7382_v42 = vadd.f32 %v19355_v3, %v7358_v15  ;;  %v7359_v6 = vadd.f32 %v7320_v60, %v19313_v55  ;;  %v13730_v10 = vpop.f32.mrb[235].mxu1  ;;  %v14589_v60 = vld [vmem:[%s20361_s6 + $0x80] sm:$0xff]  }
 0x671   : > { %7449 = vmatpush1.bf16.msra.mxu0 %v7411_v40  ;;  %v14592_v10 = vld [vmem:[%s20361_s6 + $0xd0] sm:$0xff]  }
 0x672   : > { %v7383_v2 = vadd.f32 %v19355_v3, %v7359_v6  ;;  %7450 = vmatprep.subr.bf16.mxu0 %v15136_v14  ;;  %15008 = vtanh.f32 %v7382_v42  ;;  %v14590_v42 = vld [vmem:[%s20361_s6 + $0xc8] sm:$0xff]  }
 0x673   : > { %v14591_v6 = vld [vmem:[%s20361_s6 + $0x88] sm:$0xff]  }
 0x674   : > { %15010 = vtanh.f32 %v7383_v2  ;;  %v15005_v43 = vpop.eup %15004  ;;  %v14593_v2 = vld [vmem:[%s20361_s6 + $0x90] sm:$0xff]  }
 0x675   : > { %v7325_v62 = vpop.f32.mrb[236].mxu1 }
 0x676   : > { %v15007_v25 = vpop.eup %15006  ;;  %v7360_v49 = vadd.f32 %v7325_v62, %v19326_v50  ;;  %v13733_v5 = vpop.f32.mrb[237].mxu1  ;;  %v14595_v62 = vld [vmem:[%s20361_s6 + $0x98] sm:$0xff]  }
 0x677   : > { %v7328_v34 = vpop.f32.mrb[238].mxu1  ;;  %v7412_v47 = vpack.c.bf16 %v15007_v25, %v15005_v43  ;;  %v14594_v43 = vld [vmem:[%s20361_s6 + $0xd8] sm:$0xff]   ;;  %v14596_v25 = vld [vmem:[%s20361_s6 + $0xe0] sm:$0xff]   ;;  %v14598_v5 = vld [vmem:[%s20361_s6 + $0xe8] sm:$0xff]  }
 0x678   : > { %v7384_v9 = vadd.f32 %v19355_v3, %v7360_v49  ;;  %v7361_v55 = vadd.f32 %v7328_v34, %v19329_v8  ;;  %v13734_v26 = vpop.f32.mrb[239].mxu1  ;;  %v14597_v49 = vld [vmem:[%s20361_s6 + $0xa0] sm:$0xff]   ;;  %v14599_v34 = vld [vmem:[%s20361_s6 + $0xa8] sm:$0xff]  }
 0x679   : > { %7451 = vmatpush1.bf16.msra.mxu0 %v7412_v47  ;;  %v14600_v47 = vld [vmem:[%s20361_s6 + $0xf0] sm:$0xff]   ;;  %v14603_v26 = vld [vmem:[%s20361_s6 + $0xb8] sm:$0xff]  }
 0x67a   : > { %v7385_v44 = vadd.f32 %v19355_v3, %v7361_v55  ;;  %7452 = vmatprep.subr.bf16.mxu0 %v15136_v14  ;;  %15012 = vtanh.f32 %v7384_v9  ;;  %v14601_v9 = vld [vmem:[%s20361_s6 + $0xb0] sm:$0xff]   ;;  %v14602_v55 = vld [vmem:[%s20361_s6 + $0xf8] sm:$0xff]  }
 0x67c   : > { %15014 = vtanh.f32 %v7385_v44  ;;  %v15009_v7 = vpop.eup %15008  ;;  %v14604_v44 = vld [vmem:[%s20361_s6 + $0x140] sm:$0xff]  }
 0x67d   : > { %v7333_v33 = vpop.f32.mrb[240].mxu1 }
 0x67e   : > { %v15011_v20 = vpop.eup %15010  ;;  %v7362_v50 = vadd.f32 %v7333_v33, %v19339_v48  ;;  %v13737_v52 = vpop.f32.mrb[241].mxu1  ;;  %v14605_v33 = vld [vmem:[%s20361_s6 + $0x100] sm:$0xff]  }
 0x67f   : > { %v7336_v45 = vpop.f32.mrb[242].mxu1  ;;  %v7413_v51 = vpack.c.bf16 %v15011_v20, %v15009_v7  ;;  %v14607_v52 = vld [vmem:[%s20361_s6 + $0x108] sm:$0xff]  }
 0x680   : > { %v7386_v53 = vadd.f32 %v19355_v3, %v7362_v50  ;;  %v7363_v8 = vadd.f32 %v7336_v45, %v19342_v38  ;;  %v13738_v30 = vpop.f32.mrb[243].mxu1  ;;  %v14606_v50 = vld [vmem:[%s20361_s6 + $0x148] sm:$0xff]   ;;  %v14608_v45 = vld [vmem:[%s20361_s6 + $0x150] sm:$0xff]  }
 0x681   : > { %7453 = vmatpush1.bf16.msra.mxu0 %v7413_v51  ;;  %v14609_v51 = vld [vmem:[%s20361_s6 + $0x110] sm:$0xff]   ;;  %v14612_v30 = vld [vmem:[%s20361_s6 + $0x160] sm:$0xff]  }
 0x682   : > { %v7387_v28 = vadd.f32 %v19355_v3, %v7363_v8  ;;  %7454 = vmatprep.subr.bf16.mxu0 %v15136_v14  ;;  %15016 = vtanh.f32 %v7386_v53  ;;  %v14610_v53 = vld [vmem:[%s20361_s6 + $0x158] sm:$0xff]  }
 0x683   : > { %v14611_v8 = vld [vmem:[%s20361_s6 + $0x118] sm:$0xff]  }
 0x684   : > { %15018 = vtanh.f32 %v7387_v28  ;;  %v15013_v63 = vpop.eup %15012  ;;  %v14613_v28 = vld [vmem:[%s20361_s6 + $0x120] sm:$0xff]  }
 0x685   : > { %v7341_v24 = vpop.f32.mrb[244].mxu1 }
 0x686   : > { %v15015_v27 = vpop.eup %15014  ;;  %v7364_v48 = vadd.f32 %v7341_v24, %v19347_v16  ;;  %v13741_v39 = vpop.f32.mrb[245].mxu1  ;;  %v14615_v24 = vld [vmem:[%s20361_s6 + $0x128] sm:$0xff]  }
 0x687   : > { %v7344_v29 = vpop.f32.mrb[246].mxu1  ;;  %v7414_v19 = vpack.c.bf16 %v15015_v27, %v15013_v63  ;;  %v14614_v63 = vld [vmem:[%s20361_s6 + $0x168] sm:$0xff]   ;;  %v14616_v27 = vld [vmem:[%s20361_s6 + $0x170] sm:$0xff]   ;;  %v14618_v39 = vld [vmem:[%s20361_s6 + $0x178] sm:$0xff]  }
 0x688   : > { %v7388_v0 = vadd.f32 %v19355_v3, %v7364_v48  ;;  %v7365_v38 = vadd.f32 %v7344_v29, %v19350_v32  ;;  %v13742_v61 = vpop.f32.mrb[247].mxu1  ;;  %v14566_v32 = vld [vmem:[%s20360_s5] ss:$8 sps:$4 sm:$0xff]   ;;  %v14617_v48 = vld [vmem:[%s20361_s6 + $0x130] sm:$0xff]   ;;  %v14619_v29 = vld [vmem:[%s20361_s6 + $0x138] sm:$0xff]  }
 0x689   : > { %7455 = vmatpush1.bf16.msra.mxu0 %v7414_v19  ;;  %v14620_v19 = vld [vmem:[%s20361_s6 + $0x1c0] sm:$0xff]  }
 0x68a   : > { %v7389_v57 = vadd.f32 %v19355_v3, %v7365_v38  ;;  %7456 = vmatprep.subr.bf16.mxu0 %v15136_v14  ;;  %15020 = vtanh.f32 %v7388_v0  ;;  %v14573_v3 = vld [vmem:[%s20361_s6] sm:$0xff]  }
 0x68b   : > { %v14621_v38 = vld [vmem:[%s20361_s6 + $0x180] sm:$0xff]  }
 0x68c   : > { %15022 = vtanh.f32 %v7389_v57  ;;  %v15017_v58 = vpop.eup %15016  ;;  %v14622_v57 = vld [vmem:[%s20361_s6 + $0x1c8] sm:$0xff]  }
 0x68e   : > { %v15019_v37 = vpop.eup %15018 }
 0x68f   : > { %v7415_v22 = vpack.c.bf16 %v15019_v37, %v15017_v58  ;;  %v14623_v58 = vld [vmem:[%s20361_s6 + $0x188] sm:$0xff]   ;;  %v14624_v37 = vld [vmem:[%s20361_s6 + $0x1d0] sm:$0xff]  }
 0x691   : > { %7457 = vmatpush1.bf16.msra.mxu0 %v7415_v22  ;;  %v14625_v22 = vld [vmem:[%s20361_s6 + $0x190] sm:$0xff]  }
 0x692   : > { %7458 = vmatprep.subr.bf16.mxu0 %v15136_v14  ;;  %v14575_v14 = vld [vmem:[%s20361_s6 + $0x8] sm:$0xff]  }
 0x694   : > { %v15021_v16 = vpop.eup %15020 }
 0x696   : > { %v15023_v41 = vpop.eup %15022 }
 0x697   : > { %v7416_v21 = vpack.c.bf16 %v15023_v41, %v15021_v16  ;;  %v14626_v16 = vld [vmem:[%s20361_s6 + $0x1d8] sm:$0xff]  }
 0x698   : > { %v14627_v41 = vld [vmem:[%s20361_s6 + $0x198] sm:$0xff]  }
 0x699   : > { %7459 = vmatpush1.bf16.msra.mxu0 %v7416_v21  ;;  %v14628_v21 = vld [vmem:[%s20361_s6 + $0x1e0] sm:$0xff]  }
 0x69a   : > { %13763 = vmatprep.subr.bf16.mxu0 %v20461_v59 }
 0x69c   : > { %7475 = vmatmul.mubr.bf16.vlgmr.msra.gmra.mrb[244].mxu0 %v14566_v32  ;;  %v14629_v32 = vld [vmem:[%s20361_s6 + $0x1a0] sm:$0xff]  }
 0x69d   : > { %13764 = vmatpush3.bf16.msra.mxu0 %v14573_v3  ;;  %11008 = vmatprep.mubr.msk.bf16.mxu0 %vm7435_vm13, %v14584_v31 }
 0x69e   : > { %13765 = vmatprep.subr.bf16.mxu0 %v20461_v59 }
 0x6a1   : > { %13766 = vmatpush3.bf16.msra.mxu0 %v14575_v14  ;;  %v14630_v14 = vld [vmem:[%s20361_s6 + $0x1e8] sm:$0xff]  }
 0x6a2   : > { %13767 = vmatprep.subr.bf16.mxu0 %v20461_v59 }
 0x6a4   : > { %7483 = vmatmul.mubr.bf16.gmra.mrb[248].mxu0 %v14582_v12 }
 0x6a5   : > { %13768 = vmatpush3.bf16.msra.mxu0 %v14576_v46  ;;  %13779 = vmatprep.mubr.msk.bf16.mxu0 %vm15135_vm0, %v20461_v59 }
 0x6a6   : > { %13769 = vmatprep.subr.bf16.mxu0 %v20461_v59 }
 0x6a9   : > { %13770 = vmatpush3.bf16.msra.mxu0 %v14578_v17 }
 0x6aa   : > { %13771 = vmatprep.subr.bf16.mxu0 %v20461_v59 }
 0x6ad   : > { %13772 = vmatpush3.bf16.msra.mxu0 %v14579_v56  ;;  %v14631_v56 = vld [vmem:[%s20361_s6 + $0x1a8] sm:$0xff]  }
 0x6ae   : > { %13773 = vmatprep.subr.bf16.mxu0 %v20461_v59 }
 0x6b1   : > { %13774 = vmatpush3.bf16.msra.mxu0 %v14580_v36  ;;  %v14632_v36 = vld [vmem:[%s20361_s6 + $0x1f0] sm:$0xff]  }
 0x6b2   : > { %13775 = vmatprep.subr.bf16.mxu0 %v20461_v59 }
 0x6b5   : > { %13776 = vmatpush3.bf16.msra.mxu0 %v14585_v18  ;;  %v14633_v18 = vld [vmem:[%s20361_s6 + $0x1b0] sm:$0xff]  }
 0x6b6   : > { %13777 = vmatprep.subr.bf16.mxu0 %v20461_v59 }
 0x6b9   : > { %13778 = vmatpush3.bf16.msra.mxu0 %v14586_v11  ;;  %v14634_v11 = vld [vmem:[%s20361_s6 + $0x1f8] sm:$0xff]  }
 0x6ba   : > { %13803 = vmatprep.subr.bf16.mxu0 %v20461_v59 }
 0x76f   : > { %v7476_v4 = vpop.f32.mrb[244].mxu0 }
 0x770   : > { %v7478_v1 = vpop.f32.mrb[245].mxu0 }
 0x771   : > { %v7479_v54 = vpop.f32.mrb[246].mxu0 }
 0x772   : > { %v19453_v15 = vpack.c.bf16 %v7479_v54, %v7476_v4  ;;  %v7481_v13 = vpop.f32.mrb[247].mxu0  ;;  %v14636_v4 = vld [vmem:[%s20361_s6 + $0x240] sm:$0xff]  }
 0x773   : > { %v14637_v54 = vld [vmem:[%s20361_s6 + $0x200] sm:$0xff]   ;;  %v14638_v13 = vld [vmem:[%s20361_s6 + $0x248] sm:$0xff]  }
 0x774   : > { %13780 = vmatmul.mubr.bf16.vlgmr.msra.gmra.mrb[252].mxu0 %v19453_v15  ;;  %v19460_v40 = vshrl.u32 %v19453_v15, 16  ;;  %v7724_v20 = vrot.slane %v19453_v15, 1  ;;  %v7940_v61 = vrot.slane %v19453_v15, 2 }
 0x775   : > { %13804 = vmatpush3.bf16.msra.mxu0 %v14588_v23  ;;  %13819 = vmatprep.mubr.msk.bf16.mxu0 %vm15135_vm0, %v20461_v59  ;;  %v8156_v23 = vrot.slane %v19453_v15, 3 }
 0x776   : > { %13760 = vmatmul.mubr.bf16.vlgmr.msra.gmra.mrb[248].mxu1 %v19460_v40  ;;  %13805 = vmatprep.subr.bf16.mxu0 %v20461_v59  ;;  %v7832_v7 = vrot.slane %v19460_v40, 1  ;;  %v8048_v0 = vrot.slane %v19460_v40, 2  ;;  %v8264_v1 = vrot.slane %v19460_v40, 3 }
 0x777   : > { %13784 = vmatpush3.bf16.msra.mxu1 %v14589_v60  ;;  %13799 = vmatprep.mubr.msk.bf16.mxu1 %vm15135_vm0, %v20461_v59  ;;  %v7484_v3 = vpop.f32.mrb[248].mxu0  ;;  %v14639_v60 = vld [vmem:[%s20361_s6 + $0x208] sm:$0xff]  }
 0x778   : > { %13785 = vmatprep.subr.bf16.mxu1 %v20461_v59  ;;  %v7486_v31 = vpop.f32.mrb[249].mxu0 }
 0x779   : > { %13806 = vmatpush3.bf16.msra.mxu0 %v14590_v42  ;;  %v7487_v12 = vpop.f32.mrb[250].mxu0  ;;  %v14640_v42 = vld [vmem:[%s20361_s6 + $0x250] sm:$0xff]  }
 0x77a   : > { %13807 = vmatprep.subr.bf16.mxu0 %v20461_v59  ;;  %v19643_v46 = vpack.c.bf16 %v7487_v12, %v7484_v3  ;;  %v7489_v17 = vpop.f32.mrb[251].mxu0  ;;  %v14680_v3 = vld [vmem:[%s20361_s6 + $0x370] sm:$0xff]   ;;  %v14683_v12 = vld [vmem:[%s20361_s6 + $0x338] sm:$0xff]  }
 0x77b   : > { %13786 = vmatpush3.bf16.msra.mxu1 %v14591_v6  ;;  %v14641_v6 = vld [vmem:[%s20361_s6 + $0x210] sm:$0xff]   ;;  %v14684_v17 = vld [vmem:[%s20361_s6 + $0x3c0] sm:$0xff]  }
 0x77c   : > { %13787 = vmatprep.subr.bf16.mxu1 %v20461_v59  ;;  %v14681_v31 = vld [vmem:[%s20361_s6 + $0x330] sm:$0xff]  }
 0x77d   : > { %13808 = vmatpush3.bf16.msra.mxu0 %v14592_v10  ;;  %v14642_v10 = vld [vmem:[%s20361_s6 + $0x258] sm:$0xff]  }
 0x77e   : > { %13809 = vmatprep.subr.bf16.mxu0 %v20461_v59 }
 0x77f   : > { %13788 = vmatpush3.bf16.msra.mxu1 %v14593_v2  ;;  %v14643_v2 = vld [vmem:[%s20361_s6 + $0x218] sm:$0xff]  }
 0x780   : > { %13789 = vmatprep.subr.bf16.mxu1 %v20461_v59 }
 0x781   : > { %13810 = vmatpush3.bf16.msra.mxu0 %v14594_v43  ;;  %v14644_v43 = vld [vmem:[%s20361_s6 + $0x260] sm:$0xff]  }
 0x782   : > { %13811 = vmatprep.subr.bf16.mxu0 %v20461_v59 }
 0x783   : > { %13790 = vmatpush3.bf16.msra.mxu1 %v14595_v62  ;;  %v14645_v62 = vld [vmem:[%s20361_s6 + $0x220] sm:$0xff]  }
 0x784   : > { %13791 = vmatprep.subr.bf16.mxu1 %v20461_v59 }
 0x785   : > { %13812 = vmatpush3.bf16.msra.mxu0 %v14596_v25  ;;  %v14646_v25 = vld [vmem:[%s20361_s6 + $0x268] sm:$0xff]  }
 0x786   : > { %13813 = vmatprep.subr.bf16.mxu0 %v20461_v59 }
 0x787   : > { %13792 = vmatpush3.bf16.msra.mxu1 %v14597_v49  ;;  %v14647_v49 = vld [vmem:[%s20361_s6 + $0x228] sm:$0xff]  }
 0x788   : > { %13793 = vmatprep.subr.bf16.mxu1 %v20461_v59 }
 0x789   : > { %13814 = vmatpush3.bf16.msra.mxu0 %v14598_v5  ;;  %v14648_v5 = vld [vmem:[%s20361_s6 + $0x270] sm:$0xff]  }
 0x78a   : > { %13815 = vmatprep.subr.bf16.mxu0 %v20461_v59 }
 0x78b   : > { %13794 = vmatpush3.bf16.msra.mxu1 %v14599_v34  ;;  %v14649_v34 = vld [vmem:[%s20361_s6 + $0x230] sm:$0xff]  }
 0x78c   : > { %13795 = vmatprep.subr.bf16.mxu1 %v20461_v59 }
 0x78d   : > { %13816 = vmatpush3.bf16.msra.mxu0 %v14600_v47  ;;  %v14650_v47 = vld [vmem:[%s20361_s6 + $0x278] sm:$0xff]  }
 0x78e   : > { %13817 = vmatprep.subr.bf16.mxu0 %v20461_v59 }
 0x78f   : > { %13796 = vmatpush3.bf16.msra.mxu1 %v14601_v9  ;;  %v14651_v9 = vld [vmem:[%s20361_s6 + $0x238] sm:$0xff]  }
 0x790   : > { %13797 = vmatprep.subr.bf16.mxu1 %v20461_v59 }
 0x791   : > { %13818 = vmatpush3.bf16.msra.mxu0 %v14602_v55  ;;  %v14652_v55 = vld [vmem:[%s20361_s6 + $0x2c0] sm:$0xff]  }
 0x792   : > { %13843 = vmatprep.subr.bf16.mxu0 %v20461_v59 }
 0x793   : > { %13798 = vmatpush3.bf16.msra.mxu1 %v14603_v26  ;;  %v8480_v26 = vrot.slane %v19460_v40, 4 }
 0x794   : > { %13820 = vmatmul.mubr.bf16.vlgmr.msra.gmra.mrb[0].mxu0 %v7832_v7  ;;  %13823 = vmatprep.subr.bf16.mxu1 %v20461_v59  ;;  %v8372_v7 = vrot.slane %v19453_v15, 4 }
 0x795   : > { %13844 = vmatpush3.bf16.msra.mxu0 %v14604_v44  ;;  %13859 = vmatprep.mubr.msk.bf16.mxu0 %vm15135_vm0, %v20461_v59  ;;  %v14653_v44 = vld [vmem:[%s20361_s6 + $0x280] sm:$0xff]  }
 0x796   : > { %13800 = vmatmul.mubr.bf16.vlgmr.msra.gmra.mrb[252].mxu1 %v7724_v20  ;;  %13845 = vmatprep.subr.bf16.mxu0 %v20461_v59  ;;  %v14655_v20 = vld [vmem:[%s20361_s6 + $0x288] sm:$0xff]  }
 0x797   : > { %13824 = vmatpush3.bf16.msra.mxu1 %v14605_v33  ;;  %13839 = vmatprep.mubr.msk.bf16.mxu1 %vm15135_vm0, %v20461_v59  ;;  %v14654_v33 = vld [vmem:[%s20361_s6 + $0x2c8] sm:$0xff]  }
 0x798   : > { %13825 = vmatprep.subr.bf16.mxu1 %v20461_v59 }
 0x799   : > { %13846 = vmatpush3.bf16.msra.mxu0 %v14606_v50  ;;  %v14656_v50 = vld [vmem:[%s20361_s6 + $0x2d0] sm:$0xff]  }
 0x79a   : > { %13847 = vmatprep.subr.bf16.mxu0 %v20461_v59 }
 0x79b   : > { %13826 = vmatpush3.bf16.msra.mxu1 %v14607_v52  ;;  %v14657_v52 = vld [vmem:[%s20361_s6 + $0x290] sm:$0xff]  }
 0x79c   : > { %13827 = vmatprep.subr.bf16.mxu1 %v20461_v59 }
 0x79d   : > { %13848 = vmatpush3.bf16.msra.mxu0 %v14608_v45  ;;  %v14658_v45 = vld [vmem:[%s20361_s6 + $0x2d8] sm:$0xff]  }
 0x79e   : > { %13849 = vmatprep.subr.bf16.mxu0 %v20461_v59 }
 0x79f   : > { %13828 = vmatpush3.bf16.msra.mxu1 %v14609_v51  ;;  %v14659_v51 = vld [vmem:[%s20361_s6 + $0x298] sm:$0xff]  }
 0x7a0   : > { %13829 = vmatprep.subr.bf16.mxu1 %v20461_v59 }
 0x7a1   : > { %13850 = vmatpush3.bf16.msra.mxu0 %v14610_v53  ;;  %v14660_v53 = vld [vmem:[%s20361_s6 + $0x2e0] sm:$0xff]  }
 0x7a2   : > { %13851 = vmatprep.subr.bf16.mxu0 %v20461_v59 }
 0x7a3   : > { %13830 = vmatpush3.bf16.msra.mxu1 %v14611_v8  ;;  %v14661_v8 = vld [vmem:[%s20361_s6 + $0x2a0] sm:$0xff]  }
 0x7a4   : > { %13831 = vmatprep.subr.bf16.mxu1 %v20461_v59 }
 0x7a5   : > { %13852 = vmatpush3.bf16.msra.mxu0 %v14612_v30  ;;  %v14662_v30 = vld [vmem:[%s20361_s6 + $0x2e8] sm:$0xff]  }
 0x7a6   : > { %13853 = vmatprep.subr.bf16.mxu0 %v20461_v59 }
 0x7a7   : > { %13832 = vmatpush3.bf16.msra.mxu1 %v14613_v28  ;;  %v14663_v28 = vld [vmem:[%s20361_s6 + $0x2a8] sm:$0xff]  }
 0x7a8   : > { %13833 = vmatprep.subr.bf16.mxu1 %v20461_v59 }
 0x7a9   : > { %13854 = vmatpush3.bf16.msra.mxu0 %v14614_v63  ;;  %v14664_v63 = vld [vmem:[%s20361_s6 + $0x2f0] sm:$0xff]  }
 0x7aa   : > { %13855 = vmatprep.subr.bf16.mxu0 %v20461_v59 }
 0x7ab   : > { %13834 = vmatpush3.bf16.msra.mxu1 %v14615_v24  ;;  %v14665_v24 = vld [vmem:[%s20361_s6 + $0x2b0] sm:$0xff]  }
 0x7ac   : > { %13835 = vmatprep.subr.bf16.mxu1 %v20461_v59 }
 0x7ad   : > { %13856 = vmatpush3.bf16.msra.mxu0 %v14616_v27  ;;  %v14666_v27 = vld [vmem:[%s20361_s6 + $0x2f8] sm:$0xff]  }
 0x7ae   : > { %13857 = vmatprep.subr.bf16.mxu0 %v20461_v59 }
 0x7af   : > { %13836 = vmatpush3.bf16.msra.mxu1 %v14617_v48  ;;  %v14667_v48 = vld [vmem:[%s20361_s6 + $0x2b8] sm:$0xff]  }
 0x7b0   : > { %13837 = vmatprep.subr.bf16.mxu1 %v20461_v59 }
 0x7b1   : > { %13858 = vmatpush3.bf16.msra.mxu0 %v14618_v39  ;;  %v14668_v39 = vld [vmem:[%s20361_s6 + $0x340] sm:$0xff]  }
 0x7b2   : > { %13883 = vmatprep.subr.bf16.mxu0 %v20461_v59 }
 0x7b3   : > { %13838 = vmatpush3.bf16.msra.mxu1 %v14619_v29  ;;  %v8696_v29 = vrot.slane %v19460_v40, 5 }
 0x7b4   : > { %13860 = vmatmul.mubr.bf16.vlgmr.msra.gmra.mrb[4].mxu0 %v8048_v0  ;;  %13863 = vmatprep.subr.bf16.mxu1 %v20461_v59  ;;  %v8588_v0 = vrot.slane %v19453_v15, 5 }
 0x7b5   : > { %13884 = vmatpush3.bf16.msra.mxu0 %v14620_v19  ;;  %13899 = vmatprep.mubr.msk.bf16.mxu0 %vm15135_vm0, %v20461_v59  ;;  %v14669_v19 = vld [vmem:[%s20361_s6 + $0x300] sm:$0xff]  }
 0x7b6   : > { %13840 = vmatmul.mubr.bf16.vlgmr.msra.gmra.mrb[0].mxu1 %v7940_v61  ;;  %13885 = vmatprep.subr.bf16.mxu0 %v20461_v59  ;;  %v14671_v61 = vld [vmem:[%s20361_s6 + $0x308] sm:$0xff]  }
 0x7b7   : > { %13864 = vmatpush3.bf16.msra.mxu1 %v14621_v38  ;;  %13879 = vmatprep.mubr.msk.bf16.mxu1 %vm15135_vm0, %v20461_v59  ;;  %v14670_v38 = vld [vmem:[%s20361_s6 + $0x348] sm:$0xff]  }
 0x7b8   : > { %13865 = vmatprep.subr.bf16.mxu1 %v20461_v59 }
 0x7b9   : > { %13886 = vmatpush3.bf16.msra.mxu0 %v14622_v57  ;;  %v14672_v57 = vld [vmem:[%s20361_s6 + $0x350] sm:$0xff]  }
 0x7ba   : > { %13887 = vmatprep.subr.bf16.mxu0 %v20461_v59 }
 0x7bb   : > { %13866 = vmatpush3.bf16.msra.mxu1 %v14623_v58  ;;  %v14673_v58 = vld [vmem:[%s20361_s6 + $0x310] sm:$0xff]  }
 0x7bc   : > { %13867 = vmatprep.subr.bf16.mxu1 %v20461_v59 }
 0x7bd   : > { %13888 = vmatpush3.bf16.msra.mxu0 %v14624_v37  ;;  %v14674_v37 = vld [vmem:[%s20361_s6 + $0x358] sm:$0xff]  }
 0x7be   : > { %13889 = vmatprep.subr.bf16.mxu0 %v20461_v59 }
 0x7bf   : > { %13868 = vmatpush3.bf16.msra.mxu1 %v14625_v22  ;;  %v14675_v22 = vld [vmem:[%s20361_s6 + $0x318] sm:$0xff]  }
 0x7c0   : > { %13869 = vmatprep.subr.bf16.mxu1 %v20461_v59 }
 0x7c1   : > { %13890 = vmatpush3.bf16.msra.mxu0 %v14626_v16  ;;  %v14676_v16 = vld [vmem:[%s20361_s6 + $0x360] sm:$0xff]  }
 0x7c2   : > { %13891 = vmatprep.subr.bf16.mxu0 %v20461_v59 }
 0x7c3   : > { %13870 = vmatpush3.bf16.msra.mxu1 %v14627_v41  ;;  %v14677_v41 = vld [vmem:[%s20361_s6 + $0x320] sm:$0xff]  }
 0x7c4   : > { %13871 = vmatprep.subr.bf16.mxu1 %v20461_v59 }
 0x7c5   : > { %13892 = vmatpush3.bf16.msra.mxu0 %v14628_v21  ;;  %v14678_v21 = vld [vmem:[%s20361_s6 + $0x368] sm:$0xff]  }
 0x7c6   : > { %13893 = vmatprep.subr.bf16.mxu0 %v20461_v59 }
 0x7c7   : > { %13872 = vmatpush3.bf16.msra.mxu1 %v14629_v32  ;;  %v14679_v32 = vld [vmem:[%s20361_s6 + $0x328] sm:$0xff]  }
 0x7c8   : > { %13873 = vmatprep.subr.bf16.mxu1 %v20461_v59 }
 0x7c9   : > { %13894 = vmatpush3.bf16.msra.mxu0 %v14630_v14  ;;  %v14682_v14 = vld [vmem:[%s20361_s6 + $0x378] sm:$0xff]  }
 0x7ca   : > { %13895 = vmatprep.subr.bf16.mxu0 %v20461_v59 }
 0x7cb   : > { %13874 = vmatpush3.bf16.msra.mxu1 %v14631_v56  ;;  %v8912_v56 = vrot.slane %v19460_v40, 6 }
 0x7cc   : > { %13875 = vmatprep.subr.bf16.mxu1 %v20461_v59 }
 0x7cd   : > { %13896 = vmatpush3.bf16.msra.mxu0 %v14632_v36  ;;  %v14685_v36 = vld [vmem:[%s20361_s6 + $0x380] sm:$0xff]  }
 0x7ce   : > { %13897 = vmatprep.subr.bf16.mxu0 %v20461_v59 }
 0x7cf   : > { %13876 = vmatpush3.bf16.msra.mxu1 %v14633_v18  ;;  %v8804_v18 = vrot.slane %v19453_v15, 6 }
 0x7d0   : > { %13877 = vmatprep.subr.bf16.mxu1 %v20461_v59 }
 0x7d1   : > { %13898 = vmatpush3.bf16.msra.mxu0 %v14634_v11  ;;  %v14686_v11 = vld [vmem:[%s20361_s6 + $0x3c8] sm:$0xff]  }
 0x7d2   : > { %13923 = vmatprep.subr.bf16.mxu0 %v20461_v59 }
 0x7d3   : > { %13878 = vmatpush3.bf16.msra.mxu1 %v14635_v35  ;;  %v14687_v35 = vld [vmem:[%s20361_s6 + $0x388] sm:$0xff]  }
 0x7d4   : > { %13900 = vmatmul.mubr.bf16.vlgmr.msra.gmra.mrb[8].mxu0 %v8264_v1  ;;  %13903 = vmatprep.subr.bf16.mxu1 %v20461_v59  ;;  %v14689_v1 = vld [vmem:[%s20361_s6 + $0x390] sm:$0xff]  }
 0x7d5   : > { %13924 = vmatpush3.bf16.msra.mxu0 %v14636_v4  ;;  %13939 = vmatprep.mubr.msk.bf16.mxu0 %vm15135_vm0, %v20461_v59  ;;  %v14688_v4 = vld [vmem:[%s20361_s6 + $0x3d0] sm:$0xff]  }
 0x7d6   : > { %13880 = vmatmul.mubr.bf16.vlgmr.msra.gmra.mrb[4].mxu1 %v8156_v23  ;;  %13925 = vmatprep.subr.bf16.mxu0 %v20461_v59  ;;  %v14691_v23 = vld [vmem:[%s20361_s6 + $0x398] sm:$0xff]  }
 0x7d7   : > { %13904 = vmatpush3.bf16.msra.mxu1 %v14637_v54  ;;  %13919 = vmatprep.mubr.msk.bf16.mxu1 %vm15135_vm0, %v20461_v59  ;;  %v14690_v54 = vld [vmem:[%s20361_s6 + $0x3d8] sm:$0xff]  }
 0x7d8   : > { %13905 = vmatprep.subr.bf16.mxu1 %v20461_v59 }
 0x7d9   : > { %13926 = vmatpush3.bf16.msra.mxu0 %v14638_v13  ;;  %v14692_v13 = vld [vmem:[%s20361_s6 + $0x3e0] sm:$0xff]  }
 0x7da   : > { %13927 = vmatprep.subr.bf16.mxu0 %v20461_v59 }
 0x7db   : > { %13906 = vmatpush3.bf16.msra.mxu1 %v14639_v60  ;;  %v14693_v60 = vld [vmem:[%s20361_s6 + $0x3a0] sm:$0xff]  }
 0x7dc   : > { %13907 = vmatprep.subr.bf16.mxu1 %v20461_v59 }
 0x7dd   : > { %13928 = vmatpush3.bf16.msra.mxu0 %v14640_v42  ;;  %v14694_v42 = vld [vmem:[%s20361_s6 + $0x3e8] sm:$0xff]  }
 0x7de   : > { %13929 = vmatprep.subr.bf16.mxu0 %v20461_v59 }
 0x7df   : > { %13908 = vmatpush3.bf16.msra.mxu1 %v14641_v6 }
 0x7e0   : > { %13909 = vmatprep.subr.bf16.mxu1 %v20461_v59 }
 0x7e1   : > { %13930 = vmatpush3.bf16.msra.mxu0 %v14642_v10  ;;  %v14695_v10 = vld [vmem:[%s20361_s6 + $0x3a8] sm:$0xff]  }
 0x7e2   : > { %13931 = vmatprep.subr.bf16.mxu0 %v20461_v59 }
 0x7e3   : > { %13910 = vmatpush3.bf16.msra.mxu1 %v14643_v2 }
 0x7e4   : > { %13911 = vmatprep.subr.bf16.mxu1 %v20461_v59 }
 0x7e5   : > { %13932 = vmatpush3.bf16.msra.mxu0 %v14644_v43 }
 0x7e6   : > { %13933 = vmatprep.subr.bf16.mxu0 %v20461_v59 }
 0x7e7   : > { %13912 = vmatpush3.bf16.msra.mxu1 %v14645_v62 }
 0x7e8   : > { %13913 = vmatprep.subr.bf16.mxu1 %v20461_v59 }
 0x7e9   : > { %13934 = vmatpush3.bf16.msra.mxu0 %v14646_v25  ;;  %v14696_v25 = vld [vmem:[%s20361_s6 + $0x3f0] sm:$0xff]  }
 0x7ea   : > { %13935 = vmatprep.subr.bf16.mxu0 %v20461_v59 }
 0x7eb   : > { %13914 = vmatpush3.bf16.msra.mxu1 %v14647_v49 }
 0x7ec   : > { %13915 = vmatprep.subr.bf16.mxu1 %v20461_v59 }
 0x7ed   : > { %13936 = vmatpush3.bf16.msra.mxu0 %v14648_v5 }
 0x7ee   : > { %13937 = vmatprep.subr.bf16.mxu0 %v20461_v59 }
 0x7ef   : > { %13916 = vmatpush3.bf16.msra.mxu1 %v14649_v34 }
 0x7f0   : > { %13917 = vmatprep.subr.bf16.mxu1 %v20461_v59 }
 0x7f1   : > { %13938 = vmatpush3.bf16.msra.mxu0 %v14650_v47 }
 0x7f2   : > { %13963 = vmatprep.subr.bf16.mxu0 %v20461_v59 }
 0x7f3   : > { %13918 = vmatpush3.bf16.msra.mxu1 %v14651_v9  ;;  %v14697_v9 = vld [vmem:[%s20361_s6 + $0x3b0] sm:$0xff]  }
 0x7f4   : > { %13940 = vmatmul.mubr.bf16.vlgmr.msra.gmra.mrb[12].mxu0 %v8480_v26  ;;  %13943 = vmatprep.subr.bf16.mxu1 %v20461_v59  ;;  %v14698_v26 = vld [vmem:[%s20361_s6 + $0x3f8] sm:$0xff]  }
 0x7f5   : > { %13964 = vmatpush3.bf16.msra.mxu0 %v14652_v55  ;;  %13979 = vmatprep.mubr.msk.bf16.mxu0 %vm15135_vm0, %v20461_v59 }
 0x7f6   : > { %13920 = vmatmul.mubr.bf16.vlgmr.msra.gmra.mrb[8].mxu1 %v8372_v7  ;;  %13965 = vmatprep.subr.bf16.mxu0 %v20461_v59  ;;  %v14700_v7 = vld [vmem:[%s20361_s6 + $0x440] sm:$0xff]  }
 0x7f7   : > { %13944 = vmatpush3.bf16.msra.mxu1 %v14653_v44  ;;  %13959 = vmatprep.mubr.msk.bf16.mxu1 %vm15135_vm0, %v20461_v59  ;;  %v14699_v44 = vld [vmem:[%s20361_s6 + $0x3b8] sm:$0xff]  }
 0x7f8   : > { %13945 = vmatprep.subr.bf16.mxu1 %v20461_v59 }
 0x7f9   : > { %13966 = vmatpush3.bf16.msra.mxu0 %v14654_v33  ;;  %v9128_v33 = vrot.slane %v19460_v40, 7  ;;  %v14703_v40 = vld [vmem:[%s20361_s6 + $0x408] sm:$0xff]  }
 0x7fa   : > { %13967 = vmatprep.subr.bf16.mxu0 %v20461_v59 }
 0x7fb   : > { %13946 = vmatpush3.bf16.msra.mxu1 %v14655_v20  ;;  %v14701_v20 = vld [vmem:[%s20361_s6 + $0x400] sm:$0xff]  }
 0x7fc   : > { %13947 = vmatprep.subr.bf16.mxu1 %v20461_v59 }
 0x7fd   : > { %13968 = vmatpush3.bf16.msra.mxu0 %v14656_v50  ;;  %v9020_v50 = vrot.slane %v19453_v15, 7  ;;  %v14704_v15 = vld [vmem:[%s20361_s6 + $0x450] sm:$0xff]  }
 0x7fe   : > { %13969 = vmatprep.subr.bf16.mxu0 %v20461_v59 }
 0x7ff   : > { %13948 = vmatpush3.bf16.msra.mxu1 %v14657_v52  ;;  %v14702_v52 = vld [vmem:[%s20361_s6 + $0x448] sm:$0xff]  }
 0x800   : > { %13949 = vmatprep.subr.bf16.mxu1 %v20461_v59 }
 0x801   : > { %13970 = vmatpush3.bf16.msra.mxu0 %v14658_v45  ;;  %v14705_v45 = vld [vmem:[%s20361_s6 + $0x410] sm:$0xff]  }
 0x802   : > { %13971 = vmatprep.subr.bf16.mxu0 %v20461_v59 }
 0x803   : > { %13950 = vmatpush3.bf16.msra.mxu1 %v14659_v51  ;;  %v14706_v51 = vld [vmem:[%s20361_s6 + $0x458] sm:$0xff]  }
 0x804   : > { %13951 = vmatprep.subr.bf16.mxu1 %v20461_v59 }
 0x805   : > { %13972 = vmatpush3.bf16.msra.mxu0 %v14660_v53  ;;  %v14707_v53 = vld [vmem:[%s20361_s6 + $0x418] sm:$0xff]  }
 0x806   : > { %13973 = vmatprep.subr.bf16.mxu0 %v20461_v59 }
 0x807   : > { %13952 = vmatpush3.bf16.msra.mxu1 %v14661_v8  ;;  %v14708_v8 = vld [vmem:[%s20361_s6 + $0x460] sm:$0xff]  }
 0x808   : > { %13953 = vmatprep.subr.bf16.mxu1 %v20461_v59 }
 0x809   : > { %13974 = vmatpush3.bf16.msra.mxu0 %v14662_v30  ;;  %v14709_v30 = vld [vmem:[%s20361_s6 + $0x420] sm:$0xff]  }
 0x80a   : > { %13975 = vmatprep.subr.bf16.mxu0 %v20461_v59 }
 0x80b   : > { %13954 = vmatpush3.bf16.msra.mxu1 %v14663_v28  ;;  %v14710_v28 = vld [vmem:[%s20361_s6 + $0x468] sm:$0xff]  }
 0x80c   : > { %13955 = vmatprep.subr.bf16.mxu1 %v20461_v59 }
 0x80d   : > { %13976 = vmatpush3.bf16.msra.mxu0 %v14664_v63 }
 0x80e   : > { %13977 = vmatprep.subr.bf16.mxu0 %v20461_v59 }
 0x80f   : > { %13956 = vmatpush3.bf16.msra.mxu1 %v14665_v24  ;;  %v14711_v24 = vld [vmem:[%s20361_s6 + $0x428] sm:$0xff]  }
 0x810   : > { %13957 = vmatprep.subr.bf16.mxu1 %v20461_v59 }
 0x811   : > { %13978 = vmatpush3.bf16.msra.mxu0 %v14666_v27 }
 0x812   : > { %14003 = vmatprep.subr.bf16.mxu0 %v20461_v59 }
 0x813   : > { %13958 = vmatpush3.bf16.msra.mxu1 %v14667_v48 }
 0x814   : > { %13980 = vmatmul.mubr.bf16.vlgmr.msra.gmra.mrb[16].mxu0 %v8696_v29  ;;  %13983 = vmatprep.subr.bf16.mxu1 %v20461_v59  ;;  %v14712_v29 = vld [vmem:[%s20361_s6 + $0x470] sm:$0xff]  }
 0x815   : > { %14004 = vmatpush3.bf16.msra.mxu0 %v14668_v39  ;;  %14019 = vmatprep.mubr.msk.bf16.mxu0 %vm15135_vm0, %v20461_v59 }
 0x816   : > { %13960 = vmatmul.mubr.bf16.vlgmr.msra.gmra.mrb[12].mxu1 %v8588_v0  ;;  %14005 = vmatprep.subr.bf16.mxu0 %v20461_v59 }
 0x817   : > { %13984 = vmatpush3.bf16.msra.mxu1 %v14669_v19  ;;  %13999 = vmatprep.mubr.msk.bf16.mxu1 %vm15135_vm0, %v20461_v59 }
 0x818   : > { %13985 = vmatprep.subr.bf16.mxu1 %v20461_v59 }
 0x819   : > { %14006 = vmatpush3.bf16.msra.mxu0 %v14670_v38 }
 0x81a   : > { %14007 = vmatprep.subr.bf16.mxu0 %v20461_v59 }
 0x81b   : > { %13986 = vmatpush3.bf16.msra.mxu1 %v14671_v61 }
 0x81c   : > { %13987 = vmatprep.subr.bf16.mxu1 %v20461_v59 }
 0x81d   : > { %14008 = vmatpush3.bf16.msra.mxu0 %v14672_v57  ;;  %v14713_v57 = vld [vmem:[%s20361_s6 + $0x430] sm:$0xff]  }
 0x81e   : > { %14009 = vmatprep.subr.bf16.mxu0 %v20461_v59 }
 0x81f   : > { %13988 = vmatpush3.bf16.msra.mxu1 %v14673_v58 }
 0x820   : > { %13989 = vmatprep.subr.bf16.mxu1 %v20461_v59 }
 0x821   : > { %14010 = vmatpush3.bf16.msra.mxu0 %v14674_v37 }
 0x822   : > { %14011 = vmatprep.subr.bf16.mxu0 %v20461_v59 }
 0x823   : > { %13990 = vmatpush3.bf16.msra.mxu1 %v14675_v22  ;;  %v14714_v22 = vld [vmem:[%s20361_s6 + $0x478] sm:$0xff]  }
 0x824   : > { %13991 = vmatprep.subr.bf16.mxu1 %v20461_v59 }
 0x825   : > { %14012 = vmatpush3.bf16.msra.mxu0 %v14676_v16  ;;  %v14715_v16 = vld [vmem:[%s20361_s6 + $0x438] sm:$0xff]  }
 0x826   : > { %14013 = vmatprep.subr.bf16.mxu0 %v20461_v59 }
 0x827   : > { %13992 = vmatpush3.bf16.msra.mxu1 %v14677_v41  ;;  %v14716_v41 = vld [vmem:[%s20361_s6 + $0x4c0] sm:$0xff]  }
 0x828   : > { %13993 = vmatprep.subr.bf16.mxu1 %v20461_v59 }
 0x829   : > { %14014 = vmatpush3.bf16.msra.mxu0 %v14678_v21  ;;  %v20022_v21 = vshrl.u32 %v19643_v46, 16 }
 0x82a   : > { %14015 = vmatprep.subr.bf16.mxu0 %v20461_v59 }
 0x82b   : > { %13994 = vmatpush3.bf16.msra.mxu1 %v14679_v32  ;;  %v14717_v32 = vld [vmem:[%s20361_s6 + $0x480] sm:$0xff]  }
 0x82c   : > { %13995 = vmatprep.subr.bf16.mxu1 %v20461_v59 }
 0x82d   : > { %14016 = vmatpush3.bf16.msra.mxu0 %v14680_v3  ;;  %v14718_v3 = vld [vmem:[%s20361_s6 + $0x4c8] sm:$0xff]  }
 0x82e   : > { %14017 = vmatprep.subr.bf16.mxu0 %v20461_v59 }
 0x82f   : > { %13996 = vmatpush3.bf16.msra.mxu1 %v14681_v31  ;;  %v14719_v31 = vld [vmem:[%s20361_s6 + $0x488] sm:$0xff]  }
 0x830   : > { %13997 = vmatprep.subr.bf16.mxu1 %v20461_v59 }
 0x831   : > { %14018 = vmatpush3.bf16.msra.mxu0 %v14682_v14  ;;  %v14720_v14 = vld [vmem:[%s20361_s6 + $0x4d0] sm:$0xff]  }
 0x832   : > { %14043 = vmatprep.subr.bf16.mxu0 %v20461_v59 }
 0x833   : > { %13998 = vmatpush3.bf16.msra.mxu1 %v14683_v12  ;;  %v14721_v12 = vld [vmem:[%s20361_s6 + $0x490] sm:$0xff]  }
 0x834   : > { %14020 = vmatmul.mubr.bf16.vlgmr.msra.gmra.mrb[20].mxu0 %v8912_v56  ;;  %14023 = vmatprep.subr.bf16.mxu1 %v20461_v59  ;;  %v14723_v56 = vld [vmem:[%s20361_s6 + $0x498] sm:$0xff]  }
 0x835   : > { %14044 = vmatpush3.bf16.msra.mxu0 %v14684_v17  ;;  %14059 = vmatprep.mubr.msk.bf16.mxu0 %vm15135_vm0, %v20461_v59  ;;  %v14722_v17 = vld [vmem:[%s20361_s6 + $0x4d8] sm:$0xff]  }
 0x836   : > { %14000 = vmatmul.mubr.bf16.vlgmr.msra.gmra.mrb[16].mxu1 %v8804_v18  ;;  %14045 = vmatprep.subr.bf16.mxu0 %v20461_v59  ;;  %v14725_v18 = vld [vmem:[%s20361_s6 + $0x4a0] sm:$0xff]  }
 0x837   : > { %14024 = vmatpush3.bf16.msra.mxu1 %v14685_v36  ;;  %14039 = vmatprep.mubr.msk.bf16.mxu1 %vm15135_vm0, %v20461_v59  ;;  %v14724_v36 = vld [vmem:[%s20361_s6 + $0x4e0] sm:$0xff]  }
 0x838   : > { %14025 = vmatprep.subr.bf16.mxu1 %v20461_v59 }
 0x839   : > { %14046 = vmatpush3.bf16.msra.mxu0 %v14686_v11  ;;  %v14726_v11 = vld [vmem:[%s20361_s6 + $0x4e8] sm:$0xff]  }
 0x83a   : > { %14047 = vmatprep.subr.bf16.mxu0 %v20461_v59 }
 0x83b   : > { %14026 = vmatpush3.bf16.msra.mxu1 %v14687_v35 }
 0x83c   : > { %14027 = vmatprep.subr.bf16.mxu1 %v20461_v59 }
 0x83d   : > { %14048 = vmatpush3.bf16.msra.mxu0 %v14688_v4  ;;  %v14727_v4 = vld [vmem:[%s20361_s6 + $0x4a8] sm:$0xff]  }
 0x83e   : > { %14049 = vmatprep.subr.bf16.mxu0 %v20461_v59 }
 0x83f   : > { %14028 = vmatpush3.bf16.msra.mxu1 %v14689_v1 }
 0x840   : > { %14029 = vmatprep.subr.bf16.mxu1 %v20461_v59 }
 0x841   : > { %14050 = vmatpush3.bf16.msra.mxu0 %v14690_v54 }
 0x842   : > { %14051 = vmatprep.subr.bf16.mxu0 %v20461_v59 }
 0x843   : > { %14030 = vmatpush3.bf16.msra.mxu1 %v14691_v23 }
 0x844   : > { %14031 = vmatprep.subr.bf16.mxu1 %v20461_v59 }
 0x845   : > { %14052 = vmatpush3.bf16.msra.mxu0 %v14692_v13  ;;  %v14728_v13 = vld [vmem:[%s20361_s6 + $0x4f0] sm:$0xff]  }
 0x846   : > { %14053 = vmatprep.subr.bf16.mxu0 %v20461_v59 }
 0x847   : > { %14032 = vmatpush3.bf16.msra.mxu1 %v14693_v60  ;;  %v7700_v6 = vpop.f32.mrb[252].mxu0 }
 0x848   : > { %v13781_v2 = vpop.f32.mrb[253].mxu0  ;;  %14033 = vmatprep.subr.bf16.mxu1 %v20461_v59 }
 0x849   : > { %14054 = vmatpush3.bf16.msra.mxu0 %v14694_v42  ;;  %v7612_v43 = vpop.f32.mrb[248].mxu1  ;;  %v7703_v62 = vpop.f32.mrb[254].mxu0  ;;  %v14729_v2 = vld [vmem:[%s20361_s6 + $0x4b0] sm:$0xff]  }
 0x84a   : > { %v19932_v49 = vadd.f32 %v7700_v6, %v7612_v43  ;;  %v13761_v5 = vpop.f32.mrb[249].mxu1  ;;  %v13782_v34 = vpop.f32.mrb[255].mxu0  ;;  %14055 = vmatprep.subr.bf16.mxu0 %v20461_v59 }
 0x84b   : > { %14034 = vmatpush3.bf16.msra.mxu1 %v14695_v10  ;;  %v7615_v47 = vpop.f32.mrb[250].mxu1  ;;  %v14732_v5 = vld [vmem:[%s20361_s6 + $0x540] sm:$0xff]   ;;  %v9561_v34 = vrot.slane %v20022_v21, 1 }
 0x84c   : > { %v13762_v55 = vpop.f32.mrb[251].mxu1  ;;  %14035 = vmatprep.subr.bf16.mxu1 %v20461_v59  ;;  %v14733_v47 = vld [vmem:[%s20361_s6 + $0x500] sm:$0xff]  }
 0x84d   : > { %14056 = vmatpush3.bf16.msra.mxu0 %v14696_v25  ;;  %v14730_v25 = vld [vmem:[%s20361_s6 + $0x4f8] sm:$0xff]   ;;  %v14734_v55 = vld [vmem:[%s20361_s6 + $0x548] sm:$0xff]  }
 0x84e   : > { %14057 = vmatprep.subr.bf16.mxu0 %v20461_v59 }
 0x84f   : > { %14036 = vmatpush3.bf16.msra.mxu1 %v14697_v9  ;;  %v9453_v9 = vrot.slane %v19643_v46, 1 }
 0x850   : > { %14037 = vmatprep.subr.bf16.mxu1 %v20461_v59 }
 0x851   : > { %14058 = vmatpush3.bf16.msra.mxu0 %v14698_v26  ;;  %v14735_v26 = vld [vmem:[%s20361_s6 + $0x508] sm:$0xff]  }
 0x852   : > { %14083 = vmatprep.subr.bf16.mxu0 %v20461_v59 }
 0x853   : > { %14038 = vmatpush3.bf16.msra.mxu1 %v14699_v44  ;;  %v14736_v44 = vld [vmem:[%s20361_s6 + $0x550] sm:$0xff]  }
 0x854   : > { %14060 = vmatmul.mubr.bf16.vlgmr.msra.gmra.mrb[24].mxu0 %v9128_v33  ;;  %14063 = vmatprep.subr.bf16.mxu1 %v20461_v59  ;;  %v14738_v33 = vld [vmem:[%s20361_s6 + $0x558] sm:$0xff]  }
 0x855   : > { %14084 = vmatpush3.bf16.msra.mxu0 %v14700_v7  ;;  %14099 = vmatprep.mubr.msk.bf16.mxu0 %vm15135_vm0, %v20461_v59  ;;  %v14737_v7 = vld [vmem:[%s20361_s6 + $0x510] sm:$0xff]  }
 0x856   : > { %14040 = vmatmul.mubr.bf16.vlgmr.msra.gmra.mrb[20].mxu1 %v9020_v50  ;;  %14085 = vmatprep.subr.bf16.mxu0 %v20461_v59  ;;  %v14740_v50 = vld [vmem:[%s20361_s6 + $0x560] sm:$0xff]  }
 0x857   : > { %14064 = vmatpush3.bf16.msra.mxu1 %v14701_v20  ;;  %14079 = vmatprep.mubr.msk.bf16.mxu1 %vm15135_vm0, %v20461_v59  ;;  %v14739_v20 = vld [vmem:[%s20361_s6 + $0x518] sm:$0xff]  }
 0x858   : > { %14065 = vmatprep.subr.bf16.mxu1 %v20461_v59 }
 0x859   : > { %14086 = vmatpush3.bf16.msra.mxu0 %v14702_v52  ;;  %v14741_v52 = vld [vmem:[%s20361_s6 + $0x520] sm:$0xff]  }
 0x85a   : > { %14087 = vmatprep.subr.bf16.mxu0 %v20461_v59 }
 0x85b   : > { %14066 = vmatpush3.bf16.msra.mxu1 %v14703_v40  ;;  %v14742_v40 = vld [vmem:[%s20361_s6 + $0x568] sm:$0xff]  }
 0x85c   : > { %14067 = vmatprep.subr.bf16.mxu1 %v20461_v59 }
 0x85d   : > { %14088 = vmatpush3.bf16.msra.mxu0 %v14704_v15 }
 0x85e   : > { %14089 = vmatprep.subr.bf16.mxu0 %v20461_v59 }
 0x85f   : > { %14068 = vmatpush3.bf16.msra.mxu1 %v14705_v45  ;;  %v14743_v45 = vld [vmem:[%s20361_s6 + $0x528] sm:$0xff]  }
 0x860   : > { %14069 = vmatprep.subr.bf16.mxu1 %v20461_v59 }
 0x861   : > { %14090 = vmatpush3.bf16.msra.mxu0 %v14706_v51 }
 0x862   : > { %14091 = vmatprep.subr.bf16.mxu0 %v20461_v59 }
 0x863   : > { %14070 = vmatpush3.bf16.msra.mxu1 %v14707_v53 }
 0x864   : > { %14071 = vmatprep.subr.bf16.mxu1 %v20461_v59 }
 0x865   : > { %14092 = vmatpush3.bf16.msra.mxu0 %v14708_v8 }
 0x866   : > { %14093 = vmatprep.subr.bf16.mxu0 %v20461_v59 }
 0x867   : > { %v7916_v63 = vpop.f32.mrb[0].mxu0  ;;  %14072 = vmatpush3.bf16.msra.mxu1 %v14709_v30  ;;  %v14744_v30 = vld [vmem:[%s20361_s6 + $0x570] sm:$0xff]  }
 0x868   : > { %v13821_v27 = vpop.f32.mrb[1].mxu0  ;;  %14073 = vmatprep.subr.bf16.mxu1 %v20461_v59 }
 0x869   : > { %v7808_v48 = vpop.f32.mrb[252].mxu1  ;;  %v7919_v39 = vpop.f32.mrb[2].mxu0  ;;  %14094 = vmatpush3.bf16.msra.mxu0 %v14710_v28 }
 0x86a   : > { %v7814_v19 = vadd.f32 %v7808_v48, %v19932_v49  ;;  %v13801_v0 = vpop.f32.mrb[253].mxu1  ;;  %v13822_v38 = vpop.f32.mrb[3].mxu0  ;;  %14095 = vmatprep.subr.bf16.mxu0 %v20461_v59  ;;  %v14731_v49 = vld [vmem:[%s20361_s6 + $0x4b8] sm:$0xff]   ;;  %v14745_v48 = vld [vmem:[%s20361_s6 + $0x530] sm:$0xff]  }
 0x86b   : > { %v7811_v61 = vpop.f32.mrb[254].mxu1  ;;  %14074 = vmatpush3.bf16.msra.mxu1 %v14711_v24  ;;  %v14747_v0 = vld [vmem:[%s20361_s6 + $0x538] sm:$0xff]   ;;  %v14748_v38 = vld [vmem:[%s20361_s6 + $0x5c0] sm:$0xff]  }
 0x86c   : > { %v13802_v58 = vpop.f32.mrb[255].mxu1  ;;  %14075 = vmatprep.subr.bf16.mxu1 %v20461_v59  ;;  %v7922_v37 = vadd.f32 %v7916_v63, %v7814_v19  ;;  %v14746_v19 = vld [vmem:[%s20361_s6 + $0x578] sm:$0xff]   ;;  %v9777_v61 = vrot.slane %v20022_v21, 2 }
 0x86d   : > { %14096 = vmatpush3.bf16.msra.mxu0 %v14712_v29  ;;  %v9669_v58 = vrot.slane %v19643_v46, 2 }
 0x86e   : > { %14097 = vmatprep.subr.bf16.mxu0 %v20461_v59 }
 0x86f   : > { %14076 = vmatpush3.bf16.msra.mxu1 %v14713_v57  ;;  %v14749_v57 = vld [vmem:[%s20361_s6 + $0x580] sm:$0xff]  }
 0x870   : > { %14077 = vmatprep.subr.bf16.mxu1 %v20461_v59 }
 0x871   : > { %14098 = vmatpush3.bf16.msra.mxu0 %v14714_v22  ;;  %v14751_v22 = vld [vmem:[%s20361_s6 + $0x588] sm:$0xff]  }
 0x872   : > { %14123 = vmatprep.subr.bf16.mxu0 %v20461_v59 }
 0x873   : > { %14078 = vmatpush3.bf16.msra.mxu1 %v14715_v16  ;;  %v14752_v16 = vld [vmem:[%s20361_s6 + $0x5d0] sm:$0xff]  }
 0x874   : > { %14100 = vmatmul.mubr.bf16.vlgmr.msra.gmra.mrb[28].mxu0 %v20022_v21  ;;  %14103 = vmatprep.subr.bf16.mxu1 %v20461_v59 }
 0x875   : > { %14124 = vmatpush3.bf16.msra.mxu0 %v14716_v41  ;;  %14139 = vmatprep.mubr.msk.bf16.mxu0 %vm15135_vm0, %v20461_v59  ;;  %v14753_v41 = vld [vmem:[%s20361_s6 + $0x590] sm:$0xff]  }
 0x876   : > { %14080 = vmatmul.mubr.bf16.vlgmr.msra.gmra.mrb[24].mxu1 %v19643_v46  ;;  %14125 = vmatprep.subr.bf16.mxu0 %v20461_v59 }
 0x877   : > { %14104 = vmatpush3.bf16.msra.mxu1 %v14717_v32  ;;  %14119 = vmatprep.mubr.msk.bf16.mxu1 %vm15135_vm0, %v20461_v59  ;;  %v14754_v32 = vld [vmem:[%s20361_s6 + $0x5d8] sm:$0xff]  }
 0x878   : > { %14105 = vmatprep.subr.bf16.mxu1 %v20461_v59 }
 0x879   : > { %14126 = vmatpush3.bf16.msra.mxu0 %v14718_v3  ;;  %v14755_v3 = vld [vmem:[%s20361_s6 + $0x598] sm:$0xff]  }
 0x87a   : > { %14127 = vmatprep.subr.bf16.mxu0 %v20461_v59 }
 0x87b   : > { %14106 = vmatpush3.bf16.msra.mxu1 %v14719_v31  ;;  %v14756_v31 = vld [vmem:[%s20361_s6 + $0x5e0] sm:$0xff]  }
 0x87c   : > { %14107 = vmatprep.subr.bf16.mxu1 %v20461_v59 }
 0x87d   : > { %14128 = vmatpush3.bf16.msra.mxu0 %v14720_v14  ;;  %v14757_v14 = vld [vmem:[%s20361_s6 + $0x5a0] sm:$0xff]  }
 0x87e   : > { %14129 = vmatprep.subr.bf16.mxu0 %v20461_v59 }
 0x87f   : > { %14108 = vmatpush3.bf16.msra.mxu1 %v14721_v12  ;;  %v14758_v12 = vld [vmem:[%s20361_s6 + $0x5e8] sm:$0xff]  }
 0x880   : > { %14109 = vmatprep.subr.bf16.mxu1 %v20461_v59 }
 0x881   : > { %14130 = vmatpush3.bf16.msra.mxu0 %v14722_v17 }
 0x882   : > { %14131 = vmatprep.subr.bf16.mxu0 %v20461_v59 }
 0x883   : > { %14110 = vmatpush3.bf16.msra.mxu1 %v14723_v56  ;;  %v14759_v56 = vld [vmem:[%s20361_s6 + $0x5a8] sm:$0xff]  }
 0x884   : > { %14111 = vmatprep.subr.bf16.mxu1 %v20461_v59 }
 0x885   : > { %14132 = vmatpush3.bf16.msra.mxu0 %v14724_v36 }
 0x886   : > { %14133 = vmatprep.subr.bf16.mxu0 %v20461_v59 }
 0x887   : > { %v8132_v35 = vpop.f32.mrb[4].mxu0  ;;  %14112 = vmatpush3.bf16.msra.mxu1 %v14725_v18 }
 0x888   : > { %v13861_v1 = vpop.f32.mrb[5].mxu0  ;;  %14113 = vmatprep.subr.bf16.mxu1 %v20461_v59 }
 0x889   : > { %v8024_v54 = vpop.f32.mrb[0].mxu1  ;;  %v8135_v23 = vpop.f32.mrb[6].mxu0  ;;  %14134 = vmatpush3.bf16.msra.mxu0 %v14726_v11 }
 0x88a   : > { %v8030_v60 = vadd.f32 %v8024_v54, %v7922_v37  ;;  %v13841_v42 = vpop.f32.mrb[1].mxu1  ;;  %v13862_v6 = vpop.f32.mrb[7].mxu0  ;;  %14135 = vmatprep.subr.bf16.mxu0 %v20461_v59  ;;  %v14750_v37 = vld [vmem:[%s20361_s6 + $0x5c8] sm:$0xff]  }
 0x88b   : > { %v8027_v10 = vpop.f32.mrb[2].mxu1  ;;  %14114 = vmatpush3.bf16.msra.mxu1 %v14727_v4  ;;  %v14762_v6 = vld [vmem:[%s20361_s6 + $0x5f8] sm:$0xff]  }
 0x88c   : > { %v13842_v43 = vpop.f32.mrb[3].mxu1  ;;  %14115 = vmatprep.subr.bf16.mxu1 %v20461_v59  ;;  %v8138_v62 = vadd.f32 %v8132_v35, %v8030_v60  ;;  %v14760_v35 = vld [vmem:[%s20361_s6 + $0x5f0] sm:$0xff]   ;;  %v14763_v10 = vld [vmem:[%s20361_s6 + $0x5b8] sm:$0xff]  }
 0x88d   : > { %14136 = vmatpush3.bf16.msra.mxu0 %v14728_v13  ;;  %v14761_v13 = vld [vmem:[%s20361_s6 + $0x5b0] sm:$0xff]   ;;  %v14764_v43 = vld [vmem:[%s20361_s6 + $0x600] sm:$0xff]  }
 0x88e   : > { %14137 = vmatprep.subr.bf16.mxu0 %v20461_v59 }
 0x88f   : > { %14116 = vmatpush3.bf16.msra.mxu1 %v14729_v2  ;;  %v9993_v2 = vrot.slane %v20022_v21, 3  ;;  %v14765_v21 = vld [vmem:[%s20361_s6 + $0x608] sm:$0xff]  }
 0x890   : > { %14117 = vmatprep.subr.bf16.mxu1 %v20461_v59 }
 0x891   : > { %14138 = vmatpush3.bf16.msra.mxu0 %v14730_v25  ;;  %v14766_v25 = vld [vmem:[%s20361_s6 + $0x610] sm:$0xff]  }
 0x892   : > { %14163 = vmatprep.subr.bf16.mxu0 %v20461_v59 }
 0x893   : > { %14118 = vmatpush3.bf16.msra.mxu1 %v14731_v49  ;;  %v14767_v49 = vld [vmem:[%s20361_s6 + $0x618] sm:$0xff]  }
 0x894   : > { %14140 = vmatmul.mubr.bf16.vlgmr.msra.gmra.mrb[32].mxu0 %v9561_v34  ;;  %14143 = vmatprep.subr.bf16.mxu1 %v20461_v59 }
 0x895   : > { %14164 = vmatpush3.bf16.msra.mxu0 %v14732_v5  ;;  %14179 = vmatprep.mubr.msk.bf16.mxu0 %vm15135_vm0, %v20461_v59  ;;  %v14768_v5 = vld [vmem:[%s20361_s6 + $0x620] sm:$0xff]  }
 0x896   : > { %14120 = vmatmul.mubr.bf16.vlgmr.msra.gmra.mrb[28].mxu1 %v9453_v9  ;;  %14165 = vmatprep.subr.bf16.mxu0 %v20461_v59 }
 0x897   : > { %14144 = vmatpush3.bf16.msra.mxu1 %v14733_v47  ;;  %14159 = vmatprep.mubr.msk.bf16.mxu1 %vm15135_vm0, %v20461_v59  ;;  %v14769_v47 = vld [vmem:[%s20361_s6 + $0x628] sm:$0xff]  }
 0x898   : > { %14145 = vmatprep.subr.bf16.mxu1 %v20461_v59 }
 0x899   : > { %14166 = vmatpush3.bf16.msra.mxu0 %v14734_v55 }
 0x89a   : > { %14167 = vmatprep.subr.bf16.mxu0 %v20461_v59 }
 0x89b   : > { %14146 = vmatpush3.bf16.msra.mxu1 %v14735_v26 }
 0x89c   : > { %14147 = vmatprep.subr.bf16.mxu1 %v20461_v59 }
 0x89d   : > { %14168 = vmatpush3.bf16.msra.mxu0 %v14736_v44 }
 0x89e   : > { %14169 = vmatprep.subr.bf16.mxu0 %v20461_v59 }
 0x89f   : > { %14148 = vmatpush3.bf16.msra.mxu1 %v14737_v7 }
 0x8a0   : > { %14149 = vmatprep.subr.bf16.mxu1 %v20461_v59 }
 0x8a1   : > { %14170 = vmatpush3.bf16.msra.mxu0 %v14738_v33 }
 0x8a2   : > { %14171 = vmatprep.subr.bf16.mxu0 %v20461_v59 }
 0x8a3   : > { %14150 = vmatpush3.bf16.msra.mxu1 %v14739_v20 }
 0x8a4   : > { %14151 = vmatprep.subr.bf16.mxu1 %v20461_v59 }
 0x8a5   : > { %14172 = vmatpush3.bf16.msra.mxu0 %v14740_v50  ;;  %v14770_v50 = vld [vmem:[%s20361_s6 + $0x630] sm:$0xff]  }
 0x8a6   : > { %14173 = vmatprep.subr.bf16.mxu0 %v20461_v59 }
 0x8a7   : > { %v8348_v15 = vpop.f32.mrb[8].mxu0  ;;  %14152 = vmatpush3.bf16.msra.mxu1 %v14741_v52 }
 0x8a8   : > { %v13901_v51 = vpop.f32.mrb[9].mxu0  ;;  %14153 = vmatprep.subr.bf16.mxu1 %v20461_v59 }
 0x8a9   : > { %v8240_v53 = vpop.f32.mrb[4].mxu1  ;;  %v8351_v8 = vpop.f32.mrb[10].mxu0  ;;  %14174 = vmatpush3.bf16.msra.mxu0 %v14742_v40 }
 0x8aa   : > { %v8246_v28 = vadd.f32 %v8240_v53, %v8138_v62  ;;  %v13881_v63 = vpop.f32.mrb[5].mxu1  ;;  %v13902_v24 = vpop.f32.mrb[11].mxu0  ;;  %14175 = vmatprep.subr.bf16.mxu0 %v20461_v59  ;;  %v9885_v62 = vrot.slane %v19643_v46, 3 }
 0x8ab   : > { %v8243_v27 = vpop.f32.mrb[6].mxu1  ;;  %14154 = vmatpush3.bf16.msra.mxu1 %v14743_v45  ;;  %v10101_v45 = vrot.slane %v19643_v46, 4 }
 0x8ac   : > { %v13882_v39 = vpop.f32.mrb[7].mxu1  ;;  %14155 = vmatprep.subr.bf16.mxu1 %v20461_v59  ;;  %v8354_v29 = vadd.f32 %v8348_v15, %v8246_v28  ;;  %v14771_v15 = vld [vmem:[%s20361_s6 + $0x638] sm:$0xff]  }
 0x8ad   : > { %14176 = vmatpush3.bf16.msra.mxu0 %v14744_v30 }
 0x8ae   : > { %14177 = vmatprep.subr.bf16.mxu0 %v20461_v59 }
 0x8af   : > { %14156 = vmatpush3.bf16.msra.mxu1 %v14745_v48 }
 0x8b0   : > { %14157 = vmatprep.subr.bf16.mxu1 %v20461_v59 }
 0x8b1   : > { %14178 = vmatpush3.bf16.msra.mxu0 %v14746_v19 }
 0x8b2   : > { %14203 = vmatprep.subr.bf16.mxu0 %v20461_v59 }
 0x8b3   : > { %14158 = vmatpush3.bf16.msra.mxu1 %v14747_v0 }
 0x8b4   : > { %14180 = vmatmul.mubr.bf16.vlgmr.msra.gmra.mrb[36].mxu0 %v9777_v61  ;;  %14183 = vmatprep.subr.bf16.mxu1 %v20461_v59 }
 0x8b5   : > { %14204 = vmatpush3.bf16.msra.mxu0 %v14748_v38  ;;  %14219 = vmatprep.mubr.msk.bf16.mxu0 %vm15135_vm0, %v20461_v59 }
 0x8b6   : > { %14160 = vmatmul.mubr.bf16.vlgmr.msra.gmra.mrb[32].mxu1 %v9669_v58  ;;  %14205 = vmatprep.subr.bf16.mxu0 %v20461_v59 }
 0x8b7   : > { %14184 = vmatpush3.bf16.msra.mxu1 %v14749_v57  ;;  %14199 = vmatprep.mubr.msk.bf16.mxu1 %vm15135_vm0, %v20461_v59 }
 0x8b8   : > { %14185 = vmatprep.subr.bf16.mxu1 %v20461_v59 }
 0x8b9   : > { %14206 = vmatpush3.bf16.msra.mxu0 %v14750_v37 }
 0x8ba   : > { %14207 = vmatprep.subr.bf16.mxu0 %v20461_v59 }
 0x8bb   : > { %14186 = vmatpush3.bf16.msra.mxu1 %v14751_v22 }
 0x8bc   : > { %14187 = vmatprep.subr.bf16.mxu1 %v20461_v59 }
 0x8bd   : > { %14208 = vmatpush3.bf16.msra.mxu0 %v14752_v16  ;;  %v14772_v16 = vld [vmem:[%s20363_s8] sm:$0xff]  }
 0x8be   : > { %14209 = vmatprep.subr.bf16.mxu0 %v20461_v59 }
 0x8bf   : > { %14188 = vmatpush3.bf16.msra.mxu1 %v14753_v41  ;;  %v14773_v41 = vld [vmem:[%s20363_s8 + $0x8] sm:$0xff]  }
 0x8c0   : > { %14189 = vmatprep.subr.bf16.mxu1 %v20461_v59 }
 0x8c1   : > { %14210 = vmatpush3.bf16.msra.mxu0 %v14754_v32  ;;  %v14774_v32 = vld [vmem:[%s20363_s8 + $0x10] sm:$0xff]  }
 0x8c2   : > { %14211 = vmatprep.subr.bf16.mxu0 %v20461_v59 }
 0x8c3   : > { %14190 = vmatpush3.bf16.msra.mxu1 %v14755_v3  ;;  %v14775_v3 = vld [vmem:[%s20363_s8 + $0x18] sm:$0xff]  }
 0x8c4   : > { %14191 = vmatprep.subr.bf16.mxu1 %v20461_v59 }
 0x8c5   : > { %14212 = vmatpush3.bf16.msra.mxu0 %v14756_v31 }
 0x8c6   : > { %14213 = vmatprep.subr.bf16.mxu0 %v20461_v59 }
 0x8c7   : > { %v8564_v17 = vpop.f32.mrb[12].mxu0  ;;  %14192 = vmatpush3.bf16.msra.mxu1 %v14757_v14 }
 0x8c8   : > { %v13941_v36 = vpop.f32.mrb[13].mxu0  ;;  %14193 = vmatprep.subr.bf16.mxu1 %v20461_v59 }
 0x8c9   : > { %v8456_v18 = vpop.f32.mrb[8].mxu1  ;;  %v8567_v11 = vpop.f32.mrb[14].mxu0  ;;  %14214 = vmatpush3.bf16.msra.mxu0 %v14758_v12 }
 0x8ca   : > { %v8462_v4 = vadd.f32 %v8456_v18, %v8354_v29  ;;  %v13921_v1 = vpop.f32.mrb[9].mxu1  ;;  %v13942_v54 = vpop.f32.mrb[15].mxu0  ;;  %14215 = vmatprep.subr.bf16.mxu0 %v20461_v59 }
 0x8cb   : > { %v8459_v23 = vpop.f32.mrb[10].mxu1  ;;  %14194 = vmatpush3.bf16.msra.mxu1 %v14759_v56  ;;  %v14776_v1 = vld [vmem:[%s20363_s8 + $0x20] sm:$0xff]   ;;  %v14777_v54 = vld [vmem:[%s20363_s8 + $0x28] sm:$0xff]  }
 0x8cc   : > { %v13922_v60 = vpop.f32.mrb[11].mxu1  ;;  %14195 = vmatprep.subr.bf16.mxu1 %v20461_v59  ;;  %v8570_v42 = vadd.f32 %v8564_v17, %v8462_v4  ;;  %v14778_v23 = vld [vmem:[%s20363_s8 + $0x30] sm:$0xff]  }
 0x8cd   : > { %14216 = vmatpush3.bf16.msra.mxu0 %v14760_v35 }
 0x8ce   : > { %14217 = vmatprep.subr.bf16.mxu0 %v20461_v59 }
 0x8cf   : > { %14196 = vmatpush3.bf16.msra.mxu1 %v14761_v13  ;;  %v14779_v13 = vld [vmem:[%s20363_s8 + $0x38] sm:$0xff]  }
 0x8d0   : > { %14197 = vmatprep.subr.bf16.mxu1 %v20461_v59 }
 0x8d1   : > { %14218 = vmatpush3.bf16.msra.mxu0 %v14762_v6 }
 0x8d2   : > { %14243 = vmatprep.subr.bf16.mxu0 %v20461_v59 }
 0x8d3   : > { %14198 = vmatpush3.bf16.msra.mxu1 %v14763_v10 }
 0x8d4   : > { %14220 = vmatmul.mubr.bf16.vlgmr.msra.gmra.mrb[40].mxu0 %v9993_v2  ;;  %14223 = vmatprep.subr.bf16.mxu1 %v20461_v59 }
 0x8d5   : > { %14259 = vmatprep.mubr.msk.bf16.mxu0 %vm15135_vm0, %v20461_v59  ;;  %14244 = vmatpush3.bf16.msra.mxu0 %v14772_v16 }
 0x8d6   : > { %14200 = vmatmul.mubr.bf16.vlgmr.msra.gmra.mrb[36].mxu1 %v9885_v62  ;;  %14245 = vmatprep.subr.bf16.mxu0 %v20461_v59 }
 0x8d7   : > { %14224 = vmatpush3.bf16.msra.mxu1 %v14764_v43  ;;  %14239 = vmatprep.mubr.msk.bf16.mxu1 %vm15135_vm0, %v20461_v59 }
 0x8d8   : > { %14225 = vmatprep.subr.bf16.mxu1 %v20461_v59 }
 0x8d9   : > { %14246 = vmatpush3.bf16.msra.mxu0 %v14773_v41 }
 0x8da   : > { %14247 = vmatprep.subr.bf16.mxu0 %v20461_v59 }
 0x8db   : > { %14226 = vmatpush3.bf16.msra.mxu1 %v14765_v21 }
 0x8dc   : > { %14227 = vmatprep.subr.bf16.mxu1 %v20461_v59 }
 0x8dd   : > { %14248 = vmatpush3.bf16.msra.mxu0 %v14774_v32 }
 0x8de   : > { %14249 = vmatprep.subr.bf16.mxu0 %v20461_v59 }
 0x8df   : > { %14228 = vmatpush3.bf16.msra.mxu1 %v14766_v25 }
 0x8e0   : > { %14229 = vmatprep.subr.bf16.mxu1 %v20461_v59 }
 0x8e1   : > { %14250 = vmatpush3.bf16.msra.mxu0 %v14775_v3 }
 0x8e2   : > { %14251 = vmatprep.subr.bf16.mxu0 %v20461_v59 }
 0x8e3   : > { %14230 = vmatpush3.bf16.msra.mxu1 %v14767_v49 }
 0x8e4   : > { %14231 = vmatprep.subr.bf16.mxu1 %v20461_v59 }
 0x8e5   : > { %14252 = vmatpush3.bf16.msra.mxu0 %v14776_v1 }
 0x8e6   : > { %14253 = vmatprep.subr.bf16.mxu0 %v20461_v59 }
 0x8e7   : > { %v8780_v34 = vpop.f32.mrb[16].mxu0  ;;  %14232 = vmatpush3.bf16.msra.mxu1 %v14768_v5 }
 0x8e8   : > { %v13981_v9 = vpop.f32.mrb[17].mxu0  ;;  %14233 = vmatprep.subr.bf16.mxu1 %v20461_v59 }
 0x8e9   : > { %v8672_v55 = vpop.f32.mrb[12].mxu1  ;;  %v8783_v26 = vpop.f32.mrb[18].mxu0  ;;  %14254 = vmatpush3.bf16.msra.mxu0 %v14777_v54 }
 0x8ea   : > { %v8678_v44 = vadd.f32 %v8672_v55, %v8570_v42  ;;  %v13961_v7 = vpop.f32.mrb[13].mxu1  ;;  %v13982_v33 = vpop.f32.mrb[19].mxu0  ;;  %14255 = vmatprep.subr.bf16.mxu0 %v20461_v59 }
 0x8eb   : > { %v8675_v20 = vpop.f32.mrb[14].mxu1  ;;  %14234 = vmatpush3.bf16.msra.mxu1 %v14769_v47 }
 0x8ec   : > { %v13962_v52 = vpop.f32.mrb[15].mxu1  ;;  %14235 = vmatprep.subr.bf16.mxu1 %v20461_v59  ;;  %v8786_v40 = vadd.f32 %v8780_v34, %v8678_v44 }
 0x8ed   : > { %14256 = vmatpush3.bf16.msra.mxu0 %v14778_v23 }
 0x8ee   : > { %14257 = vmatprep.subr.bf16.mxu0 %v20461_v59 }
 0x8ef   : > { %14236 = vmatpush3.bf16.msra.mxu1 %v14770_v50 }
 0x8f0   : > { %14237 = vmatprep.subr.bf16.mxu1 %v20461_v59 }
 0x8f1   : > { %14258 = vmatpush3.bf16.msra.mxu0 %v14779_v13 }
 0x8f3   : > { %14238 = vmatpush3.bf16.msra.mxu1 %v14771_v15 }
 0x8f6   : > { %14240 = vmatmul.mubr.bf16.vlgmr.msra.gmra.mrb[40].mxu1 %v10101_v45 }
 0x907   : > { %v8996_v51 = vpop.f32.mrb[20].mxu0 }
 0x908   : > { %v14021_v53 = vpop.f32.mrb[21].mxu0 }
 0x909   : > { %v8888_v8 = vpop.f32.mrb[16].mxu1  ;;  %v8999_v30 = vpop.f32.mrb[22].mxu0 }
 0x90a   : > { %v8894_v28 = vadd.f32 %v8888_v8, %v8786_v40  ;;  %v14001_v63 = vpop.f32.mrb[17].mxu1  ;;  %v14022_v24 = vpop.f32.mrb[23].mxu0 }
 0x90b   : > { %v8891_v27 = vpop.f32.mrb[18].mxu1 }
 0x90c   : > { %v14002_v48 = vpop.f32.mrb[19].mxu1  ;;  %v9002_v39 = vadd.f32 %v8996_v51, %v8894_v28  ;;  %v380_v28 = vld [vmem:[%s20362_s7] sm:$0x1] }
 0x927   : > { %v9212_v29 = vpop.f32.mrb[24].mxu0 }
 0x928   : > { %v14061_v19 = vpop.f32.mrb[25].mxu0 }
 0x929   : > { %v9104_v0 = vpop.f32.mrb[20].mxu1  ;;  %v9215_v38 = vpop.f32.mrb[26].mxu0 }
 0x92a   : > { %v9110_v61 = vadd.f32 %v9104_v0, %v9002_v39  ;;  %v14041_v57 = vpop.f32.mrb[21].mxu1  ;;  %v14062_v58 = vpop.f32.mrb[27].mxu0  ;;  %v397_v38 = vld [vmem:[%s20364_s9] sm:$0x1] }
 0x92b   : > { %v9107_v37 = vpop.f32.mrb[22].mxu1 }
 0x92c   : > { %v14042_v46 = vpop.f32.mrb[23].mxu1  ;;  %v9218_v22 = vadd.f32 %v9212_v29, %v9110_v61 }
 0x947   : > { %v9428_v31 = vpop.f32.mrb[28].mxu0 }
 0x948   : > { %v14101_v14 = vpop.f32.mrb[29].mxu0 }
 0x949   : > { %v9318_v12 = vpop.f32.mrb[24].mxu1  ;;  %v9431_v17 = vpop.f32.mrb[30].mxu0 }
 0x94a   : > { %v9324_v56 = vadd.f32 %v9318_v12, %v9218_v22  ;;  %v14081_v36 = vpop.f32.mrb[25].mxu1  ;;  %v14102_v18 = vpop.f32.mrb[31].mxu0 }
 0x94b   : > { %v9321_v11 = vpop.f32.mrb[26].mxu1 }
 0x94c   : > { %v14082_v35 = vpop.f32.mrb[27].mxu1  ;;  %v9434_v4 = vadd.f32 %v9428_v31, %v9324_v56 }
 0x967   : > { %v9645_v60 = vpop.f32.mrb[32].mxu0 }
 0x968   : > { %v14141_v42 = vpop.f32.mrb[33].mxu0 }
 0x969   : > { %v9537_v6 = vpop.f32.mrb[28].mxu1  ;;  %v9648_v10 = vpop.f32.mrb[34].mxu0 }
 0x96a   : > { %v9543_v2 = vadd.f32 %v9537_v6, %v9434_v4  ;;  %v14121_v43 = vpop.f32.mrb[29].mxu1  ;;  %v14142_v62 = vpop.f32.mrb[35].mxu0 }
 0x96b   : > { %v9540_v21 = vpop.f32.mrb[30].mxu1 }
 0x96c   : > { %v14122_v25 = vpop.f32.mrb[31].mxu1  ;;  %v9651_v49 = vadd.f32 %v9645_v60, %v9543_v2 }
 0x987   : > { %v9861_v5 = vpop.f32.mrb[36].mxu0 }
 0x988   : > { %v14181_v34 = vpop.f32.mrb[37].mxu0 }
 0x989   : > { %v9753_v47 = vpop.f32.mrb[32].mxu1  ;;  %v9864_v9 = vpop.f32.mrb[38].mxu0 }
 0x98a   : > { %v9759_v55 = vadd.f32 %v9753_v47, %v9651_v49  ;;  %v14161_v26 = vpop.f32.mrb[33].mxu1  ;;  %v14182_v44 = vpop.f32.mrb[39].mxu0 }
 0x98b   : > { %v9756_v7 = vpop.f32.mrb[34].mxu1 }
 0x98c   : > { %v14162_v59 = vpop.f32.mrb[35].mxu1  ;;  %v9867_v33 = vadd.f32 %v9861_v5, %v9759_v55 }
 0x9a7   : > { %v10077_v20 = vpop.f32.mrb[40].mxu0 }
 0x9a8   : > { %v14221_v50 = vpop.f32.mrb[41].mxu0 }
 0x9a9   : > { %v9969_v52 = vpop.f32.mrb[36].mxu1  ;;  %v10080_v40 = vpop.f32.mrb[42].mxu0 }
 0x9aa   : > { %v9975_v15 = vadd.f32 %v9969_v52, %v9867_v33  ;;  %v14201_v45 = vpop.f32.mrb[37].mxu1  ;;  %v14222_v51 = vpop.f32.mrb[43].mxu0 }
 0x9ab   : > { %v9972_v53 = vpop.f32.mrb[38].mxu1 }
 0x9ac   : > { %v14202_v8 = vpop.f32.mrb[39].mxu1  ;;  %v10083_v30 = vadd.f32 %v10077_v20, %v9975_v15 }
 0x9c9   : > { %v10185_v63 = vpop.f32.mrb[40].mxu1 }
 0x9ca   : > { %v10191_v24 = vadd.f32 %v10185_v63, %v10083_v30  ;;  %v14241_v27 = vpop.f32.mrb[41].mxu1 }
 0x9cb   : > { %v10188_v48 = vpop.f32.mrb[42].mxu1 }
 0x9cc   : > { %v10192_v39 = vadd.f32 %v10191_v24, %v380_v28  ;;  %v14242_v29 = vpop.f32.mrb[43].mxu1 }
 0x9ce   : > { %15024 = vtanh.f32 %v10192_v39 }
 0x9d8   : > { %v15025_v19 = vpop.eup %15024 }
 0x9d9   : > { %v10194_v0 = vpack.c.bf16 %v15025_v19, %v15025_v19 }
 0x9db   : > { %14260 = vmatmul.mubr.bf16.vlgmr.msra.gmra.mrb[44].mxu0 %v10194_v0 }
 0xaae   : > { %v10277_v61 = vpop.f32.mrb[44].mxu0 }
 0xaaf   : > { %v10278_v57 = vadd.f32 %v10277_v61, %v397_v38  ;;  %v14261_v58 = vpop.f32.mrb[45].mxu0 }
 0xab0   : > { %v10280_v37 = vpop.f32.mrb[46].mxu0 }
 0xab1   : > { %10283 = vst [vmem:[%s351_s21] sm:$0x1] %v10278_v57  ;;  %v14262_v46 = vpop.f32.mrb[47].mxu0 }
 0xab2   : > { %15083 = shalt.err (!%p15080_p3)
}
 0xab3   : > { %s15084_s11 = scalar_lea.hbm %s20313_s28, 16  ;;  %s15088_s26 = scalar_lea.hbm %s20365_s10, 32 }
 0xab4   : > { %p15085_p4 = scmp.ne.s32.totalorder %s20313_s28, %s15084_s11  ;;  %p15089_p9 = scmp.lt.u32.totalorder %s20313_s28, %s20365_s10 }
 0xab5   : > { %p15090_p10 = scmp.lt.u32.totalorder %s15088_s26, %s15084_s11  ;;  %p15092_p12 = scmp.lt.u32.totalorder %s15084_s11, %s20313_s28 }
 0xab6   : > { %p15086_p7 = pnand %p15085_p4, %p15231_p5 }
 0xab7   : > { %p15091_p11 = por %p15090_p10, %p15089_p9 }
 0xab8   : > { %p15087_p8 = pneg %p15086_p7 }
 0xab9   : > { %p15093_p13 = por %p15092_p12, %p15091_p11 }
 0xabb   : > { %p15094_p0 = pnand %p15093_p13, %p15087_p8 }
 0xabd   : > { %15097 = shalt.err (!%p15094_p0)
}
 0xabe   : > { %14264 = dma.vmem_to_hbm [thread:$0]  (%p15231_p5), %s20315_s25, 16, %s20313_s28, %s10285_s29  }
 0xabf PF: > { %p14270_p1 = scmp.ge.s32.totalorder %s15132_s16, 2  ;;  %s10309_s17 = sand.u32 1, %s15120_s13  }
 0xac0   : > { %s10310_s12 = scalar_lea.sflag [#allocation4], %s10309_s17 }
 0xac1   : > { %p14267_p2 = pnand %p14270_p1, %p15235_p6 }
 0xac3   : > { %15115 = dma.done.wait (!%p14267_p2), %s10310_s12, 16  }
 0xac4   : > { %15117 = vsyncadd (!%p14267_p2), %s10310_s12, 4294967280  ;;  %p20_p3 = scmp.ge.s32.totalorder %s15218_s19, 4   ;;  %s20776_s13 = smov %s15124_s14 }
 0xac5   : > { %s20777_s14 = smov %s15128_s15  ;;  %s20778_s15 = smov %s15229_s22 }
 0xac6   : > { %s20779_s16 = smov %s15218_s19  ;;  %22 = sbr.rel (!%p20_p3) target bundleno = 3 (0x3), region = 143 }
 0xacd   :  { %10314 = vsyncpa [#allocation4], 1 }
 0xace   :  { %10316 = vsyncpa [#allocation4 + $0x1], 1 }

</bundles_post_ra>
